<compile_context>
chip_gen: v7x
topology: tpu7x:2x2x1
jax: 0.10.0
libtpu: 0.0.40
codegen_flags: <defaults>
</compile_context>

<pallas_src>
import functools

import jax
import jax.numpy as jnp
from jax import lax
from jax.experimental import pallas as pl
from jax.experimental.pallas import tpu as pltpu

_EPS = 1e-5
_PHASES = ((0, 0), (0, 1), (1, 0), (1, 1))   # output parity (py, px), phase-major
_TAPS = ((0, 0), (0, 1), (1, 0), (1, 1))     # effective 2x2 taps (ty, tx)


# --------------------------------------------------------------------------- #
# One-time weight preparation (perf review: don't rebuild GEMM operands per call)
# --------------------------------------------------------------------------- #
def _phase_weights(w_t):
    """ConvTranspose2d(k=4,s=2,p=1) weight (Cin,Cout,4,4) -> per-output-parity
    effective 2x2 kernels stacked as (4, 4*Cin, Cout); rows ordered (ty,tx,ci)."""
    mats = []
    for py, px in _PHASES:
        taps = [w_t[:, :, (3 - py) - 2 * ty, (3 - px) - 2 * tx] for ty, tx in _TAPS]
        mats.append(jnp.concatenate(taps, axis=0))           # (4*Cin, Cout)
    return jnp.stack(mats, axis=0)                           # (4, 4*Cin, Cout)


def init_params(key):
    k1, k2, k3, k4 = jax.random.split(key, 4)
    std = 0.02  # DCGAN-style init; BN affine params at PyTorch defaults.
    return {
        "w1": std * jax.random.normal(k1, (100, 256, 4, 4), jnp.float32),
        "w2": std * jax.random.normal(k2, (256, 128, 4, 4), jnp.float32),
        "w3": std * jax.random.normal(k3, (128, 64, 4, 4), jnp.float32),
        "w4": std * jax.random.normal(k4, (64, 3, 4, 4), jnp.float32),
        "g1": jnp.ones((256,), jnp.float32), "b1": jnp.zeros((256,), jnp.float32),
        "g2": jnp.ones((128,), jnp.float32), "b2": jnp.zeros((128,), jnp.float32),
        "g3": jnp.ones((64,), jnp.float32), "b3": jnp.zeros((64,), jnp.float32),
    }


def prepare_params(params):
    """MXU-ready bf16 GEMM operands + f32 BN params, computed once at init."""
    w1 = params["w1"]                                        # (100, 256, 4, 4)
    cin = w1.shape[0]
    b1 = jnp.transpose(w1, (0, 2, 3, 1)).reshape(cin, 16 * 256)   # cols (ky,kx,co)
    b1 = jnp.zeros((128, 16 * 256), jnp.float32).at[:cin].set(b1)  # pad K 100->128
    b4 = _phase_weights(params["w4"])                        # (4, 256, 3)
    b4 = jnp.pad(b4, ((0, 0), (0, 0), (0, 5)))               # pad Cout 3 -> 8
    return {
        "B1": b1.astype(jnp.bfloat16),                             # (128, 4096)
        "B2": _phase_weights(params["w2"]).astype(jnp.bfloat16),   # (4, 1024, 128)
        "B3": _phase_weights(params["w3"]).astype(jnp.bfloat16),   # (4,  512,  64)
        "B4": b4.astype(jnp.bfloat16),                             # (4,  256,   8)
        "g1": params["g1"].reshape(1, -1), "be1": params["b1"].reshape(1, -1),
        "g2": params["g2"].reshape(1, -1), "be2": params["b2"].reshape(1, -1),
        "g3": params["g3"].reshape(1, -1), "be3": params["b3"].reshape(1, -1),
    }


# --------------------------------------------------------------------------- #
# Layer 1: dense latent GEMM (N,128)@(128,4096) + BatchNorm (batch stats) + ReLU
# Batch-BN coupling + tiny size (~1 MiB weights, ~24 KiB/row) => single block.
# --------------------------------------------------------------------------- #
def _l1_kernel(a_ref, b_ref, g_ref, be_ref, o_ref, *, n_pix, c_out, count):
    y = jnp.dot(a_ref[...], b_ref[...], preferred_element_type=jnp.float32)
    col_s = jnp.sum(y, axis=0, keepdims=True)                # (1, n_pix*c_out)
    col_q = jnp.sum(y * y, axis=0, keepdims=True)
    s = jnp.zeros((1, c_out), jnp.float32)
    q = jnp.zeros((1, c_out), jnp.float32)
    for g in range(n_pix):                                   # per-channel stats
        sl = slice(g * c_out, (g + 1) * c_out)
        s = s + col_s[:, sl]
        q = q + col_q[:, sl]
    inv_n = 1.0 / count
    mean = s * inv_n
    var = jnp.maximum(q * inv_n - mean * mean, 0.0)          # clamp: cancellation
    scale = g_ref[...] * lax.rsqrt(var + _EPS)
    shift = be_ref[...] - mean * scale
    scale_t = jnp.concatenate([scale] * n_pix, axis=1)       # (1, n_pix*c_out)
    shift_t = jnp.concatenate([shift] * n_pix, axis=1)
    o_ref[...] = jnp.maximum(y * scale_t + shift_t, 0.0).astype(o_ref.dtype)


def _layer1(z, b1, gamma, beta):
    n, cin = z.shape
    kp, cols = b1.shape
    c_out = gamma.shape[1]
    n_pix = cols // c_out
    a = jnp.zeros((n, kp), jnp.bfloat16).at[:, :cin].set(z.astype(jnp.bfloat16))
    kernel = functools.partial(_l1_kernel, n_pix=n_pix, c_out=c_out,
                               count=float(n * n_pix))
    y = pl.pallas_call(
        kernel,
        out_shape=jax.ShapeDtypeStruct((n, cols), jnp.bfloat16),
        grid=(1,),
        in_specs=[
            pl.BlockSpec((n, kp), lambda i: (0, 0)),
            pl.BlockSpec((kp, cols), lambda i: (0, 0)),
            pl.BlockSpec((1, c_out), lambda i: (0, 0)),
            pl.BlockSpec((1, c_out), lambda i: (0, 0)),
        ],
        out_specs=pl.BlockSpec((n, cols), lambda i: (0, 0)),
        cost_estimate=pl.CostEstimate(
            flops=2 * n * kp * cols, transcendentals=0,
            bytes_accessed=n * kp * 2 + kp * cols * 2 + n * cols * 2),
    )(a, b1, gamma, beta)
    # Columns are ordered (ky, kx, co); for the 1x1 input (ky,kx) == (oy,ox),
    # so this reshape is a free NHWC view: (N, 4, 4, 256).
    return y.reshape(n, 4, 4, c_out)


# --------------------------------------------------------------------------- #
# Stride-2 deconv helpers: in-kernel phase gather + GEMM
# --------------------------------------------------------------------------- #
def _gather_phase(xp, py, px, h, w, c):
    """Build the (h*w, 4*c) im2col block of one output parity from the padded
    compact input held in VMEM (no HBM im2col)."""
    taps = [xp[py + ty:py + ty + h, px + tx:px + tx + w, :].reshape(h * w, c)
            for ty, tx in _TAPS]
    return jnp.concatenate(taps, axis=-1)


def _phase_gemm_stats_kernel(xp_ref, b_ref, raw_ref, st_ref, *, h, w, c):
    """Per batch element: 4 phase GEMMs -> raw bf16 activations + per-step
    partial BN statistics (sum, sum-of-squares)."""
    xp = xp_ref[...]                                         # (h+2, w+2, c) bf16
    c_out = raw_ref.shape[-1]
    s = jnp.zeros((1, c_out), jnp.float32)
    q = jnp.zeros((1, c_out), jnp.float32)
    for p, (py, px) in enumerate(_PHASES):
        a = _gather_phase(xp, py, px, h, w, c)               # (h*w, 4c)
        y = jnp.dot(a, b_ref[p], preferred_element_type=jnp.float32)
        raw_ref[p] = y.astype(raw_ref.dtype)
        s = s + jnp.sum(y, axis=0, keepdims=True)
        q = q + jnp.sum(y * y, axis=0, keepdims=True)
    st_ref[...] = jnp.concatenate([s, q], axis=0)            # (2, c_out)


def _bn_relu_kernel(raw_ref, st_ref, g_ref, be_ref, o_ref, *, count):
    """Reduce per-step stat partials (resident, tiny) and apply BN + ReLU."""
    st = jnp.sum(st_ref[...], axis=0)                        # (2, c_out)
    inv_n = 1.0 / count
    mean = st[0:1, :] * inv_n
    var = jnp.maximum(st[1:2, :] * inv_n - mean * mean, 0.0)
    scale = g_ref[...] * lax.rsqrt(var + _EPS)
    shift = be_ref[...] - mean * scale
    y = raw_ref[...].astype(jnp.float32) * scale + shift     # (4, hw, c_out)
    o_ref[...] = jnp.maximum(y, 0.0).astype(o_ref.dtype)


def _assemble(y, n, h, w, c):
    """(n, 4, h*w, c) phase-major -> (n, 2h, 2w, c) NHWC (parity interleave)."""
    y = y.reshape(n, 2, 2, h, w, c)
    y = jnp.transpose(y, (0, 3, 1, 4, 2, 5))                 # (n, h, py, w, px, c)
    return y.reshape(n, 2 * h, 2 * w, c)


def _deconv_bn_relu(x_nhwc, b_ph, gamma, beta):
    n, h, w, c = x_nhwc.shape
    c_out = b_ph.shape[-1]
    hw = h * w
    hp, wp = h + 2, w + 2
    xp = jnp.pad(x_nhwc, ((0, 0), (1, 1), (1, 1), (0, 0))).astype(jnp.bfloat16)

    # Pass 1: GEMM + partial stats. Fully parallel over batch (no cross-step
    # scratch), so it can be sharded across v7x's two TensorCores.
    gemm = functools.partial(_phase_gemm_stats_kernel, h=h, w=w, c=c)
    raw, stats = pl.pallas_call(
        gemm,
        out_shape=(jax.ShapeDtypeStruct((n, 4, hw, c_out), jnp.bfloat16),
                   jax.ShapeDtypeStruct((n, 2, c_out), jnp.float32)),
        grid=(n,),
        in_specs=[
            pl.BlockSpec((None, hp, wp, c), lambda b: (b, 0, 0, 0)),
            pl.BlockSpec((4, 4 * c, c_out), lambda b: (0, 0, 0)),
        ],
        out_specs=(
            pl.BlockSpec((None, 4, hw, c_out), lambda b: (b, 0, 0, 0)),
            pl.BlockSpec((None, 2, c_out), lambda b: (b, 0, 0)),
        ),
        compiler_params=pltpu.CompilerParams(dimension_semantics=("parallel",)),
        cost_estimate=pl.CostEstimate(
            flops=2 * n * 4 * hw * 4 * c * c_out, transcendentals=0,
            bytes_accessed=(n * hp * wp * c * 2 + 4 * 4 * c * c_out * 2
                            + n * 4 * hw * c_out * 2 + n * 2 * c_out * 4)),
    )(xp, b_ph)

    # Pass 2: cheap normalize + ReLU over the bf16 raw activations.
    norm = functools.partial(_bn_relu_kernel, count=float(n * 4 * hw))
    y = pl.pallas_call(
        norm,
        out_shape=jax.ShapeDtypeStruct((n, 4, hw, c_out), jnp.bfloat16),
        grid=(n,),
        in_specs=[
            pl.BlockSpec((None, 4, hw, c_out), lambda b: (b, 0, 0, 0)),
            pl.BlockSpec((n, 2, c_out), lambda b: (0, 0, 0)),
            pl.BlockSpec((1, c_out), lambda b: (0, 0)),
            pl.BlockSpec((1, c_out), lambda b: (0, 0)),
        ],
        out_specs=pl.BlockSpec((None, 4, hw, c_out), lambda b: (b, 0, 0, 0)),
        compiler_params=pltpu.CompilerParams(dimension_semantics=("parallel",)),
    )(raw, stats, gamma, beta)
    # TODO(synk): BatchNorm running-mean/var (momentum) buffers are not updated;
    # forward uses batch statistics (PyTorch training-mode semantics).
    return _assemble(y, n, h, w, c_out)


# --------------------------------------------------------------------------- #
# Final layer: stride-2 deconv + Tanh (no BN); 8-lane (3 real) f32 output.
# --------------------------------------------------------------------------- #
def _phase_tanh_kernel(xp_ref, b_ref, o_ref, *, h, w, c):
    xp = xp_ref[...]
    for p, (py, px) in enumerate(_PHASES):
        a = _gather_phase(xp, py, px, h, w, c)
        y = jnp.dot(a, b_ref[p], preferred_element_type=jnp.float32)
        o_ref[p] = jnp.tanh(y).astype(o_ref.dtype)


def _deconv_tanh(x_nhwc, b_ph, c_real):
    n, h, w, c = x_nhwc.shape
    c_pad = b_ph.shape[-1]                                   # 8 (3 real channels)
    hw = h * w
    hp, wp = h + 2, w + 2
    xp = jnp.pad(x_nhwc, ((0, 0), (1, 1), (1, 1), (0, 0))).astype(jnp.bfloat16)
    kernel = functools.partial(_phase_tanh_kernel, h=h, w=w, c=c)
    y = pl.pallas_call(
        kernel,
        out_shape=jax.ShapeDtypeStruct((n, 4, hw, c_pad), jnp.float32),
        grid=(n,),
        in_specs=[
            pl.BlockSpec((None, hp, wp, c), lambda b: (b, 0, 0, 0)),
            pl.BlockSpec((4, 4 * c, c_pad), lambda b: (0, 0, 0)),
        ],
        out_specs=pl.BlockSpec((None, 4, hw, c_pad), lambda b: (b, 0, 0, 0)),
        compiler_params=pltpu.CompilerParams(dimension_semantics=("parallel",)),
        cost_estimate=pl.CostEstimate(
            flops=2 * n * 4 * hw * 4 * c * c_pad,
            transcendentals=n * 4 * hw * c_pad,
            bytes_accessed=(n * hp * wp * c * 2 + 4 * 4 * c * c_pad * 2
                            + n * 4 * hw * c_pad * 4)),
    )(xp, b_ph)
    return _assemble(y, n, h, w, c_pad)[..., :c_real]


# ------------------------------- Generator ---------------------------------- #
def generator_forward(z_nchw, gp):
    n = z_nchw.shape[0]
    z = z_nchw.reshape(n, -1)                                        # (n, 100)
    x = _layer1(z, gp["B1"], gp["g1"], gp["be1"])                    # (n, 4, 4, 256)
    x = _deconv_bn_relu(x, gp["B2"], gp["g2"], gp["be2"])            # (n, 8, 8, 128)
    x = _deconv_bn_relu(x, gp["B3"], gp["g3"], gp["be3"])            # (n,16,16, 64)
    x = _deconv_tanh(x, gp["B4"], 3)                                 # (n,32,32,  3)
    return jnp.transpose(x, (0, 3, 1, 2)).astype(jnp.float32)        # NCHW


if __name__ == "__main__":
    key = jax.random.PRNGKey(0)
    pkey, xkey = jax.random.split(key)
    params = init_params(pkey)
    gparams = prepare_params(params)      # GEMM-ready weights, built once
    # Latent input, NCHW like the PyTorch module expects: (N, 100, 1, 1)
    x = jax.random.normal(xkey, (2, 100, 1, 1), jnp.float32)

    fwd = jax.jit(generator_forward)
    out = jax.block_until_ready(fwd(x, gparams))

    assert out.shape == (2, 3, 32, 32), out.shape
    assert bool(jnp.all(jnp.isfinite(out)))
    assert bool(jnp.all(jnp.abs(out) <= 1.0 + 1e-6))  # tanh range
    print("KERNEL_OK")
</pallas_src>

<mosaic_0001>
module attributes {stable_mosaic.version = 11 : i64} {
  func.func @_l1_kernel(%arg0: i32, %arg1: memref<2x128xbf16, #tpu.memory_space<vmem>>, %arg2: memref<128x4096xbf16, #tpu.memory_space<vmem>>, %arg3: memref<1x256xf32, #tpu.memory_space<vmem>>, %arg4: memref<1x256xf32, #tpu.memory_space<vmem>>, %arg5: memref<2x4096xbf16, #tpu.memory_space<vmem>>) attributes {dimension_semantics = [#tpu.dimension_semantics<arbitrary>], iteration_bounds = array<i64: 1>, scalar_prefetch = 0 : i64, scratch_operands = 0 : i64, tpu.core_type = #tpu.core_type<tc>, window_params = [{pipeline_mode = #tpu.pipeline_mode<synchronous>, transform_indices = @transform_0, window_bounds = array<i64: 2, 128>}, {pipeline_mode = #tpu.pipeline_mode<synchronous>, transform_indices = @transform_1, window_bounds = array<i64: 128, 4096>}, {pipeline_mode = #tpu.pipeline_mode<synchronous>, transform_indices = @transform_2, window_bounds = array<i64: 1, 256>}, {pipeline_mode = #tpu.pipeline_mode<synchronous>, transform_indices = @transform_3, window_bounds = array<i64: 1, 256>}, {pipeline_mode = #tpu.pipeline_mode<synchronous>, transform_indices = @transform_4, window_bounds = array<i64: 2, 4096>}]} {
    %c0 = arith.constant 0 : index
    %c0_0 = arith.constant 0 : index
    %0 = vector.load %arg1[%c0, %c0_0] : memref<2x128xbf16, #tpu.memory_space<vmem>>, vector<2x128xbf16>
    %c0_1 = arith.constant 0 : index
    %c0_2 = arith.constant 0 : index
    %1 = vector.load %arg2[%c0_1, %c0_2] : memref<128x4096xbf16, #tpu.memory_space<vmem>>, vector<128x4096xbf16>
    %cst = arith.constant dense<0.000000e+00> : vector<2x4096xf32>
    %2 = tpu.matmul %0, %1, %cst {dimension_numbers = #tpu.dot_dimension_numbers<[1], [0], [0], [1], [0, 0, 1, 1], [], []>} : vector<2x128xbf16>, vector<128x4096xbf16>, vector<2x4096xf32> -> vector<2x4096xf32>
    %cst_3 = arith.constant dense<0.000000e+00> : vector<4096xf32>
    %3 = vector.multi_reduction <add>, %2, %cst_3 [0] : vector<2x4096xf32> to vector<4096xf32>
    %4 = vector.shape_cast %3 : vector<4096xf32> to vector<1x4096xf32>
    %5 = arith.mulf %2, %2 : vector<2x4096xf32>
    %cst_4 = arith.constant dense<0.000000e+00> : vector<4096xf32>
    %6 = vector.multi_reduction <add>, %5, %cst_4 [0] : vector<2x4096xf32> to vector<4096xf32>
    %7 = vector.shape_cast %6 : vector<4096xf32> to vector<1x4096xf32>
    %cst_5 = arith.constant 0.000000e+00 : f32
    %8 = vector.broadcast %cst_5 : f32 to vector<1x256xf32>
    %cst_6 = arith.constant 0.000000e+00 : f32
    %9 = vector.broadcast %cst_6 : f32 to vector<1x256xf32>
    %10 = vector.extract_strided_slice %4 {offsets = [0, 0], sizes = [1, 256], strides = [1, 1]} : vector<1x4096xf32> to vector<1x256xf32>
    %11 = arith.addf %8, %10 : vector<1x256xf32>
    %12 = vector.extract_strided_slice %7 {offsets = [0, 0], sizes = [1, 256], strides = [1, 1]} : vector<1x4096xf32> to vector<1x256xf32>
    %13 = arith.addf %9, %12 : vector<1x256xf32>
    %14 = vector.extract_strided_slice %4 {offsets = [0, 256], sizes = [1, 256], strides = [1, 1]} : vector<1x4096xf32> to vector<1x256xf32>
    %15 = arith.addf %11, %14 : vector<1x256xf32>
    %16 = vector.extract_strided_slice %7 {offsets = [0, 256], sizes = [1, 256], strides = [1, 1]} : vector<1x4096xf32> to vector<1x256xf32>
    %17 = arith.addf %13, %16 : vector<1x256xf32>
    %18 = vector.extract_strided_slice %4 {offsets = [0, 512], sizes = [1, 256], strides = [1, 1]} : vector<1x4096xf32> to vector<1x256xf32>
    %19 = arith.addf %15, %18 : vector<1x256xf32>
    %20 = vector.extract_strided_slice %7 {offsets = [0, 512], sizes = [1, 256], strides = [1, 1]} : vector<1x4096xf32> to vector<1x256xf32>
    %21 = arith.addf %17, %20 : vector<1x256xf32>
    %22 = vector.extract_strided_slice %4 {offsets = [0, 768], sizes = [1, 256], strides = [1, 1]} : vector<1x4096xf32> to vector<1x256xf32>
    %23 = arith.addf %19, %22 : vector<1x256xf32>
    %24 = vector.extract_strided_slice %7 {offsets = [0, 768], sizes = [1, 256], strides = [1, 1]} : vector<1x4096xf32> to vector<1x256xf32>
    %25 = arith.addf %21, %24 : vector<1x256xf32>
    %26 = vector.extract_strided_slice %4 {offsets = [0, 1024], sizes = [1, 256], strides = [1, 1]} : vector<1x4096xf32> to vector<1x256xf32>
    %27 = arith.addf %23, %26 : vector<1x256xf32>
    %28 = vector.extract_strided_slice %7 {offsets = [0, 1024], sizes = [1, 256], strides = [1, 1]} : vector<1x4096xf32> to vector<1x256xf32>
    %29 = arith.addf %25, %28 : vector<1x256xf32>
    %30 = vector.extract_strided_slice %4 {offsets = [0, 1280], sizes = [1, 256], strides = [1, 1]} : vector<1x4096xf32> to vector<1x256xf32>
    %31 = arith.addf %27, %30 : vector<1x256xf32>
    %32 = vector.extract_strided_slice %7 {offsets = [0, 1280], sizes = [1, 256], strides = [1, 1]} : vector<1x4096xf32> to vector<1x256xf32>
    %33 = arith.addf %29, %32 : vector<1x256xf32>
    %34 = vector.extract_strided_slice %4 {offsets = [0, 1536], sizes = [1, 256], strides = [1, 1]} : vector<1x4096xf32> to vector<1x256xf32>
    %35 = arith.addf %31, %34 : vector<1x256xf32>
    %36 = vector.extract_strided_slice %7 {offsets = [0, 1536], sizes = [1, 256], strides = [1, 1]} : vector<1x4096xf32> to vector<1x256xf32>
    %37 = arith.addf %33, %36 : vector<1x256xf32>
    %38 = vector.extract_strided_slice %4 {offsets = [0, 1792], sizes = [1, 256], strides = [1, 1]} : vector<1x4096xf32> to vector<1x256xf32>
    %39 = arith.addf %35, %38 : vector<1x256xf32>
    %40 = vector.extract_strided_slice %7 {offsets = [0, 1792], sizes = [1, 256], strides = [1, 1]} : vector<1x4096xf32> to vector<1x256xf32>
    %41 = arith.addf %37, %40 : vector<1x256xf32>
    %42 = vector.extract_strided_slice %4 {offsets = [0, 2048], sizes = [1, 256], strides = [1, 1]} : vector<1x4096xf32> to vector<1x256xf32>
    %43 = arith.addf %39, %42 : vector<1x256xf32>
    %44 = vector.extract_strided_slice %7 {offsets = [0, 2048], sizes = [1, 256], strides = [1, 1]} : vector<1x4096xf32> to vector<1x256xf32>
    %45 = arith.addf %41, %44 : vector<1x256xf32>
    %46 = vector.extract_strided_slice %4 {offsets = [0, 2304], sizes = [1, 256], strides = [1, 1]} : vector<1x4096xf32> to vector<1x256xf32>
    %47 = arith.addf %43, %46 : vector<1x256xf32>
    %48 = vector.extract_strided_slice %7 {offsets = [0, 2304], sizes = [1, 256], strides = [1, 1]} : vector<1x4096xf32> to vector<1x256xf32>
    %49 = arith.addf %45, %48 : vector<1x256xf32>
    %50 = vector.extract_strided_slice %4 {offsets = [0, 2560], sizes = [1, 256], strides = [1, 1]} : vector<1x4096xf32> to vector<1x256xf32>
    %51 = arith.addf %47, %50 : vector<1x256xf32>
    %52 = vector.extract_strided_slice %7 {offsets = [0, 2560], sizes = [1, 256], strides = [1, 1]} : vector<1x4096xf32> to vector<1x256xf32>
    %53 = arith.addf %49, %52 : vector<1x256xf32>
    %54 = vector.extract_strided_slice %4 {offsets = [0, 2816], sizes = [1, 256], strides = [1, 1]} : vector<1x4096xf32> to vector<1x256xf32>
    %55 = arith.addf %51, %54 : vector<1x256xf32>
    %56 = vector.extract_strided_slice %7 {offsets = [0, 2816], sizes = [1, 256], strides = [1, 1]} : vector<1x4096xf32> to vector<1x256xf32>
    %57 = arith.addf %53, %56 : vector<1x256xf32>
    %58 = vector.extract_strided_slice %4 {offsets = [0, 3072], sizes = [1, 256], strides = [1, 1]} : vector<1x4096xf32> to vector<1x256xf32>
    %59 = arith.addf %55, %58 : vector<1x256xf32>
    %60 = vector.extract_strided_slice %7 {offsets = [0, 3072], sizes = [1, 256], strides = [1, 1]} : vector<1x4096xf32> to vector<1x256xf32>
    %61 = arith.addf %57, %60 : vector<1x256xf32>
    %62 = vector.extract_strided_slice %4 {offsets = [0, 3328], sizes = [1, 256], strides = [1, 1]} : vector<1x4096xf32> to vector<1x256xf32>
    %63 = arith.addf %59, %62 : vector<1x256xf32>
    %64 = vector.extract_strided_slice %7 {offsets = [0, 3328], sizes = [1, 256], strides = [1, 1]} : vector<1x4096xf32> to vector<1x256xf32>
    %65 = arith.addf %61, %64 : vector<1x256xf32>
    %66 = vector.extract_strided_slice %4 {offsets = [0, 3584], sizes = [1, 256], strides = [1, 1]} : vector<1x4096xf32> to vector<1x256xf32>
    %67 = arith.addf %63, %66 : vector<1x256xf32>
    %68 = vector.extract_strided_slice %7 {offsets = [0, 3584], sizes = [1, 256], strides = [1, 1]} : vector<1x4096xf32> to vector<1x256xf32>
    %69 = arith.addf %65, %68 : vector<1x256xf32>
    %70 = vector.extract_strided_slice %4 {offsets = [0, 3840], sizes = [1, 256], strides = [1, 1]} : vector<1x4096xf32> to vector<1x256xf32>
    %71 = arith.addf %67, %70 : vector<1x256xf32>
    %72 = vector.extract_strided_slice %7 {offsets = [0, 3840], sizes = [1, 256], strides = [1, 1]} : vector<1x4096xf32> to vector<1x256xf32>
    %73 = arith.addf %69, %72 : vector<1x256xf32>
    %cst_7 = arith.constant 3.125000e-02 : f32
    %74 = vector.broadcast %cst_7 : f32 to vector<1x256xf32>
    %75 = arith.mulf %71, %74 : vector<1x256xf32>
    %cst_8 = arith.constant 3.125000e-02 : f32
    %76 = vector.broadcast %cst_8 : f32 to vector<1x256xf32>
    %77 = arith.mulf %73, %76 : vector<1x256xf32>
    %78 = arith.mulf %75, %75 : vector<1x256xf32>
    %79 = arith.subf %77, %78 : vector<1x256xf32>
    %cst_9 = arith.constant 0.000000e+00 : f32
    %80 = vector.broadcast %cst_9 : f32 to vector<1x256xf32>
    %81 = arith.maximumf %79, %80 : vector<1x256xf32>
    %c0_10 = arith.constant 0 : index
    %c0_11 = arith.constant 0 : index
    %82 = vector.load %arg3[%c0_10, %c0_11] : memref<1x256xf32, #tpu.memory_space<vmem>>, vector<1x256xf32>
    %cst_12 = arith.constant 9.99999974E-6 : f32
    %83 = vector.broadcast %cst_12 : f32 to vector<1x256xf32>
    %84 = arith.addf %81, %83 : vector<1x256xf32>
    %85 = math.rsqrt %84 : vector<1x256xf32>
    %86 = arith.mulf %82, %85 : vector<1x256xf32>
    %c0_13 = arith.constant 0 : index
    %c0_14 = arith.constant 0 : index
    %87 = vector.load %arg4[%c0_13, %c0_14] : memref<1x256xf32, #tpu.memory_space<vmem>>, vector<1x256xf32>
    %88 = arith.mulf %75, %86 : vector<1x256xf32>
    %89 = arith.subf %87, %88 : vector<1x256xf32>
    %90 = tpu.concatenate %86, %86, %86, %86, %86, %86, %86, %86, %86, %86, %86, %86, %86, %86, %86, %86 in 1 : vector<1x256xf32>, vector<1x256xf32>, vector<1x256xf32>, vector<1x256xf32>, vector<1x256xf32>, vector<1x256xf32>, vector<1x256xf32>, vector<1x256xf32>, vector<1x256xf32>, vector<1x256xf32>, vector<1x256xf32>, vector<1x256xf32>, vector<1x256xf32>, vector<1x256xf32>, vector<1x256xf32>, vector<1x256xf32> -> vector<1x4096xf32>
    %91 = tpu.concatenate %89, %89, %89, %89, %89, %89, %89, %89, %89, %89, %89, %89, %89, %89, %89, %89 in 1 : vector<1x256xf32>, vector<1x256xf32>, vector<1x256xf32>, vector<1x256xf32>, vector<1x256xf32>, vector<1x256xf32>, vector<1x256xf32>, vector<1x256xf32>, vector<1x256xf32>, vector<1x256xf32>, vector<1x256xf32>, vector<1x256xf32>, vector<1x256xf32>, vector<1x256xf32>, vector<1x256xf32>, vector<1x256xf32> -> vector<1x4096xf32>
    %92 = vector.broadcast %90 : vector<1x4096xf32> to vector<2x4096xf32>
    %93 = arith.mulf %2, %92 : vector<2x4096xf32>
    %94 = vector.broadcast %91 : vector<1x4096xf32> to vector<2x4096xf32>
    %95 = arith.addf %93, %94 : vector<2x4096xf32>
    %cst_15 = arith.constant 0.000000e+00 : f32
    %96 = vector.broadcast %cst_15 : f32 to vector<2x4096xf32>
    %97 = arith.maximumf %95, %96 : vector<2x4096xf32>
    %98 = arith.truncf %97 : vector<2x4096xf32> to vector<2x4096xbf16>
    %c0_16 = arith.constant 0 : index
    %c0_17 = arith.constant 0 : index
    %99 = vector.load %arg5[%c0_16, %c0_17] : memref<2x4096xbf16, #tpu.memory_space<vmem>>, vector<2x4096xbf16>
    tpu.vector_store %arg5[%c0_16, %c0_17], %98 {strides = array<i32>} : memref<2x4096xbf16, #tpu.memory_space<vmem>>, vector<2x4096xbf16>,
    return
  }
  func.func @transform_0(%arg0: i32) -> (i32, i32) {
    %c0_i32 = arith.constant 0 : i32
    %c0_i32_0 = arith.constant 0 : i32
    %c0_i32_1 = arith.constant 0 : i32
    return %c0_i32, %c0_i32_0 : i32, i32
  }
  func.func @transform_1(%arg0: i32) -> (i32, i32) {
    %c0_i32 = arith.constant 0 : i32
    %c0_i32_0 = arith.constant 0 : i32
    %c0_i32_1 = arith.constant 0 : i32
    return %c0_i32, %c0_i32_0 : i32, i32
  }
  func.func @transform_2(%arg0: i32) -> (i32, i32) {
    %c0_i32 = arith.constant 0 : i32
    %c0_i32_0 = arith.constant 0 : i32
    %c0_i32_1 = arith.constant 0 : i32
    return %c0_i32, %c0_i32_0 : i32, i32
  }
  func.func @transform_3(%arg0: i32) -> (i32, i32) {
    %c0_i32 = arith.constant 0 : i32
    %c0_i32_0 = arith.constant 0 : i32
    %c0_i32_1 = arith.constant 0 : i32
    return %c0_i32, %c0_i32_0 : i32, i32
  }
  func.func @transform_4(%arg0: i32) -> (i32, i32) {
    %c0_i32 = arith.constant 0 : i32
    %c0_i32_0 = arith.constant 0 : i32
    %c0_i32_1 = arith.constant 0 : i32
    return %c0_i32, %c0_i32_0 : i32, i32
  }
}

module attributes {stable_mosaic.version = 11 : i64} {
  func.func @_phase_gemm_stats_kernel(%arg0: i32, %arg1: memref<1x6x6x256xbf16, #tpu.memory_space<vmem>>, %arg2: memref<4x1024x128xbf16, #tpu.memory_space<vmem>>, %arg3: memref<1x4x16x128xbf16, #tpu.memory_space<vmem>>, %arg4: memref<1x2x128xf32, #tpu.memory_space<vmem>>) attributes {dimension_semantics = [#tpu.dimension_semantics<parallel>], iteration_bounds = array<i64: 2>, scalar_prefetch = 0 : i64, scratch_operands = 0 : i64, tpu.core_type = #tpu.core_type<tc>, window_params = [{transform_indices = @transform_0, window_bounds = array<i64: 1, 6, 6, 256>}, {pipeline_mode = #tpu.pipeline_mode<synchronous>, transform_indices = @transform_1, window_bounds = array<i64: 4, 1024, 128>}, {transform_indices = @transform_2, window_bounds = array<i64: 1, 4, 16, 128>}, {transform_indices = @transform_3, window_bounds = array<i64: 1, 2, 128>}]} {
    %c0 = arith.constant 0 : index
    %c0_0 = arith.constant 0 : index
    %c0_1 = arith.constant 0 : index
    %c0_2 = arith.constant 0 : index
    %0 = vector.load %arg1[%c0, %c0_0, %c0_1, %c0_2] : memref<1x6x6x256xbf16, #tpu.memory_space<vmem>>, vector<1x6x6x256xbf16>
    %1 = vector.shape_cast %0 : vector<1x6x6x256xbf16> to vector<6x6x256xbf16>
    %cst = arith.constant 0.000000e+00 : f32
    %2 = vector.broadcast %cst : f32 to vector<1x128xf32>
    %cst_3 = arith.constant 0.000000e+00 : f32
    %3 = vector.broadcast %cst_3 : f32 to vector<1x128xf32>
    %4 = vector.extract_strided_slice %1 {offsets = [0, 0, 0], sizes = [4, 4, 256], strides = [1, 1, 1]} : vector<6x6x256xbf16> to vector<4x4x256xbf16>
    %5 = vector.shape_cast %4 : vector<4x4x256xbf16> to vector<16x256xbf16>
    %6 = vector.extract_strided_slice %1 {offsets = [0, 1, 0], sizes = [4, 4, 256], strides = [1, 1, 1]} : vector<6x6x256xbf16> to vector<4x4x256xbf16>
    %7 = vector.shape_cast %6 : vector<4x4x256xbf16> to vector<16x256xbf16>
    %8 = vector.extract_strided_slice %1 {offsets = [1, 0, 0], sizes = [4, 4, 256], strides = [1, 1, 1]} : vector<6x6x256xbf16> to vector<4x4x256xbf16>
    %9 = vector.shape_cast %8 : vector<4x4x256xbf16> to vector<16x256xbf16>
    %10 = vector.extract_strided_slice %1 {offsets = [1, 1, 0], sizes = [4, 4, 256], strides = [1, 1, 1]} : vector<6x6x256xbf16> to vector<4x4x256xbf16>
    %11 = vector.shape_cast %10 : vector<4x4x256xbf16> to vector<16x256xbf16>
    %12 = tpu.concatenate %5, %7, %9, %11 in 1 : vector<16x256xbf16>, vector<16x256xbf16>, vector<16x256xbf16>, vector<16x256xbf16> -> vector<16x1024xbf16>
    %c0_4 = arith.constant 0 : index
    %c0_5 = arith.constant 0 : index
    %c0_6 = arith.constant 0 : index
    %13 = vector.load %arg2[%c0_4, %c0_5, %c0_6] : memref<4x1024x128xbf16, #tpu.memory_space<vmem>>, vector<1x1024x128xbf16>
    %14 = vector.shape_cast %13 : vector<1x1024x128xbf16> to vector<1024x128xbf16>
    %cst_7 = arith.constant dense<0.000000e+00> : vector<16x128xf32>
    %15 = tpu.matmul %12, %14, %cst_7 {dimension_numbers = #tpu.dot_dimension_numbers<[1], [0], [0], [1], [0, 0, 1, 1], [], []>} : vector<16x1024xbf16>, vector<1024x128xbf16>, vector<16x128xf32> -> vector<16x128xf32>
    %16 = arith.truncf %15 : vector<16x128xf32> to vector<16x128xbf16>
    %c0_8 = arith.constant 0 : index
    %c0_9 = arith.constant 0 : index
    %c0_10 = arith.constant 0 : index
    %c0_11 = arith.constant 0 : index
    %17 = vector.load %arg3[%c0_8, %c0_9, %c0_10, %c0_11] : memref<1x4x16x128xbf16, #tpu.memory_space<vmem>>, vector<1x1x16x128xbf16>
    %18 = vector.shape_cast %17 : vector<1x1x16x128xbf16> to vector<16x128xbf16>
    %19 = vector.shape_cast %16 : vector<16x128xbf16> to vector<1x1x16x128xbf16>
    tpu.vector_store %arg3[%c0_8, %c0_9, %c0_10, %c0_11], %19 {strides = array<i32>} : memref<1x4x16x128xbf16, #tpu.memory_space<vmem>>, vector<1x1x16x128xbf16>,
    %cst_12 = arith.constant dense<0.000000e+00> : vector<128xf32>
    %20 = vector.multi_reduction <add>, %15, %cst_12 [0] : vector<16x128xf32> to vector<128xf32>
    %21 = vector.shape_cast %20 : vector<128xf32> to vector<1x128xf32>
    %22 = arith.addf %2, %21 : vector<1x128xf32>
    %23 = arith.mulf %15, %15 : vector<16x128xf32>
    %cst_13 = arith.constant dense<0.000000e+00> : vector<128xf32>
    %24 = vector.multi_reduction <add>, %23, %cst_13 [0] : vector<16x128xf32> to vector<128xf32>
    %25 = vector.shape_cast %24 : vector<128xf32> to vector<1x128xf32>
    %26 = arith.addf %3, %25 : vector<1x128xf32>
    %27 = vector.extract_strided_slice %1 {offsets = [0, 1, 0], sizes = [4, 4, 256], strides = [1, 1, 1]} : vector<6x6x256xbf16> to vector<4x4x256xbf16>
    %28 = vector.shape_cast %27 : vector<4x4x256xbf16> to vector<16x256xbf16>
    %29 = vector.extract_strided_slice %1 {offsets = [0, 2, 0], sizes = [4, 4, 256], strides = [1, 1, 1]} : vector<6x6x256xbf16> to vector<4x4x256xbf16>
    %30 = vector.shape_cast %29 : vector<4x4x256xbf16> to vector<16x256xbf16>
    %31 = vector.extract_strided_slice %1 {offsets = [1, 1, 0], sizes = [4, 4, 256], strides = [1, 1, 1]} : vector<6x6x256xbf16> to vector<4x4x256xbf16>
    %32 = vector.shape_cast %31 : vector<4x4x256xbf16> to vector<16x256xbf16>
    %33 = vector.extract_strided_slice %1 {offsets = [1, 2, 0], sizes = [4, 4, 256], strides = [1, 1, 1]} : vector<6x6x256xbf16> to vector<4x4x256xbf16>
    %34 = vector.shape_cast %33 : vector<4x4x256xbf16> to vector<16x256xbf16>
    %35 = tpu.concatenate %28, %30, %32, %34 in 1 : vector<16x256xbf16>, vector<16x256xbf16>, vector<16x256xbf16>, vector<16x256xbf16> -> vector<16x1024xbf16>
    %c1 = arith.constant 1 : index
    %c0_14 = arith.constant 0 : index
    %c0_15 = arith.constant 0 : index
    %36 = vector.load %arg2[%c1, %c0_14, %c0_15] : memref<4x1024x128xbf16, #tpu.memory_space<vmem>>, vector<1x1024x128xbf16>
    %37 = vector.shape_cast %36 : vector<1x1024x128xbf16> to vector<1024x128xbf16>
    %cst_16 = arith.constant dense<0.000000e+00> : vector<16x128xf32>
    %38 = tpu.matmul %35, %37, %cst_16 {dimension_numbers = #tpu.dot_dimension_numbers<[1], [0], [0], [1], [0, 0, 1, 1], [], []>} : vector<16x1024xbf16>, vector<1024x128xbf16>, vector<16x128xf32> -> vector<16x128xf32>
    %39 = arith.truncf %38 : vector<16x128xf32> to vector<16x128xbf16>
    %c0_17 = arith.constant 0 : index
    %c1_18 = arith.constant 1 : index
    %c0_19 = arith.constant 0 : index
    %c0_20 = arith.constant 0 : index
    %40 = vector.load %arg3[%c0_17, %c1_18, %c0_19, %c0_20] : memref<1x4x16x128xbf16, #tpu.memory_space<vmem>>, vector<1x1x16x128xbf16>
    %41 = vector.shape_cast %40 : vector<1x1x16x128xbf16> to vector<16x128xbf16>
    %42 = vector.shape_cast %39 : vector<16x128xbf16> to vector<1x1x16x128xbf16>
    tpu.vector_store %arg3[%c0_17, %c1_18, %c0_19, %c0_20], %42 {strides = array<i32>} : memref<1x4x16x128xbf16, #tpu.memory_space<vmem>>, vector<1x1x16x128xbf16>,
    %cst_21 = arith.constant dense<0.000000e+00> : vector<128xf32>
    %43 = vector.multi_reduction <add>, %38, %cst_21 [0] : vector<16x128xf32> to vector<128xf32>
    %44 = vector.shape_cast %43 : vector<128xf32> to vector<1x128xf32>
    %45 = arith.addf %22, %44 : vector<1x128xf32>
    %46 = arith.mulf %38, %38 : vector<16x128xf32>
    %cst_22 = arith.constant dense<0.000000e+00> : vector<128xf32>
    %47 = vector.multi_reduction <add>, %46, %cst_22 [0] : vector<16x128xf32> to vector<128xf32>
    %48 = vector.shape_cast %47 : vector<128xf32> to vector<1x128xf32>
    %49 = arith.addf %26, %48 : vector<1x128xf32>
    %50 = vector.extract_strided_slice %1 {offsets = [1, 0, 0], sizes = [4, 4, 256], strides = [1, 1, 1]} : vector<6x6x256xbf16> to vector<4x4x256xbf16>
    %51 = vector.shape_cast %50 : vector<4x4x256xbf16> to vector<16x256xbf16>
    %52 = vector.extract_strided_slice %1 {offsets = [1, 1, 0], sizes = [4, 4, 256], strides = [1, 1, 1]} : vector<6x6x256xbf16> to vector<4x4x256xbf16>
    %53 = vector.shape_cast %52 : vector<4x4x256xbf16> to vector<16x256xbf16>
    %54 = vector.extract_strided_slice %1 {offsets = [2, 0, 0], sizes = [4, 4, 256], strides = [1, 1, 1]} : vector<6x6x256xbf16> to vector<4x4x256xbf16>
    %55 = vector.shape_cast %54 : vector<4x4x256xbf16> to vector<16x256xbf16>
    %56 = vector.extract_strided_slice %1 {offsets = [2, 1, 0], sizes = [4, 4, 256], strides = [1, 1, 1]} : vector<6x6x256xbf16> to vector<4x4x256xbf16>
    %57 = vector.shape_cast %56 : vector<4x4x256xbf16> to vector<16x256xbf16>
    %58 = tpu.concatenate %51, %53, %55, %57 in 1 : vector<16x256xbf16>, vector<16x256xbf16>, vector<16x256xbf16>, vector<16x256xbf16> -> vector<16x1024xbf16>
    %c2 = arith.constant 2 : index
    %c0_23 = arith.constant 0 : index
    %c0_24 = arith.constant 0 : index
    %59 = vector.load %arg2[%c2, %c0_23, %c0_24] : memref<4x1024x128xbf16, #tpu.memory_space<vmem>>, vector<1x1024x128xbf16>
    %60 = vector.shape_cast %59 : vector<1x1024x128xbf16> to vector<1024x128xbf16>
    %cst_25 = arith.constant dense<0.000000e+00> : vector<16x128xf32>
    %61 = tpu.matmul %58, %60, %cst_25 {dimension_numbers = #tpu.dot_dimension_numbers<[1], [0], [0], [1], [0, 0, 1, 1], [], []>} : vector<16x1024xbf16>, vector<1024x128xbf16>, vector<16x128xf32> -> vector<16x128xf32>
    %62 = arith.truncf %61 : vector<16x128xf32> to vector<16x128xbf16>
    %c0_26 = arith.constant 0 : index
    %c2_27 = arith.constant 2 : index
    %c0_28 = arith.constant 0 : index
    %c0_29 = arith.constant 0 : index
    %63 = vector.load %arg3[%c0_26, %c2_27, %c0_28, %c0_29] : memref<1x4x16x128xbf16, #tpu.memory_space<vmem>>, vector<1x1x16x128xbf16>
    %64 = vector.shape_cast %63 : vector<1x1x16x128xbf16> to vector<16x128xbf16>
    %65 = vector.shape_cast %62 : vector<16x128xbf16> to vector<1x1x16x128xbf16>
    tpu.vector_store %arg3[%c0_26, %c2_27, %c0_28, %c0_29], %65 {strides = array<i32>} : memref<1x4x16x128xbf16, #tpu.memory_space<vmem>>, vector<1x1x16x128xbf16>,
    %cst_30 = arith.constant dense<0.000000e+00> : vector<128xf32>
    %66 = vector.multi_reduction <add>, %61, %cst_30 [0] : vector<16x128xf32> to vector<128xf32>
    %67 = vector.shape_cast %66 : vector<128xf32> to vector<1x128xf32>
    %68 = arith.addf %45, %67 : vector<1x128xf32>
    %69 = arith.mulf %61, %61 : vector<16x128xf32>
    %cst_31 = arith.constant dense<0.000000e+00> : vector<128xf32>
    %70 = vector.multi_reduction <add>, %69, %cst_31 [0] : vector<16x128xf32> to vector<128xf32>
    %71 = vector.shape_cast %70 : vector<128xf32> to vector<1x128xf32>
    %72 = arith.addf %49, %71 : vector<1x128xf32>
    %73 = vector.extract_strided_slice %1 {offsets = [1, 1, 0], sizes = [4, 4, 256], strides = [1, 1, 1]} : vector<6x6x256xbf16> to vector<4x4x256xbf16>
    %74 = vector.shape_cast %73 : vector<4x4x256xbf16> to vector<16x256xbf16>
    %75 = vector.extract_strided_slice %1 {offsets = [1, 2, 0], sizes = [4, 4, 256], strides = [1, 1, 1]} : vector<6x6x256xbf16> to vector<4x4x256xbf16>
    %76 = vector.shape_cast %75 : vector<4x4x256xbf16> to vector<16x256xbf16>
    %77 = vector.extract_strided_slice %1 {offsets = [2, 1, 0], sizes = [4, 4, 256], strides = [1, 1, 1]} : vector<6x6x256xbf16> to vector<4x4x256xbf16>
    %78 = vector.shape_cast %77 : vector<4x4x256xbf16> to vector<16x256xbf16>
    %79 = vector.extract_strided_slice %1 {offsets = [2, 2, 0], sizes = [4, 4, 256], strides = [1, 1, 1]} : vector<6x6x256xbf16> to vector<4x4x256xbf16>
    %80 = vector.shape_cast %79 : vector<4x4x256xbf16> to vector<16x256xbf16>
    %81 = tpu.concatenate %74, %76, %78, %80 in 1 : vector<16x256xbf16>, vector<16x256xbf16>, vector<16x256xbf16>, vector<16x256xbf16> -> vector<16x1024xbf16>
    %c3 = arith.constant 3 : index
    %c0_32 = arith.constant 0 : index
    %c0_33 = arith.constant 0 : index
    %82 = vector.load %arg2[%c3, %c0_32, %c0_33] : memref<4x1024x128xbf16, #tpu.memory_space<vmem>>, vector<1x1024x128xbf16>
    %83 = vector.shape_cast %82 : vector<1x1024x128xbf16> to vector<1024x128xbf16>
    %cst_34 = arith.constant dense<0.000000e+00> : vector<16x128xf32>
    %84 = tpu.matmul %81, %83, %cst_34 {dimension_numbers = #tpu.dot_dimension_numbers<[1], [0], [0], [1], [0, 0, 1, 1], [], []>} : vector<16x1024xbf16>, vector<1024x128xbf16>, vector<16x128xf32> -> vector<16x128xf32>
    %85 = arith.truncf %84 : vector<16x128xf32> to vector<16x128xbf16>
    %c0_35 = arith.constant 0 : index
    %c3_36 = arith.constant 3 : index
    %c0_37 = arith.constant 0 : index
    %c0_38 = arith.constant 0 : index
    %86 = vector.load %arg3[%c0_35, %c3_36, %c0_37, %c0_38] : memref<1x4x16x128xbf16, #tpu.memory_space<vmem>>, vector<1x1x16x128xbf16>
    %87 = vector.shape_cast %86 : vector<1x1x16x128xbf16> to vector<16x128xbf16>
    %88 = vector.shape_cast %85 : vector<16x128xbf16> to vector<1x1x16x128xbf16>
    tpu.vector_store %arg3[%c0_35, %c3_36, %c0_37, %c0_38], %88 {strides = array<i32>} : memref<1x4x16x128xbf16, #tpu.memory_space<vmem>>, vector<1x1x16x128xbf16>,
    %cst_39 = arith.constant dense<0.000000e+00> : vector<128xf32>
    %89 = vector.multi_reduction <add>, %84, %cst_39 [0] : vector<16x128xf32> to vector<128xf32>
    %90 = vector.shape_cast %89 : vector<128xf32> to vector<1x128xf32>
    %91 = arith.addf %68, %90 : vector<1x128xf32>
    %92 = arith.mulf %84, %84 : vector<16x128xf32>
    %cst_40 = arith.constant dense<0.000000e+00> : vector<128xf32>
    %93 = vector.multi_reduction <add>, %92, %cst_40 [0] : vector<16x128xf32> to vector<128xf32>
    %94 = vector.shape_cast %93 : vector<128xf32> to vector<1x128xf32>
    %95 = arith.addf %72, %94 : vector<1x128xf32>
    %96 = tpu.concatenate %91, %95 in 0 : vector<1x128xf32>, vector<1x128xf32> -> vector<2x128xf32>
    %c0_41 = arith.constant 0 : index
    %c0_42 = arith.constant 0 : index
    %c0_43 = arith.constant 0 : index
    %97 = vector.load %arg4[%c0_41, %c0_42, %c0_43] : memref<1x2x128xf32, #tpu.memory_space<vmem>>, vector<1x2x128xf32>
    %98 = vector.shape_cast %97 : vector<1x2x128xf32> to vector<2x128xf32>
    %99 = vector.shape_cast %96 : vector<2x128xf32> to vector<1x2x128xf32>
    tpu.vector_store %arg4[%c0_41, %c0_42, %c0_43], %99 {strides = array<i32>} : memref<1x2x128xf32, #tpu.memory_space<vmem>>, vector<1x2x128xf32>,
    return
  }
  func.func @transform_0(%arg0: i32) -> (i32, i32, i32, i32) {
    %c0_i32 = arith.constant 0 : i32
    %c0_i32_0 = arith.constant 0 : i32
    %c0_i32_1 = arith.constant 0 : i32
    %c0_i32_2 = arith.constant 0 : i32
    return %arg0, %c0_i32, %c0_i32_0, %c0_i32_1 : i32, i32, i32, i32
  }
  func.func @transform_1(%arg0: i32) -> (i32, i32, i32) {
    %c0_i32 = arith.constant 0 : i32
    %c0_i32_0 = arith.constant 0 : i32
    %c0_i32_1 = arith.constant 0 : i32
    %c0_i32_2 = arith.constant 0 : i32
    return %c0_i32, %c0_i32_0, %c0_i32_1 : i32, i32, i32
  }
  func.func @transform_2(%arg0: i32) -> (i32, i32, i32, i32) {
    %c0_i32 = arith.constant 0 : i32
    %c0_i32_0 = arith.constant 0 : i32
    %c0_i32_1 = arith.constant 0 : i32
    %c0_i32_2 = arith.constant 0 : i32
    return %arg0, %c0_i32, %c0_i32_0, %c0_i32_1 : i32, i32, i32, i32
  }
  func.func @transform_3(%arg0: i32) -> (i32, i32, i32) {
    %c0_i32 = arith.constant 0 : i32
    %c0_i32_0 = arith.constant 0 : i32
    %c0_i32_1 = arith.constant 0 : i32
    return %arg0, %c0_i32, %c0_i32_0 : i32, i32, i32
  }
}

module attributes {stable_mosaic.version = 11 : i64} {
  func.func @_bn_relu_kernel(%arg0: i32, %arg1: memref<1x4x16x128xbf16, #tpu.memory_space<vmem>>, %arg2: memref<2x2x128xf32, #tpu.memory_space<vmem>>, %arg3: memref<1x128xf32, #tpu.memory_space<vmem>>, %arg4: memref<1x128xf32, #tpu.memory_space<vmem>>, %arg5: memref<1x4x16x128xbf16, #tpu.memory_space<vmem>>) attributes {dimension_semantics = [#tpu.dimension_semantics<parallel>], iteration_bounds = array<i64: 2>, scalar_prefetch = 0 : i64, scratch_operands = 0 : i64, tpu.core_type = #tpu.core_type<tc>, window_params = [{transform_indices = @transform_0, window_bounds = array<i64: 1, 4, 16, 128>}, {pipeline_mode = #tpu.pipeline_mode<synchronous>, transform_indices = @transform_1, window_bounds = array<i64: 2, 2, 128>}, {pipeline_mode = #tpu.pipeline_mode<synchronous>, transform_indices = @transform_2, window_bounds = array<i64: 1, 128>}, {pipeline_mode = #tpu.pipeline_mode<synchronous>, transform_indices = @transform_3, window_bounds = array<i64: 1, 128>}, {transform_indices = @transform_4, window_bounds = array<i64: 1, 4, 16, 128>}]} {
    %c0 = arith.constant 0 : index
    %c0_0 = arith.constant 0 : index
    %c0_1 = arith.constant 0 : index
    %0 = vector.load %arg2[%c0, %c0_0, %c0_1] : memref<2x2x128xf32, #tpu.memory_space<vmem>>, vector<2x2x128xf32>
    %cst = arith.constant dense<0.000000e+00> : vector<2x128xf32>
    %1 = vector.multi_reduction <add>, %0, %cst [0] : vector<2x2x128xf32> to vector<2x128xf32>
    %2 = vector.extract_strided_slice %1 {offsets = [0, 0], sizes = [1, 128], strides = [1, 1]} : vector<2x128xf32> to vector<1x128xf32>
    %cst_2 = arith.constant 7.812500e-03 : f32
    %3 = vector.broadcast %cst_2 : f32 to vector<1x128xf32>
    %4 = arith.mulf %2, %3 : vector<1x128xf32>
    %5 = vector.extract_strided_slice %1 {offsets = [1, 0], sizes = [1, 128], strides = [1, 1]} : vector<2x128xf32> to vector<1x128xf32>
    %cst_3 = arith.constant 7.812500e-03 : f32
    %6 = vector.broadcast %cst_3 : f32 to vector<1x128xf32>
    %7 = arith.mulf %5, %6 : vector<1x128xf32>
    %8 = arith.mulf %4, %4 : vector<1x128xf32>
    %9 = arith.subf %7, %8 : vector<1x128xf32>
    %cst_4 = arith.constant 0.000000e+00 : f32
    %10 = vector.broadcast %cst_4 : f32 to vector<1x128xf32>
    %11 = arith.maximumf %9, %10 : vector<1x128xf32>
    %c0_5 = arith.constant 0 : index
    %c0_6 = arith.constant 0 : index
    %12 = vector.load %arg3[%c0_5, %c0_6] : memref<1x128xf32, #tpu.memory_space<vmem>>, vector<1x128xf32>
    %cst_7 = arith.constant 9.99999974E-6 : f32
    %13 = vector.broadcast %cst_7 : f32 to vector<1x128xf32>
    %14 = arith.addf %11, %13 : vector<1x128xf32>
    %15 = math.rsqrt %14 : vector<1x128xf32>
    %16 = arith.mulf %12, %15 : vector<1x128xf32>
    %c0_8 = arith.constant 0 : index
    %c0_9 = arith.constant 0 : index
    %17 = vector.load %arg4[%c0_8, %c0_9] : memref<1x128xf32, #tpu.memory_space<vmem>>, vector<1x128xf32>
    %18 = arith.mulf %4, %16 : vector<1x128xf32>
    %19 = arith.subf %17, %18 : vector<1x128xf32>
    %c0_10 = arith.constant 0 : index
    %c0_11 = arith.constant 0 : index
    %c0_12 = arith.constant 0 : index
    %c0_13 = arith.constant 0 : index
    %20 = vector.load %arg1[%c0_10, %c0_11, %c0_12, %c0_13] : memref<1x4x16x128xbf16, #tpu.memory_space<vmem>>, vector<1x4x16x128xbf16>
    %21 = vector.shape_cast %20 : vector<1x4x16x128xbf16> to vector<4x16x128xbf16>
    %22 = arith.extf %21 : vector<4x16x128xbf16> to vector<4x16x128xf32>
    %23 = vector.shape_cast %16 : vector<1x128xf32> to vector<1x1x128xf32>
    %24 = vector.broadcast %23 : vector<1x1x128xf32> to vector<4x16x128xf32>
    %25 = arith.mulf %22, %24 : vector<4x16x128xf32>
    %26 = vector.shape_cast %19 : vector<1x128xf32> to vector<1x1x128xf32>
    %27 = vector.broadcast %26 : vector<1x1x128xf32> to vector<4x16x128xf32>
    %28 = arith.addf %25, %27 : vector<4x16x128xf32>
    %cst_14 = arith.constant 0.000000e+00 : f32
    %29 = vector.broadcast %cst_14 : f32 to vector<4x16x128xf32>
    %30 = arith.maximumf %28, %29 : vector<4x16x128xf32>
    %31 = arith.truncf %30 : vector<4x16x128xf32> to vector<4x16x128xbf16>
    %c0_15 = arith.constant 0 : index
    %c0_16 = arith.constant 0 : index
    %c0_17 = arith.constant 0 : index
    %c0_18 = arith.constant 0 : index
    %32 = vector.load %arg5[%c0_15, %c0_16, %c0_17, %c0_18] : memref<1x4x16x128xbf16, #tpu.memory_space<vmem>>, vector<1x4x16x128xbf16>
    %33 = vector.shape_cast %32 : vector<1x4x16x128xbf16> to vector<4x16x128xbf16>
    %34 = vector.shape_cast %31 : vector<4x16x128xbf16> to vector<1x4x16x128xbf16>
    tpu.vector_store %arg5[%c0_15, %c0_16, %c0_17, %c0_18], %34 {strides = array<i32>} : memref<1x4x16x128xbf16, #tpu.memory_space<vmem>>, vector<1x4x16x128xbf16>,
    return
  }
  func.func @transform_0(%arg0: i32) -> (i32, i32, i32, i32) {
    %c0_i32 = arith.constant 0 : i32
    %c0_i32_0 = arith.constant 0 : i32
    %c0_i32_1 = arith.constant 0 : i32
    %c0_i32_2 = arith.constant 0 : i32
    return %arg0, %c0_i32, %c0_i32_0, %c0_i32_1 : i32, i32, i32, i32
  }
  func.func @transform_1(%arg0: i32) -> (i32, i32, i32) {
    %c0_i32 = arith.constant 0 : i32
    %c0_i32_0 = arith.constant 0 : i32
    %c0_i32_1 = arith.constant 0 : i32
    %c0_i32_2 = arith.constant 0 : i32
    return %c0_i32, %c0_i32_0, %c0_i32_1 : i32, i32, i32
  }
  func.func @transform_2(%arg0: i32) -> (i32, i32) {
    %c0_i32 = arith.constant 0 : i32
    %c0_i32_0 = arith.constant 0 : i32
    %c0_i32_1 = arith.constant 0 : i32
    return %c0_i32, %c0_i32_0 : i32, i32
  }
  func.func @transform_3(%arg0: i32) -> (i32, i32) {
    %c0_i32 = arith.constant 0 : i32
    %c0_i32_0 = arith.constant 0 : i32
    %c0_i32_1 = arith.constant 0 : i32
    return %c0_i32, %c0_i32_0 : i32, i32
  }
  func.func @transform_4(%arg0: i32) -> (i32, i32, i32, i32) {
    %c0_i32 = arith.constant 0 : i32
    %c0_i32_0 = arith.constant 0 : i32
    %c0_i32_1 = arith.constant 0 : i32
    %c0_i32_2 = arith.constant 0 : i32
    return %arg0, %c0_i32, %c0_i32_0, %c0_i32_1 : i32, i32, i32, i32
  }
}

module attributes {stable_mosaic.version = 11 : i64} {
  func.func @_phase_gemm_stats_kernel(%arg0: i32, %arg1: memref<1x10x10x128xbf16, #tpu.memory_space<vmem>>, %arg2: memref<4x512x64xbf16, #tpu.memory_space<vmem>>, %arg3: memref<1x4x64x64xbf16, #tpu.memory_space<vmem>>, %arg4: memref<1x2x64xf32, #tpu.memory_space<vmem>>) attributes {dimension_semantics = [#tpu.dimension_semantics<parallel>], iteration_bounds = array<i64: 2>, scalar_prefetch = 0 : i64, scratch_operands = 0 : i64, tpu.core_type = #tpu.core_type<tc>, window_params = [{transform_indices = @transform_0, window_bounds = array<i64: 1, 10, 10, 128>}, {pipeline_mode = #tpu.pipeline_mode<synchronous>, transform_indices = @transform_1, window_bounds = array<i64: 4, 512, 64>}, {transform_indices = @transform_2, window_bounds = array<i64: 1, 4, 64, 64>}, {transform_indices = @transform_3, window_bounds = array<i64: 1, 2, 64>}]} {
    %c0 = arith.constant 0 : index
    %c0_0 = arith.constant 0 : index
    %c0_1 = arith.constant 0 : index
    %c0_2 = arith.constant 0 : index
    %0 = vector.load %arg1[%c0, %c0_0, %c0_1, %c0_2] : memref<1x10x10x128xbf16, #tpu.memory_space<vmem>>, vector<1x10x10x128xbf16>
    %1 = vector.shape_cast %0 : vector<1x10x10x128xbf16> to vector<10x10x128xbf16>
    %cst = arith.constant 0.000000e+00 : f32
    %2 = vector.broadcast %cst : f32 to vector<1x64xf32>
    %cst_3 = arith.constant 0.000000e+00 : f32
    %3 = vector.broadcast %cst_3 : f32 to vector<1x64xf32>
    %4 = vector.extract_strided_slice %1 {offsets = [0, 0, 0], sizes = [8, 8, 128], strides = [1, 1, 1]} : vector<10x10x128xbf16> to vector<8x8x128xbf16>
    %5 = vector.shape_cast %4 : vector<8x8x128xbf16> to vector<64x128xbf16>
    %6 = vector.extract_strided_slice %1 {offsets = [0, 1, 0], sizes = [8, 8, 128], strides = [1, 1, 1]} : vector<10x10x128xbf16> to vector<8x8x128xbf16>
    %7 = vector.shape_cast %6 : vector<8x8x128xbf16> to vector<64x128xbf16>
    %8 = vector.extract_strided_slice %1 {offsets = [1, 0, 0], sizes = [8, 8, 128], strides = [1, 1, 1]} : vector<10x10x128xbf16> to vector<8x8x128xbf16>
    %9 = vector.shape_cast %8 : vector<8x8x128xbf16> to vector<64x128xbf16>
    %10 = vector.extract_strided_slice %1 {offsets = [1, 1, 0], sizes = [8, 8, 128], strides = [1, 1, 1]} : vector<10x10x128xbf16> to vector<8x8x128xbf16>
    %11 = vector.shape_cast %10 : vector<8x8x128xbf16> to vector<64x128xbf16>
    %12 = tpu.concatenate %5, %7, %9, %11 in 1 : vector<64x128xbf16>, vector<64x128xbf16>, vector<64x128xbf16>, vector<64x128xbf16> -> vector<64x512xbf16>
    %c0_4 = arith.constant 0 : index
    %c0_5 = arith.constant 0 : index
    %c0_6 = arith.constant 0 : index
    %13 = vector.load %arg2[%c0_4, %c0_5, %c0_6] : memref<4x512x64xbf16, #tpu.memory_space<vmem>>, vector<1x512x64xbf16>
    %14 = vector.shape_cast %13 : vector<1x512x64xbf16> to vector<512x64xbf16>
    %cst_7 = arith.constant dense<0.000000e+00> : vector<64x64xf32>
    %15 = tpu.matmul %12, %14, %cst_7 {dimension_numbers = #tpu.dot_dimension_numbers<[1], [0], [0], [1], [0, 0, 1, 1], [], []>} : vector<64x512xbf16>, vector<512x64xbf16>, vector<64x64xf32> -> vector<64x64xf32>
    %16 = arith.truncf %15 : vector<64x64xf32> to vector<64x64xbf16>
    %c0_8 = arith.constant 0 : index
    %c0_9 = arith.constant 0 : index
    %c0_10 = arith.constant 0 : index
    %c0_11 = arith.constant 0 : index
    %17 = vector.load %arg3[%c0_8, %c0_9, %c0_10, %c0_11] : memref<1x4x64x64xbf16, #tpu.memory_space<vmem>>, vector<1x1x64x64xbf16>
    %18 = vector.shape_cast %17 : vector<1x1x64x64xbf16> to vector<64x64xbf16>
    %19 = vector.shape_cast %16 : vector<64x64xbf16> to vector<1x1x64x64xbf16>
    tpu.vector_store %arg3[%c0_8, %c0_9, %c0_10, %c0_11], %19 {strides = array<i32>} : memref<1x4x64x64xbf16, #tpu.memory_space<vmem>>, vector<1x1x64x64xbf16>,
    %cst_12 = arith.constant dense<0.000000e+00> : vector<64xf32>
    %20 = vector.multi_reduction <add>, %15, %cst_12 [0] : vector<64x64xf32> to vector<64xf32>
    %21 = vector.shape_cast %20 : vector<64xf32> to vector<1x64xf32>
    %22 = arith.addf %2, %21 : vector<1x64xf32>
    %23 = arith.mulf %15, %15 : vector<64x64xf32>
    %cst_13 = arith.constant dense<0.000000e+00> : vector<64xf32>
    %24 = vector.multi_reduction <add>, %23, %cst_13 [0] : vector<64x64xf32> to vector<64xf32>
    %25 = vector.shape_cast %24 : vector<64xf32> to vector<1x64xf32>
    %26 = arith.addf %3, %25 : vector<1x64xf32>
    %27 = vector.extract_strided_slice %1 {offsets = [0, 1, 0], sizes = [8, 8, 128], strides = [1, 1, 1]} : vector<10x10x128xbf16> to vector<8x8x128xbf16>
    %28 = vector.shape_cast %27 : vector<8x8x128xbf16> to vector<64x128xbf16>
    %29 = vector.extract_strided_slice %1 {offsets = [0, 2, 0], sizes = [8, 8, 128], strides = [1, 1, 1]} : vector<10x10x128xbf16> to vector<8x8x128xbf16>
    %30 = vector.shape_cast %29 : vector<8x8x128xbf16> to vector<64x128xbf16>
    %31 = vector.extract_strided_slice %1 {offsets = [1, 1, 0], sizes = [8, 8, 128], strides = [1, 1, 1]} : vector<10x10x128xbf16> to vector<8x8x128xbf16>
    %32 = vector.shape_cast %31 : vector<8x8x128xbf16> to vector<64x128xbf16>
    %33 = vector.extract_strided_slice %1 {offsets = [1, 2, 0], sizes = [8, 8, 128], strides = [1, 1, 1]} : vector<10x10x128xbf16> to vector<8x8x128xbf16>
    %34 = vector.shape_cast %33 : vector<8x8x128xbf16> to vector<64x128xbf16>
    %35 = tpu.concatenate %28, %30, %32, %34 in 1 : vector<64x128xbf16>, vector<64x128xbf16>, vector<64x128xbf16>, vector<64x128xbf16> -> vector<64x512xbf16>
    %c1 = arith.constant 1 : index
    %c0_14 = arith.constant 0 : index
    %c0_15 = arith.constant 0 : index
    %36 = vector.load %arg2[%c1, %c0_14, %c0_15] : memref<4x512x64xbf16, #tpu.memory_space<vmem>>, vector<1x512x64xbf16>
    %37 = vector.shape_cast %36 : vector<1x512x64xbf16> to vector<512x64xbf16>
    %cst_16 = arith.constant dense<0.000000e+00> : vector<64x64xf32>
    %38 = tpu.matmul %35, %37, %cst_16 {dimension_numbers = #tpu.dot_dimension_numbers<[1], [0], [0], [1], [0, 0, 1, 1], [], []>} : vector<64x512xbf16>, vector<512x64xbf16>, vector<64x64xf32> -> vector<64x64xf32>
    %39 = arith.truncf %38 : vector<64x64xf32> to vector<64x64xbf16>
    %c0_17 = arith.constant 0 : index
    %c1_18 = arith.constant 1 : index
    %c0_19 = arith.constant 0 : index
    %c0_20 = arith.constant 0 : index
    %40 = vector.load %arg3[%c0_17, %c1_18, %c0_19, %c0_20] : memref<1x4x64x64xbf16, #tpu.memory_space<vmem>>, vector<1x1x64x64xbf16>
    %41 = vector.shape_cast %40 : vector<1x1x64x64xbf16> to vector<64x64xbf16>
    %42 = vector.shape_cast %39 : vector<64x64xbf16> to vector<1x1x64x64xbf16>
    tpu.vector_store %arg3[%c0_17, %c1_18, %c0_19, %c0_20], %42 {strides = array<i32>} : memref<1x4x64x64xbf16, #tpu.memory_space<vmem>>, vector<1x1x64x64xbf16>,
    %cst_21 = arith.constant dense<0.000000e+00> : vector<64xf32>
    %43 = vector.multi_reduction <add>, %38, %cst_21 [0] : vector<64x64xf32> to vector<64xf32>
    %44 = vector.shape_cast %43 : vector<64xf32> to vector<1x64xf32>
    %45 = arith.addf %22, %44 : vector<1x64xf32>
    %46 = arith.mulf %38, %38 : vector<64x64xf32>
    %cst_22 = arith.constant dense<0.000000e+00> : vector<64xf32>
    %47 = vector.multi_reduction <add>, %46, %cst_22 [0] : vector<64x64xf32> to vector<64xf32>
    %48 = vector.shape_cast %47 : vector<64xf32> to vector<1x64xf32>
    %49 = arith.addf %26, %48 : vector<1x64xf32>
    %50 = vector.extract_strided_slice %1 {offsets = [1, 0, 0], sizes = [8, 8, 128], strides = [1, 1, 1]} : vector<10x10x128xbf16> to vector<8x8x128xbf16>
    %51 = vector.shape_cast %50 : vector<8x8x128xbf16> to vector<64x128xbf16>
    %52 = vector.extract_strided_slice %1 {offsets = [1, 1, 0], sizes = [8, 8, 128], strides = [1, 1, 1]} : vector<10x10x128xbf16> to vector<8x8x128xbf16>
    %53 = vector.shape_cast %52 : vector<8x8x128xbf16> to vector<64x128xbf16>
    %54 = vector.extract_strided_slice %1 {offsets = [2, 0, 0], sizes = [8, 8, 128], strides = [1, 1, 1]} : vector<10x10x128xbf16> to vector<8x8x128xbf16>
    %55 = vector.shape_cast %54 : vector<8x8x128xbf16> to vector<64x128xbf16>
    %56 = vector.extract_strided_slice %1 {offsets = [2, 1, 0], sizes = [8, 8, 128], strides = [1, 1, 1]} : vector<10x10x128xbf16> to vector<8x8x128xbf16>
    %57 = vector.shape_cast %56 : vector<8x8x128xbf16> to vector<64x128xbf16>
    %58 = tpu.concatenate %51, %53, %55, %57 in 1 : vector<64x128xbf16>, vector<64x128xbf16>, vector<64x128xbf16>, vector<64x128xbf16> -> vector<64x512xbf16>
    %c2 = arith.constant 2 : index
    %c0_23 = arith.constant 0 : index
    %c0_24 = arith.constant 0 : index
    %59 = vector.load %arg2[%c2, %c0_23, %c0_24] : memref<4x512x64xbf16, #tpu.memory_space<vmem>>, vector<1x512x64xbf16>
    %60 = vector.shape_cast %59 : vector<1x512x64xbf16> to vector<512x64xbf16>
    %cst_25 = arith.constant dense<0.000000e+00> : vector<64x64xf32>
    %61 = tpu.matmul %58, %60, %cst_25 {dimension_numbers = #tpu.dot_dimension_numbers<[1], [0], [0], [1], [0, 0, 1, 1], [], []>} : vector<64x512xbf16>, vector<512x64xbf16>, vector<64x64xf32> -> vector<64x64xf32>
    %62 = arith.truncf %61 : vector<64x64xf32> to vector<64x64xbf16>
    %c0_26 = arith.constant 0 : index
    %c2_27 = arith.constant 2 : index
    %c0_28 = arith.constant 0 : index
    %c0_29 = arith.constant 0 : index
    %63 = vector.load %arg3[%c0_26, %c2_27, %c0_28, %c0_29] : memref<1x4x64x64xbf16, #tpu.memory_space<vmem>>, vector<1x1x64x64xbf16>
    %64 = vector.shape_cast %63 : vector<1x1x64x64xbf16> to vector<64x64xbf16>
    %65 = vector.shape_cast %62 : vector<64x64xbf16> to vector<1x1x64x64xbf16>
    tpu.vector_store %arg3[%c0_26, %c2_27, %c0_28, %c0_29], %65 {strides = array<i32>} : memref<1x4x64x64xbf16, #tpu.memory_space<vmem>>, vector<1x1x64x64xbf16>,
    %cst_30 = arith.constant dense<0.000000e+00> : vector<64xf32>
    %66 = vector.multi_reduction <add>, %61, %cst_30 [0] : vector<64x64xf32> to vector<64xf32>
    %67 = vector.shape_cast %66 : vector<64xf32> to vector<1x64xf32>
    %68 = arith.addf %45, %67 : vector<1x64xf32>
    %69 = arith.mulf %61, %61 : vector<64x64xf32>
    %cst_31 = arith.constant dense<0.000000e+00> : vector<64xf32>
    %70 = vector.multi_reduction <add>, %69, %cst_31 [0] : vector<64x64xf32> to vector<64xf32>
    %71 = vector.shape_cast %70 : vector<64xf32> to vector<1x64xf32>
    %72 = arith.addf %49, %71 : vector<1x64xf32>
    %73 = vector.extract_strided_slice %1 {offsets = [1, 1, 0], sizes = [8, 8, 128], strides = [1, 1, 1]} : vector<10x10x128xbf16> to vector<8x8x128xbf16>
    %74 = vector.shape_cast %73 : vector<8x8x128xbf16> to vector<64x128xbf16>
    %75 = vector.extract_strided_slice %1 {offsets = [1, 2, 0], sizes = [8, 8, 128], strides = [1, 1, 1]} : vector<10x10x128xbf16> to vector<8x8x128xbf16>
    %76 = vector.shape_cast %75 : vector<8x8x128xbf16> to vector<64x128xbf16>
    %77 = vector.extract_strided_slice %1 {offsets = [2, 1, 0], sizes = [8, 8, 128], strides = [1, 1, 1]} : vector<10x10x128xbf16> to vector<8x8x128xbf16>
    %78 = vector.shape_cast %77 : vector<8x8x128xbf16> to vector<64x128xbf16>
    %79 = vector.extract_strided_slice %1 {offsets = [2, 2, 0], sizes = [8, 8, 128], strides = [1, 1, 1]} : vector<10x10x128xbf16> to vector<8x8x128xbf16>
    %80 = vector.shape_cast %79 : vector<8x8x128xbf16> to vector<64x128xbf16>
    %81 = tpu.concatenate %74, %76, %78, %80 in 1 : vector<64x128xbf16>, vector<64x128xbf16>, vector<64x128xbf16>, vector<64x128xbf16> -> vector<64x512xbf16>
    %c3 = arith.constant 3 : index
    %c0_32 = arith.constant 0 : index
    %c0_33 = arith.constant 0 : index
    %82 = vector.load %arg2[%c3, %c0_32, %c0_33] : memref<4x512x64xbf16, #tpu.memory_space<vmem>>, vector<1x512x64xbf16>
    %83 = vector.shape_cast %82 : vector<1x512x64xbf16> to vector<512x64xbf16>
    %cst_34 = arith.constant dense<0.000000e+00> : vector<64x64xf32>
    %84 = tpu.matmul %81, %83, %cst_34 {dimension_numbers = #tpu.dot_dimension_numbers<[1], [0], [0], [1], [0, 0, 1, 1], [], []>} : vector<64x512xbf16>, vector<512x64xbf16>, vector<64x64xf32> -> vector<64x64xf32>
    %85 = arith.truncf %84 : vector<64x64xf32> to vector<64x64xbf16>
    %c0_35 = arith.constant 0 : index
    %c3_36 = arith.constant 3 : index
    %c0_37 = arith.constant 0 : index
    %c0_38 = arith.constant 0 : index
    %86 = vector.load %arg3[%c0_35, %c3_36, %c0_37, %c0_38] : memref<1x4x64x64xbf16, #tpu.memory_space<vmem>>, vector<1x1x64x64xbf16>
    %87 = vector.shape_cast %86 : vector<1x1x64x64xbf16> to vector<64x64xbf16>
    %88 = vector.shape_cast %85 : vector<64x64xbf16> to vector<1x1x64x64xbf16>
    tpu.vector_store %arg3[%c0_35, %c3_36, %c0_37, %c0_38], %88 {strides = array<i32>} : memref<1x4x64x64xbf16, #tpu.memory_space<vmem>>, vector<1x1x64x64xbf16>,
    %cst_39 = arith.constant dense<0.000000e+00> : vector<64xf32>
    %89 = vector.multi_reduction <add>, %84, %cst_39 [0] : vector<64x64xf32> to vector<64xf32>
    %90 = vector.shape_cast %89 : vector<64xf32> to vector<1x64xf32>
    %91 = arith.addf %68, %90 : vector<1x64xf32>
    %92 = arith.mulf %84, %84 : vector<64x64xf32>
    %cst_40 = arith.constant dense<0.000000e+00> : vector<64xf32>
    %93 = vector.multi_reduction <add>, %92, %cst_40 [0] : vector<64x64xf32> to vector<64xf32>
    %94 = vector.shape_cast %93 : vector<64xf32> to vector<1x64xf32>
    %95 = arith.addf %72, %94 : vector<1x64xf32>
    %96 = tpu.concatenate %91, %95 in 0 : vector<1x64xf32>, vector<1x64xf32> -> vector<2x64xf32>
    %c0_41 = arith.constant 0 : index
    %c0_42 = arith.constant 0 : index
    %c0_43 = arith.constant 0 : index
    %97 = vector.load %arg4[%c0_41, %c0_42, %c0_43] : memref<1x2x64xf32, #tpu.memory_space<vmem>>, vector<1x2x64xf32>
    %98 = vector.shape_cast %97 : vector<1x2x64xf32> to vector<2x64xf32>
    %99 = vector.shape_cast %96 : vector<2x64xf32> to vector<1x2x64xf32>
    tpu.vector_store %arg4[%c0_41, %c0_42, %c0_43], %99 {strides = array<i32>} : memref<1x2x64xf32, #tpu.memory_space<vmem>>, vector<1x2x64xf32>,
    return
  }
  func.func @transform_0(%arg0: i32) -> (i32, i32, i32, i32) {
    %c0_i32 = arith.constant 0 : i32
    %c0_i32_0 = arith.constant 0 : i32
    %c0_i32_1 = arith.constant 0 : i32
    %c0_i32_2 = arith.constant 0 : i32
    return %arg0, %c0_i32, %c0_i32_0, %c0_i32_1 : i32, i32, i32, i32
  }
  func.func @transform_1(%arg0: i32) -> (i32, i32, i32) {
    %c0_i32 = arith.constant 0 : i32
    %c0_i32_0 = arith.constant 0 : i32
    %c0_i32_1 = arith.constant 0 : i32
    %c0_i32_2 = arith.constant 0 : i32
    return %c0_i32, %c0_i32_0, %c0_i32_1 : i32, i32, i32
  }
  func.func @transform_2(%arg0: i32) -> (i32, i32, i32, i32) {
    %c0_i32 = arith.constant 0 : i32
    %c0_i32_0 = arith.constant 0 : i32
    %c0_i32_1 = arith.constant 0 : i32
    %c0_i32_2 = arith.constant 0 : i32
    return %arg0, %c0_i32, %c0_i32_0, %c0_i32_1 : i32, i32, i32, i32
  }
  func.func @transform_3(%arg0: i32) -> (i32, i32, i32) {
    %c0_i32 = arith.constant 0 : i32
    %c0_i32_0 = arith.constant 0 : i32
    %c0_i32_1 = arith.constant 0 : i32
    return %arg0, %c0_i32, %c0_i32_0 : i32, i32, i32
  }
}

module attributes {stable_mosaic.version = 11 : i64} {
  func.func @_bn_relu_kernel(%arg0: i32, %arg1: memref<1x4x64x64xbf16, #tpu.memory_space<vmem>>, %arg2: memref<2x2x64xf32, #tpu.memory_space<vmem>>, %arg3: memref<1x64xf32, #tpu.memory_space<vmem>>, %arg4: memref<1x64xf32, #tpu.memory_space<vmem>>, %arg5: memref<1x4x64x64xbf16, #tpu.memory_space<vmem>>) attributes {dimension_semantics = [#tpu.dimension_semantics<parallel>], iteration_bounds = array<i64: 2>, scalar_prefetch = 0 : i64, scratch_operands = 0 : i64, tpu.core_type = #tpu.core_type<tc>, window_params = [{transform_indices = @transform_0, window_bounds = array<i64: 1, 4, 64, 64>}, {pipeline_mode = #tpu.pipeline_mode<synchronous>, transform_indices = @transform_1, window_bounds = array<i64: 2, 2, 64>}, {pipeline_mode = #tpu.pipeline_mode<synchronous>, transform_indices = @transform_2, window_bounds = array<i64: 1, 64>}, {pipeline_mode = #tpu.pipeline_mode<synchronous>, transform_indices = @transform_3, window_bounds = array<i64: 1, 64>}, {transform_indices = @transform_4, window_bounds = array<i64: 1, 4, 64, 64>}]} {
    %c0 = arith.constant 0 : index
    %c0_0 = arith.constant 0 : index
    %c0_1 = arith.constant 0 : index
    %0 = vector.load %arg2[%c0, %c0_0, %c0_1] : memref<2x2x64xf32, #tpu.memory_space<vmem>>, vector<2x2x64xf32>
    %cst = arith.constant dense<0.000000e+00> : vector<2x64xf32>
    %1 = vector.multi_reduction <add>, %0, %cst [0] : vector<2x2x64xf32> to vector<2x64xf32>
    %2 = vector.extract_strided_slice %1 {offsets = [0, 0], sizes = [1, 64], strides = [1, 1]} : vector<2x64xf32> to vector<1x64xf32>
    %cst_2 = arith.constant 0.001953125 : f32
    %3 = vector.broadcast %cst_2 : f32 to vector<1x64xf32>
    %4 = arith.mulf %2, %3 : vector<1x64xf32>
    %5 = vector.extract_strided_slice %1 {offsets = [1, 0], sizes = [1, 64], strides = [1, 1]} : vector<2x64xf32> to vector<1x64xf32>
    %cst_3 = arith.constant 0.001953125 : f32
    %6 = vector.broadcast %cst_3 : f32 to vector<1x64xf32>
    %7 = arith.mulf %5, %6 : vector<1x64xf32>
    %8 = arith.mulf %4, %4 : vector<1x64xf32>
    %9 = arith.subf %7, %8 : vector<1x64xf32>
    %cst_4 = arith.constant 0.000000e+00 : f32
    %10 = vector.broadcast %cst_4 : f32 to vector<1x64xf32>
    %11 = arith.maximumf %9, %10 : vector<1x64xf32>
    %c0_5 = arith.constant 0 : index
    %c0_6 = arith.constant 0 : index
    %12 = vector.load %arg3[%c0_5, %c0_6] : memref<1x64xf32, #tpu.memory_space<vmem>>, vector<1x64xf32>
    %cst_7 = arith.constant 9.99999974E-6 : f32
    %13 = vector.broadcast %cst_7 : f32 to vector<1x64xf32>
    %14 = arith.addf %11, %13 : vector<1x64xf32>
    %15 = math.rsqrt %14 : vector<1x64xf32>
    %16 = arith.mulf %12, %15 : vector<1x64xf32>
    %c0_8 = arith.constant 0 : index
    %c0_9 = arith.constant 0 : index
    %17 = vector.load %arg4[%c0_8, %c0_9] : memref<1x64xf32, #tpu.memory_space<vmem>>, vector<1x64xf32>
    %18 = arith.mulf %4, %16 : vector<1x64xf32>
    %19 = arith.subf %17, %18 : vector<1x64xf32>
    %c0_10 = arith.constant 0 : index
    %c0_11 = arith.constant 0 : index
    %c0_12 = arith.constant 0 : index
    %c0_13 = arith.constant 0 : index
    %20 = vector.load %arg1[%c0_10, %c0_11, %c0_12, %c0_13] : memref<1x4x64x64xbf16, #tpu.memory_space<vmem>>, vector<1x4x64x64xbf16>
    %21 = vector.shape_cast %20 : vector<1x4x64x64xbf16> to vector<4x64x64xbf16>
    %22 = arith.extf %21 : vector<4x64x64xbf16> to vector<4x64x64xf32>
    %23 = vector.shape_cast %16 : vector<1x64xf32> to vector<1x1x64xf32>
    %24 = vector.broadcast %23 : vector<1x1x64xf32> to vector<4x64x64xf32>
    %25 = arith.mulf %22, %24 : vector<4x64x64xf32>
    %26 = vector.shape_cast %19 : vector<1x64xf32> to vector<1x1x64xf32>
    %27 = vector.broadcast %26 : vector<1x1x64xf32> to vector<4x64x64xf32>
    %28 = arith.addf %25, %27 : vector<4x64x64xf32>
    %cst_14 = arith.constant 0.000000e+00 : f32
    %29 = vector.broadcast %cst_14 : f32 to vector<4x64x64xf32>
    %30 = arith.maximumf %28, %29 : vector<4x64x64xf32>
    %31 = arith.truncf %30 : vector<4x64x64xf32> to vector<4x64x64xbf16>
    %c0_15 = arith.constant 0 : index
    %c0_16 = arith.constant 0 : index
    %c0_17 = arith.constant 0 : index
    %c0_18 = arith.constant 0 : index
    %32 = vector.load %arg5[%c0_15, %c0_16, %c0_17, %c0_18] : memref<1x4x64x64xbf16, #tpu.memory_space<vmem>>, vector<1x4x64x64xbf16>
    %33 = vector.shape_cast %32 : vector<1x4x64x64xbf16> to vector<4x64x64xbf16>
    %34 = vector.shape_cast %31 : vector<4x64x64xbf16> to vector<1x4x64x64xbf16>
    tpu.vector_store %arg5[%c0_15, %c0_16, %c0_17, %c0_18], %34 {strides = array<i32>} : memref<1x4x64x64xbf16, #tpu.memory_space<vmem>>, vector<1x4x64x64xbf16>,
    return
  }
  func.func @transform_0(%arg0: i32) -> (i32, i32, i32, i32) {
    %c0_i32 = arith.constant 0 : i32
    %c0_i32_0 = arith.constant 0 : i32
    %c0_i32_1 = arith.constant 0 : i32
    %c0_i32_2 = arith.constant 0 : i32
    return %arg0, %c0_i32, %c0_i32_0, %c0_i32_1 : i32, i32, i32, i32
  }
  func.func @transform_1(%arg0: i32) -> (i32, i32, i32) {
    %c0_i32 = arith.constant 0 : i32
    %c0_i32_0 = arith.constant 0 : i32
    %c0_i32_1 = arith.constant 0 : i32
    %c0_i32_2 = arith.constant 0 : i32
    return %c0_i32, %c0_i32_0, %c0_i32_1 : i32, i32, i32
  }
  func.func @transform_2(%arg0: i32) -> (i32, i32) {
    %c0_i32 = arith.constant 0 : i32
    %c0_i32_0 = arith.constant 0 : i32
    %c0_i32_1 = arith.constant 0 : i32
    return %c0_i32, %c0_i32_0 : i32, i32
  }
  func.func @transform_3(%arg0: i32) -> (i32, i32) {
    %c0_i32 = arith.constant 0 : i32
    %c0_i32_0 = arith.constant 0 : i32
    %c0_i32_1 = arith.constant 0 : i32
    return %c0_i32, %c0_i32_0 : i32, i32
  }
  func.func @transform_4(%arg0: i32) -> (i32, i32, i32, i32) {
    %c0_i32 = arith.constant 0 : i32
    %c0_i32_0 = arith.constant 0 : i32
    %c0_i32_1 = arith.constant 0 : i32
    %c0_i32_2 = arith.constant 0 : i32
    return %arg0, %c0_i32, %c0_i32_0, %c0_i32_1 : i32, i32, i32, i32
  }
}

module attributes {stable_mosaic.version = 11 : i64} {
  func.func @_phase_tanh_kernel(%arg0: i32, %arg1: memref<1x18x18x64xbf16, #tpu.memory_space<vmem>>, %arg2: memref<4x256x8xbf16, #tpu.memory_space<vmem>>, %arg3: memref<1x4x256x8xf32, #tpu.memory_space<vmem>>) attributes {dimension_semantics = [#tpu.dimension_semantics<parallel>], iteration_bounds = array<i64: 2>, scalar_prefetch = 0 : i64, scratch_operands = 0 : i64, tpu.core_type = #tpu.core_type<tc>, window_params = [{transform_indices = @transform_0, window_bounds = array<i64: 1, 18, 18, 64>}, {pipeline_mode = #tpu.pipeline_mode<synchronous>, transform_indices = @transform_1, window_bounds = array<i64: 4, 256, 8>}, {transform_indices = @transform_2, window_bounds = array<i64: 1, 4, 256, 8>}]} {
    %c0 = arith.constant 0 : index
    %c0_0 = arith.constant 0 : index
    %c0_1 = arith.constant 0 : index
    %c0_2 = arith.constant 0 : index
    %0 = vector.load %arg1[%c0, %c0_0, %c0_1, %c0_2] : memref<1x18x18x64xbf16, #tpu.memory_space<vmem>>, vector<1x18x18x64xbf16>
    %1 = vector.shape_cast %0 : vector<1x18x18x64xbf16> to vector<18x18x64xbf16>
    %2 = vector.extract_strided_slice %1 {offsets = [0, 0, 0], sizes = [16, 16, 64], strides = [1, 1, 1]} : vector<18x18x64xbf16> to vector<16x16x64xbf16>
    %3 = vector.shape_cast %2 : vector<16x16x64xbf16> to vector<256x64xbf16>
    %4 = vector.extract_strided_slice %1 {offsets = [0, 1, 0], sizes = [16, 16, 64], strides = [1, 1, 1]} : vector<18x18x64xbf16> to vector<16x16x64xbf16>
    %5 = vector.shape_cast %4 : vector<16x16x64xbf16> to vector<256x64xbf16>
    %6 = vector.extract_strided_slice %1 {offsets = [1, 0, 0], sizes = [16, 16, 64], strides = [1, 1, 1]} : vector<18x18x64xbf16> to vector<16x16x64xbf16>
    %7 = vector.shape_cast %6 : vector<16x16x64xbf16> to vector<256x64xbf16>
    %8 = vector.extract_strided_slice %1 {offsets = [1, 1, 0], sizes = [16, 16, 64], strides = [1, 1, 1]} : vector<18x18x64xbf16> to vector<16x16x64xbf16>
    %9 = vector.shape_cast %8 : vector<16x16x64xbf16> to vector<256x64xbf16>
    %10 = tpu.concatenate %3, %5, %7, %9 in 1 : vector<256x64xbf16>, vector<256x64xbf16>, vector<256x64xbf16>, vector<256x64xbf16> -> vector<256x256xbf16>
    %c0_3 = arith.constant 0 : index
    %c0_4 = arith.constant 0 : index
    %c0_5 = arith.constant 0 : index
    %11 = vector.load %arg2[%c0_3, %c0_4, %c0_5] : memref<4x256x8xbf16, #tpu.memory_space<vmem>>, vector<1x256x8xbf16>
    %12 = vector.shape_cast %11 : vector<1x256x8xbf16> to vector<256x8xbf16>
    %cst = arith.constant dense<0.000000e+00> : vector<256x8xf32>
    %13 = tpu.matmul %10, %12, %cst {dimension_numbers = #tpu.dot_dimension_numbers<[1], [0], [0], [1], [0, 0, 1, 1], [], []>} : vector<256x256xbf16>, vector<256x8xbf16>, vector<256x8xf32> -> vector<256x8xf32>
    %14 = math.tanh %13 : vector<256x8xf32>
    %c0_6 = arith.constant 0 : index
    %c0_7 = arith.constant 0 : index
    %c0_8 = arith.constant 0 : index
    %c0_9 = arith.constant 0 : index
    %15 = vector.load %arg3[%c0_6, %c0_7, %c0_8, %c0_9] : memref<1x4x256x8xf32, #tpu.memory_space<vmem>>, vector<1x1x256x8xf32>
    %16 = vector.shape_cast %15 : vector<1x1x256x8xf32> to vector<256x8xf32>
    %17 = vector.shape_cast %14 : vector<256x8xf32> to vector<1x1x256x8xf32>
    tpu.vector_store %arg3[%c0_6, %c0_7, %c0_8, %c0_9], %17 {strides = array<i32>} : memref<1x4x256x8xf32, #tpu.memory_space<vmem>>, vector<1x1x256x8xf32>,
    %18 = vector.extract_strided_slice %1 {offsets = [0, 1, 0], sizes = [16, 16, 64], strides = [1, 1, 1]} : vector<18x18x64xbf16> to vector<16x16x64xbf16>
    %19 = vector.shape_cast %18 : vector<16x16x64xbf16> to vector<256x64xbf16>
    %20 = vector.extract_strided_slice %1 {offsets = [0, 2, 0], sizes = [16, 16, 64], strides = [1, 1, 1]} : vector<18x18x64xbf16> to vector<16x16x64xbf16>
    %21 = vector.shape_cast %20 : vector<16x16x64xbf16> to vector<256x64xbf16>
    %22 = vector.extract_strided_slice %1 {offsets = [1, 1, 0], sizes = [16, 16, 64], strides = [1, 1, 1]} : vector<18x18x64xbf16> to vector<16x16x64xbf16>
    %23 = vector.shape_cast %22 : vector<16x16x64xbf16> to vector<256x64xbf16>
    %24 = vector.extract_strided_slice %1 {offsets = [1, 2, 0], sizes = [16, 16, 64], strides = [1, 1, 1]} : vector<18x18x64xbf16> to vector<16x16x64xbf16>
    %25 = vector.shape_cast %24 : vector<16x16x64xbf16> to vector<256x64xbf16>
    %26 = tpu.concatenate %19, %21, %23, %25 in 1 : vector<256x64xbf16>, vector<256x64xbf16>, vector<256x64xbf16>, vector<256x64xbf16> -> vector<256x256xbf16>
    %c1 = arith.constant 1 : index
    %c0_10 = arith.constant 0 : index
    %c0_11 = arith.constant 0 : index
    %27 = vector.load %arg2[%c1, %c0_10, %c0_11] : memref<4x256x8xbf16, #tpu.memory_space<vmem>>, vector<1x256x8xbf16>
    %28 = vector.shape_cast %27 : vector<1x256x8xbf16> to vector<256x8xbf16>
    %cst_12 = arith.constant dense<0.000000e+00> : vector<256x8xf32>
    %29 = tpu.matmul %26, %28, %cst_12 {dimension_numbers = #tpu.dot_dimension_numbers<[1], [0], [0], [1], [0, 0, 1, 1], [], []>} : vector<256x256xbf16>, vector<256x8xbf16>, vector<256x8xf32> -> vector<256x8xf32>
    %30 = math.tanh %29 : vector<256x8xf32>
    %c0_13 = arith.constant 0 : index
    %c1_14 = arith.constant 1 : index
    %c0_15 = arith.constant 0 : index
    %c0_16 = arith.constant 0 : index
    %31 = vector.load %arg3[%c0_13, %c1_14, %c0_15, %c0_16] : memref<1x4x256x8xf32, #tpu.memory_space<vmem>>, vector<1x1x256x8xf32>
    %32 = vector.shape_cast %31 : vector<1x1x256x8xf32> to vector<256x8xf32>
    %33 = vector.shape_cast %30 : vector<256x8xf32> to vector<1x1x256x8xf32>
    tpu.vector_store %arg3[%c0_13, %c1_14, %c0_15, %c0_16], %33 {strides = array<i32>} : memref<1x4x256x8xf32, #tpu.memory_space<vmem>>, vector<1x1x256x8xf32>,
    %34 = vector.extract_strided_slice %1 {offsets = [1, 0, 0], sizes = [16, 16, 64], strides = [1, 1, 1]} : vector<18x18x64xbf16> to vector<16x16x64xbf16>
    %35 = vector.shape_cast %34 : vector<16x16x64xbf16> to vector<256x64xbf16>
    %36 = vector.extract_strided_slice %1 {offsets = [1, 1, 0], sizes = [16, 16, 64], strides = [1, 1, 1]} : vector<18x18x64xbf16> to vector<16x16x64xbf16>
    %37 = vector.shape_cast %36 : vector<16x16x64xbf16> to vector<256x64xbf16>
    %38 = vector.extract_strided_slice %1 {offsets = [2, 0, 0], sizes = [16, 16, 64], strides = [1, 1, 1]} : vector<18x18x64xbf16> to vector<16x16x64xbf16>
    %39 = vector.shape_cast %38 : vector<16x16x64xbf16> to vector<256x64xbf16>
    %40 = vector.extract_strided_slice %1 {offsets = [2, 1, 0], sizes = [16, 16, 64], strides = [1, 1, 1]} : vector<18x18x64xbf16> to vector<16x16x64xbf16>
    %41 = vector.shape_cast %40 : vector<16x16x64xbf16> to vector<256x64xbf16>
    %42 = tpu.concatenate %35, %37, %39, %41 in 1 : vector<256x64xbf16>, vector<256x64xbf16>, vector<256x64xbf16>, vector<256x64xbf16> -> vector<256x256xbf16>
    %c2 = arith.constant 2 : index
    %c0_17 = arith.constant 0 : index
    %c0_18 = arith.constant 0 : index
    %43 = vector.load %arg2[%c2, %c0_17, %c0_18] : memref<4x256x8xbf16, #tpu.memory_space<vmem>>, vector<1x256x8xbf16>
    %44 = vector.shape_cast %43 : vector<1x256x8xbf16> to vector<256x8xbf16>
    %cst_19 = arith.constant dense<0.000000e+00> : vector<256x8xf32>
    %45 = tpu.matmul %42, %44, %cst_19 {dimension_numbers = #tpu.dot_dimension_numbers<[1], [0], [0], [1], [0, 0, 1, 1], [], []>} : vector<256x256xbf16>, vector<256x8xbf16>, vector<256x8xf32> -> vector<256x8xf32>
    %46 = math.tanh %45 : vector<256x8xf32>
    %c0_20 = arith.constant 0 : index
    %c2_21 = arith.constant 2 : index
    %c0_22 = arith.constant 0 : index
    %c0_23 = arith.constant 0 : index
    %47 = vector.load %arg3[%c0_20, %c2_21, %c0_22, %c0_23] : memref<1x4x256x8xf32, #tpu.memory_space<vmem>>, vector<1x1x256x8xf32>
    %48 = vector.shape_cast %47 : vector<1x1x256x8xf32> to vector<256x8xf32>
    %49 = vector.shape_cast %46 : vector<256x8xf32> to vector<1x1x256x8xf32>
    tpu.vector_store %arg3[%c0_20, %c2_21, %c0_22, %c0_23], %49 {strides = array<i32>} : memref<1x4x256x8xf32, #tpu.memory_space<vmem>>, vector<1x1x256x8xf32>,
    %50 = vector.extract_strided_slice %1 {offsets = [1, 1, 0], sizes = [16, 16, 64], strides = [1, 1, 1]} : vector<18x18x64xbf16> to vector<16x16x64xbf16>
    %51 = vector.shape_cast %50 : vector<16x16x64xbf16> to vector<256x64xbf16>
    %52 = vector.extract_strided_slice %1 {offsets = [1, 2, 0], sizes = [16, 16, 64], strides = [1, 1, 1]} : vector<18x18x64xbf16> to vector<16x16x64xbf16>
    %53 = vector.shape_cast %52 : vector<16x16x64xbf16> to vector<256x64xbf16>
    %54 = vector.extract_strided_slice %1 {offsets = [2, 1, 0], sizes = [16, 16, 64], strides = [1, 1, 1]} : vector<18x18x64xbf16> to vector<16x16x64xbf16>
    %55 = vector.shape_cast %54 : vector<16x16x64xbf16> to vector<256x64xbf16>
    %56 = vector.extract_strided_slice %1 {offsets = [2, 2, 0], sizes = [16, 16, 64], strides = [1, 1, 1]} : vector<18x18x64xbf16> to vector<16x16x64xbf16>
    %57 = vector.shape_cast %56 : vector<16x16x64xbf16> to vector<256x64xbf16>
    %58 = tpu.concatenate %51, %53, %55, %57 in 1 : vector<256x64xbf16>, vector<256x64xbf16>, vector<256x64xbf16>, vector<256x64xbf16> -> vector<256x256xbf16>
    %c3 = arith.constant 3 : index
    %c0_24 = arith.constant 0 : index
    %c0_25 = arith.constant 0 : index
    %59 = vector.load %arg2[%c3, %c0_24, %c0_25] : memref<4x256x8xbf16, #tpu.memory_space<vmem>>, vector<1x256x8xbf16>
    %60 = vector.shape_cast %59 : vector<1x256x8xbf16> to vector<256x8xbf16>
    %cst_26 = arith.constant dense<0.000000e+00> : vector<256x8xf32>
    %61 = tpu.matmul %58, %60, %cst_26 {dimension_numbers = #tpu.dot_dimension_numbers<[1], [0], [0], [1], [0, 0, 1, 1], [], []>} : vector<256x256xbf16>, vector<256x8xbf16>, vector<256x8xf32> -> vector<256x8xf32>
    %62 = math.tanh %61 : vector<256x8xf32>
    %c0_27 = arith.constant 0 : index
    %c3_28 = arith.constant 3 : index
    %c0_29 = arith.constant 0 : index
    %c0_30 = arith.constant 0 : index
    %63 = vector.load %arg3[%c0_27, %c3_28, %c0_29, %c0_30] : memref<1x4x256x8xf32, #tpu.memory_space<vmem>>, vector<1x1x256x8xf32>
    %64 = vector.shape_cast %63 : vector<1x1x256x8xf32> to vector<256x8xf32>
    %65 = vector.shape_cast %62 : vector<256x8xf32> to vector<1x1x256x8xf32>
    tpu.vector_store %arg3[%c0_27, %c3_28, %c0_29, %c0_30], %65 {strides = array<i32>} : memref<1x4x256x8xf32, #tpu.memory_space<vmem>>, vector<1x1x256x8xf32>,
    return
  }
  func.func @transform_0(%arg0: i32) -> (i32, i32, i32, i32) {
    %c0_i32 = arith.constant 0 : i32
    %c0_i32_0 = arith.constant 0 : i32
    %c0_i32_1 = arith.constant 0 : i32
    %c0_i32_2 = arith.constant 0 : i32
    return %arg0, %c0_i32, %c0_i32_0, %c0_i32_1 : i32, i32, i32, i32
  }
  func.func @transform_1(%arg0: i32) -> (i32, i32, i32) {
    %c0_i32 = arith.constant 0 : i32
    %c0_i32_0 = arith.constant 0 : i32
    %c0_i32_1 = arith.constant 0 : i32
    %c0_i32_2 = arith.constant 0 : i32
    return %c0_i32, %c0_i32_0, %c0_i32_1 : i32, i32, i32
  }
  func.func @transform_2(%arg0: i32) -> (i32, i32, i32, i32) {
    %c0_i32 = arith.constant 0 : i32
    %c0_i32_0 = arith.constant 0 : i32
    %c0_i32_1 = arith.constant 0 : i32
    %c0_i32_2 = arith.constant 0 : i32
    return %arg0, %c0_i32, %c0_i32_0, %c0_i32_1 : i32, i32, i32, i32
  }
}

</mosaic_0001>

<bundles_post_ra>
// kernel: generator_forward.8
= control target key start
LH: loop header
LB: loop body
LE: loop exit
PB: predicated region body
PF: predicated region fallthrough
CT: control target
= control target key end

     0   :  { %s498_s15 = smov 0   ;;  %s534_s0 = inlined_call_operand.vmem [shape: bf16[2,4,16,128], index: 0, kind: input, shape index: {}]   ;;  %s535_s1 = inlined_call_operand.vmem [shape: f32[2,2,128], index: 1, kind: input, shape index: {}]   ;;  %s536_s2 = inlined_call_operand.vmem [shape: f32[1,128], index: 2, kind: input, shape index: {}]   ;;  %s537_s3 = inlined_call_operand.vmem [shape: f32[1,128], index: 3, kind: input, shape index: {}]   ;;  %s538_s4 = inlined_call_operand.vmem [shape: bf16[2,4,16,128], index: 4, kind: output, shape index: {}]  }
   0x1 LB: > { %s382_s16 = sadd.s32 4294967295, %s470_s15   ;;  %p386_p0 = scmp.ge.s32.totalorder %s470_s15, 1  ;;  %s470_s15 = sphi %s498_s15, %s14_s15  }
   0x2   : > { %p162_p1 = scmp.lt.s32.totalorder %s470_s15, 3 }
   0x4   : > { %p163_p2 = pnand %p386_p0, %p162_p1 }
   0x5   : > { %v198_v0 = vld [vmem:[%s535_s1] sm:$0x3] (!%p163_p2)  ;;  %v199_v1 = vld [vmem:[%s535_s1 + $0x2] sm:$0x3] (!%p163_p2)  ;;  %vm200_vm0 = vcmask (!%p163_p2), 1041408   ;;  %v218_v13 = vlaneseq (!%p163_p2)  ;;  %p188_p3 = scmp.lt.s32.totalorder (!%p163_p2), %s382_s16, 1 }
   0x6   : > { %166 = sbr.rel (%p163_p2) target bundleno = 54 (0x36), region = 36  ;;  %v201_v2 = vsel (!%p163_p2), %vm200_vm0, %v198_v0, 0.0  ;;  %v202_v3 = vsel (!%p163_p2), %vm200_vm0, %v199_v1, 0.0  ;;  %v472_v11 = vmov (!%p163_p2), 1966171168  }
   0x7   : > { %v203_v4 = vadd.f32 (!%p163_p2), %v202_v3, %v201_v2  ;;  %v216_v12 = vunpack.c.l.s4 (!%p163_p2), %v472_v11  ;;  %v219_v15 = vshrl.u32 (!%p163_p2), %v218_v13, 7  ;;  %v211_v20 = vld [vmem:[%s536_s2] sm:$0x1] (!%p163_p2) }
   0x8   : > { %v232_v31 = vld [vmem:[%s537_s3] sm:$0x1] (!%p163_p2) }
   0x9   : > { %v204_v5 = vmul.f32 (!%p163_p2), 0.0078125, %v203_v4  ;;  %v217_v14 = vunpack.c.0.s8 (!%p163_p2), %v216_v12  ;;  %v254_v24 = vsub.s32 (!%p163_p2), 0, %v219_v15 }
   0xb   : > { %v205_v6 = vmul.f32 (!%p163_p2), %v204_v5, %v204_v5  ;;  %v220_v16 = vsub.s32 (!%p163_p2), %v217_v14, %v219_v15 }
   0xd   : > { %v207_v7 = vrot.slane %v205_v6, 7  ;;  %s540_s16 = smov (!%p188_p3, %s382_s16), 1 }
   0xe   : > { %s401_s21 = sshll.u32 %s540_s16, 5 }
   0xf   : > { %v209_v8 = vsub.f32 %v204_v5, %v207_v7  ;;  %s192_s24 = scalar_lea.vmem %s534_s0, %s401_s21  ;;  %s197_s5 = scalar_lea.vmem %s538_s4, %s401_s21 }
  0x10   : > { %v412_v21 = vld [vmem:[%s192_s24] sm:$0xff]   ;;  %v447_v22 = vld [vmem:[%s192_s24 + $0x8] sm:$0xff]   ;;  %v448_v25 = vld [vmem:[%s192_s24 + $0x10] sm:$0xff]  }
  0x11   : > { %v210_v9 = vmax.f32 %v209_v8, 0.0  ;;  %v449_v26 = vld [vmem:[%s192_s24 + $0x18] sm:$0xff]   ;;  %v413_v28 = vunpack.c.l.bf16 %v412_v21  ;;  %v414_v29 = vunpack.c.h.bf16 %v412_v21  ;;  %v417_v30 = vunpack.c.l.bf16 %v447_v22 }
  0x12   : > { %v418_v32 = vunpack.c.h.bf16 %v447_v22  ;;  %v421_v33 = vunpack.c.l.bf16 %v448_v25  ;;  %v422_v34 = vunpack.c.h.bf16 %v448_v25  ;;  %v425_v35 = vunpack.c.l.bf16 %v449_v26 }
  0x13   : > { %v212_v10 = vadd.f32 1e-05, %v210_v9  ;;  %v426_v38 = vunpack.c.h.bf16 %v449_v26 }
  0x15   : > { %462 = vrsqrt.f32 %v212_v10 }
  0x1f   : > { %v463_v17 = vpop.eup %462 }
  0x20   : > { %v221_v18 = vrot.slane %v463_v17, %v220_v16 }
  0x22   : > { %v222_v19 = vcombine.high %v221_v18, %v221_v18 }
  0x24   : > { %v229_v23 = vrot.slane %v222_v19, %v220_v16 }
  0x26   : > { %v231_v27 = vmul.f32 %v229_v23, %v211_v20 }
  0x28   : > { %v233_v36 = vmul.f32 %v231_v27, %v204_v5  ;;  %v255_v37 = vrot.slane %v231_v27, %v254_v24 }
  0x2a   : > { %v234_v39 = vsub.f32 %v232_v31, %v233_v36  ;;  %v257_v40 = vmul.f32 %v413_v28, %v255_v37  ;;  %v258_v41 = vmul.f32 %v414_v29, %v255_v37  ;;  %v259_v42 = vmul.f32 %v417_v30, %v255_v37 }
  0x2b   : > { %v260_v43 = vmul.f32 %v418_v32, %v255_v37  ;;  %v261_v44 = vmul.f32 %v421_v33, %v255_v37  ;;  %v262_v45 = vmul.f32 %v422_v34, %v255_v37  ;;  %v263_v46 = vmul.f32 %v425_v35, %v255_v37 }
  0x2c   : > { %v269_v47 = vrot.slane %v234_v39, %v254_v24  ;;  %v264_v48 = vmul.f32 %v426_v38, %v255_v37 }
  0x2e   : > { %v271_v49 = vadd.f32 %v269_v47, %v257_v40  ;;  %v272_v50 = vadd.f32 %v269_v47, %v258_v41  ;;  %v273_v51 = vadd.f32 %v269_v47, %v259_v42  ;;  %v274_v52 = vadd.f32 %v269_v47, %v260_v43 }
  0x2f   : > { %v275_v53 = vadd.f32 %v269_v47, %v261_v44  ;;  %v276_v54 = vadd.f32 %v269_v47, %v262_v45  ;;  %v277_v55 = vadd.f32 %v269_v47, %v263_v46  ;;  %v278_v56 = vadd.f32 %v269_v47, %v264_v48 }
  0x30   : > { %v279_v57 = vmax.f32 %v271_v49, 0.0  ;;  %v280_v58 = vmax.f32 %v272_v50, 0.0  ;;  %v281_v59 = vmax.f32 %v273_v51, 0.0  ;;  %v282_v60 = vmax.f32 %v274_v52, 0.0 }
  0x31   : > { %v283_v61 = vmax.f32 %v275_v53, 0.0  ;;  %v284_v62 = vmax.f32 %v276_v54, 0.0  ;;  %v285_v63 = vmax.f32 %v277_v55, 0.0  ;;  %v286_v0 = vmax.f32 %v278_v56, 0.0 }
  0x32   : > { %v430_v1 = vpack.c.bf16 %v280_v58, %v279_v57  ;;  %v435_v2 = vpack.c.bf16 %v282_v60, %v281_v59 }
  0x33   : > { %v440_v3 = vpack.c.bf16 %v284_v62, %v283_v61  ;;  %v445_v4 = vpack.c.bf16 %v286_v0, %v285_v63 }
  0x34   : > { %431 = vst [vmem:[%s197_s5] sm:$0xff] %v430_v1   ;;  %450 = vst [vmem:[%s197_s5 + $0x8] sm:$0xff] %v435_v2  }
  0x35   : > { %451 = vst [vmem:[%s197_s5 + $0x10] sm:$0xff] %v440_v3   ;;  %452 = vst [vmem:[%s197_s5 + $0x18] sm:$0xff] %v445_v4  }
  0x36 PF: > { %s14_s15 = sadd.s32 1, %s470_s15  }
  0x37   : > { %p11_p4 = scmp.ge.s32.totalorder %s14_s15, 4  }
  0x39   :  { %13 = sbr.rel (!%p11_p4) target bundleno = 1 (0x1), region = 66 }

// kernel: generator_forward.6
= control target key start
LH: loop header
LB: loop body
LE: loop exit
PB: predicated region body
PF: predicated region fallthrough
CT: control target
= control target key end

     0   :  { %9 = vsyncpa [#allocation3], 0  ;;  %s3539_s15 = smov [#allocation2]   ;;  %s4090_s0 = inlined_call_operand.vmem [shape: bf16[2,128], index: 0, kind: input, shape index: {}]   ;;  %s4091_s1 = inlined_call_operand.hbm [shape: bf16[128,4096], index: 1, kind: input, shape index: {}]   ;;  %s4092_s2 = inlined_call_operand.vmem [shape: f32[1,256], index: 2, kind: input, shape index: {}]   ;;  %s4093_s3 = inlined_call_operand.vmem [shape: f32[1,256], index: 3, kind: input, shape index: {}]   ;;  %s4094_s4 = inlined_call_operand.vmem [shape: bf16[2,4096], index: 4, kind: output, shape index: {}]  }
   0x1   :  { %s17_s16 = sshll.u32 %s3539_s15, 4  ;;  %s3515_s19 = scalar_lea.hbm %s4091_s1, 32768  ;;  %s18_s16 = int_to_ptr.vmem [resolvable:$true] %s17_s16 }
   0x2   :  { %p3516_p0 = scmp.ne.s32.totalorder %s4091_s1, %s3515_s19  ;;  %p3519_p1 = scmp.lt.u32.totalorder %s3515_s19, %s4091_s1 }
   0x4   :  { %p3521_p2 = pnand %p3519_p1, %p3516_p0 }
   0x6   :  { %3524 = shalt.err (!%p3521_p2)
}
   0x7   :  { %s3525_s24 = scalar_lea.vmem %s18_s16, 32768  ;;  %p3530_p4 = scmp.lt.s32.totalorder %s18_s16, %s18_s16 }
   0x8   :  { %p3526_p3 = scmp.ne.s32.totalorder %s18_s16, %s3525_s24  ;;  %p3531_p5 = scmp.lt.s32.totalorder %s3525_s24, %s3525_s24 }
   0xa   :  { %p3532_p6 = por %p3531_p5, %p3530_p4 }
   0xc   :  { %p3533_p7 = pnand %p3532_p6, %p3526_p3 }
   0xe   :  { %3536 = shalt.err (!%p3533_p7)
}
   0xf   :  { %s3540_s25 = smov 2048   ;;  %s3541_s26 = smov 128  }
  0x10   :  { %23 = dma.hbm_to_vmem [thread:$0]  %s4091_s1, 32768, %s18_s16, [#allocation3], %s3540_s25, %s3540_s25, %s3541_s26  }
  0x11   :  { %3537 = dma.done.wait [#allocation3], 32768  }
  0x12   :  { %3538 = vsyncadd [#allocation3], 4294934528  ;;  %v3542_v0 = vmov 0   ;;  %v33_v1 = vld [vmem:[#allocation2] sm:$0xff]  ;;  %v34_v3 = vld [vmem:[#allocation2 + $0x8] sm:$0xff]  ;;  %vm2225_vm0 = vcmask 1041408  }
  0x13   :  { %1601 = vmatprep.mubr.bf16.mxu0 %v3542_v0  ;;  %1642 = vmatprep.mubr.bf16.mxu1 %v3542_v0  ;;  %v49_v2 = vld [vmem:[#allocation2 + $0x80] sm:$0xff]  ;;  %v50_v5 = vld [vmem:[#allocation2 + $0x88] sm:$0xff]  ;;  %v35_v63 = vld [vmem:[#allocation2 + $0x10] sm:$0xff] }
  0x14   :  { %v3234_v4 = vcombine.high %v33_v1, %v49_v2  ;;  %v3233_v6 = vcombine.low %v33_v1, %v49_v2  ;;  %v65_v7 = vld [vmem:[#allocation2 + $0x100] sm:$0xff]  ;;  %v3236_v9 = vcombine.high %v34_v3, %v50_v5  ;;  %v3235_v10 = vcombine.low %v34_v3, %v50_v5  ;;  %v66_v12 = vld [vmem:[#allocation2 + $0x108] sm:$0xff]  ;;  %v51_v1 = vld [vmem:[#allocation2 + $0x90] sm:$0xff] }
  0x15   :  { %v81_v8 = vld [vmem:[#allocation2 + $0x180] sm:$0xff]  ;;  %v82_v13 = vld [vmem:[#allocation2 + $0x188] sm:$0xff]  ;;  %v36_v2 = vld [vmem:[#allocation2 + $0x18] sm:$0xff] }
  0x16   :  { %v3266_v11 = vcombine.high %v65_v7, %v81_v8  ;;  %v97_v14 = vld [vmem:[#allocation2 + $0x200] sm:$0xff]  ;;  %1569 = vmatprep.subr.bf16.mxu0 %v3234_v4  ;;  %v3268_v15 = vcombine.high %v66_v12, %v82_v13  ;;  %v98_v17 = vld [vmem:[#allocation2 + $0x208] sm:$0xff]  ;;  %1610 = vmatprep.subr.bf16.mxu1 %v3236_v9  ;;  %v3265_v19 = vcombine.low %v65_v7, %v81_v8  ;;  %v52_v3 = vld [vmem:[#allocation2 + $0x98] sm:$0xff] }
  0x17   :  { %v113_v16 = vld [vmem:[#allocation2 + $0x280] sm:$0xff]  ;;  %v114_v18 = vld [vmem:[#allocation2 + $0x288] sm:$0xff]  ;;  %1570 = vmatpush1.bf16.msra.mxu0 %v3233_v6  ;;  %1611 = vmatpush1.bf16.msra.mxu1 %v3235_v10  ;;  %v3267_v20 = vcombine.low %v66_v12, %v82_v13  ;;  %v3238_v6 = vcombine.high %v35_v63, %v51_v1  ;;  %v3240_v7 = vcombine.high %v36_v2, %v52_v3  ;;  %v67_v8 = vld [vmem:[#allocation2 + $0x110] sm:$0xff] }
  0x18   :  { %1571 = vmatprep.subr.bf16.mxu0 %v3266_v11  ;;  %v3298_v21 = vcombine.high %v97_v14, %v113_v16  ;;  %1612 = vmatprep.subr.bf16.mxu1 %v3268_v15  ;;  %v3300_v22 = vcombine.high %v98_v17, %v114_v18  ;;  %v129_v23 = vld [vmem:[#allocation2 + $0x300] sm:$0xff]  ;;  %v130_v25 = vld [vmem:[#allocation2 + $0x308] sm:$0xff]  ;;  %v3297_v27 = vcombine.low %v97_v14, %v113_v16  ;;  %v83_v9 = vld [vmem:[#allocation2 + $0x190] sm:$0xff] }
  0x19   :  { %v145_v24 = vld [vmem:[#allocation2 + $0x380] sm:$0xff]  ;;  %v146_v26 = vld [vmem:[#allocation2 + $0x388] sm:$0xff]  ;;  %v3299_v28 = vcombine.low %v98_v17, %v114_v18  ;;  %v68_v10 = vld [vmem:[#allocation2 + $0x118] sm:$0xff]  ;;  %v3237_v13 = vcombine.low %v35_v63, %v51_v1  ;;  %v3239_v14 = vcombine.low %v36_v2, %v52_v3  ;;  %v3270_v15 = vcombine.high %v67_v8, %v83_v9 }
  0x1a   :  { %v3330_v29 = vcombine.high %v129_v23, %v145_v24  ;;  %v3332_v30 = vcombine.high %v130_v25, %v146_v26  ;;  %v161_v31 = vld [vmem:[#allocation2 + $0x400] sm:$0xff]  ;;  %v162_v33 = vld [vmem:[#allocation2 + $0x408] sm:$0xff]  ;;  %v3329_v35 = vcombine.low %v129_v23, %v145_v24  ;;  %v3331_v36 = vcombine.low %v130_v25, %v146_v26  ;;  %v84_v11 = vld [vmem:[#allocation2 + $0x198] sm:$0xff] }
  0x1b   :  { %1572 = vmatpush1.bf16.msra.mxu0 %v3265_v19  ;;  %1613 = vmatpush1.bf16.msra.mxu1 %v3267_v20  ;;  %v177_v32 = vld [vmem:[#allocation2 + $0x480] sm:$0xff]  ;;  %v178_v34 = vld [vmem:[#allocation2 + $0x488] sm:$0xff]  ;;  %v3272_v16 = vcombine.high %v68_v10, %v84_v11  ;;  %v99_v17 = vld [vmem:[#allocation2 + $0x210] sm:$0xff] }
  0x1c   :  { %1573 = vmatprep.subr.bf16.mxu0 %v3298_v21  ;;  %1614 = vmatprep.subr.bf16.mxu1 %v3300_v22  ;;  %v3362_v37 = vcombine.high %v161_v31, %v177_v32  ;;  %v3364_v38 = vcombine.high %v162_v33, %v178_v34  ;;  %v193_v39 = vld [vmem:[#allocation2 + $0x500] sm:$0xff]  ;;  %v194_v41 = vld [vmem:[#allocation2 + $0x508] sm:$0xff]  ;;  %v3361_v43 = vcombine.low %v161_v31, %v177_v32  ;;  %v115_v18 = vld [vmem:[#allocation2 + $0x290] sm:$0xff] }
  0x1d   :  { %v209_v40 = vld [vmem:[#allocation2 + $0x580] sm:$0xff]  ;;  %v210_v42 = vld [vmem:[#allocation2 + $0x588] sm:$0xff]  ;;  %v3363_v44 = vcombine.low %v162_v33, %v178_v34  ;;  %v100_v19 = vld [vmem:[#allocation2 + $0x218] sm:$0xff]  ;;  %v3269_v21 = vcombine.low %v67_v8, %v83_v9  ;;  %v3271_v22 = vcombine.low %v68_v10, %v84_v11  ;;  %v3302_v23 = vcombine.high %v99_v17, %v115_v18 }
  0x1e   :  { %v3394_v45 = vcombine.high %v193_v39, %v209_v40  ;;  %v3396_v46 = vcombine.high %v194_v41, %v210_v42  ;;  %v225_v47 = vld [vmem:[#allocation2 + $0x600] sm:$0xff]  ;;  %v226_v49 = vld [vmem:[#allocation2 + $0x608] sm:$0xff]  ;;  %v3393_v51 = vcombine.low %v193_v39, %v209_v40  ;;  %v3395_v52 = vcombine.low %v194_v41, %v210_v42  ;;  %v116_v20 = vld [vmem:[#allocation2 + $0x298] sm:$0xff] }
  0x1f   :  { %1574 = vmatpush1.bf16.msra.mxu0 %v3297_v27  ;;  %1615 = vmatpush1.bf16.msra.mxu1 %v3299_v28  ;;  %v241_v48 = vld [vmem:[#allocation2 + $0x680] sm:$0xff]  ;;  %v242_v50 = vld [vmem:[#allocation2 + $0x688] sm:$0xff]  ;;  %v3304_v24 = vcombine.high %v100_v19, %v116_v20  ;;  %v131_v25 = vld [vmem:[#allocation2 + $0x310] sm:$0xff] }
  0x20   :  { %1575 = vmatprep.subr.bf16.mxu0 %v3330_v29  ;;  %1616 = vmatprep.subr.bf16.mxu1 %v3332_v30  ;;  %v3426_v53 = vcombine.high %v225_v47, %v241_v48  ;;  %v3428_v54 = vcombine.high %v226_v49, %v242_v50  ;;  %v257_v55 = vld [vmem:[#allocation2 + $0x700] sm:$0xff]  ;;  %v258_v57 = vld [vmem:[#allocation2 + $0x708] sm:$0xff]  ;;  %v3425_v59 = vcombine.low %v225_v47, %v241_v48  ;;  %v147_v26 = vld [vmem:[#allocation2 + $0x390] sm:$0xff] }
  0x21   :  { %v273_v56 = vld [vmem:[#allocation2 + $0x780] sm:$0xff]  ;;  %v274_v58 = vld [vmem:[#allocation2 + $0x788] sm:$0xff]  ;;  %v3427_v60 = vcombine.low %v226_v49, %v242_v50  ;;  %v132_v27 = vld [vmem:[#allocation2 + $0x318] sm:$0xff]  ;;  %v3301_v29 = vcombine.low %v99_v17, %v115_v18  ;;  %v3303_v30 = vcombine.low %v100_v19, %v116_v20  ;;  %v3334_v31 = vcombine.high %v131_v25, %v147_v26 }
  0x22   :  { %v3458_v61 = vcombine.high %v257_v55, %v273_v56  ;;  %v3460_v62 = vcombine.high %v258_v57, %v274_v58  ;;  %v3457_v4 = vcombine.low %v257_v55, %v273_v56  ;;  %v3459_v5 = vcombine.low %v258_v57, %v274_v58  ;;  %v3586_v12 = vld [vmem:[%s4090_s0] sm:$0x1]  ;;  %v148_v28 = vld [vmem:[#allocation2 + $0x398] sm:$0xff]  ;;  %v163_v33 = vld [vmem:[#allocation2 + $0x410] sm:$0xff] }
  0x23   :  { %1576 = vmatpush1.bf16.msra.mxu0 %v3329_v35  ;;  %1617 = vmatpush1.bf16.msra.mxu1 %v3331_v36  ;;  %v3336_v32 = vcombine.high %v132_v27, %v148_v28  ;;  %v179_v34 = vld [vmem:[#allocation2 + $0x490] sm:$0xff]  ;;  %v164_v35 = vld [vmem:[#allocation2 + $0x418] sm:$0xff]  ;;  %v37_v2 = vld [vmem:[#allocation2 + $0x20] sm:$0xff] }
  0x24   :  { %1577 = vmatprep.subr.bf16.mxu0 %v3362_v37  ;;  %1618 = vmatprep.subr.bf16.mxu1 %v3364_v38  ;;  %v180_v36 = vld [vmem:[#allocation2 + $0x498] sm:$0xff]  ;;  %v3333_v37 = vcombine.low %v131_v25, %v147_v26  ;;  %v3335_v38 = vcombine.low %v132_v27, %v148_v28  ;;  %v3366_v39 = vcombine.high %v163_v33, %v179_v34  ;;  %v195_v41 = vld [vmem:[#allocation2 + $0x510] sm:$0xff]  ;;  %v53_v3 = vld [vmem:[#allocation2 + $0xa0] sm:$0xff] }
  0x25   :  { %v3368_v40 = vcombine.high %v164_v35, %v180_v36  ;;  %v211_v42 = vld [vmem:[#allocation2 + $0x590] sm:$0xff]  ;;  %v3242_v8 = vcombine.high %v37_v2, %v53_v3  ;;  %v69_v10 = vld [vmem:[#allocation2 + $0x120] sm:$0xff] }
  0x26   :  { %v3398_v47 = vcombine.high %v195_v41, %v211_v42  ;;  %v227_v49 = vld [vmem:[#allocation2 + $0x610] sm:$0xff]  ;;  %v85_v11 = vld [vmem:[#allocation2 + $0x1a0] sm:$0xff] }
  0x27   :  { %1578 = vmatpush1.bf16.msra.mxu0 %v3361_v43  ;;  %1619 = vmatpush1.bf16.msra.mxu1 %v3363_v44  ;;  %v196_v43 = vld [vmem:[#allocation2 + $0x518] sm:$0xff]  ;;  %v243_v50 = vld [vmem:[#allocation2 + $0x690] sm:$0xff]  ;;  %v3274_v17 = vcombine.high %v69_v10, %v85_v11  ;;  %v101_v19 = vld [vmem:[#allocation2 + $0x220] sm:$0xff] }
  0x28   :  { %1579 = vmatprep.subr.bf16.mxu0 %v3394_v45  ;;  %1620 = vmatprep.subr.bf16.mxu1 %v3396_v46  ;;  %v212_v44 = vld [vmem:[#allocation2 + $0x598] sm:$0xff]  ;;  %v3365_v45 = vcombine.low %v163_v33, %v179_v34  ;;  %v3367_v46 = vcombine.low %v164_v35, %v180_v36  ;;  %v3430_v55 = vcombine.high %v227_v49, %v243_v50  ;;  %v259_v57 = vld [vmem:[#allocation2 + $0x710] sm:$0xff]  ;;  %v117_v20 = vld [vmem:[#allocation2 + $0x2a0] sm:$0xff] }
  0x29   :  { %v3400_v48 = vcombine.high %v196_v43, %v212_v44  ;;  %v275_v58 = vld [vmem:[#allocation2 + $0x790] sm:$0xff]  ;;  %v3306_v25 = vcombine.high %v101_v19, %v117_v20  ;;  %v133_v27 = vld [vmem:[#allocation2 + $0x320] sm:$0xff] }
  0x2a   :  { %v3462_v63 = vcombine.high %v259_v57, %v275_v58  ;;  %v149_v28 = vld [vmem:[#allocation2 + $0x3a0] sm:$0xff] }
  0x2b   :  { %1580 = vmatpush1.bf16.msra.mxu0 %v3393_v51  ;;  %1621 = vmatpush1.bf16.msra.mxu1 %v3395_v52  ;;  %v228_v51 = vld [vmem:[#allocation2 + $0x618] sm:$0xff]  ;;  %v3338_v33 = vcombine.high %v133_v27, %v149_v28  ;;  %v165_v35 = vld [vmem:[#allocation2 + $0x420] sm:$0xff] }
  0x2c   :  { %1581 = vmatprep.subr.bf16.mxu0 %v3426_v53  ;;  %1622 = vmatprep.subr.bf16.mxu1 %v3428_v54  ;;  %v244_v52 = vld [vmem:[#allocation2 + $0x698] sm:$0xff]  ;;  %v3397_v53 = vcombine.low %v195_v41, %v211_v42  ;;  %v3399_v54 = vcombine.low %v196_v43, %v212_v44  ;;  %v181_v36 = vld [vmem:[#allocation2 + $0x4a0] sm:$0xff] }
  0x2d   :  { %v3432_v56 = vcombine.high %v228_v51, %v244_v52  ;;  %v3370_v41 = vcombine.high %v165_v35, %v181_v36  ;;  %v197_v43 = vld [vmem:[#allocation2 + $0x520] sm:$0xff] }
  0x2e   :  { %v213_v44 = vld [vmem:[#allocation2 + $0x5a0] sm:$0xff] }
  0x2f   :  { %1582 = vmatpush1.bf16.msra.mxu0 %v3425_v59  ;;  %1623 = vmatpush1.bf16.msra.mxu1 %v3427_v60  ;;  %v260_v59 = vld [vmem:[#allocation2 + $0x718] sm:$0xff] }
  0x30   :  { %1583 = vmatprep.subr.bf16.mxu0 %v3458_v61  ;;  %1624 = vmatprep.subr.bf16.mxu1 %v3460_v62  ;;  %v276_v60 = vld [vmem:[#allocation2 + $0x798] sm:$0xff]  ;;  %v3429_v61 = vcombine.low %v227_v49, %v243_v50  ;;  %v3431_v62 = vcombine.low %v228_v51, %v244_v52  ;;  %v3402_v49 = vcombine.high %v197_v43, %v213_v44  ;;  %v229_v51 = vld [vmem:[#allocation2 + $0x620] sm:$0xff] }
  0x31   :  { %v3464_v1 = vcombine.high %v260_v59, %v276_v60  ;;  %v245_v52 = vld [vmem:[#allocation2 + $0x6a0] sm:$0xff] }
  0x33   :  { %1584 = vmatpush1.bf16.msra.mxu0 %v3457_v4  ;;  %1625 = vmatpush1.bf16.msra.mxu1 %v3459_v5  ;;  %v38_v4 = vld [vmem:[#allocation2 + $0x28] sm:$0xff] }
  0x34   :  { %1651 = vmatprep.subr.bf16.mxu0 %v3238_v6  ;;  %1692 = vmatprep.subr.bf16.mxu1 %v3240_v7  ;;  %v54_v5 = vld [vmem:[#allocation2 + $0xa8] sm:$0xff]  ;;  %v3461_v6 = vcombine.low %v259_v57, %v275_v58  ;;  %v3463_v7 = vcombine.low %v260_v59, %v276_v60  ;;  %v3434_v57 = vcombine.high %v229_v51, %v245_v52  ;;  %v261_v59 = vld [vmem:[#allocation2 + $0x720] sm:$0xff] }
  0x35   :  { %v3244_v9 = vcombine.high %v38_v4, %v54_v5  ;;  %v277_v60 = vld [vmem:[#allocation2 + $0x7a0] sm:$0xff] }
  0x36   :  { %1602 = vmatmul.mubr.bf16.vlgmr.msra.gmra.mrb[0].mxu0 %v3586_v12  ;;  %1643 = vmatmul.mubr.bf16.vlgmr.msra.gmra.mrb[0].mxu1 %v3586_v12 }
  0x37   :  { %1652 = vmatpush1.bf16.msra.mxu0 %v3237_v13  ;;  %1693 = vmatpush1.bf16.msra.mxu1 %v3239_v14  ;;  %v70_v13 = vld [vmem:[#allocation2 + $0x128] sm:$0xff] }
  0x38   :  { %1653 = vmatprep.subr.bf16.mxu0 %v3270_v15  ;;  %1694 = vmatprep.subr.bf16.mxu1 %v3272_v16  ;;  %v86_v14 = vld [vmem:[#allocation2 + $0x1a8] sm:$0xff]  ;;  %v3241_v15 = vcombine.low %v37_v2, %v53_v3  ;;  %v3243_v16 = vcombine.low %v38_v4, %v54_v5  ;;  %v3466_v2 = vcombine.high %v261_v59, %v277_v60  ;;  %v39_v4 = vld [vmem:[#allocation2 + $0x30] sm:$0xff] }
  0x39   :  { %1683 = vmatprep.mubr.bf16.mxu0 %v3542_v0  ;;  %1724 = vmatprep.mubr.bf16.mxu1 %v3542_v0  ;;  %v3276_v18 = vcombine.high %v70_v13, %v86_v14  ;;  %v55_v5 = vld [vmem:[#allocation2 + $0xb0] sm:$0xff] }
  0x3b   :  { %1654 = vmatpush1.bf16.msra.mxu0 %v3269_v21  ;;  %1695 = vmatpush1.bf16.msra.mxu1 %v3271_v22  ;;  %v102_v21 = vld [vmem:[#allocation2 + $0x228] sm:$0xff] }
  0x3c   :  { %1655 = vmatprep.subr.bf16.mxu0 %v3302_v23  ;;  %1696 = vmatprep.subr.bf16.mxu1 %v3304_v24  ;;  %v118_v22 = vld [vmem:[#allocation2 + $0x2a8] sm:$0xff]  ;;  %v3273_v23 = vcombine.low %v69_v10, %v85_v11  ;;  %v3275_v24 = vcombine.low %v70_v13, %v86_v14  ;;  %v3246_v10 = vcombine.high %v39_v4, %v55_v5  ;;  %v71_v13 = vld [vmem:[#allocation2 + $0x130] sm:$0xff] }
  0x3d   :  { %v3308_v26 = vcombine.high %v102_v21, %v118_v22  ;;  %v87_v14 = vld [vmem:[#allocation2 + $0x1b0] sm:$0xff] }
  0x3f   :  { %1656 = vmatpush1.bf16.msra.mxu0 %v3301_v29  ;;  %1697 = vmatpush1.bf16.msra.mxu1 %v3303_v30  ;;  %v134_v29 = vld [vmem:[#allocation2 + $0x328] sm:$0xff] }
  0x40   :  { %1657 = vmatprep.subr.bf16.mxu0 %v3334_v31  ;;  %1698 = vmatprep.subr.bf16.mxu1 %v3336_v32  ;;  %v150_v30 = vld [vmem:[#allocation2 + $0x3a8] sm:$0xff]  ;;  %v3305_v31 = vcombine.low %v101_v19, %v117_v20  ;;  %v3307_v32 = vcombine.low %v102_v21, %v118_v22  ;;  %v3278_v19 = vcombine.high %v71_v13, %v87_v14  ;;  %v103_v21 = vld [vmem:[#allocation2 + $0x230] sm:$0xff] }
  0x41   :  { %v3340_v34 = vcombine.high %v134_v29, %v150_v30  ;;  %v119_v22 = vld [vmem:[#allocation2 + $0x2b0] sm:$0xff] }
  0x43   :  { %1658 = vmatpush1.bf16.msra.mxu0 %v3333_v37  ;;  %1699 = vmatpush1.bf16.msra.mxu1 %v3335_v38  ;;  %v166_v37 = vld [vmem:[#allocation2 + $0x428] sm:$0xff] }
  0x44   :  { %1659 = vmatprep.subr.bf16.mxu0 %v3366_v39  ;;  %1700 = vmatprep.subr.bf16.mxu1 %v3368_v40  ;;  %v182_v38 = vld [vmem:[#allocation2 + $0x4a8] sm:$0xff]  ;;  %v3337_v39 = vcombine.low %v133_v27, %v149_v28  ;;  %v3339_v40 = vcombine.low %v134_v29, %v150_v30  ;;  %v3310_v27 = vcombine.high %v103_v21, %v119_v22  ;;  %v135_v29 = vld [vmem:[#allocation2 + $0x330] sm:$0xff] }
  0x45   :  { %v3372_v42 = vcombine.high %v166_v37, %v182_v38  ;;  %v151_v30 = vld [vmem:[#allocation2 + $0x3b0] sm:$0xff] }
  0x47   :  { %1660 = vmatpush1.bf16.msra.mxu0 %v3365_v45  ;;  %1701 = vmatpush1.bf16.msra.mxu1 %v3367_v46  ;;  %v198_v45 = vld [vmem:[#allocation2 + $0x528] sm:$0xff] }
  0x48   :  { %1661 = vmatprep.subr.bf16.mxu0 %v3398_v47  ;;  %1702 = vmatprep.subr.bf16.mxu1 %v3400_v48  ;;  %v214_v46 = vld [vmem:[#allocation2 + $0x5a8] sm:$0xff]  ;;  %v3369_v47 = vcombine.low %v165_v35, %v181_v36  ;;  %v3371_v48 = vcombine.low %v166_v37, %v182_v38  ;;  %v3342_v35 = vcombine.high %v135_v29, %v151_v30  ;;  %v167_v37 = vld [vmem:[#allocation2 + $0x430] sm:$0xff] }
  0x49   :  { %v3404_v50 = vcombine.high %v198_v45, %v214_v46  ;;  %v183_v38 = vld [vmem:[#allocation2 + $0x4b0] sm:$0xff] }
  0x4b   :  { %1662 = vmatpush1.bf16.msra.mxu0 %v3397_v53  ;;  %1703 = vmatpush1.bf16.msra.mxu1 %v3399_v54  ;;  %v230_v53 = vld [vmem:[#allocation2 + $0x628] sm:$0xff] }
  0x4c   :  { %1663 = vmatprep.subr.bf16.mxu0 %v3430_v55  ;;  %1704 = vmatprep.subr.bf16.mxu1 %v3432_v56  ;;  %v246_v54 = vld [vmem:[#allocation2 + $0x6a8] sm:$0xff]  ;;  %v3401_v55 = vcombine.low %v197_v43, %v213_v44  ;;  %v3403_v56 = vcombine.low %v198_v45, %v214_v46  ;;  %v3374_v43 = vcombine.high %v167_v37, %v183_v38  ;;  %v199_v45 = vld [vmem:[#allocation2 + $0x530] sm:$0xff] }
  0x4d   :  { %v3436_v58 = vcombine.high %v230_v53, %v246_v54  ;;  %v215_v46 = vld [vmem:[#allocation2 + $0x5b0] sm:$0xff] }
  0x4f   :  { %1664 = vmatpush1.bf16.msra.mxu0 %v3429_v61  ;;  %1705 = vmatpush1.bf16.msra.mxu1 %v3431_v62  ;;  %v262_v61 = vld [vmem:[#allocation2 + $0x728] sm:$0xff] }
  0x50   :  { %1665 = vmatprep.subr.bf16.mxu0 %v3462_v63  ;;  %1706 = vmatprep.subr.bf16.mxu1 %v3464_v1  ;;  %v278_v62 = vld [vmem:[#allocation2 + $0x7a8] sm:$0xff]  ;;  %v3433_v63 = vcombine.low %v229_v51, %v245_v52  ;;  %v3435_v1 = vcombine.low %v230_v53, %v246_v54  ;;  %v3406_v51 = vcombine.high %v199_v45, %v215_v46  ;;  %v231_v53 = vld [vmem:[#allocation2 + $0x630] sm:$0xff] }
  0x51   :  { %v3468_v3 = vcombine.high %v262_v61, %v278_v62  ;;  %v247_v54 = vld [vmem:[#allocation2 + $0x6b0] sm:$0xff] }
  0x53   :  { %1666 = vmatpush1.bf16.msra.mxu0 %v3461_v6  ;;  %1707 = vmatpush1.bf16.msra.mxu1 %v3463_v7  ;;  %v40_v6 = vld [vmem:[#allocation2 + $0x38] sm:$0xff] }
  0x54   :  { %1733 = vmatprep.subr.bf16.mxu0 %v3242_v8  ;;  %1774 = vmatprep.subr.bf16.mxu1 %v3244_v9  ;;  %v56_v7 = vld [vmem:[#allocation2 + $0xb8] sm:$0xff]  ;;  %v3465_v8 = vcombine.low %v261_v59, %v277_v60  ;;  %v3467_v9 = vcombine.low %v262_v61, %v278_v62  ;;  %v3438_v59 = vcombine.high %v231_v53, %v247_v54  ;;  %v263_v61 = vld [vmem:[#allocation2 + $0x730] sm:$0xff] }
  0x55   :  { %v3248_v11 = vcombine.high %v40_v6, %v56_v7  ;;  %v279_v62 = vld [vmem:[#allocation2 + $0x7b0] sm:$0xff] }
  0x56   :  { %1684 = vmatmul.mubr.bf16.vlgmr.msra.gmra.mrb[4].mxu0 %v3586_v12  ;;  %1725 = vmatmul.mubr.bf16.vlgmr.msra.gmra.mrb[4].mxu1 %v3586_v12 }
  0x57   :  { %1734 = vmatpush1.bf16.msra.mxu0 %v3241_v15  ;;  %1775 = vmatpush1.bf16.msra.mxu1 %v3243_v16  ;;  %v72_v15 = vld [vmem:[#allocation2 + $0x138] sm:$0xff] }
  0x58   :  { %1735 = vmatprep.subr.bf16.mxu0 %v3274_v17  ;;  %1776 = vmatprep.subr.bf16.mxu1 %v3276_v18  ;;  %v88_v16 = vld [vmem:[#allocation2 + $0x1b8] sm:$0xff]  ;;  %v3245_v17 = vcombine.low %v39_v4, %v55_v5  ;;  %v3247_v18 = vcombine.low %v40_v6, %v56_v7  ;;  %v3470_v4 = vcombine.high %v263_v61, %v279_v62  ;;  %v41_v6 = vld [vmem:[#allocation2 + $0x40] sm:$0xff] }
  0x59   :  { %1765 = vmatprep.mubr.bf16.mxu0 %v3542_v0  ;;  %1806 = vmatprep.mubr.bf16.mxu1 %v3542_v0  ;;  %v3280_v20 = vcombine.high %v72_v15, %v88_v16  ;;  %v57_v7 = vld [vmem:[#allocation2 + $0xc0] sm:$0xff] }
  0x5b   :  { %1736 = vmatpush1.bf16.msra.mxu0 %v3273_v23  ;;  %1777 = vmatpush1.bf16.msra.mxu1 %v3275_v24  ;;  %v104_v23 = vld [vmem:[#allocation2 + $0x238] sm:$0xff] }
  0x5c   :  { %1737 = vmatprep.subr.bf16.mxu0 %v3306_v25  ;;  %1778 = vmatprep.subr.bf16.mxu1 %v3308_v26  ;;  %v120_v24 = vld [vmem:[#allocation2 + $0x2b8] sm:$0xff]  ;;  %v3277_v25 = vcombine.low %v71_v13, %v87_v14  ;;  %v3279_v26 = vcombine.low %v72_v15, %v88_v16  ;;  %v3250_v13 = vcombine.high %v41_v6, %v57_v7  ;;  %v73_v15 = vld [vmem:[#allocation2 + $0x140] sm:$0xff] }
  0x5d   :  { %v3312_v28 = vcombine.high %v104_v23, %v120_v24  ;;  %v89_v16 = vld [vmem:[#allocation2 + $0x1c0] sm:$0xff] }
  0x5f   :  { %1738 = vmatpush1.bf16.msra.mxu0 %v3305_v31  ;;  %1779 = vmatpush1.bf16.msra.mxu1 %v3307_v32  ;;  %v136_v31 = vld [vmem:[#allocation2 + $0x338] sm:$0xff] }
  0x60   :  { %1739 = vmatprep.subr.bf16.mxu0 %v3338_v33  ;;  %1780 = vmatprep.subr.bf16.mxu1 %v3340_v34  ;;  %v152_v32 = vld [vmem:[#allocation2 + $0x3b8] sm:$0xff]  ;;  %v3309_v33 = vcombine.low %v103_v21, %v119_v22  ;;  %v3311_v34 = vcombine.low %v104_v23, %v120_v24  ;;  %v3282_v21 = vcombine.high %v73_v15, %v89_v16  ;;  %v105_v23 = vld [vmem:[#allocation2 + $0x240] sm:$0xff] }
  0x61   :  { %v3344_v36 = vcombine.high %v136_v31, %v152_v32  ;;  %v121_v24 = vld [vmem:[#allocation2 + $0x2c0] sm:$0xff] }
  0x63   :  { %1740 = vmatpush1.bf16.msra.mxu0 %v3337_v39  ;;  %1781 = vmatpush1.bf16.msra.mxu1 %v3339_v40  ;;  %v168_v39 = vld [vmem:[#allocation2 + $0x438] sm:$0xff] }
  0x64   :  { %1741 = vmatprep.subr.bf16.mxu0 %v3370_v41  ;;  %1782 = vmatprep.subr.bf16.mxu1 %v3372_v42  ;;  %v184_v40 = vld [vmem:[#allocation2 + $0x4b8] sm:$0xff]  ;;  %v3341_v41 = vcombine.low %v135_v29, %v151_v30  ;;  %v3343_v42 = vcombine.low %v136_v31, %v152_v32  ;;  %v3314_v29 = vcombine.high %v105_v23, %v121_v24  ;;  %v137_v31 = vld [vmem:[#allocation2 + $0x340] sm:$0xff] }
  0x65   :  { %v3376_v44 = vcombine.high %v168_v39, %v184_v40  ;;  %v153_v32 = vld [vmem:[#allocation2 + $0x3c0] sm:$0xff] }
  0x67   :  { %1742 = vmatpush1.bf16.msra.mxu0 %v3369_v47  ;;  %1783 = vmatpush1.bf16.msra.mxu1 %v3371_v48  ;;  %v200_v47 = vld [vmem:[#allocation2 + $0x538] sm:$0xff] }
  0x68   :  { %1743 = vmatprep.subr.bf16.mxu0 %v3402_v49  ;;  %1784 = vmatprep.subr.bf16.mxu1 %v3404_v50  ;;  %v216_v48 = vld [vmem:[#allocation2 + $0x5b8] sm:$0xff]  ;;  %v3373_v49 = vcombine.low %v167_v37, %v183_v38  ;;  %v3375_v50 = vcombine.low %v168_v39, %v184_v40  ;;  %v3346_v37 = vcombine.high %v137_v31, %v153_v32  ;;  %v169_v39 = vld [vmem:[#allocation2 + $0x440] sm:$0xff] }
  0x69   :  { %v3408_v52 = vcombine.high %v200_v47, %v216_v48  ;;  %v185_v40 = vld [vmem:[#allocation2 + $0x4c0] sm:$0xff] }
  0x6b   :  { %1744 = vmatpush1.bf16.msra.mxu0 %v3401_v55  ;;  %1785 = vmatpush1.bf16.msra.mxu1 %v3403_v56  ;;  %v232_v55 = vld [vmem:[#allocation2 + $0x638] sm:$0xff] }
  0x6c   :  { %1745 = vmatprep.subr.bf16.mxu0 %v3434_v57  ;;  %1786 = vmatprep.subr.bf16.mxu1 %v3436_v58  ;;  %v248_v56 = vld [vmem:[#allocation2 + $0x6b8] sm:$0xff]  ;;  %v3405_v57 = vcombine.low %v199_v45, %v215_v46  ;;  %v3407_v58 = vcombine.low %v200_v47, %v216_v48  ;;  %v3378_v45 = vcombine.high %v169_v39, %v185_v40  ;;  %v201_v47 = vld [vmem:[#allocation2 + $0x540] sm:$0xff] }
  0x6d   :  { %v3440_v60 = vcombine.high %v232_v55, %v248_v56  ;;  %v217_v48 = vld [vmem:[#allocation2 + $0x5c0] sm:$0xff] }
  0x6f   :  { %1746 = vmatpush1.bf16.msra.mxu0 %v3433_v63  ;;  %1787 = vmatpush1.bf16.msra.mxu1 %v3435_v1  ;;  %v264_v63 = vld [vmem:[#allocation2 + $0x738] sm:$0xff] }
  0x70   :  { %1747 = vmatprep.subr.bf16.mxu0 %v3466_v2  ;;  %1788 = vmatprep.subr.bf16.mxu1 %v3468_v3  ;;  %v280_v1 = vld [vmem:[#allocation2 + $0x7b8] sm:$0xff]  ;;  %v3437_v2 = vcombine.low %v231_v53, %v247_v54  ;;  %v3439_v3 = vcombine.low %v232_v55, %v248_v56  ;;  %v3410_v53 = vcombine.high %v201_v47, %v217_v48  ;;  %v233_v55 = vld [vmem:[#allocation2 + $0x640] sm:$0xff] }
  0x71   :  { %v3472_v5 = vcombine.high %v264_v63, %v280_v1  ;;  %v249_v56 = vld [vmem:[#allocation2 + $0x6c0] sm:$0xff] }
  0x73   :  { %1748 = vmatpush1.bf16.msra.mxu0 %v3465_v8  ;;  %1789 = vmatpush1.bf16.msra.mxu1 %v3467_v9  ;;  %v42_v8 = vld [vmem:[#allocation2 + $0x48] sm:$0xff] }
  0x74   :  { %1815 = vmatprep.subr.bf16.mxu0 %v3246_v10  ;;  %1856 = vmatprep.subr.bf16.mxu1 %v3248_v11  ;;  %v58_v9 = vld [vmem:[#allocation2 + $0xc8] sm:$0xff]  ;;  %v3469_v10 = vcombine.low %v263_v61, %v279_v62  ;;  %v3471_v11 = vcombine.low %v264_v63, %v280_v1  ;;  %v3442_v61 = vcombine.high %v233_v55, %v249_v56  ;;  %v265_v63 = vld [vmem:[#allocation2 + $0x740] sm:$0xff] }
  0x75   :  { %v3252_v14 = vcombine.high %v42_v8, %v58_v9  ;;  %v281_v1 = vld [vmem:[#allocation2 + $0x7c0] sm:$0xff] }
  0x76   :  { %1766 = vmatmul.mubr.bf16.vlgmr.msra.gmra.mrb[8].mxu0 %v3586_v12  ;;  %1807 = vmatmul.mubr.bf16.vlgmr.msra.gmra.mrb[8].mxu1 %v3586_v12 }
  0x77   :  { %1816 = vmatpush1.bf16.msra.mxu0 %v3245_v17  ;;  %1857 = vmatpush1.bf16.msra.mxu1 %v3247_v18  ;;  %v74_v17 = vld [vmem:[#allocation2 + $0x148] sm:$0xff] }
  0x78   :  { %1817 = vmatprep.subr.bf16.mxu0 %v3278_v19  ;;  %1858 = vmatprep.subr.bf16.mxu1 %v3280_v20  ;;  %v90_v18 = vld [vmem:[#allocation2 + $0x1c8] sm:$0xff]  ;;  %v3249_v19 = vcombine.low %v41_v6, %v57_v7  ;;  %v3251_v20 = vcombine.low %v42_v8, %v58_v9  ;;  %v3474_v6 = vcombine.high %v265_v63, %v281_v1  ;;  %v43_v8 = vld [vmem:[#allocation2 + $0x50] sm:$0xff] }
  0x79   :  { %1847 = vmatprep.mubr.bf16.mxu0 %v3542_v0  ;;  %1888 = vmatprep.mubr.bf16.mxu1 %v3542_v0  ;;  %v3284_v22 = vcombine.high %v74_v17, %v90_v18  ;;  %v59_v9 = vld [vmem:[#allocation2 + $0xd0] sm:$0xff] }
  0x7b   :  { %1818 = vmatpush1.bf16.msra.mxu0 %v3277_v25  ;;  %1859 = vmatpush1.bf16.msra.mxu1 %v3279_v26  ;;  %v106_v25 = vld [vmem:[#allocation2 + $0x248] sm:$0xff] }
  0x7c   :  { %1819 = vmatprep.subr.bf16.mxu0 %v3310_v27  ;;  %1860 = vmatprep.subr.bf16.mxu1 %v3312_v28  ;;  %v122_v26 = vld [vmem:[#allocation2 + $0x2c8] sm:$0xff]  ;;  %v3281_v27 = vcombine.low %v73_v15, %v89_v16  ;;  %v3283_v28 = vcombine.low %v74_v17, %v90_v18  ;;  %v3254_v15 = vcombine.high %v43_v8, %v59_v9  ;;  %v75_v17 = vld [vmem:[#allocation2 + $0x150] sm:$0xff] }
  0x7d   :  { %v3316_v30 = vcombine.high %v106_v25, %v122_v26  ;;  %v91_v18 = vld [vmem:[#allocation2 + $0x1d0] sm:$0xff] }
  0x7f   :  { %1820 = vmatpush1.bf16.msra.mxu0 %v3309_v33  ;;  %1861 = vmatpush1.bf16.msra.mxu1 %v3311_v34  ;;  %v138_v33 = vld [vmem:[#allocation2 + $0x348] sm:$0xff] }
  0x80   :  { %1821 = vmatprep.subr.bf16.mxu0 %v3342_v35  ;;  %1862 = vmatprep.subr.bf16.mxu1 %v3344_v36  ;;  %v154_v34 = vld [vmem:[#allocation2 + $0x3c8] sm:$0xff]  ;;  %v3313_v35 = vcombine.low %v105_v23, %v121_v24  ;;  %v3315_v36 = vcombine.low %v106_v25, %v122_v26  ;;  %v3286_v23 = vcombine.high %v75_v17, %v91_v18  ;;  %v107_v25 = vld [vmem:[#allocation2 + $0x250] sm:$0xff] }
  0x81   :  { %v3348_v38 = vcombine.high %v138_v33, %v154_v34  ;;  %v123_v26 = vld [vmem:[#allocation2 + $0x2d0] sm:$0xff] }
  0x83   :  { %1822 = vmatpush1.bf16.msra.mxu0 %v3341_v41  ;;  %1863 = vmatpush1.bf16.msra.mxu1 %v3343_v42  ;;  %v170_v41 = vld [vmem:[#allocation2 + $0x448] sm:$0xff] }
  0x84   :  { %1823 = vmatprep.subr.bf16.mxu0 %v3374_v43  ;;  %1864 = vmatprep.subr.bf16.mxu1 %v3376_v44  ;;  %v186_v42 = vld [vmem:[#allocation2 + $0x4c8] sm:$0xff]  ;;  %v3345_v43 = vcombine.low %v137_v31, %v153_v32  ;;  %v3347_v44 = vcombine.low %v138_v33, %v154_v34  ;;  %v3318_v31 = vcombine.high %v107_v25, %v123_v26  ;;  %v139_v33 = vld [vmem:[#allocation2 + $0x350] sm:$0xff] }
  0x85   :  { %v3380_v46 = vcombine.high %v170_v41, %v186_v42  ;;  %v155_v34 = vld [vmem:[#allocation2 + $0x3d0] sm:$0xff] }
  0x87   :  { %1824 = vmatpush1.bf16.msra.mxu0 %v3373_v49  ;;  %1865 = vmatpush1.bf16.msra.mxu1 %v3375_v50  ;;  %v202_v49 = vld [vmem:[#allocation2 + $0x548] sm:$0xff] }
  0x88   :  { %1825 = vmatprep.subr.bf16.mxu0 %v3406_v51  ;;  %1866 = vmatprep.subr.bf16.mxu1 %v3408_v52  ;;  %v218_v50 = vld [vmem:[#allocation2 + $0x5c8] sm:$0xff]  ;;  %v3377_v51 = vcombine.low %v169_v39, %v185_v40  ;;  %v3379_v52 = vcombine.low %v170_v41, %v186_v42  ;;  %v3350_v39 = vcombine.high %v139_v33, %v155_v34  ;;  %v171_v41 = vld [vmem:[#allocation2 + $0x450] sm:$0xff] }
  0x89   :  { %v3412_v54 = vcombine.high %v202_v49, %v218_v50  ;;  %v187_v42 = vld [vmem:[#allocation2 + $0x4d0] sm:$0xff] }
  0x8b   :  { %1826 = vmatpush1.bf16.msra.mxu0 %v3405_v57  ;;  %1867 = vmatpush1.bf16.msra.mxu1 %v3407_v58  ;;  %v234_v57 = vld [vmem:[#allocation2 + $0x648] sm:$0xff] }
  0x8c   :  { %1827 = vmatprep.subr.bf16.mxu0 %v3438_v59  ;;  %1868 = vmatprep.subr.bf16.mxu1 %v3440_v60  ;;  %v250_v58 = vld [vmem:[#allocation2 + $0x6c8] sm:$0xff]  ;;  %v3409_v59 = vcombine.low %v201_v47, %v217_v48  ;;  %v3411_v60 = vcombine.low %v202_v49, %v218_v50  ;;  %v3382_v47 = vcombine.high %v171_v41, %v187_v42  ;;  %v203_v49 = vld [vmem:[#allocation2 + $0x550] sm:$0xff] }
  0x8d   :  { %v3444_v62 = vcombine.high %v234_v57, %v250_v58  ;;  %v219_v50 = vld [vmem:[#allocation2 + $0x5d0] sm:$0xff] }
  0x8f   :  { %1828 = vmatpush1.bf16.msra.mxu0 %v3437_v2  ;;  %1869 = vmatpush1.bf16.msra.mxu1 %v3439_v3  ;;  %v266_v2 = vld [vmem:[#allocation2 + $0x748] sm:$0xff] }
  0x90   :  { %1829 = vmatprep.subr.bf16.mxu0 %v3470_v4  ;;  %1870 = vmatprep.subr.bf16.mxu1 %v3472_v5  ;;  %v282_v3 = vld [vmem:[#allocation2 + $0x7c8] sm:$0xff]  ;;  %v3441_v4 = vcombine.low %v233_v55, %v249_v56  ;;  %v3443_v5 = vcombine.low %v234_v57, %v250_v58  ;;  %v3414_v55 = vcombine.high %v203_v49, %v219_v50  ;;  %v235_v57 = vld [vmem:[#allocation2 + $0x650] sm:$0xff] }
  0x91   :  { %v3476_v7 = vcombine.high %v266_v2, %v282_v3  ;;  %v251_v58 = vld [vmem:[#allocation2 + $0x6d0] sm:$0xff] }
  0x93   :  { %1830 = vmatpush1.bf16.msra.mxu0 %v3469_v10  ;;  %1871 = vmatpush1.bf16.msra.mxu1 %v3471_v11  ;;  %v44_v10 = vld [vmem:[#allocation2 + $0x58] sm:$0xff] }
  0x94   :  { %1897 = vmatprep.subr.bf16.mxu0 %v3250_v13  ;;  %1938 = vmatprep.subr.bf16.mxu1 %v3252_v14  ;;  %v60_v11 = vld [vmem:[#allocation2 + $0xd8] sm:$0xff]  ;;  %v3473_v13 = vcombine.low %v265_v63, %v281_v1  ;;  %v3475_v14 = vcombine.low %v266_v2, %v282_v3  ;;  %v3446_v63 = vcombine.high %v235_v57, %v251_v58  ;;  %v267_v2 = vld [vmem:[#allocation2 + $0x750] sm:$0xff] }
  0x95   :  { %v3256_v16 = vcombine.high %v44_v10, %v60_v11  ;;  %v283_v3 = vld [vmem:[#allocation2 + $0x7d0] sm:$0xff] }
  0x96   :  { %1848 = vmatmul.mubr.bf16.vlgmr.msra.gmra.mrb[12].mxu0 %v3586_v12  ;;  %1889 = vmatmul.mubr.bf16.vlgmr.msra.gmra.mrb[12].mxu1 %v3586_v12 }
  0x97   :  { %1898 = vmatpush1.bf16.msra.mxu0 %v3249_v19  ;;  %1939 = vmatpush1.bf16.msra.mxu1 %v3251_v20  ;;  %v76_v19 = vld [vmem:[#allocation2 + $0x158] sm:$0xff] }
  0x98   :  { %1899 = vmatprep.subr.bf16.mxu0 %v3282_v21  ;;  %1940 = vmatprep.subr.bf16.mxu1 %v3284_v22  ;;  %v92_v20 = vld [vmem:[#allocation2 + $0x1d8] sm:$0xff]  ;;  %v3253_v21 = vcombine.low %v43_v8, %v59_v9  ;;  %v3255_v22 = vcombine.low %v44_v10, %v60_v11  ;;  %v3478_v8 = vcombine.high %v267_v2, %v283_v3  ;;  %v45_v10 = vld [vmem:[#allocation2 + $0x60] sm:$0xff] }
  0x99   :  { %1929 = vmatprep.mubr.bf16.mxu0 %v3542_v0  ;;  %1970 = vmatprep.mubr.bf16.mxu1 %v3542_v0  ;;  %v3288_v24 = vcombine.high %v76_v19, %v92_v20  ;;  %v61_v11 = vld [vmem:[#allocation2 + $0xe0] sm:$0xff] }
  0x9b   :  { %1900 = vmatpush1.bf16.msra.mxu0 %v3281_v27  ;;  %1941 = vmatpush1.bf16.msra.mxu1 %v3283_v28  ;;  %v108_v27 = vld [vmem:[#allocation2 + $0x258] sm:$0xff] }
  0x9c   :  { %1901 = vmatprep.subr.bf16.mxu0 %v3314_v29  ;;  %1942 = vmatprep.subr.bf16.mxu1 %v3316_v30  ;;  %v124_v28 = vld [vmem:[#allocation2 + $0x2d8] sm:$0xff]  ;;  %v3285_v29 = vcombine.low %v75_v17, %v91_v18  ;;  %v3287_v30 = vcombine.low %v76_v19, %v92_v20  ;;  %v3258_v17 = vcombine.high %v45_v10, %v61_v11  ;;  %v77_v19 = vld [vmem:[#allocation2 + $0x160] sm:$0xff] }
  0x9d   :  { %v3320_v32 = vcombine.high %v108_v27, %v124_v28  ;;  %v93_v20 = vld [vmem:[#allocation2 + $0x1e0] sm:$0xff] }
  0x9f   :  { %1902 = vmatpush1.bf16.msra.mxu0 %v3313_v35  ;;  %1943 = vmatpush1.bf16.msra.mxu1 %v3315_v36  ;;  %v140_v35 = vld [vmem:[#allocation2 + $0x358] sm:$0xff] }
  0xa0   :  { %1903 = vmatprep.subr.bf16.mxu0 %v3346_v37  ;;  %1944 = vmatprep.subr.bf16.mxu1 %v3348_v38  ;;  %v156_v36 = vld [vmem:[#allocation2 + $0x3d8] sm:$0xff]  ;;  %v3317_v37 = vcombine.low %v107_v25, %v123_v26  ;;  %v3319_v38 = vcombine.low %v108_v27, %v124_v28  ;;  %v3290_v25 = vcombine.high %v77_v19, %v93_v20  ;;  %v109_v27 = vld [vmem:[#allocation2 + $0x260] sm:$0xff] }
  0xa1   :  { %v3352_v40 = vcombine.high %v140_v35, %v156_v36  ;;  %v125_v28 = vld [vmem:[#allocation2 + $0x2e0] sm:$0xff] }
  0xa3   :  { %1904 = vmatpush1.bf16.msra.mxu0 %v3345_v43  ;;  %1945 = vmatpush1.bf16.msra.mxu1 %v3347_v44  ;;  %v172_v43 = vld [vmem:[#allocation2 + $0x458] sm:$0xff] }
  0xa4   :  { %1905 = vmatprep.subr.bf16.mxu0 %v3378_v45  ;;  %1946 = vmatprep.subr.bf16.mxu1 %v3380_v46  ;;  %v188_v44 = vld [vmem:[#allocation2 + $0x4d8] sm:$0xff]  ;;  %v3349_v45 = vcombine.low %v139_v33, %v155_v34  ;;  %v3351_v46 = vcombine.low %v140_v35, %v156_v36  ;;  %v3322_v34 = vcombine.high %v109_v27, %v125_v28  ;;  %v141_v36 = vld [vmem:[#allocation2 + $0x360] sm:$0xff] }
  0xa5   :  { %v3384_v48 = vcombine.high %v172_v43, %v188_v44 }
  0xa7   :  { %1906 = vmatpush1.bf16.msra.mxu0 %v3377_v51  ;;  %1947 = vmatpush1.bf16.msra.mxu1 %v3379_v52  ;;  %v204_v51 = vld [vmem:[#allocation2 + $0x558] sm:$0xff] }
  0xa8   :  { %1907 = vmatprep.subr.bf16.mxu0 %v3410_v53  ;;  %1948 = vmatprep.subr.bf16.mxu1 %v3412_v54  ;;  %v220_v52 = vld [vmem:[#allocation2 + $0x5d8] sm:$0xff]  ;;  %v3381_v53 = vcombine.low %v171_v41, %v187_v42  ;;  %v3383_v54 = vcombine.low %v172_v43, %v188_v44  ;;  %v173_v43 = vld [vmem:[#allocation2 + $0x460] sm:$0xff] }
  0xa9   :  { %v3416_v56 = vcombine.high %v204_v51, %v220_v52  ;;  %v189_v44 = vld [vmem:[#allocation2 + $0x4e0] sm:$0xff] }
  0xab   :  { %1908 = vmatpush1.bf16.msra.mxu0 %v3409_v59  ;;  %1949 = vmatpush1.bf16.msra.mxu1 %v3411_v60  ;;  %v236_v59 = vld [vmem:[#allocation2 + $0x658] sm:$0xff] }
  0xac   :  { %1909 = vmatprep.subr.bf16.mxu0 %v3442_v61  ;;  %1950 = vmatprep.subr.bf16.mxu1 %v3444_v62  ;;  %v252_v60 = vld [vmem:[#allocation2 + $0x6d8] sm:$0xff]  ;;  %v3413_v61 = vcombine.low %v203_v49, %v219_v50  ;;  %v3415_v62 = vcombine.low %v204_v51, %v220_v52  ;;  %v3386_v49 = vcombine.high %v173_v43, %v189_v44  ;;  %v205_v51 = vld [vmem:[#allocation2 + $0x560] sm:$0xff] }
  0xad   :  { %v3448_v1 = vcombine.high %v236_v59, %v252_v60  ;;  %v221_v52 = vld [vmem:[#allocation2 + $0x5e0] sm:$0xff] }
  0xaf   :  { %1910 = vmatpush1.bf16.msra.mxu0 %v3441_v4  ;;  %1951 = vmatpush1.bf16.msra.mxu1 %v3443_v5  ;;  %v268_v4 = vld [vmem:[#allocation2 + $0x758] sm:$0xff] }
  0xb0   :  { %1911 = vmatprep.subr.bf16.mxu0 %v3474_v6  ;;  %1952 = vmatprep.subr.bf16.mxu1 %v3476_v7  ;;  %v284_v5 = vld [vmem:[#allocation2 + $0x7d8] sm:$0xff]  ;;  %v3445_v6 = vcombine.low %v235_v57, %v251_v58  ;;  %v3447_v7 = vcombine.low %v236_v59, %v252_v60  ;;  %v3418_v57 = vcombine.high %v205_v51, %v221_v52  ;;  %v237_v59 = vld [vmem:[#allocation2 + $0x660] sm:$0xff] }
  0xb1   :  { %v3480_v9 = vcombine.high %v268_v4, %v284_v5  ;;  %v253_v60 = vld [vmem:[#allocation2 + $0x6e0] sm:$0xff] }
  0xb3   :  { %1912 = vmatpush1.bf16.msra.mxu0 %v3473_v13  ;;  %1953 = vmatpush1.bf16.msra.mxu1 %v3475_v14  ;;  %v46_v13 = vld [vmem:[#allocation2 + $0x68] sm:$0xff] }
  0xb4   :  { %1979 = vmatprep.subr.bf16.mxu0 %v3254_v15  ;;  %2020 = vmatprep.subr.bf16.mxu1 %v3256_v16  ;;  %v62_v14 = vld [vmem:[#allocation2 + $0xe8] sm:$0xff]  ;;  %v3477_v15 = vcombine.low %v267_v2, %v283_v3  ;;  %v3479_v16 = vcombine.low %v268_v4, %v284_v5  ;;  %v3450_v2 = vcombine.high %v237_v59, %v253_v60  ;;  %v269_v4 = vld [vmem:[#allocation2 + $0x760] sm:$0xff] }
  0xb5   :  { %v3260_v18 = vcombine.high %v46_v13, %v62_v14  ;;  %v285_v5 = vld [vmem:[#allocation2 + $0x7e0] sm:$0xff] }
  0xb6   :  { %1930 = vmatmul.mubr.bf16.vlgmr.msra.gmra.mrb[16].mxu0 %v3586_v12  ;;  %1971 = vmatmul.mubr.bf16.vlgmr.msra.gmra.mrb[16].mxu1 %v3586_v12 }
  0xb7   :  { %1980 = vmatpush1.bf16.msra.mxu0 %v3253_v21  ;;  %2021 = vmatpush1.bf16.msra.mxu1 %v3255_v22  ;;  %v78_v21 = vld [vmem:[#allocation2 + $0x168] sm:$0xff] }
  0xb8   :  { %1981 = vmatprep.subr.bf16.mxu0 %v3286_v23  ;;  %2022 = vmatprep.subr.bf16.mxu1 %v3288_v24  ;;  %v94_v22 = vld [vmem:[#allocation2 + $0x1e8] sm:$0xff]  ;;  %v3257_v23 = vcombine.low %v45_v10, %v61_v11  ;;  %v3259_v24 = vcombine.low %v46_v13, %v62_v14  ;;  %v3482_v10 = vcombine.high %v269_v4, %v285_v5  ;;  %v47_v13 = vld [vmem:[#allocation2 + $0x70] sm:$0xff] }
  0xb9   :  { %2011 = vmatprep.mubr.bf16.mxu0 %v3542_v0  ;;  %2052 = vmatprep.mubr.bf16.mxu1 %v3542_v0  ;;  %v3292_v26 = vcombine.high %v78_v21, %v94_v22  ;;  %v3291_v33 = vcombine.low %v78_v21, %v94_v22  ;;  %v63_v14 = vld [vmem:[#allocation2 + $0xf0] sm:$0xff] }
  0xba   :  { %v79_v21 = vld [vmem:[#allocation2 + $0x170] sm:$0xff] }
  0xbb   :  { %1982 = vmatpush1.bf16.msra.mxu0 %v3285_v29  ;;  %2023 = vmatpush1.bf16.msra.mxu1 %v3287_v30  ;;  %v110_v29 = vld [vmem:[#allocation2 + $0x268] sm:$0xff]  ;;  %v95_v22 = vld [vmem:[#allocation2 + $0x1f0] sm:$0xff] }
  0xbc   :  { %1983 = vmatprep.subr.bf16.mxu0 %v3318_v31  ;;  %2024 = vmatprep.subr.bf16.mxu1 %v3320_v32  ;;  %v126_v30 = vld [vmem:[#allocation2 + $0x2e8] sm:$0xff]  ;;  %v3612_v31 = vld [vmem:[%s4090_s0] sm:$0x1]  ;;  %v3289_v32 = vcombine.low %v77_v19, %v93_v20  ;;  %v3262_v19 = vcombine.high %v47_v13, %v63_v14 }
  0xbd   :  { %v3324_v35 = vcombine.high %v110_v29, %v126_v30 }
  0xbf   :  { %1984 = vmatpush1.bf16.msra.mxu0 %v3317_v37  ;;  %2025 = vmatpush1.bf16.msra.mxu1 %v3319_v38  ;;  %v157_v37 = vld [vmem:[#allocation2 + $0x3e0] sm:$0xff]  ;;  %v158_v38 = vld [vmem:[#allocation2 + $0x3e8] sm:$0xff] }
  0xc0   :  { %1985 = vmatprep.subr.bf16.mxu0 %v3350_v39  ;;  %2026 = vmatprep.subr.bf16.mxu1 %v3352_v40  ;;  %v3321_v39 = vcombine.low %v109_v27, %v125_v28  ;;  %v3323_v40 = vcombine.low %v110_v29, %v126_v30  ;;  %v3354_v41 = vcombine.high %v141_v36, %v157_v37  ;;  %v111_v29 = vld [vmem:[#allocation2 + $0x270] sm:$0xff] }
  0xc1   :  { %v3294_v27 = vcombine.high %v79_v21, %v95_v22  ;;  %v127_v30 = vld [vmem:[#allocation2 + $0x2f0] sm:$0xff] }
  0xc3   :  { %1986 = vmatpush1.bf16.msra.mxu0 %v3349_v45  ;;  %2027 = vmatpush1.bf16.msra.mxu1 %v3351_v46  ;;  %v174_v45 = vld [vmem:[#allocation2 + $0x468] sm:$0xff] }
  0xc4   :  { %1987 = vmatprep.subr.bf16.mxu0 %v3382_v47  ;;  %2028 = vmatprep.subr.bf16.mxu1 %v3384_v48  ;;  %v190_v46 = vld [vmem:[#allocation2 + $0x4e8] sm:$0xff]  ;;  %v3353_v47 = vcombine.low %v141_v36, %v157_v37  ;;  %v3326_v36 = vcombine.high %v111_v29, %v127_v30 }
  0xc5   :  { %v3388_v50 = vcombine.high %v174_v45, %v190_v46 }
  0xc7   :  { %1988 = vmatpush1.bf16.msra.mxu0 %v3381_v53  ;;  %2029 = vmatpush1.bf16.msra.mxu1 %v3383_v54  ;;  %v206_v53 = vld [vmem:[#allocation2 + $0x568] sm:$0xff] }
  0xc8   :  { %1989 = vmatprep.subr.bf16.mxu0 %v3414_v55  ;;  %2030 = vmatprep.subr.bf16.mxu1 %v3416_v56  ;;  %v222_v54 = vld [vmem:[#allocation2 + $0x5e8] sm:$0xff]  ;;  %v3385_v55 = vcombine.low %v173_v43, %v189_v44  ;;  %v3387_v56 = vcombine.low %v174_v45, %v190_v46  ;;  %v175_v45 = vld [vmem:[#allocation2 + $0x470] sm:$0xff] }
  0xc9   :  { %v3420_v58 = vcombine.high %v206_v53, %v222_v54  ;;  %v191_v46 = vld [vmem:[#allocation2 + $0x4f0] sm:$0xff] }
  0xcb   :  { %1990 = vmatpush1.bf16.msra.mxu0 %v3413_v61  ;;  %2031 = vmatpush1.bf16.msra.mxu1 %v3415_v62  ;;  %v238_v61 = vld [vmem:[#allocation2 + $0x668] sm:$0xff] }
  0xcc   :  { %1991 = vmatprep.subr.bf16.mxu0 %v3446_v63  ;;  %2032 = vmatprep.subr.bf16.mxu1 %v3448_v1  ;;  %v254_v62 = vld [vmem:[#allocation2 + $0x6e8] sm:$0xff]  ;;  %v3417_v63 = vcombine.low %v205_v51, %v221_v52  ;;  %v3419_v1 = vcombine.low %v206_v53, %v222_v54  ;;  %v3390_v51 = vcombine.high %v175_v45, %v191_v46  ;;  %v207_v52 = vld [vmem:[#allocation2 + $0x570] sm:$0xff]  ;;  %v208_v54 = vld [vmem:[#allocation2 + $0x578] sm:$0xff] }
  0xcd   :  { %v3452_v3 = vcombine.high %v238_v61, %v254_v62  ;;  %v223_v53 = vld [vmem:[#allocation2 + $0x5f0] sm:$0xff] }
  0xcf   :  { %1992 = vmatpush1.bf16.msra.mxu0 %v3445_v6  ;;  %2033 = vmatpush1.bf16.msra.mxu1 %v3447_v7  ;;  %v270_v6 = vld [vmem:[#allocation2 + $0x768] sm:$0xff] }
  0xd0   :  { %1993 = vmatprep.subr.bf16.mxu0 %v3478_v8  ;;  %2034 = vmatprep.subr.bf16.mxu1 %v3480_v9  ;;  %v286_v7 = vld [vmem:[#allocation2 + $0x7e8] sm:$0xff]  ;;  %v3449_v8 = vcombine.low %v237_v59, %v253_v60  ;;  %v3451_v9 = vcombine.low %v238_v61, %v254_v62  ;;  %v239_v60 = vld [vmem:[#allocation2 + $0x670] sm:$0xff]  ;;  %v240_v62 = vld [vmem:[#allocation2 + $0x678] sm:$0xff] }
  0xd1   :  { %v3484_v11 = vcombine.high %v270_v6, %v286_v7  ;;  %v255_v61 = vld [vmem:[#allocation2 + $0x6f0] sm:$0xff] }
  0xd3   :  { %1994 = vmatpush1.bf16.msra.mxu0 %v3477_v15  ;;  %2035 = vmatpush1.bf16.msra.mxu1 %v3479_v16  ;;  %v48_v15 = vld [vmem:[#allocation2 + $0x78] sm:$0xff] }
  0xd4   :  { %2061 = vmatprep.subr.bf16.mxu0 %v3258_v17  ;;  %2102 = vmatprep.subr.bf16.mxu1 %v3260_v18  ;;  %v64_v16 = vld [vmem:[#allocation2 + $0xf8] sm:$0xff]  ;;  %v3481_v17 = vcombine.low %v269_v4, %v285_v5  ;;  %v3483_v18 = vcombine.low %v270_v6, %v286_v7  ;;  %v3453_v7 = vcombine.low %v239_v60, %v255_v61 }
  0xd5   :  { %v3264_v20 = vcombine.high %v48_v15, %v64_v16  ;;  %v3625_v4 = vld [vmem:[#allocation2 + $0x778] sm:$0xff] }
  0xd6   :  { %2012 = vmatmul.mubr.bf16.vlgmr.msra.gmra.mrb[20].mxu0 %v3586_v12  ;;  %2053 = vmatmul.mubr.bf16.vlgmr.msra.gmra.mrb[20].mxu1 %v3612_v31  ;;  %v142_v12 = vld [vmem:[#allocation2 + $0x368] sm:$0xff]  ;;  %v3627_v5 = vld [vmem:[#allocation2 + $0x7f8] sm:$0xff] }
  0xd7   :  { %2062 = vmatpush1.bf16.msra.mxu0 %v3257_v23  ;;  %2103 = vmatpush1.bf16.msra.mxu1 %v3259_v24  ;;  %v3356_v42 = vcombine.high %v142_v12, %v158_v38  ;;  %v3355_v48 = vcombine.low %v142_v12, %v158_v38  ;;  %v80_v23 = vld [vmem:[#allocation2 + $0x178] sm:$0xff]  ;;  %v143_v12 = vld [vmem:[#allocation2 + $0x370] sm:$0xff] }
  0xd8   :  { %2063 = vmatprep.subr.bf16.mxu0 %v3290_v25  ;;  %2104 = vmatprep.subr.bf16.mxu1 %v3292_v26  ;;  %v96_v24 = vld [vmem:[#allocation2 + $0x1f8] sm:$0xff]  ;;  %v3261_v25 = vcombine.low %v47_v13, %v63_v14  ;;  %v3263_v26 = vcombine.low %v48_v15, %v64_v16  ;;  %v159_v38 = vld [vmem:[#allocation2 + $0x3f0] sm:$0xff] }
  0xd9   :  { %2093 = vmatprep.mubr.bf16.mxu0 %v3542_v0  ;;  %2134 = vmatprep.mubr.bf16.mxu1 %v3542_v0  ;;  %v3296_v28 = vcombine.high %v80_v23, %v96_v24  ;;  %v3358_v43 = vcombine.high %v143_v12, %v159_v38 }
  0xdb   :  { %2064 = vmatpush1.bf16.msra.mxu0 %v3289_v32  ;;  %2105 = vmatpush1.bf16.msra.mxu1 %v3291_v33  ;;  %v112_v32 = vld [vmem:[#allocation2 + $0x278] sm:$0xff] }
  0xdc   :  { %2065 = vmatprep.subr.bf16.mxu0 %v3322_v34  ;;  %2106 = vmatprep.subr.bf16.mxu1 %v3324_v35  ;;  %v128_v33 = vld [vmem:[#allocation2 + $0x2f8] sm:$0xff]  ;;  %v3293_v34 = vcombine.low %v79_v21, %v95_v22  ;;  %v3295_v35 = vcombine.low %v80_v23, %v96_v24 }
  0xdd   :  { %v3328_v37 = vcombine.high %v112_v32, %v128_v33 }
  0xdf   :  { %2066 = vmatpush1.bf16.msra.mxu0 %v3321_v39  ;;  %2107 = vmatpush1.bf16.msra.mxu1 %v3323_v40  ;;  %v144_v39 = vld [vmem:[#allocation2 + $0x378] sm:$0xff] }
  0xe0   :  { %2067 = vmatprep.subr.bf16.mxu0 %v3354_v41  ;;  %2108 = vmatprep.subr.bf16.mxu1 %v3356_v42  ;;  %v160_v40 = vld [vmem:[#allocation2 + $0x3f8] sm:$0xff]  ;;  %v3325_v41 = vcombine.low %v111_v29, %v127_v30  ;;  %v3327_v42 = vcombine.low %v112_v32, %v128_v33 }
  0xe1   :  { %v3360_v44 = vcombine.high %v144_v39, %v160_v40 }
  0xe3   :  { %2068 = vmatpush1.bf16.msra.mxu0 %v3353_v47  ;;  %2109 = vmatpush1.bf16.msra.mxu1 %v3355_v48  ;;  %v176_v47 = vld [vmem:[#allocation2 + $0x478] sm:$0xff] }
  0xe4   :  { %2069 = vmatprep.subr.bf16.mxu0 %v3386_v49  ;;  %2110 = vmatprep.subr.bf16.mxu1 %v3388_v50  ;;  %v192_v48 = vld [vmem:[#allocation2 + $0x4f8] sm:$0xff]  ;;  %v3357_v49 = vcombine.low %v143_v12, %v159_v38  ;;  %v3359_v50 = vcombine.low %v144_v39, %v160_v40 }
  0xe7   :  { %2070 = vmatpush1.bf16.msra.mxu0 %v3385_v55  ;;  %2111 = vmatpush1.bf16.msra.mxu1 %v3387_v56  ;;  %v224_v55 = vld [vmem:[#allocation2 + $0x5f8] sm:$0xff]  ;;  %v3389_v56 = vcombine.low %v175_v45, %v191_v46 }
  0xe8   :  { %2071 = vmatprep.subr.bf16.mxu0 %v3418_v57  ;;  %2112 = vmatprep.subr.bf16.mxu1 %v3420_v58  ;;  %v3391_v57 = vcombine.low %v176_v47, %v192_v48  ;;  %v3422_v58 = vcombine.high %v207_v52, %v223_v53  ;;  %v3424_v59 = vcombine.high %v208_v54, %v224_v55 }
  0xe9   :  { %v3423_v6 = vcombine.low %v208_v54, %v224_v55 }
  0xeb   :  { %2072 = vmatpush1.bf16.msra.mxu0 %v3417_v63  ;;  %2113 = vmatpush1.bf16.msra.mxu1 %v3419_v1  ;;  %v256_v63 = vld [vmem:[#allocation2 + $0x6f8] sm:$0xff]  ;;  %v3621_v1 = vld [vmem:[#allocation2 + $0x770] sm:$0xff] }
  0xec   :  { %2073 = vmatprep.subr.bf16.mxu0 %v3450_v2  ;;  %2114 = vmatprep.subr.bf16.mxu1 %v3452_v3  ;;  %v3623_v2 = vld [vmem:[#allocation2 + $0x7f0] sm:$0xff]  ;;  %v3421_v3 = vcombine.low %v207_v52, %v223_v53 }
  0xed   :  { %v3485_v13 = vcombine.low %v3621_v1, %v3623_v2  ;;  %v3486_v14 = vcombine.high %v3621_v1, %v3623_v2 }
  0xef   :  { %2074 = vmatpush1.bf16.msra.mxu0 %v3449_v8  ;;  %2115 = vmatpush1.bf16.msra.mxu1 %v3451_v9  ;;  %v3454_v8 = vcombine.high %v239_v60, %v255_v61 }
  0xf0   :  { %2075 = vmatprep.subr.bf16.mxu0 %v3482_v10  ;;  %2116 = vmatprep.subr.bf16.mxu1 %v3484_v11  ;;  %v3455_v10 = vcombine.low %v240_v62, %v256_v63  ;;  %v3456_v11 = vcombine.high %v240_v62, %v256_v63 }
  0xf3   :  { %2076 = vmatpush1.bf16.msra.mxu0 %v3481_v17  ;;  %2117 = vmatpush1.bf16.msra.mxu1 %v3483_v18 }
  0xf4   :  { %2143 = vmatprep.subr.bf16.mxu0 %v3262_v19  ;;  %2184 = vmatprep.subr.bf16.mxu1 %v3264_v20  ;;  %v3487_v19 = vcombine.low %v3625_v4, %v3627_v5  ;;  %v3488_v20 = vcombine.high %v3625_v4, %v3627_v5 }
  0xf6   :  { %2094 = vmatmul.mubr.bf16.vlgmr.msra.gmra.mrb[24].mxu0 %v3612_v31  ;;  %2135 = vmatmul.mubr.bf16.vlgmr.msra.gmra.mrb[24].mxu1 %v3612_v31 }
  0xf7   :  { %2144 = vmatpush1.bf16.msra.mxu0 %v3261_v25  ;;  %2185 = vmatpush1.bf16.msra.mxu1 %v3263_v26 }
  0xf8   :  { %2145 = vmatprep.subr.bf16.mxu0 %v3294_v27  ;;  %2186 = vmatprep.subr.bf16.mxu1 %v3296_v28 }
  0xf9   :  { %2175 = vmatprep.mubr.bf16.mxu0 %v3542_v0  ;;  %2216 = vmatprep.mubr.bf16.mxu1 %v3542_v0  ;;  %v3392_v0 = vcombine.high %v176_v47, %v192_v48 }
  0xfb   :  { %2146 = vmatpush1.bf16.msra.mxu0 %v3293_v34  ;;  %2187 = vmatpush1.bf16.msra.mxu1 %v3295_v35 }
  0xfc   :  { %2147 = vmatprep.subr.bf16.mxu0 %v3326_v36  ;;  %2188 = vmatprep.subr.bf16.mxu1 %v3328_v37 }
  0xff   :  { %2148 = vmatpush1.bf16.msra.mxu0 %v3325_v41  ;;  %2189 = vmatpush1.bf16.msra.mxu1 %v3327_v42 }
 0x100   :  { %2149 = vmatprep.subr.bf16.mxu0 %v3358_v43  ;;  %2190 = vmatprep.subr.bf16.mxu1 %v3360_v44 }
 0x103   :  { %2150 = vmatpush1.bf16.msra.mxu0 %v3357_v49  ;;  %2191 = vmatpush1.bf16.msra.mxu1 %v3359_v50 }
 0x104   :  { %2151 = vmatprep.subr.bf16.mxu0 %v3390_v51  ;;  %2192 = vmatprep.subr.bf16.mxu1 %v3392_v0 }
 0x107   :  { %2152 = vmatpush1.bf16.msra.mxu0 %v3389_v56  ;;  %2193 = vmatpush1.bf16.msra.mxu1 %v3391_v57 }
 0x108   :  { %2153 = vmatprep.subr.bf16.mxu0 %v3422_v58  ;;  %2194 = vmatprep.subr.bf16.mxu1 %v3424_v59 }
 0x109   :  { %v3629_v9 = vpop.f32.mrb[0].mxu0  ;;  %v3639_v17 = vpop.f32.mrb[0].mxu1 }
 0x10a   :  { %v2226_v15 = vsel %vm2225_vm0, %v3629_v9, 0.0  ;;  %v2450_v16 = vmul.f32 %v3629_v9, %v3629_v9  ;;  %v3641_v18 = vpop.f32.mrb[1].mxu0  ;;  %v2240_v22 = vsel %vm2225_vm0, %v3639_v17, 0.0  ;;  %v2452_v23 = vmul.f32 %v3639_v17, %v3639_v17  ;;  %v3653_v25 = vpop.f32.mrb[1].mxu1 }
 0x10b   :  { %v2227_v21 = vrot.slane %v2226_v15, 4  ;;  %v2233_v24 = vsel %vm2225_vm0, %v3641_v18, 0.0  ;;  %v1607_v26 = vpop.f32.mrb[2].mxu0  ;;  %2154 = vmatpush1.bf16.msra.mxu0 %v3421_v3  ;;  %v2241_v28 = vrot.slane %v2240_v22, 4  ;;  %v2451_v30 = vmul.f32 %v3641_v18, %v3641_v18  ;;  %v1648_v32 = vpop.f32.mrb[2].mxu1  ;;  %2195 = vmatpush1.bf16.msra.mxu1 %v3423_v6 }
 0x10c   :  { %v2482_v27 = vsel %vm2225_vm0, %v2450_v16, 0.0  ;;  %v2234_v29 = vrot.slane %v2233_v24, 4  ;;  %v1608_v33 = vpop.f32.mrb[3].mxu0  ;;  %2155 = vmatprep.subr.bf16.mxu0 %v3454_v8  ;;  %v2496_v36 = vsel %vm2225_vm0, %v2452_v23, 0.0  ;;  %v2247_v37 = vsel %vm2225_vm0, %v3653_v25, 0.0  ;;  %v1649_v12 = vpop.f32.mrb[3].mxu1  ;;  %2196 = vmatprep.subr.bf16.mxu1 %v3456_v11 }
 0x10d   :  { %v2228_v34 = vadd.f32 %v2227_v21, %v2226_v15  ;;  %v2483_v35 = vrot.slane %v2482_v27, 4  ;;  %v2242_v38 = vadd.f32 %v2241_v28, %v2240_v22  ;;  %v2497_v39 = vrot.slane %v2496_v36, 4 }
 0x10e   :  { %v2235_v40 = vadd.f32 %v2234_v29, %v2233_v24  ;;  %v2489_v41 = vsel %vm2225_vm0, %v2451_v30, 0.0  ;;  %v2248_v45 = vrot.slane %v2247_v37, 4  ;;  %v2453_v49 = vmul.f32 %v3653_v25, %v3653_v25 }
 0x10f   :  { %v2229_v42 = vrot.slane %v2228_v34, 2  ;;  %v2484_v43 = vadd.f32 %v2483_v35, %v2482_v27  ;;  %v2490_v44 = vrot.slane %v2489_v41, 4  ;;  %2156 = vmatpush1.bf16.msra.mxu0 %v3453_v7  ;;  %v2243_v46 = vrot.slane %v2242_v38, 2  ;;  %2197 = vmatpush1.bf16.msra.mxu1 %v3455_v10 }
 0x110   :  { %v2498_v47 = vadd.f32 %v2497_v39, %v2496_v36  ;;  %v2236_v48 = vrot.slane %v2235_v40, 2  ;;  %2157 = vmatprep.subr.bf16.mxu0 %v3486_v14  ;;  %v2249_v52 = vadd.f32 %v2248_v45, %v2247_v37  ;;  %2198 = vmatprep.subr.bf16.mxu1 %v3488_v20  ;;  %v2503_v56 = vsel %vm2225_vm0, %v2453_v49, 0.0 }
 0x111   :  { %v2230_v50 = vadd.f32 %v2229_v42, %v2228_v34  ;;  %v2485_v51 = vrot.slane %v2484_v43, 2  ;;  %v2491_v0 = vadd.f32 %v2490_v44, %v2489_v41  ;;  %v2244_v53 = vadd.f32 %v2243_v46, %v2242_v38 }
 0x112   :  { %v2499_v54 = vrot.slane %v2498_v47, 2  ;;  %v2237_v55 = vadd.f32 %v2236_v48, %v2235_v40  ;;  %v2250_v60 = vrot.slane %v2249_v52, 2  ;;  %v2504_v1 = vrot.slane %v2503_v56, 4 }
 0x113   :  { %v2231_v57 = vrot.slane %v2230_v50, 1  ;;  %v2486_v58 = vadd.f32 %v2485_v51, %v2484_v43  ;;  %v2492_v59 = vrot.slane %v2491_v0, 2  ;;  %2158 = vmatpush1.bf16.msra.mxu0 %v3485_v13  ;;  %v2245_v61 = vrot.slane %v2244_v53, 1  ;;  %2199 = vmatpush1.bf16.msra.mxu1 %v3487_v19 }
 0x114   :  { %v2500_v62 = vadd.f32 %v2499_v54, %v2498_v47  ;;  %v2238_v63 = vrot.slane %v2237_v55, 1  ;;  %v2251_v5 = vadd.f32 %v2250_v60, %v2249_v52  ;;  %v2505_v8 = vadd.f32 %v2504_v1, %v2503_v56 }
 0x115   :  { %v2232_v2 = vadd.f32 %v2231_v57, %v2230_v50  ;;  %v2487_v3 = vrot.slane %v2486_v58, 1  ;;  %v2493_v4 = vadd.f32 %v2492_v59, %v2491_v0  ;;  %v2246_v6 = vadd.f32 %v2245_v61, %v2244_v53 }
 0x116   :  { %v2501_v7 = vrot.slane %v2500_v62, 1  ;;  %2176 = vmatmul.mubr.bf16.vlgmr.msra.gmra.mrb[28].mxu0 %v3612_v31  ;;  %v2239_v11 = vadd.f32 %v2238_v63, %v2237_v55  ;;  %v2252_v14 = vrot.slane %v2251_v5, 1  ;;  %2217 = vmatmul.mubr.bf16.vlgmr.msra.gmra.mrb[28].mxu1 %v3612_v31  ;;  %v2506_v20 = vrot.slane %v2505_v8, 2 }
 0x117   :  { %v2488_v10 = vadd.f32 %v2487_v3, %v2486_v58  ;;  %v3667_v15 = vadd.f32 %v2246_v6, %v2232_v2  ;;  %v2494_v16 = vrot.slane %v2493_v4, 1 }
 0x118   :  { %v2502_v13 = vadd.f32 %v2501_v7, %v2500_v62  ;;  %v2253_v19 = vadd.f32 %v2252_v14, %v2251_v5  ;;  %v2507_v22 = vadd.f32 %v2506_v20, %v2505_v8 }
 0x119   :  { %v2495_v24 = vadd.f32 %v2494_v16, %v2493_v4 }
 0x11a   :  { %v3669_v21 = vadd.f32 %v2502_v13, %v2488_v10  ;;  %v3671_v23 = vadd.f32 %v2253_v19, %v2239_v11  ;;  %v2508_v26 = vrot.slane %v2507_v22, 1 }
 0x11c   :  { %v2509_v27 = vadd.f32 %v2508_v26, %v2507_v22 }
 0x11e   :  { %v3673_v28 = vadd.f32 %v2509_v27, %v2495_v24 }
 0x129   :  { %v3675_v29 = vpop.f32.mrb[4].mxu0  ;;  %v3681_v32 = vpop.f32.mrb[4].mxu1 }
 0x12a   :  { %v2254_v31 = vsel %vm2225_vm0, %v3675_v29, 0.0  ;;  %v2454_v30 = vmul.f32 %v3675_v29, %v3675_v29  ;;  %v3683_v33 = vpop.f32.mrb[5].mxu0  ;;  %v2268_v35 = vsel %vm2225_vm0, %v3681_v32, 0.0  ;;  %v2456_v36 = vmul.f32 %v3681_v32, %v3681_v32  ;;  %v3691_v12 = vpop.f32.mrb[5].mxu1 }
 0x12b   :  { %v2255_v34 = vrot.slane %v2254_v31, 4  ;;  %v2261_v37 = vsel %vm2225_vm0, %v3683_v33, 0.0  ;;  %v1689_v38 = vpop.f32.mrb[6].mxu0  ;;  %v2269_v40 = vrot.slane %v2268_v35, 4  ;;  %v2455_v42 = vmul.f32 %v3683_v33, %v3683_v33  ;;  %v1730_v43 = vpop.f32.mrb[6].mxu1 }
 0x12c   :  { %v2510_v39 = vsel %vm2225_vm0, %v2454_v30, 0.0  ;;  %v2262_v41 = vrot.slane %v2261_v37, 4  ;;  %v1690_v44 = vpop.f32.mrb[7].mxu0  ;;  %v2524_v47 = vsel %vm2225_vm0, %v2456_v36, 0.0  ;;  %v2275_v48 = vsel %vm2225_vm0, %v3691_v12, 0.0  ;;  %v1731_v49 = vpop.f32.mrb[7].mxu1 }
 0x12d   :  { %v2256_v45 = vadd.f32 %v2255_v34, %v2254_v31  ;;  %v2511_v46 = vrot.slane %v2510_v39, 4  ;;  %v2270_v50 = vadd.f32 %v2269_v40, %v2268_v35  ;;  %v2525_v51 = vrot.slane %v2524_v47, 4 }
 0x12e   :  { %v2263_v0 = vadd.f32 %v2262_v41, %v2261_v37  ;;  %v2517_v52 = vsel %vm2225_vm0, %v2455_v42, 0.0  ;;  %v2276_v56 = vrot.slane %v2275_v48, 4  ;;  %v2457_v60 = vmul.f32 %v3691_v12, %v3691_v12 }
 0x12f   :  { %v2257_v53 = vrot.slane %v2256_v45, 2  ;;  %v2512_v54 = vadd.f32 %v2511_v46, %v2510_v39  ;;  %v2518_v55 = vrot.slane %v2517_v52, 4  ;;  %v2271_v57 = vrot.slane %v2270_v50, 2 }
 0x130   :  { %v2526_v58 = vadd.f32 %v2525_v51, %v2524_v47  ;;  %v2264_v59 = vrot.slane %v2263_v0, 2  ;;  %v2277_v1 = vadd.f32 %v2276_v56, %v2275_v48  ;;  %v2531_v5 = vsel %vm2225_vm0, %v2457_v60, 0.0 }
 0x131   :  { %v2258_v61 = vadd.f32 %v2257_v53, %v2256_v45  ;;  %v2513_v62 = vrot.slane %v2512_v54, 2  ;;  %v2519_v63 = vadd.f32 %v2518_v55, %v2517_v52  ;;  %v2272_v2 = vadd.f32 %v2271_v57, %v2270_v50 }
 0x132   :  { %v2527_v3 = vrot.slane %v2526_v58, 2  ;;  %v2265_v4 = vadd.f32 %v2264_v59, %v2263_v0  ;;  %v2278_v10 = vrot.slane %v2277_v1, 2  ;;  %v2532_v16 = vrot.slane %v2531_v5, 4 }
 0x133   :  { %v2259_v6 = vrot.slane %v2258_v61, 1  ;;  %v2514_v7 = vadd.f32 %v2513_v62, %v2512_v54  ;;  %v2520_v8 = vrot.slane %v2519_v63, 2  ;;  %v2273_v11 = vrot.slane %v2272_v2, 1 }
 0x134   :  { %v2528_v14 = vadd.f32 %v2527_v3, %v2526_v58  ;;  %v2266_v13 = vrot.slane %v2265_v4, 1  ;;  %v2279_v24 = vadd.f32 %v2278_v10, %v2277_v1  ;;  %v2533_v30 = vadd.f32 %v2532_v16, %v2531_v5 }
 0x135   :  { %v2260_v20 = vadd.f32 %v2259_v6, %v2258_v61  ;;  %v2515_v19 = vrot.slane %v2514_v7, 1  ;;  %v2521_v22 = vadd.f32 %v2520_v8, %v2519_v63  ;;  %v2274_v26 = vadd.f32 %v2273_v11, %v2272_v2 }
 0x136   :  { %v2529_v27 = vrot.slane %v2528_v14, 1  ;;  %v2267_v31 = vadd.f32 %v2266_v13, %v2265_v4  ;;  %v2280_v37 = vrot.slane %v2279_v24, 1  ;;  %v2534_v40 = vrot.slane %v2533_v30, 2 }
 0x137   :  { %v2516_v34 = vadd.f32 %v2515_v19, %v2514_v7  ;;  %v2714_v35 = vadd.f32 %v3667_v15, %v2260_v20  ;;  %v2522_v36 = vrot.slane %v2521_v22, 1 }
 0x138   :  { %v2530_v38 = vadd.f32 %v2529_v27, %v2528_v14  ;;  %v2715_v39 = vadd.f32 %v3671_v23, %v2267_v31  ;;  %v2281_v44 = vadd.f32 %v2280_v37, %v2279_v24  ;;  %v2535_v45 = vadd.f32 %v2534_v40, %v2533_v30 }
 0x139   :  { %v2716_v41 = vadd.f32 %v3669_v21, %v2516_v34  ;;  %v3706_v42 = vadd.f32 %v2714_v35, %v2274_v26  ;;  %v2523_v43 = vadd.f32 %v2522_v36, %v2521_v22 }
 0x13a   :  { %v3711_v48 = vadd.f32 %v2715_v39, %v2281_v44  ;;  %v2536_v15 = vrot.slane %v2535_v45, 1 }
 0x13b   :  { %v3708_v46 = vadd.f32 %v2716_v41, %v2530_v38  ;;  %v2717_v47 = vadd.f32 %v3673_v28, %v2523_v43 }
 0x13c   :  { %v2537_v49 = vadd.f32 %v2536_v15, %v2535_v45 }
 0x13e   :  { %v3713_v50 = vadd.f32 %v2717_v47, %v2537_v49 }
 0x149   :  { %v3715_v51 = vpop.f32.mrb[8].mxu0  ;;  %v3721_v0 = vpop.f32.mrb[8].mxu1 }
 0x14a   :  { %v2282_v21 = vsel %vm2225_vm0, %v3715_v51, 0.0  ;;  %v2458_v23 = vmul.f32 %v3715_v51, %v3715_v51  ;;  %v3723_v52 = vpop.f32.mrb[9].mxu0  ;;  %v2296_v28 = vsel %vm2225_vm0, %v3721_v0, 0.0  ;;  %v2460_v54 = vmul.f32 %v3721_v0, %v3721_v0  ;;  %v3731_v56 = vpop.f32.mrb[9].mxu1 }
 0x14b   :  { %v2283_v53 = vrot.slane %v2282_v21, 4  ;;  %v2289_v55 = vsel %vm2225_vm0, %v3723_v52, 0.0  ;;  %v1771_v57 = vpop.f32.mrb[10].mxu0  ;;  %v2297_v59 = vrot.slane %v2296_v28, 4  ;;  %v2459_v61 = vmul.f32 %v3723_v52, %v3723_v52  ;;  %v1812_v62 = vpop.f32.mrb[10].mxu1 }
 0x14c   :  { %v2538_v58 = vsel %vm2225_vm0, %v2458_v23, 0.0  ;;  %v2290_v60 = vrot.slane %v2289_v55, 4  ;;  %v1772_v63 = vpop.f32.mrb[11].mxu0  ;;  %v2552_v3 = vsel %vm2225_vm0, %v2460_v54, 0.0  ;;  %v2303_v4 = vsel %vm2225_vm0, %v3731_v56, 0.0  ;;  %v1813_v5 = vpop.f32.mrb[11].mxu1 }
 0x14d   :  { %v2284_v1 = vadd.f32 %v2283_v53, %v2282_v21  ;;  %v2539_v2 = vrot.slane %v2538_v58, 4  ;;  %v2298_v6 = vadd.f32 %v2297_v59, %v2296_v28  ;;  %v2553_v7 = vrot.slane %v2552_v3, 4 }
 0x14e   :  { %v2291_v8 = vadd.f32 %v2290_v60, %v2289_v55  ;;  %v2545_v10 = vsel %vm2225_vm0, %v2459_v61, 0.0  ;;  %v2304_v16 = vrot.slane %v2303_v4, 4  ;;  %v2461_v24 = vmul.f32 %v3731_v56, %v3731_v56 }
 0x14f   :  { %v2285_v11 = vrot.slane %v2284_v1, 2  ;;  %v2540_v14 = vadd.f32 %v2539_v2, %v2538_v58  ;;  %v2546_v13 = vrot.slane %v2545_v10, 4  ;;  %v2299_v20 = vrot.slane %v2298_v6, 2 }
 0x150   :  { %v2554_v19 = vadd.f32 %v2553_v7, %v2552_v3  ;;  %v2292_v22 = vrot.slane %v2291_v8, 2  ;;  %v2305_v30 = vadd.f32 %v2304_v16, %v2303_v4  ;;  %v2559_v37 = vsel %vm2225_vm0, %v2461_v24, 0.0 }
 0x151   :  { %v2286_v26 = vadd.f32 %v2285_v11, %v2284_v1  ;;  %v2541_v27 = vrot.slane %v2540_v14, 2  ;;  %v2547_v31 = vadd.f32 %v2546_v13, %v2545_v10  ;;  %v2300_v34 = vadd.f32 %v2299_v20, %v2298_v6 }
 0x152   :  { %v2555_v35 = vrot.slane %v2554_v19, 2  ;;  %v2293_v36 = vadd.f32 %v2292_v22, %v2291_v8  ;;  %v2306_v41 = vrot.slane %v2305_v30, 2  ;;  %v2560_v47 = vrot.slane %v2559_v37, 4 }
 0x153   :  { %v2287_v38 = vrot.slane %v2286_v26, 1  ;;  %v2542_v39 = vadd.f32 %v2541_v27, %v2540_v14  ;;  %v2548_v40 = vrot.slane %v2547_v31, 2  ;;  %v2301_v43 = vrot.slane %v2300_v34, 1 }
 0x154   :  { %v2556_v44 = vadd.f32 %v2555_v35, %v2554_v19  ;;  %v2294_v45 = vrot.slane %v2293_v36, 1  ;;  %v2307_v23 = vadd.f32 %v2306_v41, %v2305_v30  ;;  %v2561_v55 = vadd.f32 %v2560_v47, %v2559_v37 }
 0x155   :  { %v2288_v15 = vadd.f32 %v2287_v38, %v2286_v26  ;;  %v2543_v49 = vrot.slane %v2542_v39, 1  ;;  %v2549_v21 = vadd.f32 %v2548_v40, %v2547_v31  ;;  %v2302_v53 = vadd.f32 %v2301_v43, %v2300_v34 }
 0x156   :  { %v2557_v28 = vrot.slane %v2556_v44, 1  ;;  %v2295_v54 = vadd.f32 %v2294_v45, %v2293_v36  ;;  %v2308_v60 = vrot.slane %v2307_v23, 1  ;;  %v2562_v63 = vrot.slane %v2561_v55, 2 }
 0x157   :  { %v2544_v57 = vadd.f32 %v2543_v49, %v2542_v39  ;;  %v2722_v58 = vadd.f32 %v3706_v42, %v2288_v15  ;;  %v2550_v59 = vrot.slane %v2549_v21, 1 }
 0x158   :  { %v2558_v61 = vadd.f32 %v2557_v28, %v2556_v44  ;;  %v2723_v62 = vadd.f32 %v3711_v48, %v2295_v54  ;;  %v2309_v4 = vadd.f32 %v2308_v60, %v2307_v23  ;;  %v2563_v5 = vadd.f32 %v2562_v63, %v2561_v55 }
 0x159   :  { %v2724_v1 = vadd.f32 %v3708_v46, %v2544_v57  ;;  %v3746_v2 = vadd.f32 %v2722_v58, %v2302_v53  ;;  %v2551_v3 = vadd.f32 %v2550_v59, %v2549_v21 }
 0x15a   :  { %v3751_v8 = vadd.f32 %v2723_v62, %v2309_v4  ;;  %v2564_v42 = vrot.slane %v2563_v5, 1 }
 0x15b   :  { %v3748_v6 = vadd.f32 %v2724_v1, %v2558_v61  ;;  %v2725_v7 = vadd.f32 %v3713_v50, %v2551_v3 }
 0x15c   :  { %v2565_v10 = vadd.f32 %v2564_v42, %v2563_v5 }
 0x15e   :  { %v3753_v11 = vadd.f32 %v2725_v7, %v2565_v10 }
 0x169   :  { %v3755_v14 = vpop.f32.mrb[12].mxu0  ;;  %v3761_v13 = vpop.f32.mrb[12].mxu1 }
 0x16a   :  { %v2310_v46 = vsel %vm2225_vm0, %v3755_v14, 0.0  ;;  %v2462_v48 = vmul.f32 %v3755_v14, %v3755_v14  ;;  %v3763_v16 = vpop.f32.mrb[13].mxu0  ;;  %v2324_v50 = vsel %vm2225_vm0, %v3761_v13, 0.0  ;;  %v2464_v19 = vmul.f32 %v3761_v13, %v3761_v13  ;;  %v3771_v24 = vpop.f32.mrb[13].mxu1 }
 0x16b   :  { %v2311_v20 = vrot.slane %v2310_v46, 4  ;;  %v2317_v22 = vsel %vm2225_vm0, %v3763_v16, 0.0  ;;  %v1853_v26 = vpop.f32.mrb[14].mxu0  ;;  %v2325_v31 = vrot.slane %v2324_v50, 4  ;;  %v2463_v34 = vmul.f32 %v3763_v16, %v3763_v16  ;;  %v1894_v35 = vpop.f32.mrb[14].mxu1 }
 0x16c   :  { %v2566_v27 = vsel %vm2225_vm0, %v2462_v48, 0.0  ;;  %v2318_v30 = vrot.slane %v2317_v22, 4  ;;  %v1854_v36 = vpop.f32.mrb[15].mxu0  ;;  %v2580_v39 = vsel %vm2225_vm0, %v2464_v19, 0.0  ;;  %v2331_v40 = vsel %vm2225_vm0, %v3771_v24, 0.0  ;;  %v1895_v41 = vpop.f32.mrb[15].mxu1 }
 0x16d   :  { %v2312_v37 = vadd.f32 %v2311_v20, %v2310_v46  ;;  %v2567_v38 = vrot.slane %v2566_v27, 4  ;;  %v2326_v43 = vadd.f32 %v2325_v31, %v2324_v50  ;;  %v2581_v44 = vrot.slane %v2580_v39, 4 }
 0x16e   :  { %v2319_v45 = vadd.f32 %v2318_v30, %v2317_v22  ;;  %v2573_v47 = vsel %vm2225_vm0, %v2463_v34, 0.0  ;;  %v2332_v23 = vrot.slane %v2331_v40, 4  ;;  %v2465_v55 = vmul.f32 %v3771_v24, %v3771_v24 }
 0x16f   :  { %v2313_v15 = vrot.slane %v2312_v37, 2  ;;  %v2568_v49 = vadd.f32 %v2567_v38, %v2566_v27  ;;  %v2574_v21 = vrot.slane %v2573_v47, 4  ;;  %v2327_v53 = vrot.slane %v2326_v43, 2 }
 0x170   :  { %v2582_v28 = vadd.f32 %v2581_v44, %v2580_v39  ;;  %v2320_v54 = vrot.slane %v2319_v45, 2  ;;  %v2333_v60 = vadd.f32 %v2332_v23, %v2331_v40  ;;  %v2587_v1 = vsel %vm2225_vm0, %v2465_v55, 0.0 }
 0x171   :  { %v2314_v57 = vadd.f32 %v2313_v15, %v2312_v37  ;;  %v2569_v58 = vrot.slane %v2568_v49, 2  ;;  %v2575_v59 = vadd.f32 %v2574_v21, %v2573_v47  ;;  %v2328_v61 = vadd.f32 %v2327_v53, %v2326_v43 }
 0x172   :  { %v2583_v62 = vrot.slane %v2582_v28, 2  ;;  %v2321_v63 = vadd.f32 %v2320_v54, %v2319_v45  ;;  %v2334_v7 = vrot.slane %v2333_v60, 2  ;;  %v2588_v48 = vrot.slane %v2587_v1, 4 }
 0x173   :  { %v2315_v3 = vrot.slane %v2314_v57, 1  ;;  %v2570_v4 = vadd.f32 %v2569_v58, %v2568_v49  ;;  %v2576_v5 = vrot.slane %v2575_v59, 2  ;;  %v2329_v42 = vrot.slane %v2328_v61, 1 }
 0x174   :  { %v2584_v10 = vadd.f32 %v2583_v62, %v2582_v28  ;;  %v2322_v46 = vrot.slane %v2321_v63, 1  ;;  %v2335_v22 = vadd.f32 %v2334_v7, %v2333_v60  ;;  %v2589_v30 = vadd.f32 %v2588_v48, %v2587_v1 }
 0x175   :  { %v2316_v20 = vadd.f32 %v2315_v3, %v2314_v57  ;;  %v2571_v50 = vrot.slane %v2570_v4, 1  ;;  %v2577_v19 = vadd.f32 %v2576_v5, %v2575_v59  ;;  %v2330_v26 = vadd.f32 %v2329_v42, %v2328_v61 }
 0x176   :  { %v2585_v27 = vrot.slane %v2584_v10, 1  ;;  %v2323_v31 = vadd.f32 %v2322_v46, %v2321_v63  ;;  %v2336_v37 = vrot.slane %v2335_v22, 1  ;;  %v2590_v40 = vrot.slane %v2589_v30, 2 }
 0x177   :  { %v2572_v34 = vadd.f32 %v2571_v50, %v2570_v4  ;;  %v2730_v35 = vadd.f32 %v3746_v2, %v2316_v20  ;;  %v2578_v36 = vrot.slane %v2577_v19, 1 }
 0x178   :  { %v2586_v38 = vadd.f32 %v2585_v27, %v2584_v10  ;;  %v2731_v39 = vadd.f32 %v3751_v8, %v2323_v31  ;;  %v2337_v45 = vadd.f32 %v2336_v37, %v2335_v22  ;;  %v2591_v47 = vadd.f32 %v2590_v40, %v2589_v30 }
 0x179   :  { %v2732_v41 = vadd.f32 %v3748_v6, %v2572_v34  ;;  %v3786_v43 = vadd.f32 %v2730_v35, %v2330_v26  ;;  %v2579_v44 = vadd.f32 %v2578_v36, %v2577_v19 }
 0x17a   :  { %v3791_v21 = vadd.f32 %v2731_v39, %v2337_v45  ;;  %v2592_v2 = vrot.slane %v2591_v47, 1 }
 0x17b   :  { %v3788_v15 = vadd.f32 %v2732_v41, %v2586_v38  ;;  %v2733_v49 = vadd.f32 %v3753_v11, %v2579_v44 }
 0x17c   :  { %v2593_v23 = vadd.f32 %v2592_v2, %v2591_v47 }
 0x17e   :  { %v3793_v53 = vadd.f32 %v2733_v49, %v2593_v23 }
 0x189   :  { %v3795_v28 = vpop.f32.mrb[16].mxu0  ;;  %v3801_v54 = vpop.f32.mrb[16].mxu1 }
 0x18a   :  { %v2338_v6 = vsel %vm2225_vm0, %v3795_v28, 0.0  ;;  %v2466_v8 = vmul.f32 %v3795_v28, %v3795_v28  ;;  %v3803_v55 = vpop.f32.mrb[17].mxu0  ;;  %v2352_v11 = vsel %vm2225_vm0, %v3801_v54, 0.0  ;;  %v2468_v58 = vmul.f32 %v3801_v54, %v3801_v54  ;;  %v3811_v60 = vpop.f32.mrb[17].mxu1 }
 0x18b   :  { %v2339_v57 = vrot.slane %v2338_v6, 4  ;;  %v2345_v59 = vsel %vm2225_vm0, %v3803_v55, 0.0  ;;  %v1935_v61 = vpop.f32.mrb[18].mxu0  ;;  %v2353_v63 = vrot.slane %v2352_v11, 4  ;;  %v2467_v3 = vmul.f32 %v3803_v55, %v3803_v55  ;;  %v1976_v4 = vpop.f32.mrb[18].mxu1 }
 0x18c   :  { %v2594_v62 = vsel %vm2225_vm0, %v2466_v8, 0.0  ;;  %v2346_v1 = vrot.slane %v2345_v59, 4  ;;  %v1936_v5 = vpop.f32.mrb[19].mxu0  ;;  %v2608_v10 = vsel %vm2225_vm0, %v2468_v58, 0.0  ;;  %v2359_v46 = vsel %vm2225_vm0, %v3811_v60, 0.0  ;;  %v1977_v48 = vpop.f32.mrb[19].mxu1 }
 0x18d   :  { %v2340_v7 = vadd.f32 %v2339_v57, %v2338_v6  ;;  %v2595_v42 = vrot.slane %v2594_v62, 4  ;;  %v2354_v20 = vadd.f32 %v2353_v63, %v2352_v11  ;;  %v2609_v50 = vrot.slane %v2608_v10, 4 }
 0x18e   :  { %v2347_v19 = vadd.f32 %v2346_v1, %v2345_v59  ;;  %v2601_v22 = vsel %vm2225_vm0, %v2467_v3, 0.0  ;;  %v2360_v30 = vrot.slane %v2359_v46, 4  ;;  %v2469_v37 = vmul.f32 %v3811_v60, %v3811_v60 }
 0x18f   :  { %v2341_v26 = vrot.slane %v2340_v7, 2  ;;  %v2596_v27 = vadd.f32 %v2595_v42, %v2594_v62  ;;  %v2602_v31 = vrot.slane %v2601_v22, 4  ;;  %v2355_v34 = vrot.slane %v2354_v20, 2 }
 0x190   :  { %v2610_v35 = vadd.f32 %v2609_v50, %v2608_v10  ;;  %v2348_v36 = vrot.slane %v2347_v19, 2  ;;  %v2361_v41 = vadd.f32 %v2360_v30, %v2359_v46  ;;  %v2615_v49 = vsel %vm2225_vm0, %v2469_v37, 0.0 }
 0x191   :  { %v2342_v38 = vadd.f32 %v2341_v26, %v2340_v7  ;;  %v2597_v39 = vrot.slane %v2596_v27, 2  ;;  %v2603_v40 = vadd.f32 %v2602_v31, %v2601_v22  ;;  %v2356_v44 = vadd.f32 %v2355_v34, %v2354_v20 }
 0x192   :  { %v2611_v45 = vrot.slane %v2610_v35, 2  ;;  %v2349_v47 = vadd.f32 %v2348_v36, %v2347_v19  ;;  %v2362_v8 = vrot.slane %v2361_v41, 2  ;;  %v2616_v59 = vrot.slane %v2615_v49, 4 }
 0x193   :  { %v2343_v2 = vrot.slane %v2342_v38, 1  ;;  %v2598_v23 = vadd.f32 %v2597_v39, %v2596_v27  ;;  %v2604_v6 = vrot.slane %v2603_v40, 2  ;;  %v2357_v57 = vrot.slane %v2356_v44, 1 }
 0x194   :  { %v2612_v11 = vadd.f32 %v2611_v45, %v2610_v35  ;;  %v2350_v58 = vrot.slane %v2349_v47, 1  ;;  %v2363_v1 = vadd.f32 %v2362_v8, %v2361_v41  ;;  %v2617_v7 = vadd.f32 %v2616_v59, %v2615_v49 }
 0x195   :  { %v2344_v61 = vadd.f32 %v2343_v2, %v2342_v38  ;;  %v2599_v62 = vrot.slane %v2598_v23, 1  ;;  %v2605_v63 = vadd.f32 %v2604_v6, %v2603_v40  ;;  %v2358_v3 = vadd.f32 %v2357_v57, %v2356_v44 }
 0x196   :  { %v2613_v4 = vrot.slane %v2612_v11, 1  ;;  %v2351_v5 = vadd.f32 %v2350_v58, %v2349_v47  ;;  %v2364_v48 = vrot.slane %v2363_v1, 1  ;;  %v2618_v19 = vrot.slane %v2617_v7, 2 }
 0x197   :  { %v2600_v42 = vadd.f32 %v2599_v62, %v2598_v23  ;;  %v2738_v10 = vadd.f32 %v3786_v43, %v2344_v61  ;;  %v2606_v46 = vrot.slane %v2605_v63, 1 }
 0x198   :  { %v2614_v20 = vadd.f32 %v2613_v4, %v2612_v11  ;;  %v2739_v50 = vadd.f32 %v3791_v21, %v2351_v5  ;;  %v2365_v31 = vadd.f32 %v2364_v48, %v2363_v1  ;;  %v2619_v30 = vadd.f32 %v2618_v19, %v2617_v7 }
 0x199   :  { %v2740_v22 = vadd.f32 %v3788_v15, %v2600_v42  ;;  %v3826_v26 = vadd.f32 %v2738_v10, %v2358_v3  ;;  %v2607_v27 = vadd.f32 %v2606_v46, %v2605_v63 }
 0x19a   :  { %v3831_v36 = vadd.f32 %v2739_v50, %v2365_v31  ;;  %v2620_v43 = vrot.slane %v2619_v30, 1 }
 0x19b   :  { %v3828_v34 = vadd.f32 %v2740_v22, %v2614_v20  ;;  %v2741_v35 = vadd.f32 %v3793_v53, %v2607_v27 }
 0x19c   :  { %v2621_v37 = vadd.f32 %v2620_v43, %v2619_v30 }
 0x19e   :  { %v3833_v38 = vadd.f32 %v2741_v35, %v2621_v37 }
 0x1a9   :  { %v3835_v39 = vpop.f32.mrb[20].mxu0  ;;  %v3841_v40 = vpop.f32.mrb[20].mxu1 }
 0x1aa   :  { %v2366_v15 = vsel %vm2225_vm0, %v3835_v39, 0.0  ;;  %v2470_v21 = vmul.f32 %v3835_v39, %v3835_v39  ;;  %v3843_v41 = vpop.f32.mrb[21].mxu0  ;;  %v2380_v53 = vsel %vm2225_vm0, %v3841_v40, 0.0  ;;  %v2472_v45 = vmul.f32 %v3841_v40, %v3841_v40  ;;  %v3851_v49 = vpop.f32.mrb[21].mxu1 }
 0x1ab   :  { %v2367_v44 = vrot.slane %v2366_v15, 4  ;;  %v2373_v47 = vsel %vm2225_vm0, %v3843_v41, 0.0  ;;  %v2017_v2 = vpop.f32.mrb[22].mxu0  ;;  %v2381_v6 = vrot.slane %v2380_v53, 4  ;;  %v2471_v57 = vmul.f32 %v3843_v41, %v3843_v41  ;;  %v2058_v11 = vpop.f32.mrb[22].mxu1 }
 0x1ac   :  { %v2622_v23 = vsel %vm2225_vm0, %v2470_v21, 0.0  ;;  %v2374_v8 = vrot.slane %v2373_v47, 4  ;;  %v2018_v58 = vpop.f32.mrb[23].mxu0  ;;  %v2636_v62 = vsel %vm2225_vm0, %v2472_v45, 0.0  ;;  %v2387_v63 = vsel %vm2225_vm0, %v3851_v49, 0.0  ;;  %v2059_v1 = vpop.f32.mrb[23].mxu1 }
 0x1ad   :  { %v2368_v59 = vadd.f32 %v2367_v44, %v2366_v15  ;;  %v2623_v61 = vrot.slane %v2622_v23, 4  ;;  %v2382_v3 = vadd.f32 %v2381_v6, %v2380_v53  ;;  %v2637_v4 = vrot.slane %v2636_v62, 4 }
 0x1ae   :  { %v2375_v5 = vadd.f32 %v2374_v8, %v2373_v47  ;;  %v2629_v7 = vsel %vm2225_vm0, %v2471_v57, 0.0  ;;  %v2388_v48 = vrot.slane %v2387_v63, 4  ;;  %v2473_v22 = vmul.f32 %v3851_v49, %v3851_v49 }
 0x1af   :  { %v2369_v42 = vrot.slane %v2368_v59, 2  ;;  %v2624_v10 = vadd.f32 %v2623_v61, %v2622_v23  ;;  %v2630_v46 = vrot.slane %v2629_v7, 4  ;;  %v2383_v20 = vrot.slane %v2382_v3, 2 }
 0x1b0   :  { %v2638_v50 = vadd.f32 %v2637_v4, %v2636_v62  ;;  %v2376_v19 = vrot.slane %v2375_v5, 2  ;;  %v2389_v35 = vadd.f32 %v2388_v48, %v2387_v63  ;;  %v2643_v21 = vsel %vm2225_vm0, %v2473_v22, 0.0 }
 0x1b1   :  { %v2370_v27 = vadd.f32 %v2369_v42, %v2368_v59  ;;  %v2625_v31 = vrot.slane %v2624_v10, 2  ;;  %v2631_v30 = vadd.f32 %v2630_v46, %v2629_v7  ;;  %v2384_v43 = vadd.f32 %v2383_v20, %v2382_v3 }
 0x1b2   :  { %v2639_v37 = vrot.slane %v2638_v50, 2  ;;  %v2377_v15 = vadd.f32 %v2376_v19, %v2375_v5  ;;  %v2390_v47 = vrot.slane %v2389_v35, 2  ;;  %v2644_v8 = vrot.slane %v2643_v21, 4 }
 0x1b3   :  { %v2371_v44 = vrot.slane %v2370_v27, 1  ;;  %v2626_v53 = vadd.f32 %v2625_v31, %v2624_v10  ;;  %v2632_v45 = vrot.slane %v2631_v30, 2  ;;  %v2385_v2 = vrot.slane %v2384_v43, 1 }
 0x1b4   :  { %v2640_v23 = vadd.f32 %v2639_v37, %v2638_v50  ;;  %v2378_v6 = vrot.slane %v2377_v15, 1  ;;  %v2391_v59 = vadd.f32 %v2390_v47, %v2389_v35  ;;  %v2645_v1 = vadd.f32 %v2644_v8, %v2643_v21 }
 0x1b5   :  { %v2372_v57 = vadd.f32 %v2371_v44, %v2370_v27  ;;  %v2627_v11 = vrot.slane %v2626_v53, 1  ;;  %v2633_v58 = vadd.f32 %v2632_v45, %v2631_v30  ;;  %v2386_v61 = vadd.f32 %v2385_v2, %v2384_v43 }
 0x1b6   :  { %v2641_v62 = vrot.slane %v2640_v23, 1  ;;  %v2379_v63 = vadd.f32 %v2378_v6, %v2377_v15  ;;  %v2392_v7 = vrot.slane %v2391_v59, 1  ;;  %v2646_v46 = vrot.slane %v2645_v1, 2 }
 0x1b7   :  { %v2628_v3 = vadd.f32 %v2627_v11, %v2626_v53  ;;  %v2746_v4 = vadd.f32 %v3826_v26, %v2372_v57  ;;  %v2634_v5 = vrot.slane %v2633_v58, 1 }
 0x1b8   :  { %v2642_v42 = vadd.f32 %v2641_v62, %v2640_v23  ;;  %v2747_v10 = vadd.f32 %v3831_v36, %v2379_v63  ;;  %v2393_v19 = vadd.f32 %v2392_v7, %v2391_v59  ;;  %v2647_v22 = vadd.f32 %v2646_v46, %v2645_v1 }
 0x1b9   :  { %v2748_v48 = vadd.f32 %v3828_v34, %v2628_v3  ;;  %v3866_v20 = vadd.f32 %v2746_v4, %v2386_v61  ;;  %v2635_v50 = vadd.f32 %v2634_v5, %v2633_v58 }
 0x1ba   :  { %v3871_v30 = vadd.f32 %v2747_v10, %v2393_v19  ;;  %v2648_v26 = vrot.slane %v2647_v22, 1 }
 0x1bb   :  { %v3868_v27 = vadd.f32 %v2748_v48, %v2642_v42  ;;  %v2749_v31 = vadd.f32 %v3833_v38, %v2635_v50 }
 0x1bc   :  { %v2649_v35 = vadd.f32 %v2648_v26, %v2647_v22 }
 0x1be   :  { %v3873_v43 = vadd.f32 %v2749_v31, %v2649_v35 }
 0x1c9   :  { %v3875_v37 = vpop.f32.mrb[24].mxu0  ;;  %v3881_v15 = vpop.f32.mrb[24].mxu1 }
 0x1ca   :  { %v2394_v34 = vsel %vm2225_vm0, %v3875_v37, 0.0  ;;  %v2474_v36 = vmul.f32 %v3875_v37, %v3875_v37  ;;  %v3883_v21 = vpop.f32.mrb[25].mxu0  ;;  %v2408_v38 = vsel %vm2225_vm0, %v3881_v15, 0.0  ;;  %v2476_v53 = vmul.f32 %v3881_v15, %v3881_v15  ;;  %v3891_v47 = vpop.f32.mrb[25].mxu1 }
 0x1cb   :  { %v2395_v44 = vrot.slane %v2394_v34, 4  ;;  %v2401_v45 = vsel %vm2225_vm0, %v3883_v21, 0.0  ;;  %v2099_v2 = vpop.f32.mrb[26].mxu0  ;;  %v2409_v6 = vrot.slane %v2408_v38, 4  ;;  %v2475_v57 = vmul.f32 %v3883_v21, %v3883_v21  ;;  %v2140_v11 = vpop.f32.mrb[26].mxu1 }
 0x1cc   :  { %v2650_v23 = vsel %vm2225_vm0, %v2474_v36, 0.0  ;;  %v2402_v8 = vrot.slane %v2401_v45, 4  ;;  %v2100_v58 = vpop.f32.mrb[27].mxu0  ;;  %v2664_v62 = vsel %vm2225_vm0, %v2476_v53, 0.0  ;;  %v2415_v63 = vsel %vm2225_vm0, %v3891_v47, 0.0  ;;  %v2141_v1 = vpop.f32.mrb[27].mxu1 }
 0x1cd   :  { %v2396_v59 = vadd.f32 %v2395_v44, %v2394_v34  ;;  %v2651_v61 = vrot.slane %v2650_v23, 4  ;;  %v2410_v3 = vadd.f32 %v2409_v6, %v2408_v38  ;;  %v2665_v4 = vrot.slane %v2664_v62, 4 }
 0x1ce   :  { %v2403_v5 = vadd.f32 %v2402_v8, %v2401_v45  ;;  %v2657_v7 = vsel %vm2225_vm0, %v2475_v57, 0.0  ;;  %v2416_v48 = vrot.slane %v2415_v63, 4  ;;  %v2477_v31 = vmul.f32 %v3891_v47, %v3891_v47 }
 0x1cf   :  { %v2397_v42 = vrot.slane %v2396_v59, 2  ;;  %v2652_v10 = vadd.f32 %v2651_v61, %v2650_v23  ;;  %v2658_v46 = vrot.slane %v2657_v7, 4  ;;  %v2411_v50 = vrot.slane %v2410_v3, 2 }
 0x1d0   :  { %v2666_v19 = vadd.f32 %v2665_v4, %v2664_v62  ;;  %v2404_v22 = vrot.slane %v2403_v5, 2  ;;  %v2417_v36 = vadd.f32 %v2416_v48, %v2415_v63  ;;  %v2671_v45 = vsel %vm2225_vm0, %v2477_v31, 0.0 }
 0x1d1   :  { %v2398_v26 = vadd.f32 %v2397_v42, %v2396_v59  ;;  %v2653_v35 = vrot.slane %v2652_v10, 2  ;;  %v2659_v34 = vadd.f32 %v2658_v46, %v2657_v7  ;;  %v2412_v44 = vadd.f32 %v2411_v50, %v2410_v3 }
 0x1d2   :  { %v2667_v38 = vrot.slane %v2666_v19, 2  ;;  %v2405_v53 = vadd.f32 %v2404_v22, %v2403_v5  ;;  %v2418_v8 = vrot.slane %v2417_v36, 2  ;;  %v2672_v61 = vrot.slane %v2671_v45, 4 }
 0x1d3   :  { %v2399_v2 = vrot.slane %v2398_v26, 1  ;;  %v2654_v6 = vadd.f32 %v2653_v35, %v2652_v10  ;;  %v2660_v23 = vrot.slane %v2659_v34, 2  ;;  %v2413_v57 = vrot.slane %v2412_v44, 1 }
 0x1d4   :  { %v2668_v11 = vadd.f32 %v2667_v38, %v2666_v19  ;;  %v2406_v58 = vrot.slane %v2405_v53, 1  ;;  %v2419_v59 = vadd.f32 %v2418_v8, %v2417_v36  ;;  %v2673_v3 = vadd.f32 %v2672_v61, %v2671_v45 }
 0x1d5   :  { %v2400_v62 = vadd.f32 %v2399_v2, %v2398_v26  ;;  %v2655_v1 = vrot.slane %v2654_v6, 1  ;;  %v2661_v4 = vadd.f32 %v2660_v23, %v2659_v34  ;;  %v2414_v42 = vadd.f32 %v2413_v57, %v2412_v44 }
 0x1d6   :  { %v2669_v7 = vrot.slane %v2668_v11, 1  ;;  %v2407_v63 = vadd.f32 %v2406_v58, %v2405_v53  ;;  %v2420_v50 = vrot.slane %v2419_v59, 1  ;;  %v2674_v31 = vrot.slane %v2673_v3, 2 }
 0x1d7   :  { %v2656_v46 = vadd.f32 %v2655_v1, %v2654_v6  ;;  %v2754_v5 = vadd.f32 %v3866_v20, %v2400_v62  ;;  %v2662_v48 = vrot.slane %v2661_v4, 1 }
 0x1d8   :  { %v2670_v10 = vadd.f32 %v2669_v7, %v2668_v11  ;;  %v2755_v22 = vadd.f32 %v3871_v30, %v2407_v63  ;;  %v2421_v34 = vadd.f32 %v2420_v50, %v2419_v59  ;;  %v2675_v36 = vadd.f32 %v2674_v31, %v2673_v3 }
 0x1d9   :  { %v2756_v19 = vadd.f32 %v3868_v27, %v2656_v46  ;;  %v3906_v35 = vadd.f32 %v2754_v5, %v2414_v42  ;;  %v2663_v26 = vadd.f32 %v2662_v48, %v2661_v4 }
 0x1da   :  { %v3911_v53 = vadd.f32 %v2755_v22, %v2421_v34  ;;  %v2676_v20 = vrot.slane %v2675_v36, 1 }
 0x1db   :  { %v3908_v44 = vadd.f32 %v2756_v19, %v2670_v10  ;;  %v2757_v38 = vadd.f32 %v3873_v43, %v2663_v26 }
 0x1dc   :  { %v2677_v45 = vadd.f32 %v2676_v20, %v2675_v36 }
 0x1de   :  { %v3913_v2 = vadd.f32 %v2757_v38, %v2677_v45 }
 0x1e9   :  { %v3915_v6 = vpop.f32.mrb[28].mxu0  ;;  %v3921_v23 = vpop.f32.mrb[28].mxu1 }
 0x1ea   :  { %4099 = vst [vmem:[#allocation5_spill] sm:$0xff] %v3915_v6  ;;  %v2422_v27 = vsel %vm2225_vm0, %v3915_v6, 0.0  ;;  %v2478_v30 = vmul.f32 %v3915_v6, %v3915_v6  ;;  %4100 = vst [vmem:[#allocation6_spill] sm:$0xff] %v3921_v23  ;;  %v3923_v8 = vpop.f32.mrb[29].mxu0  ;;  %v2436_v43 = vsel %vm2225_vm0, %v3921_v23, 0.0  ;;  %v2480_v11 = vmul.f32 %v3921_v23, %v3921_v23  ;;  %v3931_v61 = vpop.f32.mrb[29].mxu1 }
 0x1eb   :  { %4101 = vst [vmem:[#allocation7_spill] sm:$0xff] %v3923_v8  ;;  %v2423_v57 = vrot.slane %v2422_v27, 4  ;;  %v2429_v58 = vsel %vm2225_vm0, %v3923_v8, 0.0  ;;  %4102 = vst [vmem:[#allocation8_spill] sm:$0xff] %v3931_v61  ;;  %v2181_v62 = vpop.f32.mrb[30].mxu0  ;;  %v2437_v4 = vrot.slane %v2436_v43, 4  ;;  %v2479_v42 = vmul.f32 %v3923_v8, %v3923_v8 }
 0x1ec   :  { %v2678_v1 = vsel %vm2225_vm0, %v2478_v30, 0.0  ;;  %v2430_v59 = vrot.slane %v2429_v58, 4  ;;  %v2222_v7 = vpop.f32.mrb[30].mxu1  ;;  %v2182_v63 = vpop.f32.mrb[31].mxu0  ;;  %v2692_v5 = vsel %vm2225_vm0, %v2480_v11, 0.0  ;;  %v2443_v48 = vsel %vm2225_vm0, %v3931_v61, 0.0 }
 0x1ed   :  { %v2424_v3 = vadd.f32 %v2423_v57, %v2422_v27  ;;  %v2679_v46 = vrot.slane %v2678_v1, 4  ;;  %v2223_v50 = vpop.f32.mrb[31].mxu1  ;;  %v2438_v10 = vadd.f32 %v2437_v4, %v2436_v43  ;;  %v2693_v22 = vrot.slane %v2692_v5, 4 }
 0x1ee   :  { %v2431_v31 = vadd.f32 %v2430_v59, %v2429_v58  ;;  %v2685_v19 = vsel %vm2225_vm0, %v2479_v42, 0.0  ;;  %v2444_v38 = vrot.slane %v2443_v48, 4  ;;  %v2481_v27 = vmul.f32 %v3931_v61, %v3931_v61 }
 0x1ef   :  { %v2425_v26 = vrot.slane %v2424_v3, 2  ;;  %v2680_v34 = vadd.f32 %v2679_v46, %v2678_v1  ;;  %v2686_v36 = vrot.slane %v2685_v19, 4  ;;  %v2439_v20 = vrot.slane %v2438_v10, 2 }
 0x1f0   :  { %v2694_v45 = vadd.f32 %v2693_v22, %v2692_v5  ;;  %v2432_v30 = vrot.slane %v2431_v31, 2  ;;  %v2445_v7 = vadd.f32 %v2444_v38, %v2443_v48  ;;  %v2699_v58 = vsel %vm2225_vm0, %v2481_v27, 0.0 }
 0x1f1   :  { %v2426_v57 = vadd.f32 %v2425_v26, %v2424_v3  ;;  %v2681_v11 = vrot.slane %v2680_v34, 2  ;;  %v2687_v62 = vadd.f32 %v2686_v36, %v2685_v19  ;;  %v2440_v63 = vadd.f32 %v2439_v20, %v2438_v10 }
 0x1f2   :  { %v2695_v43 = vrot.slane %v2694_v45, 2  ;;  %v2433_v4 = vadd.f32 %v2432_v30, %v2431_v31  ;;  %v2446_v46 = vrot.slane %v2445_v7, 2  ;;  %v2700_v22 = vrot.slane %v2699_v58, 4 }
 0x1f3   :  { %v2427_v59 = vrot.slane %v2426_v57, 1  ;;  %v2682_v42 = vadd.f32 %v2681_v11, %v2680_v34  ;;  %v2688_v1 = vrot.slane %v2687_v62, 2  ;;  %v2441_v50 = vrot.slane %v2440_v63, 1 }
 0x1f4   :  { %v2696_v23 = vadd.f32 %v2695_v43, %v2694_v45  ;;  %v2434_v5 = vrot.slane %v2433_v4, 1  ;;  %v2447_v3 = vadd.f32 %v2446_v46, %v2445_v7  ;;  %v2701_v10 = vadd.f32 %v2700_v22, %v2699_v58 }
 0x1f5   :  { %v2428_v8 = vadd.f32 %v2427_v59, %v2426_v57  ;;  %v2683_v6 = vrot.slane %v2682_v42, 1  ;;  %v2689_v61 = vadd.f32 %v2688_v1, %v2687_v62  ;;  %v2442_v26 = vadd.f32 %v2441_v50, %v2440_v63 }
 0x1f6   :  { %v2697_v19 = vrot.slane %v2696_v23, 1  ;;  %v2435_v48 = vadd.f32 %v2434_v5, %v2433_v4  ;;  %v2448_v20 = vrot.slane %v2447_v3, 1  ;;  %v2702_v27 = vrot.slane %v2701_v10, 2 }
 0x1f7   :  { %v2684_v36 = vadd.f32 %v2683_v6, %v2682_v42  ;;  %v2762_v31 = vadd.f32 %v3906_v35, %v2428_v8  ;;  %v2690_v38 = vrot.slane %v2689_v61, 1 }
 0x1f8   :  { %v2698_v34 = vadd.f32 %v2697_v19, %v2696_v23  ;;  %v2763_v30 = vadd.f32 %v3911_v53, %v2435_v48  ;;  %v2449_v43 = vadd.f32 %v2448_v20, %v2447_v3  ;;  %v2703_v62 = vadd.f32 %v2702_v27, %v2701_v10 }
 0x1f9   :  { %v2764_v45 = vadd.f32 %v3908_v44, %v2684_v36  ;;  %v2766_v11 = vadd.f32 %v2762_v31, %v2442_v26  ;;  %v2691_v57 = vadd.f32 %v2690_v38, %v2689_v61  ;;  %v3543_v3 = vmov 1966171168  }
 0x1fa   :  { %v2767_v58 = vadd.f32 %v2763_v30, %v2449_v43  ;;  %v2704_v6 = vrot.slane %v2703_v62, 1  ;;  %v2789_v26 = vunpack.c.l.s4 %v3543_v3 }
 0x1fb   :  { %v2768_v7 = vadd.f32 %v2764_v45, %v2698_v34  ;;  %v2770_v63 = vmul.f32 0.03125, %v2766_v11  ;;  %v2765_v4 = vadd.f32 %v3913_v2, %v2691_v57  ;;  %v2791_v2 = vlaneseq  ;;  %v2780_v34 = vld [vmem:[%s4092_s2] sm:$0x3] }
 0x1fc   :  { %v2771_v8 = vmul.f32 0.03125, %v2767_v58  ;;  %v2705_v42 = vadd.f32 %v2704_v6, %v2703_v62  ;;  %v2790_v19 = vunpack.c.0.s8 %v2789_v26 }
 0x1fd   :  { %v2772_v59 = vmul.f32 0.03125, %v2768_v7  ;;  %v2774_v35 = vmul.f32 %v2770_v63, %v2770_v63  ;;  %v2792_v48 = vshrl.u32 %v2791_v2, 7 }
 0x1fe   :  { %v2769_v1 = vadd.f32 %v2765_v4, %v2705_v42  ;;  %v2775_v53 = vmul.f32 %v2771_v8, %v2771_v8 }
 0x1ff   :  { %v2776_v23 = vsub.f32 %v2772_v59, %v2774_v35  ;;  %v3947_v36 = vsub.s32 %v2790_v19, %v2792_v48  ;;  %v2808_v27 = vsub.s32 0, %v2792_v48  ;;  %v2812_v45 = vsub.s32 1, %v2792_v48  ;;  %v4105_v19 = vld [vmem:[#allocation6_spill] sm:$0xff]  ;;  %v4106_v48 = vld [vmem:[#allocation8_spill] sm:$0xff] }
 0x200   :  { %v2773_v50 = vmul.f32 0.03125, %v2769_v1 }
 0x201   :  { %v2778_v46 = vmax.f32 %v2776_v23, 0.0 }
 0x202   :  { %v2777_v5 = vsub.f32 %v2773_v50, %v2775_v53 }
 0x203   :  { %v2781_v44 = vadd.f32 1e-05, %v2778_v46 }
 0x204   :  { %v2779_v61 = vmax.f32 %v2777_v5, 0.0 }
 0x205   :  { %3510 = vrsqrt.f32 %v2781_v44 }
 0x206   :  { %v2782_v22 = vadd.f32 1e-05, %v2779_v61 }
 0x208   :  { %3512 = vrsqrt.f32 %v2782_v22 }
 0x20f   :  { %v3511_v10 = vpop.eup %3510 }
 0x212   :  { %v3513_v31 = vpop.eup %3512 }
 0x213   :  { %v2787_v38 = vcombine.low %v3511_v10, %v3513_v31 }
 0x215   :  { %v2794_v20 = vrot.slane %v2787_v38, %v3947_v36 }
 0x217   :  { %v2801_v30 = vrot.slane %v2794_v20, %v3947_v36 }
 0x219   :  { %v2803_v11 = vmul.f32 %v2801_v30, %v2780_v34 }
 0x21b   :  { %v2809_v57 = vrot.slane %v2803_v11, %v2808_v27  ;;  %v2813_v43 = vrot.slane %v2803_v11, %v2812_v45 }
 0x21d   :  { %v2816_v62 = vmul.f32 %v2809_v57, %v2770_v63  ;;  %v2817_v7 = vmul.f32 %v2813_v43, %v2771_v8  ;;  %v2851_v4 = vrot.slane %v2809_v57, %v2808_v27  ;;  %v2855_v58 = vrot.slane %v2813_v43, %v2808_v27 }
 0x21f   :  { %v2820_v6 = vcombine.low %v2816_v62, %v2817_v7  ;;  %v2856_v59 = vmul.f32 %v2851_v4, %v3629_v9  ;;  %v2857_v35 = vmul.f32 %v2855_v58, %v3641_v18  ;;  %v2858_v42 = vmul.f32 %v2851_v4, %v3639_v17  ;;  %v2804_v17 = vld [vmem:[%s4093_s3] sm:$0x3] }
 0x220   :  { %v2859_v23 = vmul.f32 %v2855_v58, %v3653_v25  ;;  %v2860_v1 = vmul.f32 %v2851_v4, %v3675_v29  ;;  %v2861_v53 = vmul.f32 %v2855_v58, %v3683_v33  ;;  %v2862_v46 = vmul.f32 %v2851_v4, %v3681_v32 }
 0x221   :  { %v2827_v63 = vrot.slane %v2820_v6, %v3947_v36  ;;  %v2863_v8 = vmul.f32 %v2855_v58, %v3691_v12  ;;  %v2864_v50 = vmul.f32 %v2851_v4, %v3715_v51  ;;  %v2865_v9 = vmul.f32 %v2855_v58, %v3723_v52 }
 0x222   :  { %v2866_v18 = vmul.f32 %v2851_v4, %v3721_v0  ;;  %v2867_v25 = vmul.f32 %v2855_v58, %v3731_v56  ;;  %v2868_v29 = vmul.f32 %v2851_v4, %v3755_v14  ;;  %v2869_v32 = vmul.f32 %v2855_v58, %v3763_v16 }
 0x223   :  { %v2834_v33 = vrot.slane %v2827_v63, %v3947_v36  ;;  %v2870_v12 = vmul.f32 %v2851_v4, %v3761_v13  ;;  %v2871_v51 = vmul.f32 %v2855_v58, %v3771_v24  ;;  %v2872_v52 = vmul.f32 %v2851_v4, %v3795_v28 }
 0x224   :  { %v2873_v44 = vmul.f32 %v2855_v58, %v3803_v55  ;;  %v2874_v5 = vmul.f32 %v2851_v4, %v3801_v54  ;;  %v2875_v0 = vmul.f32 %v2855_v58, %v3811_v60  ;;  %v2876_v56 = vmul.f32 %v2851_v4, %v3835_v39  ;;  %v4103_v60 = vld [vmem:[#allocation5_spill] sm:$0xff]  ;;  %v4104_v39 = vld [vmem:[#allocation7_spill] sm:$0xff] }
 0x225   :  { %v2836_v61 = vsub.f32 %v2804_v17, %v2834_v33  ;;  %v2877_v14 = vmul.f32 %v2855_v58, %v3843_v41  ;;  %v2878_v16 = vmul.f32 %v2851_v4, %v3841_v40  ;;  %v2879_v22 = vmul.f32 %v2855_v58, %v3851_v49 }
 0x226   :  { %v2880_v13 = vmul.f32 %v2851_v4, %v3875_v37  ;;  %v2881_v24 = vmul.f32 %v2855_v58, %v3883_v21  ;;  %v2882_v28 = vmul.f32 %v2851_v4, %v3881_v15  ;;  %v2883_v55 = vmul.f32 %v2855_v58, %v3891_v47 }
 0x227   :  { %v2841_v54 = vrot.slane %v2836_v61, %v2808_v27  ;;  %v2845_v3 = vrot.slane %v2836_v61, %v2812_v45  ;;  %v2884_v26 = vmul.f32 %v2851_v4, %v4103_v60  ;;  %v2885_v2 = vmul.f32 %v2855_v58, %v4104_v39 }
 0x228   :  { %v2886_v41 = vmul.f32 %v2851_v4, %v4105_v19  ;;  %v2887_v40 = vmul.f32 %v2855_v58, %v4106_v48 }
 0x229   :  { %v2891_v10 = vrot.slane %v2841_v54, %v2808_v27  ;;  %v2895_v49 = vrot.slane %v2845_v3, %v2808_v27 }
 0x22b   :  { %v3991_v31 = vadd.f32 %v2891_v10, %v2856_v59  ;;  %v3993_v37 = vadd.f32 %v2895_v49, %v2857_v35  ;;  %v3995_v21 = vadd.f32 %v2891_v10, %v2858_v42  ;;  %v3997_v15 = vadd.f32 %v2895_v49, %v2859_v23 }
 0x22c   :  { %v3999_v47 = vadd.f32 %v2891_v10, %v2860_v1  ;;  %v2901_v38 = vadd.f32 %v2895_v49, %v2861_v53  ;;  %v2902_v20 = vadd.f32 %v2891_v10, %v2862_v46  ;;  %v2903_v34 = vadd.f32 %v2895_v49, %v2863_v8 }
 0x22d   :  { %v2904_v30 = vadd.f32 %v2891_v10, %v2864_v50  ;;  %v2905_v45 = vadd.f32 %v2895_v49, %v2865_v9  ;;  %v2906_v11 = vadd.f32 %v2891_v10, %v2866_v18  ;;  %v2907_v57 = vadd.f32 %v2895_v49, %v2867_v25 }
 0x22e   :  { %v2908_v43 = vadd.f32 %v2891_v10, %v2868_v29  ;;  %v2909_v62 = vadd.f32 %v2895_v49, %v2869_v32  ;;  %v2910_v27 = vadd.f32 %v2891_v10, %v2870_v12  ;;  %v2911_v7 = vadd.f32 %v2895_v49, %v2871_v51 }
 0x22f   :  { %v4001_v4 = vadd.f32 %v2891_v10, %v2872_v52  ;;  %v4003_v58 = vadd.f32 %v2895_v49, %v2873_v44  ;;  %v4005_v6 = vadd.f32 %v2891_v10, %v2874_v5  ;;  %v4007_v59 = vadd.f32 %v2895_v49, %v2875_v0 }
 0x230   :  { %v4009_v35 = vadd.f32 %v2891_v10, %v2876_v56  ;;  %v4011_v42 = vadd.f32 %v2895_v49, %v2877_v14  ;;  %v4013_v23 = vadd.f32 %v2891_v10, %v2878_v16  ;;  %v4015_v1 = vadd.f32 %v2895_v49, %v2879_v22 }
 0x231   :  { %v4017_v53 = vadd.f32 %v2891_v10, %v2880_v13  ;;  %v4019_v46 = vadd.f32 %v2895_v49, %v2881_v24  ;;  %v4021_v63 = vadd.f32 %v2891_v10, %v2882_v28  ;;  %v4023_v8 = vadd.f32 %v2895_v49, %v2883_v55 }
 0x232   :  { %v4025_v50 = vadd.f32 %v2891_v10, %v2884_v26  ;;  %v4027_v9 = vadd.f32 %v2895_v49, %v2885_v2  ;;  %v4029_v17 = vadd.f32 %v2891_v10, %v2886_v41  ;;  %v4031_v18 = vadd.f32 %v2895_v49, %v2887_v40 }
 0x233   :  { %v2928_v25 = vmax.f32 %v3991_v31, 0.0  ;;  %v2929_v29 = vmax.f32 %v3993_v37, 0.0  ;;  %v2930_v32 = vmax.f32 %v3995_v21, 0.0  ;;  %v2931_v33 = vmax.f32 %v3997_v15, 0.0 }
 0x234   :  { %v2932_v12 = vmax.f32 %v3999_v47, 0.0  ;;  %v2933_v51 = vmax.f32 %v2901_v38, 0.0  ;;  %v2934_v52 = vmax.f32 %v2902_v20, 0.0  ;;  %v2935_v44 = vmax.f32 %v2903_v34, 0.0 }
 0x235   :  { %v2936_v5 = vmax.f32 %v2904_v30, 0.0  ;;  %v2937_v0 = vmax.f32 %v2905_v45, 0.0  ;;  %v2938_v56 = vmax.f32 %v2906_v11, 0.0  ;;  %v2939_v61 = vmax.f32 %v2907_v57, 0.0 }
 0x236   :  { %v2940_v14 = vmax.f32 %v2908_v43, 0.0  ;;  %v2941_v16 = vmax.f32 %v2909_v62, 0.0  ;;  %v2942_v22 = vmax.f32 %v2910_v27, 0.0  ;;  %v2943_v13 = vmax.f32 %v2911_v7, 0.0 }
 0x237   :  { %v2944_v24 = vmax.f32 %v4001_v4, 0.0  ;;  %v2945_v28 = vmax.f32 %v4003_v58, 0.0  ;;  %v2946_v55 = vmax.f32 %v4005_v6, 0.0  ;;  %v2947_v54 = vmax.f32 %v4007_v59, 0.0 }
 0x238   :  { %v2948_v3 = vmax.f32 %v4009_v35, 0.0  ;;  %v2949_v60 = vmax.f32 %v4011_v42, 0.0  ;;  %v2950_v26 = vmax.f32 %v4013_v23, 0.0  ;;  %v2951_v39 = vmax.f32 %v4015_v1, 0.0 }
 0x239   :  { %v2952_v2 = vmax.f32 %v4017_v53, 0.0  ;;  %v2953_v19 = vmax.f32 %v4019_v46, 0.0  ;;  %v2954_v41 = vmax.f32 %v4021_v63, 0.0  ;;  %v2955_v48 = vmax.f32 %v4023_v8, 0.0 }
 0x23a   :  { %v2956_v40 = vmax.f32 %v4025_v50, 0.0  ;;  %v2957_v10 = vmax.f32 %v4027_v9, 0.0  ;;  %v2958_v49 = vmax.f32 %v4029_v17, 0.0  ;;  %v2959_v31 = vmax.f32 %v4031_v18, 0.0 }
 0x23b   :  { %v3489_v37 = vpack.c.bf16 %v2929_v29, %v2928_v25  ;;  %v3490_v21 = vpack.c.bf16 %v2931_v33, %v2930_v32  ;;  %v3491_v15 = vpack.c.bf16 %v2933_v51, %v2932_v12  ;;  %v3492_v47 = vpack.c.bf16 %v2935_v44, %v2934_v52 }
 0x23c   :  { %v3493_v38 = vpack.c.bf16 %v2937_v0, %v2936_v5  ;;  %v3494_v20 = vpack.c.bf16 %v2939_v61, %v2938_v56  ;;  %v3495_v34 = vpack.c.bf16 %v2941_v16, %v2940_v14  ;;  %v3496_v30 = vpack.c.bf16 %v2943_v13, %v2942_v22 }
 0x23d   :  { %v3034_v45 = vrot.slane %v3489_v37, %v3947_v36  ;;  %v3041_v11 = vrot.slane %v3490_v21, %v3947_v36  ;;  %v3048_v57 = vrot.slane %v3491_v15, %v3947_v36  ;;  %v3055_v43 = vrot.slane %v3492_v47, %v3947_v36 }
 0x23e   :  { %v3083_v62 = vrot.slane %v3493_v38, %v3947_v36  ;;  %v3090_v27 = vrot.slane %v3494_v20, %v3947_v36  ;;  %v3097_v7 = vrot.slane %v3495_v34, %v3947_v36  ;;  %v3104_v4 = vrot.slane %v3496_v30, %v3947_v36 }
 0x23f   :  { %v3056_v58 = vcombine.low %v3034_v45, %v3041_v11  ;;  %v3057_v6 = vcombine.low %v3048_v57, %v3055_v43  ;;  %v3497_v59 = vpack.c.bf16 %v2945_v28, %v2944_v24  ;;  %v3498_v35 = vpack.c.bf16 %v2947_v54, %v2946_v55 }
 0x240   :  { %v3105_v42 = vcombine.low %v3083_v62, %v3090_v27  ;;  %v3106_v23 = vcombine.low %v3097_v7, %v3104_v4  ;;  %v3499_v1 = vpack.c.bf16 %v2949_v60, %v2948_v3  ;;  %v3500_v53 = vpack.c.bf16 %v2951_v39, %v2950_v26 }
 0x241   :  { %v3064_v46 = vrot.slane %v3056_v58, %v3947_v36  ;;  %v3071_v63 = vrot.slane %v3057_v6, %v3947_v36  ;;  %v3132_v8 = vrot.slane %v3497_v59, %v3947_v36  ;;  %v3139_v50 = vrot.slane %v3498_v35, %v3947_v36 }
 0x242   :  { %v3113_v9 = vrot.slane %v3105_v42, %v3947_v36  ;;  %v3120_v17 = vrot.slane %v3106_v23, %v3947_v36  ;;  %v3146_v18 = vrot.slane %v3499_v1, %v3947_v36  ;;  %v3153_v25 = vrot.slane %v3500_v53, %v3947_v36 }
 0x243   :  { %v3072_v29 = vcombine.low %v3064_v46, %v3071_v63  ;;  %v3154_v32 = vcombine.low %v3132_v8, %v3139_v50  ;;  %v3501_v33 = vpack.c.bf16 %v2953_v19, %v2952_v2  ;;  %v3502_v12 = vpack.c.bf16 %v2955_v48, %v2954_v41 }
 0x244   :  { %v3121_v51 = vcombine.low %v3113_v9, %v3120_v17  ;;  %v3155_v52 = vcombine.low %v3146_v18, %v3153_v25  ;;  %v3503_v44 = vpack.c.bf16 %v2957_v10, %v2956_v40  ;;  %v3504_v5 = vpack.c.bf16 %v2959_v31, %v2958_v49 }
 0x245   :  { %v3162_v0 = vrot.slane %v3154_v32, %v3947_v36  ;;  %v3181_v56 = vrot.slane %v3501_v33, %v3947_v36  ;;  %v3188_v61 = vrot.slane %v3502_v12, %v3947_v36  ;;  %3224 = vst [vmem:[%s4094_s4] sm:$0xff] %v3072_v29 }
 0x246   :  { %v3169_v14 = vrot.slane %v3155_v52, %v3947_v36  ;;  %v3195_v16 = vrot.slane %v3503_v44, %v3947_v36  ;;  %v3202_v22 = vrot.slane %v3504_v5, %v3947_v36  ;;  %3225 = vst [vmem:[%s4094_s4 + $0x8] sm:$0xff] %v3121_v51 }
 0x247   :  { %v3203_v13 = vcombine.low %v3181_v56, %v3188_v61 }
 0x248   :  { %v3170_v24 = vcombine.low %v3162_v0, %v3169_v14  ;;  %v3204_v28 = vcombine.low %v3195_v16, %v3202_v22 }
 0x249   :  { %v3211_v55 = vrot.slane %v3203_v13, %v3947_v36 }
 0x24a   :  { %v3218_v54 = vrot.slane %v3204_v28, %v3947_v36  ;;  %3226 = vst [vmem:[%s4094_s4 + $0x10] sm:$0xff] %v3170_v24 }
 0x24c   :  { %v3219_v3 = vcombine.low %v3211_v55, %v3218_v54 }
 0x24e   :  { %3227 = vst [vmem:[%s4094_s4 + $0x18] sm:$0xff] %v3219_v3 }
 0x24f   :  { %3232 = vsyncpa [#allocation3], 1 }

// kernel: generator_forward.7
= control target key start
LH: loop header
LB: loop body
LE: loop exit
PB: predicated region body
PF: predicated region fallthrough
CT: control target
= control target key end

     0   :  { %s4789_s12 = smov 0   ;;  %s5852_s0 = inlined_call_operand.vmem [shape: bf16[2,6,6,256], index: 0, kind: input, shape index: {}]   ;;  %s5853_s1 = inlined_call_operand.vmem [shape: bf16[4,1024,128], index: 1, kind: input, shape index: {}]   ;;  %s5854_s2 = inlined_call_operand.vmem [shape: bf16[2,4,16,128], index: 2, kind: output, shape index: {0}]   ;;  %s5855_s3 = inlined_call_operand.vmem [shape: f32[2,2,128], index: 3, kind: output, shape index: {1}]  }
   0x1 LB: > { %s3432_s13 = sadd.s32 4294967295, %s4766_s12   ;;  %p3436_p0 = scmp.ge.s32.totalorder %s4766_s12, 1  ;;  %s4766_s12 = sphi %s4789_s12, %s14_s12  }
   0x2   : > { %p140_p1 = scmp.lt.s32.totalorder %s4766_s12, 3 }
   0x4   : > { %p141_p2 = pnand %p3436_p0, %p140_p1 }
   0x5   : > { %v4503_v0 = vld [vmem:[%s5853_s1 + $0x40] sm:$0xff] (!%p141_p2)   ;;  %v4507_v4 = vld [vmem:[%s5853_s1 + $0x48] sm:$0xff] (!%p141_p2)   ;;  %v4511_v8 = vld [vmem:[%s5853_s1 + $0x50] sm:$0xff] (!%p141_p2)   ;;  %p168_p3 = scmp.lt.s32.totalorder (!%p141_p2), %s3432_s13, 1  ;;  %v316_v28 = vlaneseq (!%p141_p2)  ;;  %v4768_v36 = vmov (!%p141_p2), 1983009808  }
   0x6   : > { %144 = sbr.rel (%p141_p2) target bundleno = 508 (0x1fc), region = 28  ;;  %v4504_v1 = vld [vmem:[%s5853_s1 + $0xc0] sm:$0xff] (!%p141_p2)   ;;  %4141 = vmatprep.subr.bf16.mxu0 (!%p141_p2), %v4503_v0  ;;  %v4508_v5 = vld [vmem:[%s5853_s1 + $0xc8] sm:$0xff] (!%p141_p2)   ;;  %v4512_v9 = vld [vmem:[%s5853_s1 + $0xd0] sm:$0xff] (!%p141_p2)   ;;  %v314_v37 = vunpack.c.l.s4 (!%p141_p2), %v4768_v36  ;;  %vm225_vm0 = vsmask.f32 (!%p141_p2), 1280 }
   0x7   : > { %v4505_v2 = vld [vmem:[%s5853_s1] sm:$0xff] (!%p141_p2)   ;;  %4163 = vmatprep.subr.bf16.mxu1 (!%p141_p2), %v4504_v1  ;;  %v4509_v6 = vld [vmem:[%s5853_s1 + $0x8] sm:$0xff] (!%p141_p2)   ;;  %v4513_v10 = vld [vmem:[%s5853_s1 + $0x10] sm:$0xff] (!%p141_p2)   ;;  %v317_v33 = vshrl.u32 (!%p141_p2), %v316_v28, 7  ;;  %vm226_vm1 = vsmask.f32 (!%p141_p2), 3336 }
   0x8   : > { %v4506_v3 = vld [vmem:[%s5853_s1 + $0x80] sm:$0xff] (!%p141_p2)   ;;  %4142 = vmatpush3.bf16.msra.mxu0 (!%p141_p2), %v4505_v2  ;;  %v4510_v7 = vld [vmem:[%s5853_s1 + $0x88] sm:$0xff] (!%p141_p2)   ;;  %v4514_v11 = vld [vmem:[%s5853_s1 + $0x90] sm:$0xff] (!%p141_p2)   ;;  %v315_v43 = vunpack.c.0.s8 (!%p141_p2), %v314_v37  ;;  %vm228_vm2 = vsmask.f32 (!%p141_p2), 5392  ;;  %vm1095_vm7 = vcmask (!%p141_p2), 1040384  }
   0x9   : > { %4164 = vmatpush3.bf16.msra.mxu1 (!%p141_p2), %v4506_v3  ;;  %4143 = vmatprep.subr.bf16.mxu0 (!%p141_p2), %v4507_v4  ;;  %v4515_v12 = vld [vmem:[%s5853_s1 + $0x58] sm:$0xff] (!%p141_p2)   ;;  %v4519_v16 = vld [vmem:[%s5853_s1 + $0x60] sm:$0xff] (!%p141_p2)   ;;  %v4523_v20 = vld [vmem:[%s5853_s1 + $0x68] sm:$0xff] (!%p141_p2)   ;;  %vm230_vm4 = vsmask.f32 (!%p141_p2), 7448  ;;  %vm1096_vm8 = vcmask (!%p141_p2), 1042434  }
   0xa   : > { %4165 = vmatprep.subr.bf16.mxu1 (!%p141_p2), %v4508_v5  ;;  %v4516_v13 = vld [vmem:[%s5853_s1 + $0xd8] sm:$0xff] (!%p141_p2)   ;;  %v4520_v17 = vld [vmem:[%s5853_s1 + $0xe0] sm:$0xff] (!%p141_p2)   ;;  %v4524_v21 = vld [vmem:[%s5853_s1 + $0xe8] sm:$0xff] (!%p141_p2)   ;;  %v4945_v50 = vsub.s32 (!%p141_p2), %v315_v43, %v317_v33  ;;  %vm1098_vm10 = vcmask (!%p141_p2), 1044484   ;;  %vm1100_vm12 = vcmask (!%p141_p2), 1046534  }
   0xb   : > { %v4517_v14 = vld [vmem:[%s5853_s1 + $0x18] sm:$0xff] (!%p141_p2)   ;;  %v4521_v18 = vld [vmem:[%s5853_s1 + $0x20] sm:$0xff] (!%p141_p2)   ;;  %v4525_v22 = vld [vmem:[%s5853_s1 + $0x28] sm:$0xff] (!%p141_p2)  }
   0xc   : > { %4144 = vmatpush3.bf16.msra.mxu0 (!%p141_p2), %v4509_v6  ;;  %v4518_v15 = vld [vmem:[%s5853_s1 + $0x98] sm:$0xff] (!%p141_p2)   ;;  %v4522_v19 = vld [vmem:[%s5853_s1 + $0xa0] sm:$0xff] (!%p141_p2)   ;;  %v4526_v23 = vld [vmem:[%s5853_s1 + $0xa8] sm:$0xff] (!%p141_p2)  }
   0xd   : > { %4166 = vmatpush3.bf16.msra.mxu1 %v4510_v7  ;;  %4145 = vmatprep.subr.bf16.mxu0 %v4511_v8  ;;  %s5865_s13 = smov (!%p168_p3, %s3432_s13), 1  ;;  %v4527_v24 = vld [vmem:[%s5853_s1 + $0x70] sm:$0xff]   ;;  %v4531_v29 = vld [vmem:[%s5853_s1 + $0x78] sm:$0xff]   ;;  %vm4937_vm3 = vmor %vm225_vm0, %vm226_vm1 }
   0xe   : > { %4167 = vmatprep.subr.bf16.mxu1 %v4512_v9  ;;  %v4528_v25 = vld [vmem:[%s5853_s1 + $0xf0] sm:$0xff]   ;;  %s4493_s16 = smul.u32 48, %s5865_s13  ;;  %v4532_v30 = vld [vmem:[%s5853_s1 + $0xf8] sm:$0xff]   ;;  %v4535_v49 = vld [vmem:[%s5853_s1 + $0x140] sm:$0xff]   ;;  %s4109_s17 = sshll.u32 %s5865_s13, 5 }
   0xf   : > { %v4529_v26 = vld [vmem:[%s5853_s1 + $0x30] sm:$0xff]   ;;  %v4533_v31 = vld [vmem:[%s5853_s1 + $0x38] sm:$0xff]   ;;  %v4536_v54 = vld [vmem:[%s5853_s1 + $0x1c0] sm:$0xff]   ;;  %s5838_s20 = scalar_lea.vmem %s5854_s2, %s4109_s17  ;;  %s3440_s21 = sshll.u32 %s5865_s13, 1 }
  0x10   : > { %4146 = vmatpush3.bf16.msra.mxu0 %v4513_v10  ;;  %v4530_v27 = vld [vmem:[%s5853_s1 + $0xb0] sm:$0xff]   ;;  %s4897_s27 = scalar_lea.vmem %s5852_s0, %s4493_s16  ;;  %v4534_v32 = vld [vmem:[%s5853_s1 + $0xb8] sm:$0xff]   ;;  %vm229_vm5 = vmor %vm4937_vm3, %vm228_vm2  ;;  %s181_s24 = scalar_lea.vmem %s5855_s3, %s3440_s21 }
  0x11   : > { %4168 = vmatpush3.bf16.msra.mxu1 %v4514_v11  ;;  %4147 = vmatprep.subr.bf16.mxu0 %v4515_v12  ;;  %v4906_v34 = vld.sshfl [vmem:[%s4897_s27] sm:$0x5f pattern:$0x76325410]  ;;  %vm4967_vm6 = vmor %vm229_vm5, %vm230_vm4  ;;  %v4545_v37 = vld [vmem:[%s5853_s1 + $0x110] sm:$0xff]  }
  0x12   : > { %4169 = vmatprep.subr.bf16.mxu1 %v4516_v13  ;;  %v4909_v35 = vld.sshfl [vmem:[%s4897_s27 + $0x8] sm:$0x5f pattern:$0x76325410]  ;;  %v4913_v38 = vcombine.high %v4906_v34, %v4906_v34  ;;  %v233_v48 = vshrl.u32 %v4906_v34, 16  ;;  %v236_v51 = vshll.u32 %v4906_v34, 16  ;;  %vm1097_vm9 = vmor %vm1095_vm7, %vm1096_vm8 }
  0x13   : > { %v4916_v39 = vld.sshfl [vmem:[%s4897_s27 + $0x10] sm:$0x5f pattern:$0x76325410]  ;;  %v4920_v40 = vcombine.high %v4909_v35, %v4909_v35  ;;  %v311_v42 = vcombine.low %v4906_v34, %v4909_v35  ;;  %v247_v53 = vshrl.u32 %v4909_v35, 16  ;;  %v250_v56 = vshll.u32 %v4909_v35, 16  ;;  %vm5010_vm11 = vmor %vm1097_vm9, %vm1098_vm10 }
  0x14   : > { %4148 = vmatpush3.bf16.msra.mxu0 %v4517_v14  ;;  %v4923_v41 = vld.sshfl [vmem:[%s4897_s27 + $0x18] sm:$0x5f pattern:$0x76325410]  ;;  %v4929_v44 = vcombine.high %v4916_v39, %v4916_v39  ;;  %v242_v52 = vshll.u32 %v4913_v38, 16  ;;  %v235_v55 = vrot.slane %v233_v48, 6  ;;  %vm5060_vm13 = vmor %vm5010_vm11, %vm1100_vm12 }
  0x15   : > { %4170 = vmatpush3.bf16.msra.mxu1 %v4518_v15  ;;  %4149 = vmatprep.subr.bf16.mxu0 %v4519_v16  ;;  %v312_v45 = vcombine.low %v4916_v39, %v4923_v41  ;;  %v4935_v46 = vcombine.high %v4923_v41, %v4923_v41  ;;  %v256_v57 = vshll.u32 %v4920_v40, 16  ;;  %v261_v58 = vshrl.u32 %v4916_v39, 16  ;;  %v4538_v47 = vld [vmem:[%s5853_s1 + $0x180] sm:$0xff]  }
  0x16   : > { %4171 = vmatprep.subr.bf16.mxu1 %v4520_v17  ;;  %v319_v59 = vrot.slane %v311_v42, %v4945_v50  ;;  %v238_v61 = vrot.slane %v236_v51, 7  ;;  %v244_v62 = vrot.slane %v242_v52, 7  ;;  %v249_v63 = vrot.slane %v247_v53, 6  ;;  %v4537_v17 = vld [vmem:[%s5853_s1 + $0x100] sm:$0xff]   ;;  %v4540_v51 = vld [vmem:[%s5853_s1 + $0x1c8] sm:$0xff]   ;;  %v4549_v52 = vld [vmem:[%s5853_s1 + $0x118] sm:$0xff]  }
  0x17   : > { %v4958_v60 = vrot.slane %v312_v45, %v4945_v50  ;;  %v252_v0 = vrot.slane %v250_v56, 7  ;;  %v258_v1 = vrot.slane %v256_v57, 7  ;;  %v263_v2 = vrot.slane %v261_v58, 6  ;;  %v4547_v45 = vld [vmem:[%s5853_s1 + $0x158] sm:$0xff]   ;;  %v4551_v53 = vld [vmem:[%s5853_s1 + $0x160] sm:$0xff]   ;;  %v4555_v57 = vld [vmem:[%s5853_s1 + $0x168] sm:$0xff]  }
  0x18   : > { %4150 = vmatpush3.bf16.msra.mxu0 %v4521_v18  ;;  %v239_v4 = vor.u32 %v238_v61, %v235_v55  ;;  %v264_v5 = vshll.u32 %v4916_v39, 16  ;;  %v270_v6 = vshll.u32 %v4929_v44, 16  ;;  %v275_v9 = vshrl.u32 %v4923_v41, 16  ;;  %v4544_v55 = vld [vmem:[%s5853_s1 + $0x1d0] sm:$0xff]   ;;  %v4553_v56 = vld [vmem:[%s5853_s1 + $0x120] sm:$0xff]   ;;  %v4726_v61 = vld [vmem:[%s5853_s1 + $0x6b8] sm:$0xff]  }
  0x19   : > { %4172 = vmatpush3.bf16.msra.mxu1 %v4522_v19  ;;  %4151 = vmatprep.subr.bf16.mxu0 %v4523_v20  ;;  %v328_v3 = vcombine.high %v319_v59, %v4958_v60  ;;  %v253_v8 = vor.u32 %v252_v0, %v249_v63  ;;  %v278_v10 = vshll.u32 %v4923_v41, 16  ;;  %v284_v11 = vshll.u32 %v4935_v46, 16  ;;  %v4546_v58 = vld [vmem:[%s5853_s1 + $0x190] sm:$0xff]   ;;  %v4557_v63 = vld [vmem:[%s5853_s1 + $0x128] sm:$0xff]   ;;  %v4696_v7 = vld [vmem:[%s5853_s1 + $0x6c0] sm:$0xff]  }
  0x1a   : > { %4173 = vmatprep.subr.bf16.mxu1 %v4524_v21  ;;  %v240_v12 = vrot.slane %v239_v4, 2  ;;  %v266_v13 = vrot.slane %v264_v5, 7  ;;  %v277_v15 = vrot.slane %v275_v9, 6  ;;  %v272_v20 = vrot.slane %v270_v6, 7  ;;  %v4559_v0 = vld [vmem:[%s5853_s1 + $0x170] sm:$0xff]  }
  0x1b   : > { %935 = vmatprep.mubr.bf16.mxu0 %v328_v3  ;;  %v254_v14 = vrot.slane %v253_v8, 2  ;;  %v280_v16 = vrot.slane %v278_v10, 7  ;;  %v327_v21 = vcombine.low %v319_v59, %v4958_v60  ;;  %v4548_v59 = vld [vmem:[%s5853_s1 + $0x1d8] sm:$0xff]   ;;  %v1104_v3 = vrot.slane %v4913_v38, 7  ;;  %v4554_v38 = vld [vmem:[%s5853_s1 + $0x1a0] sm:$0xff]   ;;  %v4556_v10 = vld [vmem:[%s5853_s1 + $0x1e8] sm:$0xff]  }
  0x1c   : > { %4152 = vmatpush3.bf16.msra.mxu0 %v4525_v22  ;;  %v245_v18 = vsel %vm4967_vm6, %v240_v12, %v244_v62  ;;  %v267_v19 = vor.u32 %v266_v13, %v263_v2  ;;  %v4539_v22 = vld [vmem:[%s5853_s1 + $0x148] sm:$0xff]   ;;  %v1112_v62 = vrot.slane %v4929_v44, 7  ;;  %v4550_v2 = vld [vmem:[%s5853_s1 + $0x198] sm:$0xff]   ;;  %v4552_v44 = vld [vmem:[%s5853_s1 + $0x1e0] sm:$0xff]   ;;  %v3513_v4 = vrot.slane %v4909_v35, 9 }
  0x1d   : > { %4174 = vmatpush3.bf16.msra.mxu1 %v4526_v23  ;;  %4153 = vmatprep.subr.bf16.mxu0 %v4527_v24  ;;  %v4985_v23 = vsel %vm4967_vm6, %v254_v14, %v258_v1  ;;  %v281_v24 = vor.u32 %v280_v16, %v277_v15  ;;  %v3512_v1 = vrot.slane %v4906_v34, 9  ;;  %v4561_v34 = vld [vmem:[%s5853_s1 + $0x130] sm:$0xff]   ;;  %v351_v5 = vcombine.low %v4909_v35, %v4916_v39  ;;  %v4563_v8 = vld [vmem:[%s5853_s1 + $0x178] sm:$0xff]  }
  0x1e   : > { %4175 = vmatprep.subr.bf16.mxu1 %v4528_v25  ;;  %v286_v25 = vrot.slane %v284_v11, 7  ;;  %v1108_v6 = vrot.slane %v4920_v40, 7  ;;  %v3514_v9 = vrot.slane %v4916_v39, 9  ;;  %v3515_v11 = vrot.slane %v4923_v41, 9  ;;  %v4565_v35 = vld [vmem:[%s5853_s1 + $0x138] sm:$0xff]   ;;  %v4562_v42 = vld [vmem:[%s5853_s1 + $0x1b0] sm:$0xff]  }
  0x1f   : > { %v282_v28 = vrot.slane %v281_v24, 2  ;;  %v1116_v40 = vrot.slane %v4935_v46, 7  ;;  %v5102_v12 = vld.sshfl [vmem:[%s4897_s27 + $0x20] sm:$0x5f pattern:$0x76325410]  ;;  %v359_v13 = vrot.slane %v351_v5, %v4945_v50 }
  0x20   : > { %4154 = vmatpush3.bf16.msra.mxu0 %v4529_v26  ;;  %v268_v26 = vrot.slane %v267_v19, 2  ;;  %v352_v39 = vcombine.low %v4923_v41, %v5102_v12  ;;  %v5109_v14 = vcombine.high %v5102_v12, %v5102_v12  ;;  %v298_v15 = vshrl.u32 %v5102_v12, 16  ;;  %v4567_v46 = vld [vmem:[%s5853_s1 + $0x240] sm:$0xff]   ;;  %v4558_v41 = vld [vmem:[%s5853_s1 + $0x1a8] sm:$0xff]   ;;  %v4576_v5 = vld [vmem:[%s5853_s1 + $0x2d0] sm:$0xff]  }
  0x21   : > { %4176 = vmatpush3.bf16.msra.mxu1 %v4530_v27  ;;  %4155 = vmatprep.subr.bf16.mxu0 %v4531_v29  ;;  %v331_v27 = vcombine.low %v245_v18, %v4985_v23  ;;  %v4541_v29 = vld [vmem:[%s5853_s1 + $0x108] sm:$0xff]   ;;  %v301_v16 = vshll.u32 %v5102_v12, 16  ;;  %v5128_v24 = vsel %vm5060_vm13, %v3513_v4, %v1108_v6  ;;  %v4583_v4 = vld [vmem:[%s5853_s1 + $0x260] sm:$0xff]  }
  0x22   : > { %4177 = vmatprep.subr.bf16.mxu1 %v4532_v30  ;;  %v4995_v30 = vsel %vm4967_vm6, %v268_v26, %v272_v20  ;;  %v366_v18 = vrot.slane %v352_v39, %v4945_v50  ;;  %v300_v19 = vrot.slane %v298_v15, 6  ;;  %v5136_v26 = vsel %vm5060_vm13, %v3515_v11, %v1116_v40  ;;  %v4585_v6 = vld [vmem:[%s5853_s1 + $0x220] sm:$0xff]   ;;  %v4591_v11 = vld [vmem:[%s5853_s1 + $0x270] sm:$0xff]   ;;  %v4595_v39 = vld [vmem:[%s5853_s1 + $0x278] sm:$0xff]  }
  0x23   : > { %v339_v36 = vrot.slane %v331_v27, %v4945_v50  ;;  %v303_v20 = vrot.slane %v301_v16, 7  ;;  %v4584_v40 = vld [vmem:[%s5853_s1 + $0x2e0] sm:$0xff]   ;;  %v3516_v16 = vrot.slane %v5102_v12, 9  ;;  %v4590_v12 = vld [vmem:[%s5853_s1 + $0x2a8] sm:$0xff]  }
  0x24   : > { %4156 = vmatpush3.bf16.msra.mxu0 %v4533_v31  ;;  %v4543_v31 = vld [vmem:[%s5853_s1 + $0x150] sm:$0xff]   ;;  %v5138_v27 = vcombine.high %v359_v13, %v366_v18  ;;  %v4586_v15 = vld [vmem:[%s5853_s1 + $0x2a0] sm:$0xff]  }
  0x25   : > { %4178 = vmatpush3.bf16.msra.mxu1 %v4534_v32  ;;  %4185 = vmatprep.subr.bf16.mxu0 %v4535_v49  ;;  %v5002_v32 = vsel %vm4967_vm6, %v282_v28, %v286_v25  ;;  %v5132_v25 = vsel %vm5060_vm13, %v3514_v9, %v1112_v62  ;;  %v304_v28 = vor.u32 %v303_v20, %v300_v19  ;;  %v4580_v9 = vld [vmem:[%s5853_s1 + $0x2d8] sm:$0xff]   ;;  %v4601_v20 = vld [vmem:[%s5853_s1 + $0x300] sm:$0xff]  }
  0x26   : > { %4207 = vmatprep.subr.bf16.mxu1 %v4536_v54  ;;  %v332_v33 = vcombine.low %v4995_v30, %v5002_v32  ;;  %v4542_v54 = vld [vmem:[%s5853_s1 + $0x188] sm:$0xff]  }
  0x27   : > { %936 = vmatmul.mubr.bf16.vlgmr.msra.gmra.mrb[0].mxu0 %v327_v21  ;;  %v307_v21 = vshll.u32 %v5109_v14, 16 }
  0x28   : > { %4186 = vmatpush3.bf16.msra.mxu0 %v4537_v17  ;;  %v5015_v43 = vrot.slane %v332_v33, %v4945_v50  ;;  %v1105_v17 = vsel %vm5060_vm13, %v3512_v1, %v1104_v3  ;;  %v4569_v33 = vld [vmem:[%s5853_s1 + $0x200] sm:$0xff]   ;;  %1017 = vmatprep.mubr.bf16.mxu0 %v5138_v27  ;;  %v4572_v3 = vld [vmem:[%s5853_s1 + $0x2c8] sm:$0xff]  }
  0x29   : > { %4187 = vmatprep.subr.bf16.mxu0 %v4539_v22  ;;  %v4560_v22 = vld [vmem:[%s5853_s1 + $0x1f0] sm:$0xff]   ;;  %v4570_v1 = vld [vmem:[%s5853_s1 + $0x280] sm:$0xff]  }
  0x2a   : > { %v5024_v48 = vcombine.high %v339_v36, %v5015_v43  ;;  %v5027_v49 = vcombine.low %v339_v36, %v5015_v43  ;;  %v371_v36 = vcombine.low %v4985_v23, %v4995_v30  ;;  %v4564_v23 = vld [vmem:[%s5853_s1 + $0x1f8] sm:$0xff]  }
  0x2c   : > { %4188 = vmatpush3.bf16.msra.mxu0 %v4541_v29  ;;  %976 = vmatprep.mubr.bf16.mxu1 %v5024_v48  ;;  %v309_v29 = vrot.slane %v307_v21, 7  ;;  %v4603_v21 = vld [vmem:[%s5853_s1 + $0x348] sm:$0xff]  }
  0x2d   : > { %4189 = vmatprep.subr.bf16.mxu0 %v4543_v31  ;;  %977 = vmatmul.mubr.bf16.vlgmr.msra.gmra.mrb[0].mxu1 %v5027_v49  ;;  %v5140_v31 = vcombine.low %v359_v13, %v366_v18  ;;  %v4593_v13 = vld [vmem:[%s5853_s1 + $0x230] sm:$0xff]   ;;  %v4599_v18 = vld [vmem:[%s5853_s1 + $0x340] sm:$0xff]  }
  0x2e   : > { %4208 = vmatpush3.bf16.msra.mxu1 %v4538_v47  ;;  %v1122_v47 = vcombine.low %v1105_v17, %v5128_v24  ;;  %v1120_v17 = vrot.slane %v5109_v14, 7  ;;  %v4592_v14 = vld [vmem:[%s5853_s1 + $0x2f0] sm:$0xff]  }
  0x2f   : > { %4209 = vmatprep.subr.bf16.mxu1 %v4540_v51  ;;  %v1123_v51 = vcombine.low %v5132_v25, %v5136_v26 }
  0x30   : > { %4190 = vmatpush3.bf16.msra.mxu0 %v4545_v37  ;;  %v4571_v37 = vld [vmem:[%s5853_s1 + $0x248] sm:$0xff]   ;;  %v5272_v19 = vsel %vm5060_vm13, %v3516_v16, %v1120_v17  ;;  %v4632_v16 = vld [vmem:[%s5853_s1 + $0x4c0] sm:$0xff]   ;;  %v4643_v17 = vld [vmem:[%s5853_s1 + $0x458] sm:$0xff]  }
  0x31   : > { %4191 = vmatprep.subr.bf16.mxu0 %v4547_v45  ;;  %v305_v45 = vrot.slane %v304_v28, 2  ;;  %v1142_v28 = vcombine.low %v5128_v24, %v5132_v25  ;;  %v4607_v24 = vld [vmem:[%s5853_s1 + $0x350] sm:$0xff]   ;;  %v4598_v25 = vld [vmem:[%s5853_s1 + $0x2b8] sm:$0xff]  }
  0x32   : > { %4210 = vmatpush3.bf16.msra.mxu1 %v4542_v54  ;;  %v379_v54 = vrot.slane %v371_v36, %v4945_v50  ;;  %v4605_v36 = vld [vmem:[%s5853_s1 + $0x308] sm:$0xff]  }
  0x33   : > { %4211 = vmatprep.subr.bf16.mxu1 %v4544_v55  ;;  %v5163_v30 = vsel %vm4967_vm6, %v305_v45, %v309_v29  ;;  %v4575_v55 = vld [vmem:[%s5853_s1 + $0x250] sm:$0xff]   ;;  %v1143_v29 = vcombine.low %v5136_v26, %v5272_v19  ;;  %v5302_v26 = vrot.slane %v1142_v28, %v4945_v50  ;;  %v4651_v28 = vld [vmem:[%s5853_s1 + $0x468] sm:$0xff]  }
  0x34   : > { %4192 = vmatpush3.bf16.msra.mxu0 %v4549_v52  ;;  %v4573_v52 = vld [vmem:[%s5853_s1 + $0x208] sm:$0xff]  }
  0x35   : > { %4193 = vmatprep.subr.bf16.mxu0 %v4551_v53  ;;  %v372_v53 = vcombine.low %v5002_v32, %v5163_v30 }
  0x36   : > { %4212 = vmatpush3.bf16.msra.mxu1 %v4546_v58  ;;  %v4568_v58 = vld [vmem:[%s5853_s1 + $0x2c0] sm:$0xff]  }
  0x37   : > { %4213 = vmatprep.subr.bf16.mxu1 %v4548_v59  ;;  %v386_v32 = vrot.slane %v372_v53, %v4945_v50  ;;  %v4577_v59 = vld [vmem:[%s5853_s1 + $0x210] sm:$0xff]   ;;  %v4613_v53 = vld [vmem:[%s5853_s1 + $0x318] sm:$0xff]  }
  0x38   : > { %4194 = vmatpush3.bf16.msra.mxu0 %v4553_v56  ;;  %v4566_v56 = vld [vmem:[%s5853_s1 + $0x1b8] sm:$0xff]  }
  0x39   : > { %4195 = vmatprep.subr.bf16.mxu0 %v4555_v57  ;;  %v5179_v57 = vrot.slane %v1122_v47, %v4945_v50  ;;  %v5191_v62 = vcombine.high %v379_v54, %v386_v32  ;;  %v4611_v47 = vld [vmem:[%s5853_s1 + $0x358] sm:$0xff]  }
  0x3a   : > { %4214 = vmatpush3.bf16.msra.mxu1 %v4550_v2 }
  0x3b   : > { %4215 = vmatprep.subr.bf16.mxu1 %v4552_v44  ;;  %1058 = vmatprep.mubr.bf16.mxu1 %v5191_v62  ;;  %v4581_v44 = vld [vmem:[%s5853_s1 + $0x218] sm:$0xff]  }
  0x3c   : > { %4196 = vmatpush3.bf16.msra.mxu0 %v4557_v63  ;;  %v5193_v63 = vcombine.low %v379_v54, %v386_v32  ;;  %v4615_v54 = vld [vmem:[%s5853_s1 + $0x360] sm:$0xff]   ;;  %v4619_v32 = vld [vmem:[%s5853_s1 + $0x368] sm:$0xff]  }
  0x3d   : > { %4197 = vmatprep.subr.bf16.mxu0 %v4559_v0  ;;  %v4579_v0 = vld [vmem:[%s5853_s1 + $0x258] sm:$0xff]  }
  0x3e   : > { %4216 = vmatpush3.bf16.msra.mxu1 %v4554_v38  ;;  %v4587_v38 = vld [vmem:[%s5853_s1 + $0x268] sm:$0xff]  }
  0x3f   : > { %4217 = vmatprep.subr.bf16.mxu1 %v4556_v10  ;;  %v4589_v10 = vld [vmem:[%s5853_s1 + $0x228] sm:$0xff]  }
  0x40   : > { %4198 = vmatpush3.bf16.msra.mxu0 %v4561_v34  ;;  %v4574_v34 = vld [vmem:[%s5853_s1 + $0x288] sm:$0xff]  }
  0x41   : > { %4199 = vmatprep.subr.bf16.mxu0 %v4563_v8  ;;  %v4578_v8 = vld [vmem:[%s5853_s1 + $0x290] sm:$0xff]  }
  0x42   : > { %4218 = vmatpush3.bf16.msra.mxu1 %v4558_v41  ;;  %v4597_v41 = vld [vmem:[%s5853_s1 + $0x238] sm:$0xff]  }
  0x43   : > { %4219 = vmatprep.subr.bf16.mxu1 %v4560_v22  ;;  %v4594_v22 = vld [vmem:[%s5853_s1 + $0x2b0] sm:$0xff]  }
  0x44   : > { %4200 = vmatpush3.bf16.msra.mxu0 %v4565_v35  ;;  %v4582_v35 = vld [vmem:[%s5853_s1 + $0x298] sm:$0xff]  }
  0x45   : > { %4229 = vmatprep.subr.bf16.mxu0 %v4567_v46  ;;  %v4588_v46 = vld [vmem:[%s5853_s1 + $0x2e8] sm:$0xff]  }
  0x46   : > { %4220 = vmatpush3.bf16.msra.mxu1 %v4562_v42  ;;  %v4609_v42 = vld [vmem:[%s5853_s1 + $0x310] sm:$0xff]  }
  0x47   : > { %1018 = vmatmul.mubr.bf16.vlgmr.msra.gmra.mrb[4].mxu0 %v5140_v31  ;;  %4221 = vmatprep.subr.bf16.mxu1 %v4564_v23 }
  0x48   : > { %4230 = vmatpush3.bf16.msra.mxu0 %v4569_v33  ;;  %1707 = vmatprep.mubr.bf16.mxu0 %v5024_v48  ;;  %v5182_v48 = vrot.slane %v1123_v51, %v4945_v50  ;;  %v4596_v33 = vld [vmem:[%s5853_s1 + $0x2f8] sm:$0xff]   ;;  %v4602_v51 = vld [vmem:[%s5853_s1 + $0x380] sm:$0xff]  }
  0x49   : > { %4231 = vmatprep.subr.bf16.mxu0 %v4571_v37  ;;  %v4600_v37 = vld [vmem:[%s5853_s1 + $0x3c0] sm:$0xff]  }
  0x4a   : > { %4222 = vmatpush3.bf16.msra.mxu1 %v4566_v56  ;;  %v1139_v2 = vcombine.high %v5179_v57, %v5182_v48  ;;  %v1138_v45 = vcombine.low %v5179_v57, %v5182_v48  ;;  %v4608_v56 = vld [vmem:[%s5853_s1 + $0x3d0] sm:$0xff]   ;;  %v4617_v57 = vld [vmem:[%s5853_s1 + $0x320] sm:$0xff]  }
  0x4b   : > { %4251 = vmatprep.subr.bf16.mxu1 %v4568_v58  ;;  %v4610_v58 = vld [vmem:[%s5853_s1 + $0x390] sm:$0xff]  }
  0x4c   : > { %4232 = vmatpush3.bf16.msra.mxu0 %v4573_v52  ;;  %v4604_v52 = vld [vmem:[%s5853_s1 + $0x3c8] sm:$0xff]  }
  0x4d   : > { %4233 = vmatprep.subr.bf16.mxu0 %v4575_v55  ;;  %1059 = vmatmul.mubr.bf16.vlgmr.msra.gmra.mrb[4].mxu1 %v5193_v63  ;;  %v4606_v55 = vld [vmem:[%s5853_s1 + $0x388] sm:$0xff]  }
  0x4e   : > { %4252 = vmatpush3.bf16.msra.mxu1 %v4570_v1  ;;  %1748 = vmatprep.mubr.bf16.mxu1 %v1139_v2  ;;  %v4623_v1 = vld [vmem:[%s5853_s1 + $0x370] sm:$0xff]   ;;  %v4614_v2 = vld [vmem:[%s5853_s1 + $0x398] sm:$0xff]  }
  0x4f   : > { %4253 = vmatprep.subr.bf16.mxu1 %v4572_v3  ;;  %v4616_v3 = vld [vmem:[%s5853_s1 + $0x3e0] sm:$0xff]  }
  0x50   : > { %4234 = vmatpush3.bf16.msra.mxu0 %v4577_v59  ;;  %v4612_v59 = vld [vmem:[%s5853_s1 + $0x3d8] sm:$0xff]  }
  0x51   : > { %4235 = vmatprep.subr.bf16.mxu0 %v4579_v0  ;;  %v4621_v0 = vld [vmem:[%s5853_s1 + $0x328] sm:$0xff]  }
  0x52   : > { %4254 = vmatpush3.bf16.msra.mxu1 %v4574_v34  ;;  %v4618_v34 = vld [vmem:[%s5853_s1 + $0x3a0] sm:$0xff]  }
  0x53   : > { %4255 = vmatprep.subr.bf16.mxu1 %v4576_v5  ;;  %v4620_v5 = vld [vmem:[%s5853_s1 + $0x3e8] sm:$0xff]  }
  0x54   : > { %4236 = vmatpush3.bf16.msra.mxu0 %v4581_v44  ;;  %v4625_v44 = vld [vmem:[%s5853_s1 + $0x330] sm:$0xff]  }
  0x55   : > { %4237 = vmatprep.subr.bf16.mxu0 %v4583_v4  ;;  %v4627_v4 = vld [vmem:[%s5853_s1 + $0x378] sm:$0xff]  }
  0x56   : > { %4256 = vmatpush3.bf16.msra.mxu1 %v4578_v8  ;;  %v4622_v8 = vld [vmem:[%s5853_s1 + $0x3a8] sm:$0xff]  }
  0x57   : > { %4257 = vmatprep.subr.bf16.mxu1 %v4580_v9  ;;  %v4624_v9 = vld [vmem:[%s5853_s1 + $0x3f0] sm:$0xff]  }
  0x58   : > { %4238 = vmatpush3.bf16.msra.mxu0 %v4585_v6  ;;  %v4629_v6 = vld [vmem:[%s5853_s1 + $0x338] sm:$0xff]  }
  0x59   : > { %4239 = vmatprep.subr.bf16.mxu0 %v4587_v38  ;;  %v4631_v38 = vld [vmem:[%s5853_s1 + $0x440] sm:$0xff]  }
  0x5a   : > { %4258 = vmatpush3.bf16.msra.mxu1 %v4582_v35  ;;  %v4626_v35 = vld [vmem:[%s5853_s1 + $0x3b0] sm:$0xff]  }
  0x5b   : > { %4259 = vmatprep.subr.bf16.mxu1 %v4584_v40  ;;  %v4628_v40 = vld [vmem:[%s5853_s1 + $0x3f8] sm:$0xff]  }
  0x5c   : > { %4240 = vmatpush3.bf16.msra.mxu0 %v4589_v10  ;;  %v4633_v10 = vld [vmem:[%s5853_s1 + $0x400] sm:$0xff]  }
  0x5d   : > { %4241 = vmatprep.subr.bf16.mxu0 %v4591_v11  ;;  %v4635_v11 = vld [vmem:[%s5853_s1 + $0x448] sm:$0xff]  }
  0x5e   : > { %4260 = vmatpush3.bf16.msra.mxu1 %v4586_v15  ;;  %v4630_v15 = vld [vmem:[%s5853_s1 + $0x3b8] sm:$0xff]  }
  0x5f   : > { %4261 = vmatprep.subr.bf16.mxu1 %v4588_v46 }
  0x60   : > { %4242 = vmatpush3.bf16.msra.mxu0 %v4593_v13  ;;  %v4637_v13 = vld [vmem:[%s5853_s1 + $0x408] sm:$0xff]  }
  0x61   : > { %4243 = vmatprep.subr.bf16.mxu0 %v4595_v39  ;;  %v4639_v39 = vld [vmem:[%s5853_s1 + $0x450] sm:$0xff]  }
  0x62   : > { %4262 = vmatpush3.bf16.msra.mxu1 %v4590_v12  ;;  %v4645_v12 = vld [vmem:[%s5853_s1 + $0x418] sm:$0xff]  }
  0x63   : > { %4263 = vmatprep.subr.bf16.mxu1 %v4592_v14  ;;  %v4647_v14 = vld [vmem:[%s5853_s1 + $0x460] sm:$0xff]  }
  0x64   : > { %4244 = vmatpush3.bf16.msra.mxu0 %v4597_v41  ;;  %v4634_v41 = vld [vmem:[%s5853_s1 + $0x480] sm:$0xff]  }
  0x65   : > { %4273 = vmatprep.subr.bf16.mxu0 %v4599_v18  ;;  %v4636_v18 = vld [vmem:[%s5853_s1 + $0x4c8] sm:$0xff]  }
  0x66   : > { %4264 = vmatpush3.bf16.msra.mxu1 %v4594_v22  ;;  %v4649_v22 = vld [vmem:[%s5853_s1 + $0x420] sm:$0xff]  }
  0x67   : > { %1708 = vmatmul.mubr.bf16.vlgmr.msra.gmra.mrb[8].mxu0 %v5027_v49  ;;  %v5305_v49 = vrot.slane %v1143_v29, %v4945_v50  ;;  %4265 = vmatprep.subr.bf16.mxu1 %v4596_v33  ;;  %v4642_v29 = vld [vmem:[%s5853_s1 + $0x490] sm:$0xff]   ;;  %v4644_v33 = vld [vmem:[%s5853_s1 + $0x4d8] sm:$0xff]  }
  0x68   : > { %4274 = vmatpush3.bf16.msra.mxu0 %v4601_v20  ;;  %1789 = vmatprep.mubr.bf16.mxu0 %v5191_v62  ;;  %v4638_v20 = vld [vmem:[%s5853_s1 + $0x488] sm:$0xff]  }
  0x69   : > { %4275 = vmatprep.subr.bf16.mxu0 %v4603_v21  ;;  %v5323_v23 = vcombine.high %v5302_v26, %v5305_v49  ;;  %v5420_v46 = vcombine.low %v5302_v26, %v5305_v49  ;;  %v4640_v21 = vld [vmem:[%s5853_s1 + $0x4d0] sm:$0xff]   ;;  %v4648_v26 = vld [vmem:[%s5853_s1 + $0x4e0] sm:$0xff]  }
  0x6a   : > { %4266 = vmatpush3.bf16.msra.mxu1 %v4598_v25  ;;  %v4646_v25 = vld [vmem:[%s5853_s1 + $0x498] sm:$0xff]   ;;  %v4657_v49 = vld [vmem:[%s5853_s1 + $0x430] sm:$0xff]  }
  0x6b   : > { %4295 = vmatprep.subr.bf16.mxu1 %v4600_v37  ;;  %v4659_v37 = vld [vmem:[%s5853_s1 + $0x478] sm:$0xff]  }
  0x6c   : > { %4276 = vmatpush3.bf16.msra.mxu0 %v4605_v36  ;;  %v4653_v36 = vld [vmem:[%s5853_s1 + $0x428] sm:$0xff]  }
  0x6d   : > { %4277 = vmatprep.subr.bf16.mxu0 %v4607_v24  ;;  %1749 = vmatmul.mubr.bf16.vlgmr.msra.gmra.mrb[8].mxu1 %v1138_v45  ;;  %v4655_v24 = vld [vmem:[%s5853_s1 + $0x470] sm:$0xff]   ;;  %v4652_v45 = vld [vmem:[%s5853_s1 + $0x4e8] sm:$0xff]  }
  0x6e   : > { %4296 = vmatpush3.bf16.msra.mxu1 %v4602_v51  ;;  %1830 = vmatprep.mubr.bf16.mxu1 %v5323_v23  ;;  %v4663_v51 = vld [vmem:[%s5853_s1 + $0x540] sm:$0xff]  }
  0x6f   : > { %4297 = vmatprep.subr.bf16.mxu1 %v4604_v52  ;;  %v4654_v52 = vld [vmem:[%s5853_s1 + $0x4a8] sm:$0xff]  }
  0x70   : > { %4278 = vmatpush3.bf16.msra.mxu0 %v4609_v42  ;;  %v4650_v42 = vld [vmem:[%s5853_s1 + $0x4a0] sm:$0xff]  }
  0x71   : > { %4279 = vmatprep.subr.bf16.mxu0 %v4611_v47  ;;  %v4661_v47 = vld [vmem:[%s5853_s1 + $0x438] sm:$0xff]  }
  0x72   : > { %4298 = vmatpush3.bf16.msra.mxu1 %v4606_v55  ;;  %v4667_v55 = vld [vmem:[%s5853_s1 + $0x548] sm:$0xff]  }
  0x73   : > { %4299 = vmatprep.subr.bf16.mxu1 %v4608_v56  ;;  %v4658_v56 = vld [vmem:[%s5853_s1 + $0x4b0] sm:$0xff]  }
  0x74   : > { %4280 = vmatpush3.bf16.msra.mxu0 %v4613_v53  ;;  %v4656_v53 = vld [vmem:[%s5853_s1 + $0x4f0] sm:$0xff]  }
  0x75   : > { %4281 = vmatprep.subr.bf16.mxu0 %v4615_v54  ;;  %v4665_v54 = vld [vmem:[%s5853_s1 + $0x500] sm:$0xff]  }
  0x76   : > { %4300 = vmatpush3.bf16.msra.mxu1 %v4610_v58  ;;  %v4671_v58 = vld [vmem:[%s5853_s1 + $0x550] sm:$0xff]  }
  0x77   : > { %4301 = vmatprep.subr.bf16.mxu1 %v4612_v59  ;;  %v4662_v59 = vld [vmem:[%s5853_s1 + $0x4b8] sm:$0xff]  }
  0x78   : > { %4282 = vmatpush3.bf16.msra.mxu0 %v4617_v57  ;;  %v4660_v57 = vld [vmem:[%s5853_s1 + $0x4f8] sm:$0xff]  }
  0x79   : > { %4283 = vmatprep.subr.bf16.mxu0 %v4619_v32  ;;  %v4669_v32 = vld [vmem:[%s5853_s1 + $0x508] sm:$0xff]  }
  0x7a   : > { %4302 = vmatpush3.bf16.msra.mxu1 %v4614_v2  ;;  %v4666_v2 = vld [vmem:[%s5853_s1 + $0x580] sm:$0xff]  }
  0x7b   : > { %4303 = vmatprep.subr.bf16.mxu1 %v4616_v3  ;;  %v4668_v3 = vld [vmem:[%s5853_s1 + $0x5c8] sm:$0xff]  }
  0x7c   : > { %4284 = vmatpush3.bf16.msra.mxu0 %v4621_v0  ;;  %v4673_v0 = vld [vmem:[%s5853_s1 + $0x510] sm:$0xff]  }
  0x7d   : > { %4285 = vmatprep.subr.bf16.mxu0 %v4623_v1  ;;  %v4675_v1 = vld [vmem:[%s5853_s1 + $0x558] sm:$0xff]  }
  0x7e   : > { %4304 = vmatpush3.bf16.msra.mxu1 %v4618_v34  ;;  %v4670_v34 = vld [vmem:[%s5853_s1 + $0x588] sm:$0xff]  }
  0x7f   : > { %4305 = vmatprep.subr.bf16.mxu1 %v4620_v5  ;;  %v4672_v5 = vld [vmem:[%s5853_s1 + $0x5d0] sm:$0xff]  }
  0x80   : > { %4286 = vmatpush3.bf16.msra.mxu0 %v4625_v44  ;;  %v4677_v44 = vld [vmem:[%s5853_s1 + $0x518] sm:$0xff]  }
  0x81   : > { %4287 = vmatprep.subr.bf16.mxu0 %v4627_v4  ;;  %v4679_v4 = vld [vmem:[%s5853_s1 + $0x560] sm:$0xff]  }
  0x82   : > { %4306 = vmatpush3.bf16.msra.mxu1 %v4622_v8  ;;  %v4674_v8 = vld [vmem:[%s5853_s1 + $0x590] sm:$0xff]  }
  0x83   : > { %4307 = vmatprep.subr.bf16.mxu1 %v4624_v9  ;;  %v4676_v9 = vld [vmem:[%s5853_s1 + $0x5d8] sm:$0xff]  }
  0x84   : > { %4288 = vmatpush3.bf16.msra.mxu0 %v4629_v6  ;;  %v4681_v6 = vld [vmem:[%s5853_s1 + $0x520] sm:$0xff]  }
  0x85   : > { %4317 = vmatprep.subr.bf16.mxu0 %v4631_v38  ;;  %v4683_v38 = vld [vmem:[%s5853_s1 + $0x568] sm:$0xff]  }
  0x86   : > { %4308 = vmatpush3.bf16.msra.mxu1 %v4626_v35  ;;  %v4678_v35 = vld [vmem:[%s5853_s1 + $0x598] sm:$0xff]  }
  0x87   : > { %1790 = vmatmul.mubr.bf16.vlgmr.msra.gmra.mrb[12].mxu0 %v5193_v63  ;;  %4309 = vmatprep.subr.bf16.mxu1 %v4628_v40  ;;  %v4680_v40 = vld [vmem:[%s5853_s1 + $0x5e0] sm:$0xff]  }
  0x88   : > { %4318 = vmatpush3.bf16.msra.mxu0 %v4633_v10  ;;  %2460 = vmatprep.mubr.bf16.mxu0 %v5138_v27  ;;  %v4641_v27 = vld [vmem:[%s5853_s1 + $0x410] sm:$0xff]   ;;  %v4685_v10 = vld [vmem:[%s5853_s1 + $0x528] sm:$0xff]  }
  0x89   : > { %4319 = vmatprep.subr.bf16.mxu0 %v4635_v11  ;;  %v4687_v11 = vld [vmem:[%s5853_s1 + $0x570] sm:$0xff]  }
  0x8a   : > { %4310 = vmatpush3.bf16.msra.mxu1 %v4630_v15  ;;  %v4691_v15 = vld [vmem:[%s5853_s1 + $0x578] sm:$0xff]  }
  0x8b   : > { %4339 = vmatprep.subr.bf16.mxu1 %v4632_v16  ;;  %v4684_v16 = vld [vmem:[%s5853_s1 + $0x5e8] sm:$0xff]  }
  0x8c   : > { %4320 = vmatpush3.bf16.msra.mxu0 %v4637_v13  ;;  %v4682_v13 = vld [vmem:[%s5853_s1 + $0x5a0] sm:$0xff]  }
  0x8d   : > { %4321 = vmatprep.subr.bf16.mxu0 %v4639_v39  ;;  %1831 = vmatmul.mubr.bf16.vlgmr.msra.gmra.mrb[12].mxu1 %v5420_v46  ;;  %v4689_v39 = vld [vmem:[%s5853_s1 + $0x530] sm:$0xff]  }
  0x8e   : > { %4340 = vmatpush3.bf16.msra.mxu1 %v4634_v41  ;;  %2501 = vmatprep.mubr.bf16.mxu1 %v5191_v62  ;;  %v4686_v41 = vld [vmem:[%s5853_s1 + $0x5a8] sm:$0xff]  }
  0x8f   : > { %4341 = vmatprep.subr.bf16.mxu1 %v4636_v18  ;;  %v4759_v18 = vld.sshfl [vmem:[%s4897_s27 + $0x20] sm:$0x5f pattern:$0x76325410] }
  0x90   : > { %4322 = vmatpush3.bf16.msra.mxu0 %v4641_v27  ;;  %v4693_v27 = vld [vmem:[%s5853_s1 + $0x538] sm:$0xff]  }
  0x91   : > { %4323 = vmatprep.subr.bf16.mxu0 %v4643_v17  ;;  %v5583_v17 = vld.sshfl [vmem:[%s4897_s27 + $0x28] sm:$0x5f pattern:$0x76325410] }
  0x92   : > { %4342 = vmatpush3.bf16.msra.mxu1 %v4638_v20  ;;  %v1878_v20 = vshrl.u32 %v5583_v17, 16 }
  0x93   : > { %4343 = vmatprep.subr.bf16.mxu1 %v4640_v21  ;;  %v1881_v21 = vshll.u32 %v5583_v17, 16 }
  0x94   : > { %4324 = vmatpush3.bf16.msra.mxu0 %v4645_v12  ;;  %v1891_v12 = vcombine.low %v4759_v18, %v5583_v17  ;;  %v4731_v18 = vld [vmem:[%s5853_s1 + $0x748] sm:$0xff]  }
  0x95   : > { %4325 = vmatprep.subr.bf16.mxu0 %v4647_v14  ;;  %v5592_v14 = vcombine.high %v5583_v17, %v5583_v17 }
  0x96   : > { %4344 = vmatpush3.bf16.msra.mxu1 %v4642_v29  ;;  %v1898_v29 = vrot.slane %v1891_v12, %v4945_v50  ;;  %v4724_v12 = vld [vmem:[%s5853_s1 + $0x6f8] sm:$0xff]  }
  0x97   : > { %4345 = vmatprep.subr.bf16.mxu1 %v4644_v33  ;;  %v1880_v33 = vrot.slane %v1878_v20, 6  ;;  %v4733_v20 = vld [vmem:[%s5853_s1 + $0x708] sm:$0xff]  }
  0x98   : > { %4326 = vmatpush3.bf16.msra.mxu0 %v4649_v22  ;;  %v4695_v22 = vld [vmem:[%s5853_s1 + $0x640] sm:$0xff]  }
  0x99   : > { %4327 = vmatprep.subr.bf16.mxu0 %v4651_v28  ;;  %v4688_v28 = vld [vmem:[%s5853_s1 + $0x5f0] sm:$0xff]  }
  0x9a   : > { %4346 = vmatpush3.bf16.msra.mxu1 %v4646_v25  ;;  %v4690_v25 = vld [vmem:[%s5853_s1 + $0x5b0] sm:$0xff]  }
  0x9b   : > { %4347 = vmatprep.subr.bf16.mxu1 %v4648_v26  ;;  %v1900_v26 = vcombine.high %v4958_v60, %v1898_v29 }
  0x9c   : > { %4328 = vmatpush3.bf16.msra.mxu0 %v4653_v36  ;;  %v1883_v36 = vrot.slane %v1881_v21, 7  ;;  %v4735_v21 = vld [vmem:[%s5853_s1 + $0x750] sm:$0xff]  }
  0x9d   : > { %4329 = vmatprep.subr.bf16.mxu0 %v4655_v24  ;;  %v1887_v24 = vshll.u32 %v5592_v14, 16 }
  0x9e   : > { %4348 = vmatpush3.bf16.msra.mxu1 %v4650_v42  ;;  %v1899_v42 = vcombine.low %v4958_v60, %v1898_v29  ;;  %v4694_v60 = vld [vmem:[%s5853_s1 + $0x5b8] sm:$0xff]  }
  0x9f   : > { %4349 = vmatprep.subr.bf16.mxu1 %v4652_v45  ;;  %v4697_v45 = vld [vmem:[%s5853_s1 + $0x600] sm:$0xff]   ;;  %v4739_v29 = vld [vmem:[%s5853_s1 + $0x758] sm:$0xff]  }
  0xa0   : > { %4330 = vmatpush3.bf16.msra.mxu0 %v4657_v49  ;;  %v1884_v49 = vor.u32 %v1883_v36, %v1880_v33  ;;  %v4734_v36 = vld [vmem:[%s5853_s1 + $0x788] sm:$0xff]  }
  0xa1   : > { %4331 = vmatprep.subr.bf16.mxu0 %v4659_v37  ;;  %v1889_v37 = vrot.slane %v1887_v24, 7  ;;  %v4741_v24 = vld [vmem:[%s5853_s1 + $0x718] sm:$0xff]  }
  0xa2   : > { %4350 = vmatpush3.bf16.msra.mxu1 %v4654_v52  ;;  %v1885_v52 = vrot.slane %v1884_v49, 2  ;;  %v4745_v49 = vld [vmem:[%s5853_s1 + $0x720] sm:$0xff]  }
  0xa3   : > { %4351 = vmatprep.subr.bf16.mxu1 %v4656_v53 }
  0xa4   : > { %4332 = vmatpush3.bf16.msra.mxu0 %v4661_v47  ;;  %v4699_v47 = vld [vmem:[%s5853_s1 + $0x648] sm:$0xff]   ;;  %v1890_v53 = vsel %vm4967_vm6, %v1885_v52, %v1889_v37 }
  0xa5   : > { %4361 = vmatprep.subr.bf16.mxu0 %v4663_v51  ;;  %v4692_v51 = vld [vmem:[%s5853_s1 + $0x5f8] sm:$0xff]   ;;  %v4747_v37 = vld [vmem:[%s5853_s1 + $0x768] sm:$0xff]  }
  0xa6   : > { %4352 = vmatpush3.bf16.msra.mxu1 %v4658_v56  ;;  %v4703_v56 = vld [vmem:[%s5853_s1 + $0x650] sm:$0xff]  }
  0xa7   : > { %2461 = vmatmul.mubr.bf16.vlgmr.msra.gmra.mrb[16].mxu0 %v5140_v31  ;;  %4353 = vmatprep.subr.bf16.mxu1 %v4660_v57  ;;  %v4664_v31 = vld [vmem:[%s5853_s1 + $0x5c0] sm:$0xff]  }
  0xa8   : > { %4362 = vmatpush3.bf16.msra.mxu0 %v4665_v54  ;;  %2542 = vmatprep.mubr.bf16.mxu0 %v1900_v26  ;;  %v4701_v54 = vld [vmem:[%s5853_s1 + $0x608] sm:$0xff]   ;;  %v4736_v26 = vld [vmem:[%s5853_s1 + $0x7d0] sm:$0xff]  }
  0xa9   : > { %4363 = vmatprep.subr.bf16.mxu0 %v4667_v55  ;;  %v1903_v55 = vcombine.low %v5163_v30, %v1890_v53  ;;  %v4705_v30 = vld [vmem:[%s5853_s1 + $0x610] sm:$0xff]   ;;  %v4744_v53 = vld [vmem:[%s5853_s1 + $0x7e0] sm:$0xff]  }
  0xaa   : > { %4354 = vmatpush3.bf16.msra.mxu1 %v4662_v59  ;;  %v4707_v59 = vld [vmem:[%s5853_s1 + $0x658] sm:$0xff]  }
  0xab   : > { %4383 = vmatprep.subr.bf16.mxu1 %v4664_v31  ;;  %v1910_v57 = vrot.slane %v1903_v55, %v4945_v50  ;;  %v4700_v31 = vld [vmem:[%s5853_s1 + $0x6c8] sm:$0xff]  }
  0xac   : > { %4364 = vmatpush3.bf16.msra.mxu0 %v4669_v32  ;;  %v4698_v32 = vld [vmem:[%s5853_s1 + $0x680] sm:$0xff]  }
  0xad   : > { %4365 = vmatprep.subr.bf16.mxu0 %v4671_v58  ;;  %2502 = vmatmul.mubr.bf16.vlgmr.msra.gmra.mrb[16].mxu1 %v5193_v63  ;;  %v5645_v58 = vcombine.low %v5015_v43, %v1910_v57 }
  0xae   : > { %4384 = vmatpush3.bf16.msra.mxu1 %v4666_v2  ;;  %v4704_v2 = vld [vmem:[%s5853_s1 + $0x6d0] sm:$0xff]  }
  0xaf   : > { %4385 = vmatprep.subr.bf16.mxu1 %v4668_v3  ;;  %v4706_v3 = vld [vmem:[%s5853_s1 + $0x690] sm:$0xff]  }
  0xb0   : > { %4366 = vmatpush3.bf16.msra.mxu0 %v4673_v0  ;;  %v4702_v0 = vld [vmem:[%s5853_s1 + $0x688] sm:$0xff]  }
  0xb1   : > { %4367 = vmatprep.subr.bf16.mxu0 %v4675_v1  ;;  %v4711_v1 = vld [vmem:[%s5853_s1 + $0x660] sm:$0xff]  }
  0xb2   : > { %4386 = vmatpush3.bf16.msra.mxu1 %v4670_v34  ;;  %v4710_v34 = vld [vmem:[%s5853_s1 + $0x698] sm:$0xff]  }
  0xb3   : > { %4387 = vmatprep.subr.bf16.mxu1 %v4672_v5  ;;  %v4717_v5 = vld [vmem:[%s5853_s1 + $0x628] sm:$0xff]  }
  0xb4   : > { %4368 = vmatpush3.bf16.msra.mxu0 %v4677_v44  ;;  %v4713_v44 = vld [vmem:[%s5853_s1 + $0x620] sm:$0xff]  }
  0xb5   : > { %4369 = vmatprep.subr.bf16.mxu0 %v4679_v4  ;;  %v4715_v4 = vld [vmem:[%s5853_s1 + $0x668] sm:$0xff]  }
  0xb6   : > { %4388 = vmatpush3.bf16.msra.mxu1 %v4674_v8  ;;  %v4714_v8 = vld [vmem:[%s5853_s1 + $0x6a0] sm:$0xff]  }
  0xb7   : > { %4389 = vmatprep.subr.bf16.mxu1 %v4676_v9  ;;  %v4721_v9 = vld [vmem:[%s5853_s1 + $0x630] sm:$0xff]  }
  0xb8   : > { %4370 = vmatpush3.bf16.msra.mxu0 %v4681_v6  ;;  %v4719_v6 = vld [vmem:[%s5853_s1 + $0x670] sm:$0xff]  }
  0xb9   : > { %4371 = vmatprep.subr.bf16.mxu0 %v4683_v38  ;;  %v4712_v38 = vld [vmem:[%s5853_s1 + $0x6e0] sm:$0xff]  }
  0xba   : > { %4390 = vmatpush3.bf16.msra.mxu1 %v4678_v35  ;;  %v3910_v35 = vrot.slane %v5583_v17, 9 }
  0xbb   : > { %4391 = vmatprep.subr.bf16.mxu1 %v4680_v40  ;;  %v4718_v40 = vld [vmem:[%s5853_s1 + $0x6a8] sm:$0xff]  }
  0xbc   : > { %4372 = vmatpush3.bf16.msra.mxu0 %v4685_v10  ;;  %v4723_v10 = vld [vmem:[%s5853_s1 + $0x678] sm:$0xff]  }
  0xbd   : > { %4373 = vmatprep.subr.bf16.mxu0 %v4687_v11  ;;  %v4716_v11 = vld [vmem:[%s5853_s1 + $0x6e8] sm:$0xff]  }
  0xbe   : > { %4392 = vmatpush3.bf16.msra.mxu1 %v4682_v13  ;;  %v2623_v13 = vrot.slane %v5592_v14, 7 }
  0xbf   : > { %4393 = vmatprep.subr.bf16.mxu1 %v4684_v16  ;;  %v4720_v16 = vld [vmem:[%s5853_s1 + $0x6f0] sm:$0xff]  }
  0xc0   : > { %4374 = vmatpush3.bf16.msra.mxu0 %v4689_v39  ;;  %v4725_v39 = vld [vmem:[%s5853_s1 + $0x638] sm:$0xff]   ;;  %v2624_v17 = vsel %vm5060_vm13, %v3910_v35, %v2623_v13 }
  0xc1   : > { %4375 = vmatprep.subr.bf16.mxu0 %v4691_v15  ;;  %v4727_v15 = vld [vmem:[%s5853_s1 + $0x740] sm:$0xff]   ;;  %v2625_v14 = vcombine.low %v5272_v19, %v2624_v17 }
  0xc2   : > { %4394 = vmatpush3.bf16.msra.mxu1 %v4686_v41  ;;  %v4729_v41 = vld [vmem:[%s5853_s1 + $0x700] sm:$0xff]  }
  0xc3   : > { %4395 = vmatprep.subr.bf16.mxu1 %v4688_v28  ;;  %v4728_v19 = vld [vmem:[%s5853_s1 + $0x7c0] sm:$0xff]   ;;  %v4737_v28 = vld [vmem:[%s5853_s1 + $0x710] sm:$0xff]  }
  0xc4   : > { %4376 = vmatpush3.bf16.msra.mxu0 %v4693_v27  ;;  %v4722_v27 = vld [vmem:[%s5853_s1 + $0x6b0] sm:$0xff]  }
  0xc5   : > { %4405 = vmatprep.subr.bf16.mxu0 %v4695_v22  ;;  %v4730_v22 = vld [vmem:[%s5853_s1 + $0x780] sm:$0xff]  }
  0xc6   : > { %4396 = vmatpush3.bf16.msra.mxu1 %v4690_v25  ;;  %v4743_v25 = vld [vmem:[%s5853_s1 + $0x760] sm:$0xff]  }
  0xc7   : > { %2543 = vmatmul.mubr.bf16.vlgmr.msra.gmra.mrb[20].mxu0 %v1899_v42  ;;  %4397 = vmatprep.subr.bf16.mxu1 %v4692_v51  ;;  %v4740_v42 = vld [vmem:[%s5853_s1 + $0x7d8] sm:$0xff]   ;;  %v4749_v51 = vld [vmem:[%s5853_s1 + $0x728] sm:$0xff]  }
  0xc8   : > { %4406 = vmatpush3.bf16.msra.mxu0 %v4697_v45  ;;  %3182 = vmatprep.mubr.bf16.mxu0 %v5191_v62  ;;  %v5642_v62 = vcombine.high %v5015_v43, %v1910_v57  ;;  %v4709_v43 = vld [vmem:[%s5853_s1 + $0x618] sm:$0xff]  }
  0xc9   : > { %4407 = vmatprep.subr.bf16.mxu0 %v4699_v47  ;;  %v4742_v45 = vld [vmem:[%s5853_s1 + $0x798] sm:$0xff]  }
  0xca   : > { %4398 = vmatpush3.bf16.msra.mxu1 %v4694_v60  ;;  %2583 = vmatprep.mubr.bf16.mxu1 %v5642_v62  ;;  %v4751_v60 = vld [vmem:[%s5853_s1 + $0x770] sm:$0xff]  }
  0xcb   : > { %4427 = vmatprep.subr.bf16.mxu1 %v4696_v7 }
  0xcc   : > { %4408 = vmatpush3.bf16.msra.mxu0 %v4701_v54 }
  0xcd   : > { %4409 = vmatprep.subr.bf16.mxu0 %v4703_v56  ;;  %2584 = vmatmul.mubr.bf16.vlgmr.msra.gmra.mrb[20].mxu1 %v5645_v58  ;;  %v4746_v56 = vld [vmem:[%s5853_s1 + $0x7a0] sm:$0xff]  }
  0xce   : > { %4428 = vmatpush3.bf16.msra.mxu1 %v4698_v32  ;;  %3223 = vmatprep.mubr.bf16.mxu1 %v5323_v23  ;;  %v4708_v23 = vld [vmem:[%s5853_s1 + $0x6d8] sm:$0xff]   ;;  %v4753_v32 = vld [vmem:[%s5853_s1 + $0x730] sm:$0xff]  }
  0xcf   : > { %4429 = vmatprep.subr.bf16.mxu1 %v4700_v31  ;;  %v4750_v31 = vld [vmem:[%s5853_s1 + $0x7a8] sm:$0xff]  }
  0xd0   : > { %4410 = vmatpush3.bf16.msra.mxu0 %v4705_v30  ;;  %v4755_v30 = vld [vmem:[%s5853_s1 + $0x778] sm:$0xff]  }
  0xd1   : > { %4411 = vmatprep.subr.bf16.mxu0 %v4707_v59  ;;  %v4757_v59 = vld [vmem:[%s5853_s1 + $0x738] sm:$0xff]  }
  0xd2   : > { %4430 = vmatpush3.bf16.msra.mxu1 %v4702_v0  ;;  %v4752_v0 = vld [vmem:[%s5853_s1 + $0x7f0] sm:$0xff]  }
  0xd3   : > { %4431 = vmatprep.subr.bf16.mxu1 %v4704_v2 }
  0xd4   : > { %4412 = vmatpush3.bf16.msra.mxu0 %v4709_v43 }
  0xd5   : > { %4413 = vmatprep.subr.bf16.mxu0 %v4711_v1 }
  0xd6   : > { %4432 = vmatpush3.bf16.msra.mxu1 %v4706_v3 }
  0xd7   : > { %4433 = vmatprep.subr.bf16.mxu1 %v4708_v23  ;;  %v4756_v23 = vld [vmem:[%s5853_s1 + $0x7f8] sm:$0xff]  }
  0xd8   : > { %4414 = vmatpush3.bf16.msra.mxu0 %v4713_v44  ;;  %v4754_v44 = vld [vmem:[%s5853_s1 + $0x7b0] sm:$0xff]  }
  0xd9   : > { %4415 = vmatprep.subr.bf16.mxu0 %v4715_v4 }
  0xda   : > { %4434 = vmatpush3.bf16.msra.mxu1 %v4710_v34 }
  0xdb   : > { %4435 = vmatprep.subr.bf16.mxu1 %v4712_v38  ;;  %v4758_v38 = vld [vmem:[%s5853_s1 + $0x7b8] sm:$0xff]  }
  0xdc   : > { %4416 = vmatpush3.bf16.msra.mxu0 %v4717_v5 }
  0xdd   : > { %4417 = vmatprep.subr.bf16.mxu0 %v4719_v6 }
  0xde   : > { %4436 = vmatpush3.bf16.msra.mxu1 %v4714_v8 }
  0xdf   : > { %4437 = vmatprep.subr.bf16.mxu1 %v4716_v11 }
  0xe0   : > { %4418 = vmatpush3.bf16.msra.mxu0 %v4721_v9 }
  0xe1   : > { %4419 = vmatprep.subr.bf16.mxu0 %v4723_v10 }
  0xe2   : > { %4438 = vmatpush3.bf16.msra.mxu1 %v4718_v40 }
  0xe3   : > { %4439 = vmatprep.subr.bf16.mxu1 %v4720_v16 }
  0xe4   : > { %4420 = vmatpush3.bf16.msra.mxu0 %v4725_v39 }
  0xe5   : > { %4449 = vmatprep.subr.bf16.mxu0 %v4727_v15 }
  0xe6   : > { %4440 = vmatpush3.bf16.msra.mxu1 %v4722_v27 }
  0xe7   : > { %3183 = vmatmul.mubr.bf16.vlgmr.msra.gmra.mrb[24].mxu0 %v5193_v63  ;;  %4441 = vmatprep.subr.bf16.mxu1 %v4724_v12  ;;  %v5748_v63 = vrot.slane %v2625_v14, %v4945_v50  ;;  %v4732_v50 = vld [vmem:[%s5853_s1 + $0x7c8] sm:$0xff]  }
  0xe8   : > { %4450 = vmatpush3.bf16.msra.mxu0 %v4729_v41  ;;  %3264 = vmatprep.mubr.bf16.mxu0 %v5642_v62  ;;  %v4748_v62 = vld [vmem:[%s5853_s1 + $0x7e8] sm:$0xff]  }
  0xe9   : > { %4451 = vmatprep.subr.bf16.mxu0 %v4731_v18  ;;  %v2634_v33 = vcombine.high %v5182_v48, %v5748_v63  ;;  %v2633_v8 = vcombine.low %v5182_v48, %v5748_v63 }
  0xea   : > { %4442 = vmatpush3.bf16.msra.mxu1 %v4726_v61 }
  0xeb   : > { %4471 = vmatprep.subr.bf16.mxu1 %v4728_v19 }
  0xec   : > { %4452 = vmatpush3.bf16.msra.mxu0 %v4733_v20 }
  0xed   : > { %4453 = vmatprep.subr.bf16.mxu0 %v4735_v21  ;;  %3224 = vmatmul.mubr.bf16.vlgmr.msra.gmra.mrb[24].mxu1 %v5420_v46  ;;  %v4738_v46 = vld [vmem:[%s5853_s1 + $0x790] sm:$0xff]  }
  0xee   : > { %4472 = vmatpush3.bf16.msra.mxu1 %v4730_v22  ;;  %3305 = vmatprep.mubr.bf16.mxu1 %v2634_v33 }
  0xef   : > { %4473 = vmatprep.subr.bf16.mxu1 %v4732_v50 }
  0xf0   : > { %4454 = vmatpush3.bf16.msra.mxu0 %v4737_v28 }
  0xf1   : > { %4455 = vmatprep.subr.bf16.mxu0 %v4739_v29 }
  0xf2   : > { %4474 = vmatpush3.bf16.msra.mxu1 %v4734_v36 }
  0xf3   : > { %4475 = vmatprep.subr.bf16.mxu1 %v4736_v26 }
  0xf4   : > { %4456 = vmatpush3.bf16.msra.mxu0 %v4741_v24 }
  0xf5   : > { %4457 = vmatprep.subr.bf16.mxu0 %v4743_v25 }
  0xf6   : > { %4476 = vmatpush3.bf16.msra.mxu1 %v4738_v46 }
  0xf7   : > { %4477 = vmatprep.subr.bf16.mxu1 %v4740_v42 }
  0xf8   : > { %4458 = vmatpush3.bf16.msra.mxu0 %v4745_v49 }
  0xf9   : > { %4459 = vmatprep.subr.bf16.mxu0 %v4747_v37 }
  0xfa   : > { %v4157_v47 = vpop.f32.mrb[0].mxu0  ;;  %4478 = vmatpush3.bf16.msra.mxu1 %v4742_v45 }
  0xfb   : > { %v4158_v52 = vpop.f32.mrb[1].mxu0  ;;  %4479 = vmatprep.subr.bf16.mxu1 %v4744_v53 }
  0xfc   : > { %v4159_v54 = vadd.f32 %v4158_v52, %v4157_v47  ;;  %v4160_v55 = vpop.f32.mrb[2].mxu0  ;;  %4460 = vmatpush3.bf16.msra.mxu0 %v4749_v51 }
  0xfd   : > { %v4161_v7 = vpop.f32.mrb[3].mxu0  ;;  %4461 = vmatprep.subr.bf16.mxu0 %v4751_v60 }
  0xfe   : > { %v4162_v57 = vadd.f32 %v4161_v7, %v4160_v55  ;;  %4480 = vmatpush3.bf16.msra.mxu1 %v4746_v56 }
  0xff   : > { %4481 = vmatprep.subr.bf16.mxu1 %v4748_v62 }
 0x100   : > { %4462 = vmatpush3.bf16.msra.mxu0 %v4753_v32  ;;  %v4179_v43 = vpop.f32.mrb[0].mxu1 }
 0x101   : > { %4463 = vmatprep.subr.bf16.mxu0 %v4755_v30  ;;  %v4180_v1 = vpop.f32.mrb[1].mxu1 }
 0x102   : > { %v4181_v2 = vadd.f32 %v4180_v1, %v4179_v43  ;;  %v4182_v3 = vpop.f32.mrb[2].mxu1  ;;  %4482 = vmatpush3.bf16.msra.mxu1 %v4750_v31 }
 0x103   : > { %v4183_v4 = vpop.f32.mrb[3].mxu1  ;;  %4483 = vmatprep.subr.bf16.mxu1 %v4752_v0 }
 0x104   : > { %4464 = vmatpush3.bf16.msra.mxu0 %v4757_v59  ;;  %v979_v34 = vadd.f32 %v4181_v2, %v4159_v54  ;;  %v4184_v5 = vadd.f32 %v4183_v4, %v4182_v3 }
 0x106   : > { %v982_v6 = vadd.f32 %v4184_v5, %v4162_v57  ;;  %4484 = vmatpush3.bf16.msra.mxu1 %v4754_v44 }
 0x107   : > { %3265 = vmatmul.mubr.bf16.vlgmr.msra.gmra.mrb[28].mxu0 %v5645_v58  ;;  %4485 = vmatprep.subr.bf16.mxu1 %v4756_v23 }
 0x10a   : > { %4486 = vmatpush3.bf16.msra.mxu1 %v4758_v38 }
 0x10d   : > { %3306 = vmatmul.mubr.bf16.vlgmr.msra.gmra.mrb[28].mxu1 %v2633_v8 }
 0x11a   : > { %v4201_v9 = vpop.f32.mrb[4].mxu0 }
 0x11b   : > { %v4202_v10 = vpop.f32.mrb[5].mxu0 }
 0x11c   : > { %v4203_v11 = vadd.f32 %v4202_v10, %v4201_v9  ;;  %v4204_v35 = vpop.f32.mrb[6].mxu0 }
 0x11d   : > { %v4205_v40 = vpop.f32.mrb[7].mxu0 }
 0x11e   : > { %v1020_v13 = vadd.f32 %v4203_v11, %v979_v34  ;;  %v4206_v58 = vadd.f32 %v4205_v40, %v4204_v35 }
 0x120   : > { %v1023_v39 = vadd.f32 %v4206_v58, %v982_v6  ;;  %v4223_v15 = vpop.f32.mrb[4].mxu1 }
 0x121   : > { %v4224_v16 = vpop.f32.mrb[5].mxu1 }
 0x122   : > { %v4225_v27 = vadd.f32 %v4224_v16, %v4223_v15  ;;  %v4226_v17 = vpop.f32.mrb[6].mxu1 }
 0x123   : > { %v4227_v41 = vpop.f32.mrb[7].mxu1 }
 0x124   : > { %v1061_v18 = vadd.f32 %v4225_v27, %v1020_v13  ;;  %v4228_v12 = vadd.f32 %v4227_v41, %v4226_v17 }
 0x126   : > { %v1064_v48 = vadd.f32 %v4228_v12, %v1023_v39  ;;  %v1085_v14 = vmul.f32 %v1061_v18, %v1061_v18 }
 0x128   : > { %v4121_v61 = vpack.c.bf16 %v1064_v48, %v1061_v18  ;;  %v1077_v20 = vadd.f32 %v1064_v48, %v1061_v18  ;;  %v1086_v21 = vmul.f32 %v1064_v48, %v1064_v48 }
 0x12a   : > { %4122 = vst [vmem:[%s5838_s20] sm:$0xff] %v4121_v61   ;;  %v1087_v19 = vadd.f32 %v1086_v21, %v1085_v14  ;;  %v1078_v56 = vrot.slane %v1077_v20, 4 }
 0x12c   : > { %v1088_v32 = vrot.slane %v1087_v19, 4  ;;  %v1079_v59 = vadd.f32 %v1078_v56, %v1077_v20 }
 0x12e   : > { %v1089_v1 = vadd.f32 %v1088_v32, %v1087_v19  ;;  %v1080_v3 = vrot.slane %v1079_v59, 2 }
 0x130   : > { %v1090_v5 = vrot.slane %v1089_v1, 2  ;;  %v1081_v8 = vadd.f32 %v1080_v3, %v1079_v59 }
 0x132   : > { %v1091_v11 = vadd.f32 %v1090_v5, %v1089_v1  ;;  %v1082_v13 = vrot.slane %v1081_v8, 1 }
 0x134   : > { %v1092_v15 = vrot.slane %v1091_v11, 1  ;;  %v1083_v17 = vadd.f32 %v1082_v13, %v1081_v8 }
 0x136   : > { %v1093_v12 = vadd.f32 %v1092_v15, %v1091_v11 }
 0x13a   : > { %v4245_v63 = vpop.f32.mrb[8].mxu0 }
 0x13b   : > { %v4246_v22 = vpop.f32.mrb[9].mxu0 }
 0x13c   : > { %v4247_v28 = vadd.f32 %v4246_v22, %v4245_v63  ;;  %v4248_v29 = vpop.f32.mrb[10].mxu0 }
 0x13d   : > { %v4249_v50 = vpop.f32.mrb[11].mxu0 }
 0x13e   : > { %v4250_v33 = vadd.f32 %v4249_v50, %v4248_v29 }
 0x140   : > { %v4267_v36 = vpop.f32.mrb[8].mxu1 }
 0x141   : > { %v4268_v24 = vpop.f32.mrb[9].mxu1 }
 0x142   : > { %v4269_v25 = vadd.f32 %v4268_v24, %v4267_v36  ;;  %v4270_v26 = vpop.f32.mrb[10].mxu1 }
 0x143   : > { %v4271_v46 = vpop.f32.mrb[11].mxu1 }
 0x144   : > { %v1751_v49 = vadd.f32 %v4269_v25, %v4247_v28  ;;  %v4272_v37 = vadd.f32 %v4271_v46, %v4270_v26 }
 0x146   : > { %v1754_v42 = vadd.f32 %v4272_v37, %v4250_v33 }
 0x15a   : > { %v4289_v45 = vpop.f32.mrb[12].mxu0 }
 0x15b   : > { %v4290_v47 = vpop.f32.mrb[13].mxu0 }
 0x15c   : > { %v4291_v51 = vadd.f32 %v4290_v47, %v4289_v45  ;;  %v4292_v52 = vpop.f32.mrb[14].mxu0 }
 0x15d   : > { %v4293_v60 = vpop.f32.mrb[15].mxu0 }
 0x15e   : > { %v1792_v53 = vadd.f32 %v4291_v51, %v1751_v49  ;;  %v4294_v54 = vadd.f32 %v4293_v60, %v4292_v52 }
 0x160   : > { %v1795_v55 = vadd.f32 %v4294_v54, %v1754_v42  ;;  %v4311_v7 = vpop.f32.mrb[12].mxu1 }
 0x161   : > { %v4312_v57 = vpop.f32.mrb[13].mxu1 }
 0x162   : > { %v4313_v30 = vadd.f32 %v4312_v57, %v4311_v7  ;;  %v4314_v62 = vpop.f32.mrb[14].mxu1 }
 0x163   : > { %v4315_v31 = vpop.f32.mrb[15].mxu1 }
 0x164   : > { %v1833_v0 = vadd.f32 %v4313_v30, %v1792_v53  ;;  %v4316_v43 = vadd.f32 %v4315_v31, %v4314_v62 }
 0x166   : > { %v1836_v2 = vadd.f32 %v4316_v43, %v1795_v55  ;;  %v1858_v44 = vmul.f32 %v1833_v0, %v1833_v0 }
 0x168   : > { %v4126_v4 = vpack.c.bf16 %v1836_v2, %v1833_v0  ;;  %v1850_v23 = vadd.f32 %v1836_v2, %v1833_v0  ;;  %v1859_v34 = vmul.f32 %v1836_v2, %v1836_v2 }
 0x16a   : > { %4138 = vst [vmem:[%s5838_s20 + $0x8] sm:$0xff] %v4126_v4   ;;  %v1851_v6 = vrot.slane %v1850_v23, 4  ;;  %v1860_v38 = vadd.f32 %v1859_v34, %v1858_v44 }
 0x16c   : > { %v1852_v9 = vadd.f32 %v1851_v6, %v1850_v23  ;;  %v1861_v10 = vrot.slane %v1860_v38, 4 }
 0x16e   : > { %v1853_v35 = vrot.slane %v1852_v9, 2  ;;  %v1862_v40 = vadd.f32 %v1861_v10, %v1860_v38 }
 0x170   : > { %v1854_v58 = vadd.f32 %v1853_v35, %v1852_v9  ;;  %v1863_v39 = vrot.slane %v1862_v40, 2 }
 0x172   : > { %v1855_v16 = vrot.slane %v1854_v58, 1  ;;  %v1864_v27 = vadd.f32 %v1863_v39, %v1862_v40 }
 0x174   : > { %v1856_v41 = vadd.f32 %v1855_v16, %v1854_v58  ;;  %v1865_v18 = vrot.slane %v1864_v27, 1 }
 0x176   : > { %v1857_v48 = vadd.f32 %v1856_v41, %v1083_v17  ;;  %v1866_v14 = vadd.f32 %v1865_v18, %v1864_v27 }
 0x178   : > { %v1867_v21 = vadd.f32 %v1866_v14, %v1093_v12 }
 0x17a   : > { %v4333_v61 = vpop.f32.mrb[16].mxu0 }
 0x17b   : > { %v4334_v20 = vpop.f32.mrb[17].mxu0 }
 0x17c   : > { %v4335_v19 = vadd.f32 %v4334_v20, %v4333_v61  ;;  %v4336_v63 = vpop.f32.mrb[18].mxu0 }
 0x17d   : > { %v4337_v22 = vpop.f32.mrb[19].mxu0 }
 0x17e   : > { %v4338_v28 = vadd.f32 %v4337_v22, %v4336_v63 }
 0x180   : > { %v4355_v29 = vpop.f32.mrb[16].mxu1 }
 0x181   : > { %v4356_v50 = vpop.f32.mrb[17].mxu1 }
 0x182   : > { %v4357_v33 = vadd.f32 %v4356_v50, %v4355_v29  ;;  %v4358_v36 = vpop.f32.mrb[18].mxu1 }
 0x183   : > { %v4359_v24 = vpop.f32.mrb[19].mxu1 }
 0x184   : > { %v2504_v25 = vadd.f32 %v4357_v33, %v4335_v19  ;;  %v4360_v26 = vadd.f32 %v4359_v24, %v4358_v36 }
 0x186   : > { %v2507_v46 = vadd.f32 %v4360_v26, %v4338_v28 }
 0x19a   : > { %v4377_v49 = vpop.f32.mrb[20].mxu0 }
 0x19b   : > { %v4378_v37 = vpop.f32.mrb[21].mxu0 }
 0x19c   : > { %v4379_v42 = vadd.f32 %v4378_v37, %v4377_v49  ;;  %v4380_v45 = vpop.f32.mrb[22].mxu0 }
 0x19d   : > { %v4381_v47 = vpop.f32.mrb[23].mxu0 }
 0x19e   : > { %v2545_v51 = vadd.f32 %v4379_v42, %v2504_v25  ;;  %v4382_v52 = vadd.f32 %v4381_v47, %v4380_v45 }
 0x1a0   : > { %v2548_v60 = vadd.f32 %v4382_v52, %v2507_v46  ;;  %v4399_v53 = vpop.f32.mrb[20].mxu1 }
 0x1a1   : > { %v4400_v54 = vpop.f32.mrb[21].mxu1 }
 0x1a2   : > { %v4401_v55 = vadd.f32 %v4400_v54, %v4399_v53  ;;  %v4402_v56 = vpop.f32.mrb[22].mxu1 }
 0x1a3   : > { %v4403_v7 = vpop.f32.mrb[23].mxu1 }
 0x1a4   : > { %v2586_v57 = vadd.f32 %v4401_v55, %v2545_v51  ;;  %v4404_v32 = vadd.f32 %v4403_v7, %v4402_v56 }
 0x1a6   : > { %v2589_v30 = vadd.f32 %v4404_v32, %v2548_v60  ;;  %v2611_v62 = vmul.f32 %v2586_v57, %v2586_v57 }
 0x1a8   : > { %v4131_v59 = vpack.c.bf16 %v2589_v30, %v2586_v57  ;;  %v2603_v31 = vadd.f32 %v2589_v30, %v2586_v57  ;;  %v2612_v0 = vmul.f32 %v2589_v30, %v2589_v30 }
 0x1aa   : > { %4139 = vst [vmem:[%s5838_s20 + $0x10] sm:$0xff] %v4131_v59   ;;  %v2604_v43 = vrot.slane %v2603_v31, 4  ;;  %v2613_v1 = vadd.f32 %v2612_v0, %v2611_v62 }
 0x1ac   : > { %v2605_v2 = vadd.f32 %v2604_v43, %v2603_v31  ;;  %v2614_v3 = vrot.slane %v2613_v1, 4 }
 0x1ae   : > { %v2606_v44 = vrot.slane %v2605_v2, 2  ;;  %v2615_v4 = vadd.f32 %v2614_v3, %v2613_v1 }
 0x1b0   : > { %v2607_v23 = vadd.f32 %v2606_v44, %v2605_v2  ;;  %v2616_v34 = vrot.slane %v2615_v4, 2 }
 0x1b2   : > { %v2608_v5 = vrot.slane %v2607_v23, 1  ;;  %v2617_v6 = vadd.f32 %v2616_v34, %v2615_v4 }
 0x1b4   : > { %v2609_v38 = vadd.f32 %v2608_v5, %v2607_v23  ;;  %v2618_v8 = vrot.slane %v2617_v6, 1 }
 0x1b6   : > { %v2610_v9 = vadd.f32 %v2609_v38, %v1857_v48  ;;  %v2619_v10 = vadd.f32 %v2618_v8, %v2617_v6 }
 0x1b8   : > { %v2620_v35 = vadd.f32 %v2619_v10, %v1867_v21 }
 0x1ba   : > { %v4421_v11 = vpop.f32.mrb[24].mxu0 }
 0x1bb   : > { %v4422_v40 = vpop.f32.mrb[25].mxu0 }
 0x1bc   : > { %v4423_v13 = vadd.f32 %v4422_v40, %v4421_v11  ;;  %v4424_v58 = vpop.f32.mrb[26].mxu0 }
 0x1bd   : > { %v4425_v39 = vpop.f32.mrb[27].mxu0 }
 0x1be   : > { %v4426_v15 = vadd.f32 %v4425_v39, %v4424_v58 }
 0x1c0   : > { %v4443_v16 = vpop.f32.mrb[24].mxu1 }
 0x1c1   : > { %v4444_v27 = vpop.f32.mrb[25].mxu1 }
 0x1c2   : > { %v4445_v17 = vadd.f32 %v4444_v27, %v4443_v16  ;;  %v4446_v41 = vpop.f32.mrb[26].mxu1 }
 0x1c3   : > { %v4447_v18 = vpop.f32.mrb[27].mxu1 }
 0x1c4   : > { %v3226_v12 = vadd.f32 %v4445_v17, %v4423_v13  ;;  %v4448_v14 = vadd.f32 %v4447_v18, %v4446_v41 }
 0x1c6   : > { %v3229_v61 = vadd.f32 %v4448_v14, %v4426_v15 }
 0x1da   : > { %v4465_v20 = vpop.f32.mrb[28].mxu0 }
 0x1db   : > { %v4466_v19 = vpop.f32.mrb[29].mxu0 }
 0x1dc   : > { %v4467_v63 = vadd.f32 %v4466_v19, %v4465_v20  ;;  %v4468_v48 = vpop.f32.mrb[30].mxu0 }
 0x1dd   : > { %v4469_v22 = vpop.f32.mrb[31].mxu0 }
 0x1de   : > { %v3267_v21 = vadd.f32 %v4467_v63, %v3226_v12  ;;  %v4470_v28 = vadd.f32 %v4469_v22, %v4468_v48 }
 0x1e0   : > { %v3270_v29 = vadd.f32 %v4470_v28, %v3229_v61  ;;  %v4487_v50 = vpop.f32.mrb[28].mxu1 }
 0x1e1   : > { %v4488_v33 = vpop.f32.mrb[29].mxu1 }
 0x1e2   : > { %v4489_v36 = vadd.f32 %v4488_v33, %v4487_v50  ;;  %v4490_v24 = vpop.f32.mrb[30].mxu1 }
 0x1e3   : > { %v4491_v25 = vpop.f32.mrb[31].mxu1 }
 0x1e4   : > { %v3308_v26 = vadd.f32 %v4489_v36, %v3267_v21  ;;  %v4492_v46 = vadd.f32 %v4491_v25, %v4490_v24 }
 0x1e6   : > { %v3311_v49 = vadd.f32 %v4492_v46, %v3270_v29  ;;  %v3333_v37 = vmul.f32 %v3308_v26, %v3308_v26 }
 0x1e8   : > { %v4136_v42 = vpack.c.bf16 %v3311_v49, %v3308_v26  ;;  %v3325_v45 = vadd.f32 %v3311_v49, %v3308_v26  ;;  %v3334_v47 = vmul.f32 %v3311_v49, %v3311_v49 }
 0x1ea   : > { %4140 = vst [vmem:[%s5838_s20 + $0x18] sm:$0xff] %v4136_v42   ;;  %v3326_v51 = vrot.slane %v3325_v45, 4  ;;  %v3335_v52 = vadd.f32 %v3334_v47, %v3333_v37 }
 0x1ec   : > { %v3327_v60 = vadd.f32 %v3326_v51, %v3325_v45  ;;  %v3336_v53 = vrot.slane %v3335_v52, 4 }
 0x1ee   : > { %v3328_v54 = vrot.slane %v3327_v60, 2  ;;  %v3337_v55 = vadd.f32 %v3336_v53, %v3335_v52 }
 0x1f0   : > { %v3329_v56 = vadd.f32 %v3328_v54, %v3327_v60  ;;  %v3338_v7 = vrot.slane %v3337_v55, 2 }
 0x1f2   : > { %v3330_v57 = vrot.slane %v3329_v56, 1  ;;  %v3339_v32 = vadd.f32 %v3338_v7, %v3337_v55 }
 0x1f4   : > { %v3331_v30 = vadd.f32 %v3330_v57, %v3329_v56  ;;  %v3340_v62 = vrot.slane %v3339_v32, 1 }
 0x1f6   : > { %v3332_v59 = vadd.f32 %v3331_v30, %v2610_v9  ;;  %v3341_v31 = vadd.f32 %v3340_v62, %v3339_v32 }
 0x1f8   : > { %v3342_v0 = vadd.f32 %v3341_v31, %v2620_v35 }
 0x1fa   : > { %v3344_v43 = vsel %vm1095_vm7, %v3332_v59, %v3342_v0 }
 0x1fb   : > { %3345 = vst [vmem:[%s181_s24] sm:$0x3] %v3344_v43 }
 0x1fc PF: > { %s14_s12 = sadd.s32 1, %s4766_s12  }
 0x1fd   : > { %p11_p4 = scmp.ge.s32.totalorder %s14_s12, 4  }
 0x1ff   :  { %13 = sbr.rel (!%p11_p4) target bundleno = 1 (0x1), region = 76 }

// kernel: generator_forward.9
= control target key start
LH: loop header
LB: loop body
LE: loop exit
PB: predicated region body
PF: predicated region fallthrough
CT: control target
= control target key end

     0   :  { %s3454_s12 = smov 0   ;;  %s4303_s0 = inlined_call_operand.vmem [shape: bf16[2,10,10,128], index: 0, kind: input, shape index: {}]   ;;  %s4304_s1 = inlined_call_operand.vmem [shape: bf16[4,512,64], index: 1, kind: input, shape index: {}]   ;;  %s4305_s2 = inlined_call_operand.vmem [shape: bf16[2,4,64,64], index: 2, kind: output, shape index: {0}]   ;;  %s4306_s3 = inlined_call_operand.vmem [shape: f32[2,2,64], index: 3, kind: output, shape index: {1}]  }
   0x1 LB: > { %s2503_s13 = sadd.s32 4294967295, %s3432_s12   ;;  %p2507_p0 = scmp.ge.s32.totalorder %s3432_s12, 1  ;;  %s3432_s12 = sphi %s3454_s12, %s14_s12  }
   0x2   : > { %p140_p1 = scmp.lt.s32.totalorder %s3432_s12, 3 }
   0x4   : > { %p141_p2 = pnand %p2507_p0, %p140_p1 }
   0x5   : > { %v3289_v0 = vld [vmem:[%s4304_s1 + $0x40] sm:$0xff] (!%p141_p2)   ;;  %v3293_v4 = vld [vmem:[%s4304_s1 + $0x48] sm:$0xff] (!%p141_p2)   ;;  %v3297_v8 = vld [vmem:[%s4304_s1 + $0x50] sm:$0xff] (!%p141_p2)   ;;  %p168_p3 = scmp.lt.s32.totalorder (!%p141_p2), %s2503_s13, 1  ;;  %vm203_vm0 = vsmask.f32 (!%p141_p2), 3328 }
   0x6   : > { %144 = sbr.rel (%p141_p2) target bundleno = 402 (0x192), region = 28  ;;  %v3290_v1 = vld [vmem:[%s4304_s1 + $0xc0] sm:$0xff] (!%p141_p2)   ;;  %2960 = vmatprep.subr.bf16.mxu0 (!%p141_p2), %v3289_v0  ;;  %v3294_v5 = vld [vmem:[%s4304_s1 + $0xc8] sm:$0xff] (!%p141_p2)   ;;  %v3298_v9 = vld [vmem:[%s4304_s1 + $0xd0] sm:$0xff] (!%p141_p2)   ;;  %vm204_vm1 = vsmask.f32 (!%p141_p2), 7440 }
   0x7   : > { %v3291_v2 = vld [vmem:[%s4304_s1] sm:$0xff] (!%p141_p2)   ;;  %3000 = vmatprep.subr.bf16.mxu1 (!%p141_p2), %v3290_v1  ;;  %v3295_v6 = vld [vmem:[%s4304_s1 + $0x8] sm:$0xff] (!%p141_p2)   ;;  %v3299_v10 = vld [vmem:[%s4304_s1 + $0x10] sm:$0xff] (!%p141_p2)   ;;  %vm879_vm3 = vcmask (!%p141_p2), 1042432   ;;  %vm880_vm4 = vcmask (!%p141_p2), 1046532   ;;  %vm809_vm6 = vcmask (!%p141_p2), 519168  }
   0x8   : > { %v3292_v3 = vld [vmem:[%s4304_s1 + $0x80] sm:$0xff] (!%p141_p2)   ;;  %2961 = vmatpush3.bf16.msra.mxu0 (!%p141_p2), %v3291_v2  ;;  %v3296_v7 = vld [vmem:[%s4304_s1 + $0x88] sm:$0xff] (!%p141_p2)   ;;  %v3300_v11 = vld [vmem:[%s4304_s1 + $0x90] sm:$0xff] (!%p141_p2)   ;;  %vm818_vm7 = vcmask (!%p141_p2), 523264   ;;  %vm2413_vm8 = vcmask (!%p141_p2), 1040384   ;;  %vm2415_vm9 = vcmask (!%p141_p2), 517120  }
   0x9   : > { %3001 = vmatpush3.bf16.msra.mxu1 (!%p141_p2), %v3292_v3  ;;  %2962 = vmatprep.subr.bf16.mxu0 (!%p141_p2), %v3293_v4  ;;  %v3301_v12 = vld [vmem:[%s4304_s1 + $0x58] sm:$0xff] (!%p141_p2)   ;;  %v3305_v16 = vld [vmem:[%s4304_s1 + $0x60] sm:$0xff] (!%p141_p2)   ;;  %v3309_v20 = vld [vmem:[%s4304_s1 + $0x68] sm:$0xff] (!%p141_p2)  }
   0xa   : > { %3002 = vmatprep.subr.bf16.mxu1 (!%p141_p2), %v3294_v5  ;;  %v3302_v13 = vld [vmem:[%s4304_s1 + $0xd8] sm:$0xff] (!%p141_p2)   ;;  %v3306_v17 = vld [vmem:[%s4304_s1 + $0xe0] sm:$0xff] (!%p141_p2)   ;;  %v3310_v21 = vld [vmem:[%s4304_s1 + $0xe8] sm:$0xff] (!%p141_p2)  }
   0xb   : > { %v3303_v14 = vld [vmem:[%s4304_s1 + $0x18] sm:$0xff] (!%p141_p2)   ;;  %v3307_v18 = vld [vmem:[%s4304_s1 + $0x20] sm:$0xff] (!%p141_p2)   ;;  %v3311_v22 = vld [vmem:[%s4304_s1 + $0x28] sm:$0xff] (!%p141_p2)  }
   0xc   : > { %2963 = vmatpush3.bf16.msra.mxu0 (!%p141_p2), %v3295_v6  ;;  %v3304_v15 = vld [vmem:[%s4304_s1 + $0x98] sm:$0xff] (!%p141_p2)   ;;  %v3308_v19 = vld [vmem:[%s4304_s1 + $0xa0] sm:$0xff] (!%p141_p2)   ;;  %v3312_v23 = vld [vmem:[%s4304_s1 + $0xa8] sm:$0xff] (!%p141_p2)  }
   0xd   : > { %3003 = vmatpush3.bf16.msra.mxu1 %v3296_v7  ;;  %2964 = vmatprep.subr.bf16.mxu0 %v3297_v8  ;;  %s4312_s13 = smov (!%p168_p3, %s2503_s13), 1  ;;  %v3313_v24 = vld [vmem:[%s4304_s1 + $0x70] sm:$0xff]   ;;  %v3317_v28 = vld [vmem:[%s4304_s1 + $0x78] sm:$0xff]   ;;  %v3323_v43 = vld [vmem:[%s4304_s1 + $0x140] sm:$0xff]  }
   0xe   : > { %3004 = vmatprep.subr.bf16.mxu1 %v3298_v9  ;;  %v3314_v25 = vld [vmem:[%s4304_s1 + $0xf0] sm:$0xff]   ;;  %s3280_s16 = smul.u32 80, %s4312_s13  ;;  %v3318_v29 = vld [vmem:[%s4304_s1 + $0xf8] sm:$0xff]   ;;  %v3324_v60 = vld [vmem:[%s4304_s1 + $0x1c0] sm:$0xff]   ;;  %s2927_s4 = sshll.u32 %s4312_s13, 7 }
   0xf   : > { %v3315_v26 = vld [vmem:[%s4304_s1 + $0x30] sm:$0xff]   ;;  %v3319_v30 = vld [vmem:[%s4304_s1 + $0x38] sm:$0xff]   ;;  %vm3612_vm2 = vmor %vm203_vm0, %vm204_vm1  ;;  %s4146_s7 = scalar_lea.vmem %s4305_s2, %s2927_s4  ;;  %s2511_s8 = sshll.u32 %s4312_s13, 1 }
  0x10   : > { %2965 = vmatpush3.bf16.msra.mxu0 %v3299_v10  ;;  %v3316_v27 = vld [vmem:[%s4304_s1 + $0xb0] sm:$0xff]   ;;  %s3562_s27 = scalar_lea.vmem %s4303_s0, %s3280_s16  ;;  %v3320_v31 = vld [vmem:[%s4304_s1 + $0xb8] sm:$0xff]   ;;  %v3325_v9 = vld [vmem:[%s4304_s1 + $0x100] sm:$0xff]   ;;  %s181_s11 = scalar_lea.vmem %s4306_s3, %s2511_s8 }
  0x11   : > { %3005 = vmatpush3.bf16.msra.mxu1 %v3300_v11  ;;  %2966 = vmatprep.subr.bf16.mxu0 %v3301_v12  ;;  %v3571_v32 = vld [vmem:[%s3562_s27] sm:$0xf]  ;;  %v3574_v33 = vld [vmem:[%s3562_s27 + $0x4] sm:$0x1]  ;;  %v3577_v34 = vld [vmem:[%s3562_s27 + $0x8] sm:$0xf] }
  0x12   : > { %3006 = vmatprep.subr.bf16.mxu1 %v3302_v13  ;;  %v3580_v35 = vld [vmem:[%s3562_s27 + $0xc] sm:$0x1]  ;;  %v3583_v36 = vld [vmem:[%s3562_s27 + $0x10] sm:$0xf]  ;;  %v3586_v37 = vld [vmem:[%s3562_s27 + $0x14] sm:$0x1]  ;;  %v2512_v13 = vcombine.low %v3571_v32, %v3577_v34 }
  0x13   : > { %v3589_v38 = vld [vmem:[%s3562_s27 + $0x18] sm:$0xf]  ;;  %v3592_v39 = vld [vmem:[%s3562_s27 + $0x1c] sm:$0x1]  ;;  %v207_v40 = vshrl.u32 %v3571_v32, 16  ;;  %v210_v41 = vshll.u32 %v3571_v32, 16  ;;  %vm3799_vm5 = vmor %vm879_vm3, %vm880_vm4 }
  0x14   : > { %2967 = vmatpush3.bf16.msra.mxu0 %v3303_v14  ;;  %v216_v42 = vshll.u32 %v3574_v33, 16  ;;  %v221_v44 = vshrl.u32 %v3577_v34, 16  ;;  %v224_v45 = vshll.u32 %v3577_v34, 16  ;;  %v230_v46 = vshll.u32 %v3580_v35, 16  ;;  %v3326_v14 = vld [vmem:[%s4304_s1 + $0x180] sm:$0xff]   ;;  %v3424_v61 = vld [vmem:[%s4304_s1 + $0x338] sm:$0xff]  }
  0x15   : > { %3007 = vmatpush3.bf16.msra.mxu1 %v3304_v15  ;;  %2968 = vmatprep.subr.bf16.mxu0 %v3305_v16  ;;  %v235_v47 = vshrl.u32 %v3583_v36, 16  ;;  %v209_v48 = vrot.slane %v207_v40, 4  ;;  %v212_v49 = vrot.slane %v210_v41, 5  ;;  %v238_v51 = vshll.u32 %v3583_v36, 16  ;;  %v3333_v41 = vld [vmem:[%s4304_s1 + $0x150] sm:$0xff]  }
  0x16   : > { %3008 = vmatprep.subr.bf16.mxu1 %v3306_v17  ;;  %v218_v50 = vrot.slane %v216_v42, 5  ;;  %v223_v52 = vrot.slane %v221_v44, 4  ;;  %v226_v53 = vrot.slane %v224_v45, 5  ;;  %v232_v54 = vrot.slane %v230_v46, 5  ;;  %v3334_v42 = vld [vmem:[%s4304_s1 + $0x1d0] sm:$0xff]  }
  0x17   : > { %v237_v55 = vrot.slane %v235_v47, 4  ;;  %v213_v56 = vor.u32 %v212_v49, %v209_v48  ;;  %v240_v57 = vrot.slane %v238_v51, 5  ;;  %v244_v58 = vshll.u32 %v3586_v37, 16  ;;  %v3336_v47 = vld [vmem:[%s4304_s1 + $0x190] sm:$0xff]   ;;  %v3337_v48 = vld [vmem:[%s4304_s1 + $0x158] sm:$0xff]  }
  0x18   : > { %2969 = vmatpush3.bf16.msra.mxu0 %v3307_v18  ;;  %v249_v59 = vshrl.u32 %v3589_v38, 16  ;;  %v227_v62 = vor.u32 %v226_v53, %v223_v52  ;;  %v252_v63 = vshll.u32 %v3589_v38, 16  ;;  %v258_v0 = vshll.u32 %v3592_v39, 16  ;;  %v3327_v18 = vld [vmem:[%s4304_s1 + $0x148] sm:$0xff]   ;;  %v3339_v51 = vld [vmem:[%s4304_s1 + $0x118] sm:$0xff]  }
  0x19   : > { %3009 = vmatpush3.bf16.msra.mxu1 %v3308_v19  ;;  %2970 = vmatprep.subr.bf16.mxu0 %v3309_v20  ;;  %v214_v1 = vrot.slane %v213_v56, 4  ;;  %v241_v2 = vor.u32 %v240_v57, %v237_v55  ;;  %v246_v3 = vrot.slane %v244_v58, 5  ;;  %v3636_v17 = vcombine.low %v3577_v34, %v3583_v36  ;;  %v3705_v55 = vld [vmem:[%s3562_s27 + $0x28] sm:$0xf]  ;;  %v3708_v56 = vld [vmem:[%s3562_s27 + $0x2c] sm:$0x1] }
  0x1a   : > { %3010 = vmatprep.subr.bf16.mxu1 %v3310_v21  ;;  %v251_v4 = vrot.slane %v249_v59, 4  ;;  %v228_v5 = vrot.slane %v227_v62, 4  ;;  %v254_v6 = vrot.slane %v252_v63, 5  ;;  %v260_v12 = vrot.slane %v258_v0, 5  ;;  %v3328_v21 = vld [vmem:[%s4304_s1 + $0x1c8] sm:$0xff]   ;;  %v3343_v0 = vld [vmem:[%s4304_s1 + $0x160] sm:$0xff]  }
  0x1b   : > { %v219_v7 = vsel %vm3612_vm2, %v214_v1, %v218_v50  ;;  %v242_v8 = vrot.slane %v241_v2, 4  ;;  %v3680_v46 = vcombine.low %v3583_v36, %v3589_v38  ;;  %v3338_v50 = vld [vmem:[%s4304_s1 + $0x1d8] sm:$0xff]   ;;  %v2568_v57 = vrot.slane %v3571_v32, 9  ;;  %v3717_v63 = vld [vmem:[%s3562_s27 + $0x30] sm:$0xf] }
  0x1c   : > { %2971 = vmatpush3.bf16.msra.mxu0 %v3311_v22  ;;  %v233_v10 = vsel %vm3612_vm2, %v228_v5, %v232_v54  ;;  %v255_v11 = vor.u32 %v254_v6, %v251_v4  ;;  %v3648_v22 = vld [vmem:[%s3562_s27 + $0x20] sm:$0xf]  ;;  %v3340_v54 = vld [vmem:[%s4304_s1 + $0x198] sm:$0xff]   ;;  %v277_v59 = vshrl.u32 %v3705_v55, 16  ;;  %v286_v62 = vshll.u32 %v3708_v56, 16 }
  0x1d   : > { %3011 = vmatpush3.bf16.msra.mxu1 %v3312_v23  ;;  %2972 = vmatprep.subr.bf16.mxu0 %v3313_v24  ;;  %v247_v15 = vsel %vm3612_vm2, %v242_v8, %v246_v3  ;;  %v3632_v16 = vcombine.low %v219_v7, %v233_v10  ;;  %v3651_v23 = vld [vmem:[%s3562_s27 + $0x24] sm:$0x1]  ;;  %v3699_v53 = vcombine.low %v3589_v38, %v3648_v22  ;;  %v3723_v1 = vld [vmem:[%s3562_s27 + $0x34] sm:$0x1]  ;;  %v291_v2 = vshrl.u32 %v3717_v63, 16 }
  0x1e   : > { %3012 = vmatprep.subr.bf16.mxu1 %v3314_v25  ;;  %v256_v19 = vrot.slane %v255_v11, 4  ;;  %v3641_v20 = vcombine.low %v233_v10, %v247_v15  ;;  %v3329_v25 = vld [vmem:[%s4304_s1 + $0x108] sm:$0xff]   ;;  %v294_v3 = vshll.u32 %v3717_v63, 16  ;;  %v279_v4 = vrot.slane %v277_v59, 4 }
  0x1f   : > { %679 = vmatprep.mubr.bf16.mxu0 %v3632_v16  ;;  %v300_v6 = vshll.u32 %v3723_v1, 16  ;;  %v884_v7 = vrot.slane %v3574_v33, 5  ;;  %v293_v8 = vrot.slane %v291_v2, 4  ;;  %v288_v11 = vrot.slane %v286_v62, 5 }
  0x20   : > { %2973 = vmatpush3.bf16.msra.mxu0 %v3315_v26  ;;  %v261_v24 = vsel %vm3612_vm2, %v256_v19, %v260_v12  ;;  %744 = vmatprep.mubr.bf16.mxu1 %v3641_v20  ;;  %v263_v26 = vshrl.u32 %v3648_v22, 16  ;;  %v3344_v12 = vld [vmem:[%s4304_s1 + $0x1e0] sm:$0xff]  }
  0x21   : > { %3013 = vmatpush3.bf16.msra.mxu1 %v3316_v27  ;;  %2974 = vmatprep.subr.bf16.mxu0 %v3317_v28  ;;  %v266_v27 = vshll.u32 %v3648_v22, 16  ;;  %v272_v28 = vshll.u32 %v3651_v23, 16  ;;  %v3346_v19 = vld [vmem:[%s4304_s1 + $0x1a0] sm:$0xff]  }
  0x22   : > { %3014 = vmatprep.subr.bf16.mxu1 %v3318_v29  ;;  %v3662_v29 = vcombine.low %v247_v15, %v261_v24  ;;  %v3345_v15 = vld [vmem:[%s4304_s1 + $0x120] sm:$0xff]  }
  0x23   : > { %v268_v40 = vrot.slane %v266_v27, 5  ;;  %v274_v45 = vrot.slane %v272_v28, 5  ;;  %v3348_v27 = vld [vmem:[%s4304_s1 + $0x1e8] sm:$0xff]   ;;  %v2569_v28 = vrot.slane %v3577_v34, 9 }
  0x24   : > { %2975 = vmatpush3.bf16.msra.mxu0 %v3319_v30  ;;  %v3330_v30 = vld [vmem:[%s4304_s1 + $0x188] sm:$0xff]  }
  0x25   : > { %3015 = vmatpush3.bf16.msra.mxu1 %v3320_v31  ;;  %3040 = vmatprep.subr.bf16.mxu0 %v3323_v43  ;;  %v265_v31 = vrot.slane %v263_v26, 4  ;;  %v3335_v43 = vld [vmem:[%s4304_s1 + $0x110] sm:$0xff]   ;;  %v3747_v26 = vcombine.low %v3648_v22, %v3705_v55 }
  0x26   : > { %3080 = vmatprep.subr.bf16.mxu1 %v3324_v60  ;;  %v280_v60 = vshll.u32 %v3705_v55, 16 }
  0x27   : > { %680 = vmatmul.mubr.bf16.vlgmr.msra.gmra.mrb[0].mxu0 %v2512_v13  ;;  %v269_v44 = vor.u32 %v268_v40, %v265_v31  ;;  %v3759_v40 = vcombine.low %v3705_v55, %v3717_v63 }
  0x28   : > { %745 = vmatmul.mubr.bf16.vlgmr.msra.gmra.mrb[0].mxu1 %v3636_v17  ;;  %3041 = vmatpush3.bf16.msra.mxu0 %v3325_v9  ;;  %v282_v5 = vrot.slane %v280_v60, 5  ;;  %v296_v9 = vrot.slane %v294_v3, 5 }
  0x29   : > { %3081 = vmatpush3.bf16.msra.mxu1 %v3326_v14  ;;  %3042 = vmatprep.subr.bf16.mxu0 %v3327_v18  ;;  %v270_v49 = vrot.slane %v269_v44, 4  ;;  %v302_v14 = vrot.slane %v300_v6, 5  ;;  %v3771_v44 = vld [vmem:[%s3562_s27 + $0x38] sm:$0xf] }
  0x2a   : > { %3082 = vmatprep.subr.bf16.mxu1 %v3328_v21  ;;  %687 = vmatprep.mubr.bf16.mxu0 %v3662_v29  ;;  %v283_v10 = vor.u32 %v282_v5, %v279_v4  ;;  %v297_v13 = vor.u32 %v296_v9, %v293_v8  ;;  %v3354_v8 = vld [vmem:[%s4304_s1 + $0x1f0] sm:$0xff]   ;;  %v3829_v32 = vcombine.low %v3717_v63, %v3771_v44 }
  0x2b   : > { %v275_v52 = vsel %vm3612_vm2, %v270_v49, %v274_v45  ;;  %v3774_v45 = vld [vmem:[%s3562_s27 + $0x3c] sm:$0x1]  ;;  %v308_v49 = vshll.u32 %v3771_v44, 16 }
  0x2c   : > { %3043 = vmatpush3.bf16.msra.mxu0 %v3329_v25  ;;  %v3711_v58 = vcombine.low %v261_v24, %v275_v52  ;;  %v284_v18 = vrot.slane %v283_v10, 4  ;;  %v298_v21 = vrot.slane %v297_v13, 4  ;;  %v3347_v24 = vld [vmem:[%s4304_s1 + $0x168] sm:$0xff]   ;;  %v885_v13 = vsel %vm3799_vm5, %v2568_v57, %v884_v7  ;;  %v3358_v57 = vld [vmem:[%s4304_s1 + $0x1f8] sm:$0xff]  }
  0x2d   : > { %3083 = vmatpush3.bf16.msra.mxu1 %v3330_v30  ;;  %3044 = vmatprep.subr.bf16.mxu0 %v3333_v41  ;;  %v3349_v41 = vld [vmem:[%s4304_s1 + $0x128] sm:$0xff]   ;;  %v310_v60 = vrot.slane %v308_v49, 5  ;;  %v2572_v49 = vrot.slane %v3648_v22, 9 }
  0x2e   : > { %3084 = vmatprep.subr.bf16.mxu1 %v3334_v42  ;;  %752 = vmatprep.mubr.bf16.mxu1 %v3711_v58  ;;  %v289_v25 = vsel %vm3612_vm2, %v284_v18, %v288_v11  ;;  %v303_v31 = vsel %vm3612_vm2, %v298_v21, %v302_v14  ;;  %v888_v42 = vrot.slane %v3580_v35, 5  ;;  %v314_v35 = vshll.u32 %v3774_v45, 16  ;;  %v3357_v18 = vld [vmem:[%s4304_s1 + $0x178] sm:$0xff]  }
  0x2f   : > { %688 = vmatmul.mubr.bf16.gmra.mrb[4].mxu0 %v3680_v46  ;;  %v3753_v30 = vcombine.low %v275_v52, %v289_v25  ;;  %v3765_v34 = vcombine.low %v289_v25, %v303_v31  ;;  %v3790_v52 = vld [vmem:[%s3562_s27 + $0x44] sm:$0x1]  ;;  %v3359_v25 = vld [vmem:[%s4304_s1 + $0x138] sm:$0xff]  }
  0x30   : > { %3045 = vmatpush3.bf16.msra.mxu0 %v3335_v43  ;;  %753 = vmatmul.mubr.bf16.gmra.mrb[4].mxu1 %v3699_v53  ;;  %v3350_v43 = vld [vmem:[%s4304_s1 + $0x1a8] sm:$0xff]   ;;  %v328_v62 = vshll.u32 %v3790_v52, 16  ;;  %v316_v6 = vrot.slane %v314_v35, 5  ;;  %v889_v14 = vsel %vm3799_vm5, %v2569_v28, %v888_v42  ;;  %v3361_v42 = vld [vmem:[%s4304_s1 + $0x240] sm:$0xff]   ;;  %v900_v35 = vrot.slane %v3651_v23, 5 }
  0x31   : > { %3085 = vmatpush3.bf16.msra.mxu1 %v3336_v47  ;;  %3046 = vmatprep.subr.bf16.mxu0 %v3337_v48  ;;  %v2570_v47 = vrot.slane %v3583_v36, 9  ;;  %v305_v48 = vshrl.u32 %v3771_v44, 16  ;;  %v3365_v23 = vld [vmem:[%s4304_s1 + $0x248] sm:$0xff]  }
  0x32   : > { %3086 = vmatprep.subr.bf16.mxu1 %v3338_v50  ;;  %695 = vmatprep.mubr.bf16.mxu0 %v3753_v30  ;;  %v3782_v50 = vld [vmem:[%s3562_s27 + $0x40] sm:$0xf]  ;;  %v330_v10 = vrot.slane %v328_v62, 5  ;;  %v901_v22 = vsel %vm3799_vm5, %v2572_v49, %v900_v35  ;;  %v3367_v62 = vld [vmem:[%s4304_s1 + $0x208] sm:$0xff]   ;;  %v3386_v49 = vld [vmem:[%s4304_s1 + $0x2f0] sm:$0xff]  }
  0x33   : > { %760 = vmatprep.mubr.bf16.mxu1 %v3765_v34  ;;  %v319_v36 = vshrl.u32 %v3782_v50, 16  ;;  %v307_v59 = vrot.slane %v305_v48, 4  ;;  %v896_v48 = vrot.slane %v3592_v39, 5  ;;  %v3364_v39 = vld [vmem:[%s4304_s1 + $0x280] sm:$0xff]   ;;  %v3387_v35 = vld [vmem:[%s4304_s1 + $0x230] sm:$0xff]  }
  0x34   : > { %3047 = vmatpush3.bf16.msra.mxu0 %v3339_v51  ;;  %v3353_v51 = vld [vmem:[%s4304_s1 + $0x170] sm:$0xff]  }
  0x35   : > { %3087 = vmatpush3.bf16.msra.mxu1 %v3340_v54  ;;  %3048 = vmatprep.subr.bf16.mxu0 %v3343_v0  ;;  %v322_v54 = vshll.u32 %v3782_v50, 16  ;;  %v892_v0 = vrot.slane %v3586_v37, 5  ;;  %v321_v2 = vrot.slane %v319_v36, 4  ;;  %v311_v5 = vor.u32 %v310_v60, %v307_v59  ;;  %v3355_v37 = vld [vmem:[%s4304_s1 + $0x130] sm:$0xff]  }
  0x36   : > { %3088 = vmatprep.subr.bf16.mxu1 %v3344_v12  ;;  %v3356_v12 = vld [vmem:[%s4304_s1 + $0x1b0] sm:$0xff]   ;;  %v2573_v36 = vrot.slane %v3705_v55, 9  ;;  %v904_v60 = vrot.slane %v3708_v56, 5  ;;  %v3368_v55 = vld [vmem:[%s4304_s1 + $0x288] sm:$0xff]  }
  0x37   : > { %696 = vmatmul.mubr.bf16.gmra.mrb[8].mxu0 %v3747_v26  ;;  %v324_v3 = vrot.slane %v322_v54, 5  ;;  %v312_v11 = vrot.slane %v311_v5, 4  ;;  %v3366_v54 = vld [vmem:[%s4304_s1 + $0x2c8] sm:$0xff]   ;;  %v3370_v56 = vld [vmem:[%s4304_s1 + $0x2d0] sm:$0xff]  }
  0x38   : > { %3049 = vmatpush3.bf16.msra.mxu0 %v3345_v15  ;;  %761 = vmatmul.mubr.bf16.gmra.mrb[8].mxu1 %v3759_v40  ;;  %v3372_v5 = vld [vmem:[%s4304_s1 + $0x290] sm:$0xff]  }
  0x39   : > { %3089 = vmatpush3.bf16.msra.mxu1 %v3346_v19  ;;  %3050 = vmatprep.subr.bf16.mxu0 %v3347_v24  ;;  %v325_v9 = vor.u32 %v324_v3, %v321_v2  ;;  %v893_v19 = vsel %vm3799_vm5, %v2570_v47, %v892_v0  ;;  %v317_v33 = vsel %vm3612_vm2, %v312_v11, %v316_v6  ;;  %v3362_v47 = vld [vmem:[%s4304_s1 + $0x2c0] sm:$0xff]   ;;  %v2574_v2 = vrot.slane %v3717_v63, 9  ;;  %v3371_v63 = vld [vmem:[%s4304_s1 + $0x210] sm:$0xff]  }
  0x3a   : > { %3090 = vmatprep.subr.bf16.mxu1 %v3348_v27  ;;  %v3834_v7 = vcombine.low %v303_v31, %v317_v33  ;;  %v3842_v24 = vcombine.low %v3771_v44, %v3782_v50  ;;  %v2577_v27 = vcombine.low %v885_v13, %v889_v14  ;;  %v3360_v31 = vld [vmem:[%s4304_s1 + $0x1b8] sm:$0xff]   ;;  %v908_v3 = vrot.slane %v3723_v1, 5 }
  0x3b   : > { %v326_v15 = vrot.slane %v325_v9, 4  ;;  %v905_v1 = vsel %vm3799_vm5, %v2573_v36, %v904_v60  ;;  %v2575_v9 = vrot.slane %v3771_v44, 9  ;;  %v912_v11 = vrot.slane %v3774_v45, 5  ;;  %v3376_v44 = vld [vmem:[%s4304_s1 + $0x298] sm:$0xff]   ;;  %v3377_v45 = vld [vmem:[%s4304_s1 + $0x260] sm:$0xff]  }
  0x3c   : > { %3051 = vmatpush3.bf16.msra.mxu0 %v3349_v41  ;;  %v3853_v41 = vcombine.low %v889_v14, %v893_v19  ;;  %703 = vmatprep.mubr.bf16.mxu0 %v3834_v7  ;;  %v909_v6 = vsel %vm3799_vm5, %v2574_v2, %v908_v3  ;;  %v2576_v14 = vrot.slane %v3782_v50, 9  ;;  %v3393_v36 = vld [vmem:[%s4304_s1 + $0x340] sm:$0xff]   ;;  %v3397_v2 = vld [vmem:[%s4304_s1 + $0x348] sm:$0xff]  }
  0x3d   : > { %3091 = vmatpush3.bf16.msra.mxu1 %v3350_v43  ;;  %3052 = vmatprep.subr.bf16.mxu0 %v3353_v51  ;;  %v3838_v21 = vsel %vm3612_vm2, %v326_v15, %v330_v10  ;;  %v2571_v43 = vrot.slane %v3589_v38, 9  ;;  %v3363_v38 = vld [vmem:[%s4304_s1 + $0x200] sm:$0xff]   ;;  %v3374_v10 = vld [vmem:[%s4304_s1 + $0x2d8] sm:$0xff]   ;;  %v3934_v13 = vcombine.low %v905_v1, %v909_v6  ;;  %v917_v15 = vrot.slane %v3790_v52, 5  ;;  %v3399_v3 = vld [vmem:[%s4304_s1 + $0x308] sm:$0xff]  }
  0x3e   : > { %3092 = vmatprep.subr.bf16.mxu1 %v3354_v8  ;;  %v3848_v28 = vcombine.low %v317_v33, %v3838_v21  ;;  %v3373_v8 = vld [vmem:[%s4304_s1 + $0x258] sm:$0xff]   ;;  %v913_v52 = vsel %vm3799_vm5, %v2575_v9, %v912_v11  ;;  %v3380_v33 = vld [vmem:[%s4304_s1 + $0x2a0] sm:$0xff]   ;;  %v3413_v11 = vld [vmem:[%s4304_s1 + $0x368] sm:$0xff]  }
  0x3f   : > { %704 = vmatmul.mubr.bf16.gmra.mrb[12].mxu0 %v3829_v32  ;;  %v897_v51 = vsel %vm3799_vm5, %v2571_v43, %v896_v48  ;;  %v3385_v48 = vld [vmem:[%s4304_s1 + $0x270] sm:$0xff]   ;;  %v3395_v60 = vld [vmem:[%s4304_s1 + $0x300] sm:$0xff]  }
  0x40   : > { %3053 = vmatpush3.bf16.msra.mxu0 %v3355_v37  ;;  %768 = vmatprep.mubr.bf16.mxu1 %v3848_v28  ;;  %v3887_v59 = vcombine.low %v893_v19, %v897_v51  ;;  %v3894_v0 = vcombine.low %v897_v51, %v901_v22  ;;  %v3927_v37 = vcombine.low %v901_v22, %v905_v1  ;;  %v3379_v19 = vld [vmem:[%s4304_s1 + $0x220] sm:$0xff]   ;;  %v3389_v51 = vld [vmem:[%s4304_s1 + $0x278] sm:$0xff]  }
  0x41   : > { %3093 = vmatpush3.bf16.msra.mxu1 %v3356_v12  ;;  %3054 = vmatprep.subr.bf16.mxu0 %v3357_v18  ;;  %v3375_v12 = vld [vmem:[%s4304_s1 + $0x218] sm:$0xff]   ;;  %v3378_v18 = vld [vmem:[%s4304_s1 + $0x2e0] sm:$0xff]  }
  0x42   : > { %3094 = vmatprep.subr.bf16.mxu1 %v3358_v57  ;;  %769 = vmatmul.mubr.bf16.gmra.mrb[12].mxu1 %v3842_v24  ;;  %v3960_v57 = vsel %vm3799_vm5, %v2576_v14, %v917_v15  ;;  %v3391_v22 = vld [vmem:[%s4304_s1 + $0x238] sm:$0xff]   ;;  %v3409_v9 = vld [vmem:[%s4304_s1 + $0x360] sm:$0xff]   ;;  %v202_v14 = vld [vmem:[%s3562_s27 + $0x4c] sm:$0x1] }
  0x43   : > { %1233 = vmatprep.mubr.bf16.mxu0 %v2577_v27  ;;  %1298 = vmatprep.mubr.bf16.mxu1 %v3853_v41  ;;  %v3382_v27 = vld [vmem:[%s4304_s1 + $0x2e8] sm:$0xff]   ;;  %v3975_v43 = vcombine.low %v913_v52, %v3960_v57  ;;  %v3405_v1 = vld [vmem:[%s4304_s1 + $0x358] sm:$0xff]  }
  0x44   : > { %3055 = vmatpush3.bf16.msra.mxu0 %v3359_v25  ;;  %v3381_v25 = vld [vmem:[%s4304_s1 + $0x268] sm:$0xff]  }
  0x45   : > { %3095 = vmatpush3.bf16.msra.mxu1 %v3360_v31  ;;  %3120 = vmatprep.subr.bf16.mxu0 %v3361_v42  ;;  %v3968_v31 = vcombine.low %v909_v6, %v913_v52  ;;  %v3383_v42 = vld [vmem:[%s4304_s1 + $0x228] sm:$0xff]   ;;  %v3407_v6 = vld [vmem:[%s4304_s1 + $0x318] sm:$0xff]  }
  0x46   : > { %3160 = vmatprep.subr.bf16.mxu1 %v3362_v47  ;;  %v3384_v47 = vld [vmem:[%s4304_s1 + $0x2a8] sm:$0xff]  }
  0x47   : > { %1234 = vmatmul.mubr.bf16.vlgmr.msra.gmra.mrb[16].mxu0 %v3632_v16  ;;  %v3369_v16 = vld [vmem:[%s4304_s1 + $0x250] sm:$0xff]   ;;  %v3416_v52 = vld [vmem:[%s4304_s1 + $0x3a8] sm:$0xff]  }
  0x48   : > { %3121 = vmatpush3.bf16.msra.mxu0 %v3363_v38  ;;  %1241 = vmatprep.mubr.bf16.mxu0 %v3887_v59  ;;  %v3388_v38 = vld [vmem:[%s4304_s1 + $0x2b0] sm:$0xff]  }
  0x49   : > { %3122 = vmatprep.subr.bf16.mxu0 %v3365_v23  ;;  %v3392_v23 = vld [vmem:[%s4304_s1 + $0x2b8] sm:$0xff]  }
  0x4a   : > { %1299 = vmatmul.mubr.bf16.vlgmr.msra.gmra.mrb[16].mxu1 %v3641_v20 }
  0x4b   : > { %3161 = vmatpush3.bf16.msra.mxu1 %v3364_v39  ;;  %1306 = vmatprep.mubr.bf16.mxu1 %v3894_v0  ;;  %v3390_v39 = vld [vmem:[%s4304_s1 + $0x2f8] sm:$0xff]  }
  0x4c   : > { %3162 = vmatprep.subr.bf16.mxu1 %v3366_v54  ;;  %3123 = vmatpush3.bf16.msra.mxu0 %v3367_v62  ;;  %v3394_v54 = vld [vmem:[%s4304_s1 + $0x3c0] sm:$0xff]  }
  0x4d   : > { %3124 = vmatprep.subr.bf16.mxu0 %v3369_v16  ;;  %v3396_v62 = vld [vmem:[%s4304_s1 + $0x380] sm:$0xff]   ;;  %v3400_v16 = vld [vmem:[%s4304_s1 + $0x388] sm:$0xff]  }
  0x4f   : > { %3163 = vmatpush3.bf16.msra.mxu1 %v3368_v55  ;;  %1242 = vmatmul.mubr.bf16.gmra.mrb[20].mxu0 %v3662_v29  ;;  %v3398_v55 = vld [vmem:[%s4304_s1 + $0x3c8] sm:$0xff]  }
  0x50   : > { %3164 = vmatprep.subr.bf16.mxu1 %v3370_v56  ;;  %3125 = vmatpush3.bf16.msra.mxu0 %v3371_v63  ;;  %v3401_v56 = vld [vmem:[%s4304_s1 + $0x350] sm:$0xff]  }
  0x51   : > { %3126 = vmatprep.subr.bf16.mxu0 %v3373_v8  ;;  %1249 = vmatprep.mubr.bf16.mxu0 %v3927_v37  ;;  %v3404_v63 = vld [vmem:[%s4304_s1 + $0x390] sm:$0xff]   ;;  %v3408_v8 = vld [vmem:[%s4304_s1 + $0x398] sm:$0xff]  }
  0x52   : > { %1307 = vmatmul.mubr.bf16.gmra.mrb[20].mxu1 %v3711_v58 }
  0x53   : > { %3165 = vmatpush3.bf16.msra.mxu1 %v3372_v5  ;;  %1314 = vmatprep.mubr.bf16.mxu1 %v3934_v13  ;;  %v3406_v5 = vld [vmem:[%s4304_s1 + $0x3d8] sm:$0xff]  }
  0x54   : > { %3166 = vmatprep.subr.bf16.mxu1 %v3374_v10  ;;  %3127 = vmatpush3.bf16.msra.mxu0 %v3375_v12  ;;  %v3412_v10 = vld [vmem:[%s4304_s1 + $0x3a0] sm:$0xff]   ;;  %v201_v12 = vld [vmem:[%s3562_s27 + $0x48] sm:$0xf] }
  0x55   : > { %3128 = vmatprep.subr.bf16.mxu0 %v3377_v45  ;;  %v1425_v15 = vshrl.u32 %v201_v12, 16  ;;  %v1428_v45 = vshll.u32 %v201_v12, 16 }
  0x57   : > { %3167 = vmatpush3.bf16.msra.mxu1 %v3376_v44  ;;  %1250 = vmatmul.mubr.bf16.gmra.mrb[24].mxu0 %v3753_v30  ;;  %v3414_v44 = vld [vmem:[%s4304_s1 + $0x3e8] sm:$0xff]  }
  0x58   : > { %3168 = vmatprep.subr.bf16.mxu1 %v3378_v18  ;;  %3129 = vmatpush3.bf16.msra.mxu0 %v3379_v19  ;;  %v1434_v18 = vshll.u32 %v202_v14, 16  ;;  %v3415_v19 = vld [vmem:[%s4304_s1 + $0x328] sm:$0xff]  }
  0x59   : > { %3130 = vmatprep.subr.bf16.mxu0 %v3381_v25  ;;  %1257 = vmatprep.mubr.bf16.mxu0 %v3968_v31  ;;  %v1430_v25 = vrot.slane %v1428_v45, 5 }
  0x5a   : > { %1315 = vmatmul.mubr.bf16.gmra.mrb[24].mxu1 %v3765_v34 }
  0x5b   : > { %3169 = vmatpush3.bf16.msra.mxu1 %v3380_v33  ;;  %1322 = vmatprep.mubr.bf16.mxu1 %v3975_v43  ;;  %v1427_v33 = vrot.slane %v1425_v15, 4 }
  0x5c   : > { %3170 = vmatprep.subr.bf16.mxu1 %v3382_v27  ;;  %3131 = vmatpush3.bf16.msra.mxu0 %v3383_v42  ;;  %v3418_v27 = vld [vmem:[%s4304_s1 + $0x370] sm:$0xff]  }
  0x5d   : > { %3132 = vmatprep.subr.bf16.mxu0 %v3385_v48  ;;  %v3419_v42 = vld [vmem:[%s4304_s1 + $0x3f0] sm:$0xff]  }
  0x5e   : > { %v3420_v48 = vld [vmem:[%s4304_s1 + $0x330] sm:$0xff]  }
  0x5f   : > { %3171 = vmatpush3.bf16.msra.mxu1 %v3384_v47  ;;  %1258 = vmatmul.mubr.bf16.gmra.mrb[28].mxu0 %v3834_v7 }
  0x60   : > { %3172 = vmatprep.subr.bf16.mxu1 %v3386_v49  ;;  %3133 = vmatpush3.bf16.msra.mxu0 %v3387_v35  ;;  %v3421_v49 = vld [vmem:[%s4304_s1 + $0x3b0] sm:$0xff]  }
  0x61   : > { %3134 = vmatprep.subr.bf16.mxu0 %v3389_v51  ;;  %1734 = vmatprep.mubr.bf16.mxu0 %v3641_v20  ;;  %v3422_v51 = vld [vmem:[%s4304_s1 + $0x378] sm:$0xff]  }
  0x62   : > { %1323 = vmatmul.mubr.bf16.gmra.mrb[28].mxu1 %v3848_v28 }
  0x63   : > { %3173 = vmatpush3.bf16.msra.mxu1 %v3388_v38  ;;  %1799 = vmatprep.mubr.bf16.mxu1 %v3662_v29  ;;  %v2697_v38 = vcombine.low %v3782_v50, %v201_v12  ;;  %v3425_v50 = vld [vmem:[%s4304_s1 + $0x3b8] sm:$0xff]  }
  0x64   : > { %3174 = vmatprep.subr.bf16.mxu1 %v3390_v39  ;;  %3135 = vmatpush3.bf16.msra.mxu0 %v3391_v22  ;;  %v3423_v22 = vld [vmem:[%s4304_s1 + $0x3f8] sm:$0xff]  }
  0x65   : > { %3200 = vmatprep.subr.bf16.mxu0 %v3393_v36 }
  0x67   : > { %3175 = vmatpush3.bf16.msra.mxu1 %v3392_v23  ;;  %1735 = vmatmul.mubr.bf16.vlgmr.msra.gmra.mrb[32].mxu0 %v3636_v17  ;;  %v3402_v17 = vld [vmem:[%s4304_s1 + $0x3d0] sm:$0xff]  }
  0x68   : > { %3240 = vmatprep.subr.bf16.mxu1 %v3394_v54  ;;  %3201 = vmatpush3.bf16.msra.mxu0 %v3395_v60 }
  0x69   : > { %3202 = vmatprep.subr.bf16.mxu0 %v3397_v2  ;;  %1742 = vmatprep.mubr.bf16.mxu0 %v3711_v58 }
  0x6a   : > { %1800 = vmatmul.mubr.bf16.vlgmr.msra.gmra.mrb[32].mxu1 %v3680_v46  ;;  %v3403_v46 = vld [vmem:[%s4304_s1 + $0x310] sm:$0xff]  }
  0x6b   : > { %3241 = vmatpush3.bf16.msra.mxu1 %v3396_v62  ;;  %1807 = vmatprep.mubr.bf16.mxu1 %v3753_v30 }
  0x6c   : > { %3242 = vmatprep.subr.bf16.mxu1 %v3398_v55  ;;  %3203 = vmatpush3.bf16.msra.mxu0 %v3399_v3 }
  0x6d   : > { %3204 = vmatprep.subr.bf16.mxu0 %v3401_v56 }
  0x6f   : > { %3243 = vmatpush3.bf16.msra.mxu1 %v3400_v16  ;;  %1743 = vmatmul.mubr.bf16.gmra.mrb[36].mxu0 %v3699_v53  ;;  %v3410_v53 = vld [vmem:[%s4304_s1 + $0x3e0] sm:$0xff]  }
  0x70   : > { %3244 = vmatprep.subr.bf16.mxu1 %v3402_v17  ;;  %3205 = vmatpush3.bf16.msra.mxu0 %v3403_v46 }
  0x71   : > { %3206 = vmatprep.subr.bf16.mxu0 %v3405_v1  ;;  %1750 = vmatprep.mubr.bf16.mxu0 %v3765_v34 }
  0x72   : > { %1808 = vmatmul.mubr.bf16.gmra.mrb[36].mxu1 %v3747_v26  ;;  %v3411_v26 = vld [vmem:[%s4304_s1 + $0x320] sm:$0xff]  }
  0x73   : > { %3245 = vmatpush3.bf16.msra.mxu1 %v3404_v63  ;;  %1815 = vmatprep.mubr.bf16.mxu1 %v3834_v7 }
  0x74   : > { %3246 = vmatprep.subr.bf16.mxu1 %v3406_v5  ;;  %3207 = vmatpush3.bf16.msra.mxu0 %v3407_v6 }
  0x75   : > { %3208 = vmatprep.subr.bf16.mxu0 %v3409_v9 }
  0x77   : > { %3247 = vmatpush3.bf16.msra.mxu1 %v3408_v8  ;;  %1751 = vmatmul.mubr.bf16.gmra.mrb[40].mxu0 %v3759_v40  ;;  %v1431_v40 = vor.u32 %v1430_v25, %v1427_v33 }
  0x78   : > { %3248 = vmatprep.subr.bf16.mxu1 %v3410_v53  ;;  %3209 = vmatpush3.bf16.msra.mxu0 %v3411_v26 }
  0x79   : > { %3210 = vmatprep.subr.bf16.mxu0 %v3413_v11  ;;  %1758 = vmatprep.mubr.bf16.mxu0 %v3848_v28  ;;  %v1432_v47 = vrot.slane %v1431_v40, 4 }
  0x7a   : > { %1816 = vmatmul.mubr.bf16.gmra.mrb[40].mxu1 %v3829_v32  ;;  %v1436_v32 = vrot.slane %v1434_v18, 5 }
  0x7b   : > { %3249 = vmatpush3.bf16.msra.mxu1 %v3412_v10 }
  0x7c   : > { %3250 = vmatprep.subr.bf16.mxu1 %v3414_v44  ;;  %3211 = vmatpush3.bf16.msra.mxu0 %v3415_v19  ;;  %v1437_v35 = vsel %vm3612_vm2, %v1432_v47, %v1436_v32 }
  0x7d   : > { %3212 = vmatprep.subr.bf16.mxu0 %v3418_v27  ;;  %v2698_v39 = vcombine.low %v3838_v21, %v1437_v35  ;;  %v2811_v21 = vrot.slane %v201_v12, 9 }
  0x7f   : > { %3251 = vmatpush3.bf16.msra.mxu1 %v3416_v52  ;;  %1759 = vmatmul.mubr.bf16.gmra.mrb[44].mxu0 %v3842_v24  ;;  %v1928_v24 = vrot.slane %v202_v14, 5 }
  0x80   : > { %3252 = vmatprep.subr.bf16.mxu1 %v3419_v42  ;;  %3213 = vmatpush3.bf16.msra.mxu0 %v3420_v48 }
  0x81   : > { %2222 = vmatprep.mubr.bf16.mxu0 %v3853_v41  ;;  %1823 = vmatprep.mubr.bf16.mxu1 %v2698_v39 }
  0x82   : > { %1824 = vmatmul.mubr.bf16.gmra.mrb[44].mxu1 %v2697_v38  ;;  %3214 = vmatprep.subr.bf16.mxu0 %v3422_v51 }
  0x83   : > { %3253 = vmatpush3.bf16.msra.mxu1 %v3421_v49  ;;  %2287 = vmatprep.mubr.bf16.mxu1 %v3887_v59 }
  0x84   : > { %3254 = vmatprep.subr.bf16.mxu1 %v3423_v22  ;;  %3215 = vmatpush3.bf16.msra.mxu0 %v3424_v61 }
  0x87   : > { %3255 = vmatpush3.bf16.msra.mxu1 %v3425_v50  ;;  %2223 = vmatmul.mubr.bf16.vlgmr.msra.gmra.mrb[48].mxu0 %v3641_v20  ;;  %v1929_v20 = vsel %vm3799_vm5, %v2811_v21, %v1928_v24 }
  0x88   : > { %2230 = vmatprep.mubr.bf16.mxu0 %v3894_v0 }
  0x8a   : > { %2288 = vmatmul.mubr.bf16.vlgmr.msra.gmra.mrb[48].mxu1 %v3662_v29  ;;  %v2812_v29 = vcombine.low %v3960_v57, %v1929_v20 }
  0x8b   : > { %2295 = vmatprep.mubr.bf16.mxu1 %v3927_v37 }
  0x8f   : > { %2231 = vmatmul.mubr.bf16.gmra.mrb[52].mxu0 %v3711_v58 }
  0x90   : > { %2238 = vmatprep.mubr.bf16.mxu0 %v3934_v13 }
  0x92   : > { %2296 = vmatmul.mubr.bf16.gmra.mrb[52].mxu1 %v3753_v30 }
  0x93   : > { %2303 = vmatprep.mubr.bf16.mxu1 %v3968_v31 }
  0x97   : > { %2239 = vmatmul.mubr.bf16.gmra.mrb[56].mxu0 %v3765_v34 }
  0x98   : > { %2246 = vmatprep.mubr.bf16.mxu0 %v3975_v43 }
  0x9a   : > { %2304 = vmatmul.mubr.bf16.gmra.mrb[56].mxu1 %v3834_v7 }
  0x9b   : > { %2311 = vmatprep.mubr.bf16.mxu1 %v2812_v29 }
  0x9f   : > { %2247 = vmatmul.mubr.bf16.gmra.mrb[60].mxu0 %v3848_v28 }
  0xa2   : > { %2312 = vmatmul.mubr.bf16.gmra.mrb[60].mxu1 %v2698_v39 }
  0xfa   : > { %v2976_v58 = vpop.f32.mrb[0].mxu0 }
  0xfb   : > { %v3016_v30 = vpop.f32.mrb[0].mxu1  ;;  %v2977_v41 = vpop.f32.mrb[1].mxu0 }
  0xfc   : > { %v2978_v59 = vadd.f32 %v2977_v41, %v2976_v58  ;;  %v3017_v0 = vpop.f32.mrb[1].mxu1  ;;  %v2979_v37 = vpop.f32.mrb[2].mxu0 }
  0xfd   : > { %v3018_v4 = vadd.f32 %v3017_v0, %v3016_v30  ;;  %v3019_v13 = vpop.f32.mrb[2].mxu1  ;;  %v2980_v34 = vpop.f32.mrb[3].mxu0 }
  0xfe   : > { %v2981_v31 = vadd.f32 %v2980_v34, %v2979_v37  ;;  %v3020_v57 = vpop.f32.mrb[3].mxu1 }
  0xff   : > { %v747_v23 = vadd.f32 %v3018_v4, %v2978_v59  ;;  %v3021_v43 = vadd.f32 %v3020_v57, %v3019_v13 }
 0x101   : > { %v2928_v7 = vpack.c.bf16 %v747_v23, %v747_v23  ;;  %v841_v28 = vmul.f32 %v747_v23, %v747_v23  ;;  %v750_v36 = vadd.f32 %v3021_v43, %v2981_v31  ;;  %v819_v60 = vsel %vm818_vm7, %v747_v23, 0.0 }
 0x102   : > { %v2982_v54 = vpop.f32.mrb[4].mxu0 }
 0x103   : > { %810 = vst.msk [vmem:[%s4146_s7] sm:$0xf] %vm809_vm6, %v2928_v7  ;;  %v2929_v62 = vpack.c.bf16 %v750_v36, %v750_v36  ;;  %v820_v2 = vsel %vm818_vm7, %v750_v36, 0.0  ;;  %v842_v55 = vmul.f32 %v750_v36, %v750_v36  ;;  %v2983_v3 = vpop.f32.mrb[5].mxu0  ;;  %v849_v46 = vsel %vm818_vm7, %v841_v28, 0.0  ;;  %v3022_v6 = vpop.f32.mrb[4].mxu1 }
 0x104   : > { %v821_v16 = vadd.f32 %v820_v2, %v819_v60  ;;  %v2984_v56 = vadd.f32 %v2983_v3, %v2982_v54  ;;  %v2985_v17 = vpop.f32.mrb[6].mxu0  ;;  %v3023_v9 = vpop.f32.mrb[5].mxu1 }
 0x105   : > { %811 = vst.msk [vmem:[%s4146_s7 + $0x4] sm:$0xf] %vm809_vm6, %v2929_v62  ;;  %v850_v63 = vsel %vm818_vm7, %v842_v55, 0.0  ;;  %v2986_v1 = vpop.f32.mrb[7].mxu0  ;;  %v3024_v53 = vadd.f32 %v3023_v9, %v3022_v6  ;;  %v3025_v26 = vpop.f32.mrb[6].mxu1 }
 0x106   : > { %v851_v5 = vadd.f32 %v850_v63, %v849_v46  ;;  %v2987_v8 = vadd.f32 %v2986_v1, %v2985_v17  ;;  %v3026_v10 = vpop.f32.mrb[7].mxu1 }
 0x107   : > { %v755_v11 = vadd.f32 %v3024_v53, %v2984_v56  ;;  %v3027_v12 = vadd.f32 %v3026_v10, %v3025_v26 }
 0x109   : > { %v2930_v14 = vpack.c.bf16 %v755_v11, %v755_v11  ;;  %v822_v44 = vsel %vm818_vm7, %v755_v11, 0.0  ;;  %v843_v15 = vmul.f32 %v755_v11, %v755_v11  ;;  %v758_v45 = vadd.f32 %v3027_v12, %v2987_v8 }
 0x10a   : > { %v823_v18 = vadd.f32 %v822_v44, %v821_v16  ;;  %v2988_v32 = vpop.f32.mrb[8].mxu0 }
 0x10b   : > { %812 = vst.msk [vmem:[%s4146_s7 + $0x8] sm:$0xf] %vm809_vm6, %v2930_v14  ;;  %v852_v19 = vsel %vm818_vm7, %v843_v15, 0.0  ;;  %v2931_v52 = vpack.c.bf16 %v758_v45, %v758_v45  ;;  %v824_v33 = vsel %vm818_vm7, %v758_v45, 0.0  ;;  %v844_v25 = vmul.f32 %v758_v45, %v758_v45  ;;  %v3028_v47 = vpop.f32.mrb[8].mxu1  ;;  %v2989_v48 = vpop.f32.mrb[9].mxu0 }
 0x10c   : > { %v853_v27 = vadd.f32 %v852_v19, %v851_v5  ;;  %v825_v40 = vadd.f32 %v824_v33, %v823_v18  ;;  %v2990_v35 = vadd.f32 %v2989_v48, %v2988_v32  ;;  %v3029_v38 = vpop.f32.mrb[9].mxu1  ;;  %v2991_v51 = vpop.f32.mrb[10].mxu0 }
 0x10d   : > { %813 = vst.msk [vmem:[%s4146_s7 + $0xc] sm:$0xf] %vm809_vm6, %v2931_v52  ;;  %v854_v42 = vsel %vm818_vm7, %v844_v25, 0.0  ;;  %v3030_v39 = vadd.f32 %v3029_v38, %v3028_v47  ;;  %v3031_v22 = vpop.f32.mrb[10].mxu1  ;;  %v2992_v61 = vpop.f32.mrb[11].mxu0 }
 0x10e   : > { %v855_v49 = vadd.f32 %v854_v42, %v853_v27  ;;  %v2993_v50 = vadd.f32 %v2992_v61, %v2991_v51  ;;  %v3032_v21 = vpop.f32.mrb[11].mxu1 }
 0x10f   : > { %v763_v24 = vadd.f32 %v3030_v39, %v2990_v35  ;;  %v3033_v20 = vadd.f32 %v3032_v21, %v3031_v22 }
 0x111   : > { %v2932_v29 = vpack.c.bf16 %v763_v24, %v763_v24  ;;  %v826_v58 = vsel %vm818_vm7, %v763_v24, 0.0  ;;  %v845_v30 = vmul.f32 %v763_v24, %v763_v24  ;;  %v766_v41 = vadd.f32 %v3033_v20, %v2993_v50 }
 0x112   : > { %v827_v59 = vadd.f32 %v826_v58, %v825_v40  ;;  %v2994_v23 = vpop.f32.mrb[12].mxu0 }
 0x113   : > { %814 = vst.msk [vmem:[%s4146_s7 + $0x10] sm:$0xf] %vm809_vm6, %v2932_v29  ;;  %v856_v0 = vsel %vm818_vm7, %v845_v30, 0.0  ;;  %v2933_v37 = vpack.c.bf16 %v766_v41, %v766_v41  ;;  %v828_v4 = vsel %vm818_vm7, %v766_v41, 0.0  ;;  %v846_v13 = vmul.f32 %v766_v41, %v766_v41  ;;  %v2995_v28 = vpop.f32.mrb[13].mxu0 }
 0x114   : > { %v857_v34 = vadd.f32 %v856_v0, %v855_v49  ;;  %v829_v31 = vadd.f32 %v828_v4, %v827_v59  ;;  %v2996_v36 = vadd.f32 %v2995_v28, %v2994_v23  ;;  %v2997_v60 = vpop.f32.mrb[14].mxu0 }
 0x115   : > { %815 = vst.msk [vmem:[%s4146_s7 + $0x14] sm:$0xf] %vm809_vm6, %v2933_v37  ;;  %v858_v57 = vsel %vm818_vm7, %v846_v13, 0.0  ;;  %v3034_v7 = vpop.f32.mrb[12].mxu1  ;;  %v2998_v55 = vpop.f32.mrb[15].mxu0 }
 0x116   : > { %v859_v43 = vadd.f32 %v858_v57, %v857_v34  ;;  %v3035_v54 = vpop.f32.mrb[13].mxu1  ;;  %v2999_v3 = vadd.f32 %v2998_v55, %v2997_v60 }
 0x117   : > { %v3036_v62 = vadd.f32 %v3035_v54, %v3034_v7  ;;  %v3037_v2 = vpop.f32.mrb[14].mxu1 }
 0x118   : > { %v3038_v16 = vpop.f32.mrb[15].mxu1 }
 0x119   : > { %v771_v56 = vadd.f32 %v3036_v62, %v2996_v36  ;;  %v3039_v17 = vadd.f32 %v3038_v16, %v3037_v2 }
 0x11a   : > { %v3056_v8 = vpop.f32.mrb[16].mxu0 }
 0x11b   : > { %v2934_v46 = vpack.c.bf16 %v771_v56, %v771_v56  ;;  %v830_v63 = vsel %vm818_vm7, %v771_v56, 0.0  ;;  %v847_v1 = vmul.f32 %v771_v56, %v771_v56  ;;  %v774_v5 = vadd.f32 %v3039_v17, %v2999_v3  ;;  %v3057_v12 = vpop.f32.mrb[17].mxu0 }
 0x11c   : > { %v831_v6 = vadd.f32 %v830_v63, %v829_v31  ;;  %v3058_v15 = vadd.f32 %v3057_v12, %v3056_v8  ;;  %v3059_v18 = vpop.f32.mrb[18].mxu0 }
 0x11d   : > { %816 = vst.msk [vmem:[%s4146_s7 + $0x18] sm:$0xf] %vm809_vm6, %v2934_v46  ;;  %v860_v9 = vsel %vm818_vm7, %v847_v1, 0.0  ;;  %v2935_v53 = vpack.c.bf16 %v774_v5, %v774_v5  ;;  %v832_v26 = vsel %vm818_vm7, %v774_v5, 0.0  ;;  %v848_v10 = vmul.f32 %v774_v5, %v774_v5  ;;  %v3096_v11 = vpop.f32.mrb[16].mxu1  ;;  %v3060_v25 = vpop.f32.mrb[19].mxu0 }
 0x11e   : > { %v861_v14 = vadd.f32 %v860_v9, %v859_v43  ;;  %v4177_v44 = vadd.f32 %v832_v26, %v831_v6  ;;  %v3097_v45 = vpop.f32.mrb[17].mxu1  ;;  %v3061_v40 = vadd.f32 %v3060_v25, %v3059_v18 }
 0x11f   : > { %817 = vst.msk [vmem:[%s4146_s7 + $0x1c] sm:$0xf] %vm809_vm6, %v2935_v53  ;;  %v862_v19 = vsel %vm818_vm7, %v848_v10, 0.0  ;;  %v3098_v52 = vadd.f32 %v3097_v45, %v3096_v11  ;;  %v3099_v33 = vpop.f32.mrb[18].mxu1 }
 0x120   : > { %v4182_v27 = vadd.f32 %v862_v19, %v861_v14  ;;  %v3100_v32 = vpop.f32.mrb[19].mxu1  ;;  %v834_v19 = vrot.slane %v4177_v44, 4 }
 0x121   : > { %v1301_v42 = vadd.f32 %v3098_v52, %v3058_v15  ;;  %v3101_v47 = vadd.f32 %v3100_v32, %v3099_v33 }
 0x122   : > { %v3062_v38 = vpop.f32.mrb[20].mxu0 }
 0x123   : > { %v2936_v48 = vpack.c.bf16 %v1301_v42, %v1301_v42  ;;  %v1394_v49 = vmul.f32 %v1301_v42, %v1301_v42  ;;  %v1304_v35 = vadd.f32 %v3101_v47, %v3061_v40  ;;  %v1372_v51 = vsel %vm818_vm7, %v1301_v42, 0.0  ;;  %v3063_v21 = vpop.f32.mrb[21].mxu0 }
 0x124   : > { %v3064_v20 = vadd.f32 %v3063_v21, %v3062_v38  ;;  %v3065_v58 = vpop.f32.mrb[22].mxu0 }
 0x125   : > { %2689 = vst.msk [vmem:[%s4146_s7 + $0x20] sm:$0xf] %vm809_vm6, %v2936_v48  ;;  %v2937_v39 = vpack.c.bf16 %v1304_v35, %v1304_v35  ;;  %v1373_v22 = vsel %vm818_vm7, %v1304_v35, 0.0  ;;  %v1395_v61 = vmul.f32 %v1304_v35, %v1304_v35  ;;  %v3102_v50 = vpop.f32.mrb[20].mxu1  ;;  %v1402_v30 = vsel %vm818_vm7, %v1394_v49, 0.0  ;;  %v3066_v37 = vpop.f32.mrb[23].mxu0 }
 0x126   : > { %v1374_v24 = vadd.f32 %v1373_v22, %v1372_v51  ;;  %v3103_v29 = vpop.f32.mrb[21].mxu1  ;;  %v3067_v13 = vadd.f32 %v3066_v37, %v3065_v58  ;;  %v864_v49 = vrot.slane %v4182_v27, 4 }
 0x127   : > { %2690 = vst.msk [vmem:[%s4146_s7 + $0x24] sm:$0xf] %vm809_vm6, %v2937_v39  ;;  %v1403_v41 = vsel %vm818_vm7, %v1395_v61, 0.0  ;;  %v3104_v59 = vadd.f32 %v3103_v29, %v3102_v50  ;;  %v3105_v0 = vpop.f32.mrb[22].mxu1 }
 0x128   : > { %v1404_v4 = vadd.f32 %v1403_v41, %v1402_v30  ;;  %v3106_v34 = vpop.f32.mrb[23].mxu1 }
 0x129   : > { %v1309_v31 = vadd.f32 %v3104_v59, %v3064_v20  ;;  %v3107_v57 = vadd.f32 %v3106_v34, %v3105_v0  ;;  %v835_v20 = vadd.f32 %v834_v19, %v4177_v44  ;;  %v865_v0 = vadd.f32 %v864_v49, %v4182_v27 }
 0x12a   : > { %v3068_v54 = vpop.f32.mrb[24].mxu0 }
 0x12b   : > { %v2938_v23 = vpack.c.bf16 %v1309_v31, %v1309_v31  ;;  %v1375_v43 = vsel %vm818_vm7, %v1309_v31, 0.0  ;;  %v1396_v7 = vmul.f32 %v1309_v31, %v1309_v31  ;;  %v1312_v28 = vadd.f32 %v3107_v57, %v3067_v13  ;;  %v3069_v16 = vpop.f32.mrb[25].mxu0 }
 0x12c   : > { %v1376_v36 = vadd.f32 %v1375_v43, %v1374_v24  ;;  %v3070_v46 = vadd.f32 %v3069_v16, %v3068_v54  ;;  %v3071_v1 = vpop.f32.mrb[26].mxu0  ;;  %v836_v31 = vrot.slane %v835_v20, 2 }
 0x12d   : > { %2691 = vst.msk [vmem:[%s4146_s7 + $0x28] sm:$0xf] %vm809_vm6, %v2938_v23  ;;  %v1405_v60 = vsel %vm818_vm7, %v1396_v7, 0.0  ;;  %v2939_v62 = vpack.c.bf16 %v1312_v28, %v1312_v28  ;;  %v1377_v2 = vsel %vm818_vm7, %v1312_v28, 0.0  ;;  %v1397_v55 = vmul.f32 %v1312_v28, %v1312_v28  ;;  %v3108_v3 = vpop.f32.mrb[24].mxu1  ;;  %v3072_v9 = vpop.f32.mrb[27].mxu0 }
 0x12e   : > { %v1406_v56 = vadd.f32 %v1405_v60, %v1404_v4  ;;  %v1378_v17 = vadd.f32 %v1377_v2, %v1376_v36  ;;  %v3109_v63 = vpop.f32.mrb[25].mxu1  ;;  %v3073_v26 = vadd.f32 %v3072_v9, %v3071_v1 }
 0x12f   : > { %2692 = vst.msk [vmem:[%s4146_s7 + $0x2c] sm:$0xf] %vm809_vm6, %v2939_v62  ;;  %v1407_v5 = vsel %vm818_vm7, %v1397_v55, 0.0  ;;  %v3110_v6 = vadd.f32 %v3109_v63, %v3108_v3  ;;  %v3111_v8 = vpop.f32.mrb[26].mxu1  ;;  %v866_v3 = vrot.slane %v865_v0, 2  ;;  %v837_v63 = vadd.f32 %v836_v31, %v835_v20 }
 0x130   : > { %v1408_v53 = vadd.f32 %v1407_v5, %v1406_v56  ;;  %v3112_v10 = vpop.f32.mrb[27].mxu1 }
 0x131   : > { %v1317_v11 = vadd.f32 %v3110_v6, %v3070_v46  ;;  %v3113_v12 = vadd.f32 %v3112_v10, %v3111_v8 }
 0x132   : > { %v3074_v33 = vpop.f32.mrb[28].mxu0 }
 0x133   : > { %v2940_v14 = vpack.c.bf16 %v1317_v11, %v1317_v11  ;;  %v1379_v15 = vsel %vm818_vm7, %v1317_v11, 0.0  ;;  %v1398_v45 = vmul.f32 %v1317_v11, %v1317_v11  ;;  %v1320_v18 = vadd.f32 %v3113_v12, %v3073_v26  ;;  %v3075_v48 = vpop.f32.mrb[29].mxu0 }
 0x134   : > { %v1380_v52 = vadd.f32 %v1379_v15, %v1378_v17  ;;  %v3076_v51 = vadd.f32 %v3075_v48, %v3074_v33  ;;  %v3077_v22 = vpop.f32.mrb[30].mxu0  ;;  %v867_v11 = vadd.f32 %v866_v3, %v865_v0 }
 0x135   : > { %2693 = vst.msk [vmem:[%s4146_s7 + $0x30] sm:$0xf] %vm809_vm6, %v2940_v14  ;;  %v1409_v25 = vsel %vm818_vm7, %v1398_v45, 0.0  ;;  %v2941_v40 = vpack.c.bf16 %v1320_v18, %v1320_v18  ;;  %v1381_v32 = vsel %vm818_vm7, %v1320_v18, 0.0  ;;  %v1399_v42 = vmul.f32 %v1320_v18, %v1320_v18  ;;  %v3114_v47 = vpop.f32.mrb[28].mxu1  ;;  %v3078_v24 = vpop.f32.mrb[31].mxu0 }
 0x136   : > { %v1410_v35 = vadd.f32 %v1409_v25, %v1408_v53  ;;  %v1382_v38 = vadd.f32 %v1381_v32, %v1380_v52  ;;  %v3115_v39 = vpop.f32.mrb[29].mxu1  ;;  %v3079_v58 = vadd.f32 %v3078_v24, %v3077_v22  ;;  %v838_v45 = vrot.slane %v837_v63, 1 }
 0x137   : > { %2694 = vst.msk [vmem:[%s4146_s7 + $0x34] sm:$0xf] %vm809_vm6, %v2941_v40  ;;  %v1411_v61 = vsel %vm818_vm7, %v1399_v42, 0.0  ;;  %v3116_v50 = vadd.f32 %v3115_v39, %v3114_v47  ;;  %v3117_v21 = vpop.f32.mrb[30].mxu1  ;;  %v868_v22 = vrot.slane %v867_v11, 1 }
 0x138   : > { %v1412_v29 = vadd.f32 %v1411_v61, %v1410_v35  ;;  %v3118_v30 = vpop.f32.mrb[31].mxu1 }
 0x139   : > { %v1325_v41 = vadd.f32 %v3116_v50, %v3076_v51  ;;  %v3119_v59 = vadd.f32 %v3118_v30, %v3117_v21 }
 0x13a   : > { %v3136_v23 = vpop.f32.mrb[32].mxu0 }
 0x13b   : > { %v2942_v37 = vpack.c.bf16 %v1325_v41, %v1325_v41  ;;  %v1383_v4 = vsel %vm818_vm7, %v1325_v41, 0.0  ;;  %v1400_v13 = vmul.f32 %v1325_v41, %v1325_v41  ;;  %v1328_v34 = vadd.f32 %v3119_v59, %v3079_v58  ;;  %v3137_v54 = vpop.f32.mrb[33].mxu0 }
 0x13c   : > { %v1384_v57 = vadd.f32 %v1383_v4, %v1382_v38  ;;  %v3138_v62 = vadd.f32 %v3137_v54, %v3136_v23  ;;  %v3139_v55 = vpop.f32.mrb[34].mxu0  ;;  %v839_v4 = vadd.f32 %v838_v45, %v837_v63 }
 0x13d   : > { %2695 = vst.msk [vmem:[%s4146_s7 + $0x38] sm:$0xf] %vm809_vm6, %v2942_v37  ;;  %v1413_v44 = vsel %vm818_vm7, %v1400_v13, 0.0  ;;  %v2943_v43 = vpack.c.bf16 %v1328_v34, %v1328_v34  ;;  %v1385_v7 = vsel %vm818_vm7, %v1328_v34, 0.0  ;;  %v1401_v28 = vmul.f32 %v1328_v34, %v1328_v34  ;;  %v3176_v36 = vpop.f32.mrb[32].mxu1  ;;  %v3140_v46 = vpop.f32.mrb[35].mxu0 }
 0x13e   : > { %v1414_v27 = vadd.f32 %v1413_v44, %v1412_v29  ;;  %v1386_v60 = vadd.f32 %v1385_v7, %v1384_v57  ;;  %v3177_v2 = vpop.f32.mrb[33].mxu1  ;;  %v3141_v6 = vadd.f32 %v3140_v46, %v3139_v55 }
 0x13f   : > { %2696 = vst.msk [vmem:[%s4146_s7 + $0x3c] sm:$0xf] %vm809_vm6, %v2943_v43  ;;  %v1415_v16 = vsel %vm818_vm7, %v1401_v28, 0.0  ;;  %v3178_v56 = vadd.f32 %v3177_v2, %v3176_v36  ;;  %v3179_v17 = vpop.f32.mrb[34].mxu1  ;;  %v869_v43 = vadd.f32 %v868_v22, %v867_v11 }
 0x140   : > { %v1387_v1 = vrot.slane %v1386_v60, 4  ;;  %v1416_v5 = vadd.f32 %v1415_v16, %v1414_v27  ;;  %v3180_v8 = vpop.f32.mrb[35].mxu1 }
 0x141   : > { %v1802_v9 = vadd.f32 %v3178_v56, %v3138_v62  ;;  %v3181_v53 = vadd.f32 %v3180_v8, %v3179_v17 }
 0x142   : > { %v1388_v26 = vadd.f32 %v1387_v1, %v1386_v60  ;;  %v1417_v10 = vrot.slane %v1416_v5, 4  ;;  %v3142_v52 = vpop.f32.mrb[36].mxu0 }
 0x143   : > { %v2944_v12 = vpack.c.bf16 %v1802_v9, %v1802_v9  ;;  %v1895_v14 = vmul.f32 %v1802_v9, %v1802_v9  ;;  %v1805_v15 = vadd.f32 %v3181_v53, %v3141_v6  ;;  %v1873_v33 = vsel %vm818_vm7, %v1802_v9, 0.0  ;;  %v3143_v47 = vpop.f32.mrb[37].mxu0 }
 0x144   : > { %v1389_v18 = vrot.slane %v1388_v26, 2  ;;  %v1418_v19 = vadd.f32 %v1417_v10, %v1416_v5  ;;  %v3144_v38 = vadd.f32 %v3143_v47, %v3142_v52  ;;  %v3145_v39 = vpop.f32.mrb[38].mxu0 }
 0x145   : > { %2803 = vst.msk [vmem:[%s4146_s7 + $0x40] sm:$0xf] %vm809_vm6, %v2944_v12  ;;  %v2945_v25 = vpack.c.bf16 %v1805_v15, %v1805_v15  ;;  %v1874_v40 = vsel %vm818_vm7, %v1805_v15, 0.0  ;;  %v1896_v32 = vmul.f32 %v1805_v15, %v1805_v15  ;;  %v3182_v42 = vpop.f32.mrb[36].mxu1  ;;  %v1903_v61 = vsel %vm818_vm7, %v1895_v14, 0.0  ;;  %v3146_v20 = vpop.f32.mrb[39].mxu0 }
 0x146   : > { %v1390_v48 = vadd.f32 %v1389_v18, %v1388_v26  ;;  %v1419_v49 = vrot.slane %v1418_v19, 2  ;;  %v1875_v35 = vadd.f32 %v1874_v40, %v1873_v33  ;;  %v3183_v51 = vpop.f32.mrb[37].mxu1  ;;  %v3147_v41 = vadd.f32 %v3146_v20, %v3145_v39 }
 0x147   : > { %2804 = vst.msk [vmem:[%s4146_s7 + $0x44] sm:$0xf] %vm809_vm6, %v2945_v25  ;;  %v1904_v50 = vsel %vm818_vm7, %v1896_v32, 0.0  ;;  %v3184_v21 = vadd.f32 %v3183_v51, %v3182_v42  ;;  %v3185_v24 = vpop.f32.mrb[38].mxu1 }
 0x148   : > { %v1391_v29 = vrot.slane %v1390_v48, 1  ;;  %v1420_v58 = vadd.f32 %v1419_v49, %v1418_v19  ;;  %v1905_v30 = vadd.f32 %v1904_v50, %v1903_v61  ;;  %v3186_v59 = vpop.f32.mrb[39].mxu1 }
 0x149   : > { %v1810_v0 = vadd.f32 %v3184_v21, %v3144_v38  ;;  %v3187_v37 = vadd.f32 %v3186_v59, %v3185_v24 }
 0x14a   : > { %v1392_v13 = vadd.f32 %v1391_v29, %v1390_v48  ;;  %v1421_v34 = vrot.slane %v1420_v58, 1  ;;  %v3148_v54 = vpop.f32.mrb[40].mxu0 }
 0x14b   : > { %v2946_v31 = vpack.c.bf16 %v1810_v0, %v1810_v0  ;;  %v1876_v57 = vsel %vm818_vm7, %v1810_v0, 0.0  ;;  %v1897_v23 = vmul.f32 %v1810_v0, %v1810_v0  ;;  %v1813_v44 = vadd.f32 %v3187_v37, %v3147_v41  ;;  %v3149_v3 = vpop.f32.mrb[41].mxu0 }
 0x14c   : > { %v4229_v7 = vadd.f32 %v1392_v13, %v839_v4  ;;  %v1422_v28 = vadd.f32 %v1421_v34, %v1420_v58  ;;  %v1877_v36 = vadd.f32 %v1876_v57, %v1875_v35  ;;  %v3150_v46 = vadd.f32 %v3149_v3, %v3148_v54  ;;  %v3151_v1 = vpop.f32.mrb[42].mxu0 }
 0x14d   : > { %2805 = vst.msk [vmem:[%s4146_s7 + $0x48] sm:$0xf] %vm809_vm6, %v2946_v31  ;;  %v1906_v27 = vsel %vm818_vm7, %v1897_v23, 0.0  ;;  %v2947_v60 = vpack.c.bf16 %v1813_v44, %v1813_v44  ;;  %v1878_v62 = vsel %vm818_vm7, %v1813_v44, 0.0  ;;  %v1898_v2 = vmul.f32 %v1813_v44, %v1813_v44  ;;  %v3188_v55 = vpop.f32.mrb[40].mxu1  ;;  %v3152_v9 = vpop.f32.mrb[43].mxu0 }
 0x14e   : > { %v4235_v16 = vadd.f32 %v1422_v28, %v869_v43  ;;  %v1907_v56 = vadd.f32 %v1906_v27, %v1905_v30  ;;  %v1879_v17 = vadd.f32 %v1878_v62, %v1877_v36  ;;  %v3189_v63 = vpop.f32.mrb[41].mxu1  ;;  %v3153_v26 = vadd.f32 %v3152_v9, %v3151_v1 }
 0x14f   : > { %2806 = vst.msk [vmem:[%s4146_s7 + $0x4c] sm:$0xf] %vm809_vm6, %v2947_v60  ;;  %v1908_v5 = vsel %vm818_vm7, %v1898_v2, 0.0  ;;  %v3190_v6 = vadd.f32 %v3189_v63, %v3188_v55  ;;  %v3191_v8 = vpop.f32.mrb[42].mxu1 }
 0x150   : > { %v1909_v53 = vadd.f32 %v1908_v5, %v1907_v56  ;;  %v3192_v10 = vpop.f32.mrb[43].mxu1 }
 0x151   : > { %v1818_v11 = vadd.f32 %v3190_v6, %v3150_v46  ;;  %v3193_v12 = vadd.f32 %v3192_v10, %v3191_v8 }
 0x152   : > { %v3154_v52 = vpop.f32.mrb[44].mxu0 }
 0x153   : > { %v2948_v14 = vpack.c.bf16 %v1818_v11, %v1818_v11  ;;  %v1880_v15 = vsel %vm818_vm7, %v1818_v11, 0.0  ;;  %v1899_v45 = vmul.f32 %v1818_v11, %v1818_v11  ;;  %v1821_v18 = vadd.f32 %v3193_v12, %v3153_v26  ;;  %v3155_v42 = vpop.f32.mrb[45].mxu0 }
 0x154   : > { %v1881_v19 = vadd.f32 %v1880_v15, %v1879_v17  ;;  %v3156_v49 = vadd.f32 %v3155_v42, %v3154_v52  ;;  %v3157_v35 = vpop.f32.mrb[46].mxu0 }
 0x155   : > { %2807 = vst.msk [vmem:[%s4146_s7 + $0x50] sm:$0xf] %vm809_vm6, %v2948_v14  ;;  %v1910_v33 = vsel %vm818_vm7, %v1899_v45, 0.0  ;;  %v2949_v25 = vpack.c.bf16 %v1821_v18, %v1821_v18  ;;  %v1882_v40 = vsel %vm818_vm7, %v1821_v18, 0.0  ;;  %v1900_v32 = vmul.f32 %v1821_v18, %v1821_v18  ;;  %v3194_v51 = vpop.f32.mrb[44].mxu1  ;;  %v3158_v39 = vpop.f32.mrb[47].mxu0 }
 0x156   : > { %v1911_v47 = vadd.f32 %v1910_v33, %v1909_v53  ;;  %v1883_v48 = vadd.f32 %v1882_v40, %v1881_v19  ;;  %v3195_v61 = vpop.f32.mrb[45].mxu1  ;;  %v3159_v50 = vadd.f32 %v3158_v39, %v3157_v35 }
 0x157   : > { %2808 = vst.msk [vmem:[%s4146_s7 + $0x54] sm:$0xf] %vm809_vm6, %v2949_v25  ;;  %v1912_v38 = vsel %vm818_vm7, %v1900_v32, 0.0  ;;  %v3196_v21 = vadd.f32 %v3195_v61, %v3194_v51  ;;  %v3197_v24 = vpop.f32.mrb[46].mxu1 }
 0x158   : > { %v1913_v22 = vadd.f32 %v1912_v38, %v1911_v47  ;;  %v3198_v20 = vpop.f32.mrb[47].mxu1 }
 0x159   : > { %v1826_v29 = vadd.f32 %v3196_v21, %v3156_v49  ;;  %v3199_v58 = vadd.f32 %v3198_v20, %v3197_v24 }
 0x15a   : > { %v3216_v30 = vpop.f32.mrb[48].mxu0 }
 0x15b   : > { %v2950_v41 = vpack.c.bf16 %v1826_v29, %v1826_v29  ;;  %v1884_v59 = vsel %vm818_vm7, %v1826_v29, 0.0  ;;  %v1901_v0 = vmul.f32 %v1826_v29, %v1826_v29  ;;  %v1829_v37 = vadd.f32 %v3199_v58, %v3159_v50  ;;  %v3217_v4 = vpop.f32.mrb[49].mxu0 }
 0x15c   : > { %v1885_v13 = vadd.f32 %v1884_v59, %v1883_v48  ;;  %v3218_v34 = vadd.f32 %v3217_v4, %v3216_v30  ;;  %v3219_v31 = vpop.f32.mrb[50].mxu0 }
 0x15d   : > { %2809 = vst.msk [vmem:[%s4146_s7 + $0x58] sm:$0xf] %vm809_vm6, %v2950_v41  ;;  %v1914_v57 = vsel %vm818_vm7, %v1901_v0, 0.0  ;;  %v2951_v23 = vpack.c.bf16 %v1829_v37, %v1829_v37  ;;  %v1886_v44 = vsel %vm818_vm7, %v1829_v37, 0.0  ;;  %v1902_v43 = vmul.f32 %v1829_v37, %v1829_v37  ;;  %v3256_v28 = vpop.f32.mrb[48].mxu1  ;;  %v3220_v36 = vpop.f32.mrb[51].mxu0 }
 0x15e   : > { %v1915_v54 = vadd.f32 %v1914_v57, %v1913_v22  ;;  %v1887_v27 = vadd.f32 %v1886_v44, %v1885_v13  ;;  %v3257_v60 = vpop.f32.mrb[49].mxu1  ;;  %v3221_v62 = vadd.f32 %v3220_v36, %v3219_v31 }
 0x15f   : > { %2810 = vst.msk [vmem:[%s4146_s7 + $0x5c] sm:$0xf] %vm809_vm6, %v2951_v23  ;;  %v1916_v2 = vsel %vm818_vm7, %v1902_v43, 0.0  ;;  %v3258_v55 = vadd.f32 %v3257_v60, %v3256_v28  ;;  %v3259_v3 = vpop.f32.mrb[50].mxu1 }
 0x160   : > { %v1888_v56 = vrot.slane %v1887_v27, 4  ;;  %v1917_v17 = vadd.f32 %v1916_v2, %v1915_v54  ;;  %v3260_v46 = vpop.f32.mrb[51].mxu1 }
 0x161   : > { %v2290_v63 = vadd.f32 %v3258_v55, %v3218_v34  ;;  %v3261_v1 = vadd.f32 %v3260_v46, %v3259_v3 }
 0x162   : > { %v1889_v5 = vadd.f32 %v1888_v56, %v1887_v27  ;;  %v1918_v6 = vrot.slane %v1917_v17, 4  ;;  %v3222_v8 = vpop.f32.mrb[52].mxu0 }
 0x163   : > { %v2952_v9 = vpack.c.bf16 %v2290_v63, %v2290_v63  ;;  %v2383_v53 = vmul.f32 %v2290_v63, %v2290_v63  ;;  %v2293_v26 = vadd.f32 %v3261_v1, %v3221_v62  ;;  %v3223_v10 = vpop.f32.mrb[53].mxu0  ;;  %v2361_v45 = vsel %vm818_vm7, %v2290_v63, 0.0 }
 0x164   : > { %v1890_v11 = vrot.slane %v1889_v5, 2  ;;  %v1919_v12 = vadd.f32 %v1918_v6, %v1917_v17  ;;  %v3224_v14 = vadd.f32 %v3223_v10, %v3222_v8  ;;  %v3225_v15 = vpop.f32.mrb[54].mxu0 }
 0x165   : > { %2917 = vst.msk [vmem:[%s4146_s7 + $0x60] sm:$0xf] %vm809_vm6, %v2952_v9  ;;  %v2953_v18 = vpack.c.bf16 %v2293_v26, %v2293_v26  ;;  %v2362_v19 = vsel %vm818_vm7, %v2293_v26, 0.0  ;;  %v2384_v52 = vmul.f32 %v2293_v26, %v2293_v26  ;;  %v3262_v33 = vpop.f32.mrb[52].mxu1  ;;  %v3226_v25 = vpop.f32.mrb[55].mxu0  ;;  %v2391_v49 = vsel %vm818_vm7, %v2383_v53, 0.0 }
 0x166   : > { %v1891_v40 = vadd.f32 %v1890_v11, %v1889_v5  ;;  %v1920_v32 = vrot.slane %v1919_v12, 2  ;;  %v2363_v42 = vadd.f32 %v2362_v19, %v2361_v45  ;;  %v3263_v47 = vpop.f32.mrb[53].mxu1  ;;  %v3227_v48 = vadd.f32 %v3226_v25, %v3225_v15 }
 0x167   : > { %2918 = vst.msk [vmem:[%s4146_s7 + $0x64] sm:$0xf] %vm809_vm6, %v2953_v18  ;;  %v2392_v35 = vsel %vm818_vm7, %v2384_v52, 0.0  ;;  %v3264_v38 = vadd.f32 %v3263_v47, %v3262_v33  ;;  %v3265_v51 = vpop.f32.mrb[54].mxu1 }
 0x168   : > { %v1892_v39 = vrot.slane %v1891_v40, 1  ;;  %v1921_v22 = vadd.f32 %v1920_v32, %v1919_v12  ;;  %v2393_v61 = vadd.f32 %v2392_v35, %v2391_v49  ;;  %v3266_v50 = vpop.f32.mrb[55].mxu1 }
 0x169   : > { %v2298_v21 = vadd.f32 %v3264_v38, %v3224_v14  ;;  %v3267_v24 = vadd.f32 %v3266_v50, %v3265_v51 }
 0x16a   : > { %v1893_v20 = vadd.f32 %v1892_v39, %v1891_v40  ;;  %v1922_v29 = vrot.slane %v1921_v22, 1  ;;  %v3228_v58 = vpop.f32.mrb[56].mxu0 }
 0x16b   : > { %v2954_v30 = vpack.c.bf16 %v2298_v21, %v2298_v21  ;;  %v2364_v41 = vsel %vm818_vm7, %v2298_v21, 0.0  ;;  %v2385_v59 = vmul.f32 %v2298_v21, %v2298_v21  ;;  %v2301_v0 = vadd.f32 %v3267_v24, %v3227_v48  ;;  %v3229_v37 = vpop.f32.mrb[57].mxu0 }
 0x16c   : > { %v4266_v4 = vadd.f32 %v1893_v20, %v4229_v7  ;;  %v1923_v13 = vadd.f32 %v1922_v29, %v1921_v22  ;;  %v2365_v34 = vadd.f32 %v2364_v41, %v2363_v42  ;;  %v3230_v31 = vadd.f32 %v3229_v37, %v3228_v58  ;;  %v3231_v57 = vpop.f32.mrb[58].mxu0 }
 0x16d   : > { %2919 = vst.msk [vmem:[%s4146_s7 + $0x68] sm:$0xf] %vm809_vm6, %v2954_v30  ;;  %v2394_v23 = vsel %vm818_vm7, %v2385_v59, 0.0  ;;  %v2955_v44 = vpack.c.bf16 %v2301_v0, %v2301_v0  ;;  %v2366_v43 = vsel %vm818_vm7, %v2301_v0, 0.0  ;;  %v2386_v28 = vmul.f32 %v2301_v0, %v2301_v0  ;;  %v3268_v36 = vpop.f32.mrb[56].mxu1  ;;  %v3232_v54 = vpop.f32.mrb[59].mxu0 }
 0x16e   : > { %v4273_v27 = vadd.f32 %v1923_v13, %v4235_v16  ;;  %v2395_v7 = vadd.f32 %v2394_v23, %v2393_v61  ;;  %v2367_v60 = vadd.f32 %v2366_v43, %v2365_v34  ;;  %v3269_v62 = vpop.f32.mrb[57].mxu1  ;;  %v3233_v2 = vadd.f32 %v3232_v54, %v3231_v57 }
 0x16f   : > { %2920 = vst.msk [vmem:[%s4146_s7 + $0x6c] sm:$0xf] %vm809_vm6, %v2955_v44  ;;  %v2396_v55 = vsel %vm818_vm7, %v2386_v28, 0.0  ;;  %v3270_v3 = vadd.f32 %v3269_v62, %v3268_v36  ;;  %v3271_v56 = vpop.f32.mrb[58].mxu1 }
 0x170   : > { %v2397_v17 = vadd.f32 %v2396_v55, %v2395_v7  ;;  %v3272_v46 = vpop.f32.mrb[59].mxu1 }
 0x171   : > { %v2306_v63 = vadd.f32 %v3270_v3, %v3230_v31  ;;  %v3273_v1 = vadd.f32 %v3272_v46, %v3271_v56 }
 0x172   : > { %v3234_v5 = vpop.f32.mrb[60].mxu0 }
 0x173   : > { %v2956_v6 = vpack.c.bf16 %v2306_v63, %v2306_v63  ;;  %v2368_v16 = vsel %vm818_vm7, %v2306_v63, 0.0  ;;  %v2387_v8 = vmul.f32 %v2306_v63, %v2306_v63  ;;  %v2309_v9 = vadd.f32 %v3273_v1, %v3233_v2  ;;  %v3235_v53 = vpop.f32.mrb[61].mxu0 }
 0x174   : > { %v2369_v26 = vadd.f32 %v2368_v16, %v2367_v60  ;;  %v3236_v10 = vadd.f32 %v3235_v53, %v3234_v5  ;;  %v3237_v11 = vpop.f32.mrb[62].mxu0 }
 0x175   : > { %2921 = vst.msk [vmem:[%s4146_s7 + $0x70] sm:$0xf] %vm809_vm6, %v2956_v6  ;;  %v2398_v12 = vsel %vm818_vm7, %v2387_v8, 0.0  ;;  %v2957_v14 = vpack.c.bf16 %v2309_v9, %v2309_v9  ;;  %v2370_v15 = vsel %vm818_vm7, %v2309_v9, 0.0  ;;  %v2388_v45 = vmul.f32 %v2309_v9, %v2309_v9  ;;  %v3274_v18 = vpop.f32.mrb[60].mxu1  ;;  %v3238_v19 = vpop.f32.mrb[63].mxu0 }
 0x176   : > { %v2399_v52 = vadd.f32 %v2398_v12, %v2397_v17  ;;  %v2371_v33 = vadd.f32 %v2370_v15, %v2369_v26  ;;  %v3275_v25 = vpop.f32.mrb[61].mxu1  ;;  %v3239_v40 = vadd.f32 %v3238_v19, %v3237_v11 }
 0x177   : > { %2922 = vst.msk [vmem:[%s4146_s7 + $0x74] sm:$0xf] %vm809_vm6, %v2957_v14  ;;  %v2400_v32 = vsel %vm818_vm7, %v2388_v45, 0.0  ;;  %v3276_v42 = vadd.f32 %v3275_v25, %v3274_v18  ;;  %v3277_v47 = vpop.f32.mrb[62].mxu1 }
 0x178   : > { %v2401_v48 = vadd.f32 %v2400_v32, %v2399_v52  ;;  %v3278_v49 = vpop.f32.mrb[63].mxu1 }
 0x179   : > { %v2314_v35 = vadd.f32 %v3276_v42, %v3236_v10  ;;  %v3279_v38 = vadd.f32 %v3278_v49, %v3277_v47 }
 0x17b   : > { %v2958_v51 = vpack.c.bf16 %v2314_v35, %v2314_v35  ;;  %v2372_v39 = vsel %vm818_vm7, %v2314_v35, 0.0  ;;  %v2389_v22 = vmul.f32 %v2314_v35, %v2314_v35  ;;  %v2317_v61 = vadd.f32 %v3279_v38, %v3239_v40 }
 0x17c   : > { %v2373_v50 = vadd.f32 %v2372_v39, %v2371_v33 }
 0x17d   : > { %2923 = vst.msk [vmem:[%s4146_s7 + $0x78] sm:$0xf] %vm809_vm6, %v2958_v51  ;;  %v2402_v21 = vsel %vm818_vm7, %v2389_v22, 0.0  ;;  %v2959_v24 = vpack.c.bf16 %v2317_v61, %v2317_v61  ;;  %v2374_v20 = vsel %vm818_vm7, %v2317_v61, 0.0  ;;  %v2390_v29 = vmul.f32 %v2317_v61, %v2317_v61 }
 0x17e   : > { %v2403_v58 = vadd.f32 %v2402_v21, %v2401_v48  ;;  %v2375_v30 = vadd.f32 %v2374_v20, %v2373_v50 }
 0x17f   : > { %2924 = vst.msk [vmem:[%s4146_s7 + $0x7c] sm:$0xf] %vm809_vm6, %v2959_v24  ;;  %v2404_v41 = vsel %vm818_vm7, %v2390_v29, 0.0 }
 0x180   : > { %v2376_v59 = vrot.slane %v2375_v30, 4  ;;  %v2405_v0 = vadd.f32 %v2404_v41, %v2403_v58 }
 0x182   : > { %v2377_v37 = vadd.f32 %v2376_v59, %v2375_v30  ;;  %v2406_v13 = vrot.slane %v2405_v0, 4 }
 0x184   : > { %v2378_v34 = vrot.slane %v2377_v37, 2  ;;  %v2407_v31 = vadd.f32 %v2406_v13, %v2405_v0 }
 0x186   : > { %v2379_v57 = vadd.f32 %v2378_v34, %v2377_v37  ;;  %v2408_v23 = vrot.slane %v2407_v31, 2 }
 0x188   : > { %v2380_v44 = vrot.slane %v2379_v57, 1  ;;  %v2409_v43 = vadd.f32 %v2408_v23, %v2407_v31 }
 0x18a   : > { %v2381_v28 = vadd.f32 %v2380_v44, %v2379_v57  ;;  %v2410_v36 = vrot.slane %v2409_v43, 1 }
 0x18c   : > { %v2382_v54 = vadd.f32 %v2381_v28, %v4266_v4  ;;  %v2411_v7 = vadd.f32 %v2410_v36, %v2409_v43 }
 0x18e   : > { %v2412_v60 = vadd.f32 %v2411_v7, %v4273_v27 }
 0x190   : > { %v2414_v62 = vsel %vm2413_vm8, %v2382_v54, %v2412_v60 }
 0x191   : > { %2416 = vst.msk [vmem:[%s181_s11] sm:$0x3] %vm2415_vm9, %v2414_v62 }
 0x192 PF: > { %s14_s12 = sadd.s32 1, %s3432_s12  }
 0x193   : > { %p11_p4 = scmp.ge.s32.totalorder %s14_s12, 4  }
 0x195   :  { %13 = sbr.rel (!%p11_p4) target bundleno = 1 (0x1), region = 76 }

// kernel: generator_forward.10
= control target key start
LH: loop header
LB: loop body
LE: loop exit
PB: predicated region body
PF: predicated region fallthrough
CT: control target
= control target key end

     0   :  { %s824_s15 = smov 0   ;;  %s1114_s0 = inlined_call_operand.vmem [shape: bf16[2,4,64,64], index: 0, kind: input, shape index: {}]   ;;  %s1115_s1 = inlined_call_operand.vmem [shape: f32[2,2,64], index: 1, kind: input, shape index: {}]   ;;  %s1116_s2 = inlined_call_operand.vmem [shape: f32[1,64], index: 2, kind: input, shape index: {}]   ;;  %s1117_s3 = inlined_call_operand.vmem [shape: f32[1,64], index: 3, kind: input, shape index: {}]   ;;  %s1118_s4 = inlined_call_operand.vmem [shape: bf16[2,4,64,64], index: 4, kind: output, shape index: {}]  }
   0x1 LB: > { %s623_s16 = sadd.s32 4294967295, %s796_s15   ;;  %p627_p0 = scmp.ge.s32.totalorder %s796_s15, 1  ;;  %s796_s15 = sphi %s824_s15, %s14_s15  }
   0x2   : > { %p162_p1 = scmp.lt.s32.totalorder %s796_s15, 3 }
   0x4   : > { %p163_p2 = pnand %p627_p0, %p162_p1 }
   0x5   : > { %v198_v0 = vld [vmem:[%s1115_s1] sm:$0x3] (!%p163_p2)  ;;  %v199_v1 = vld [vmem:[%s1115_s1 + $0x2] sm:$0x3] (!%p163_p2)  ;;  %vm200_vm0 = vcmask (!%p163_p2), 517120   ;;  %p188_p3 = scmp.lt.s32.totalorder (!%p163_p2), %s623_s16, 1  ;;  %v218_v13 = vlaneseq (!%p163_p2) }
   0x6   : > { %166 = sbr.rel (%p163_p2) target bundleno = 81 (0x51), region = 36  ;;  %v201_v2 = vsel (!%p163_p2), %vm200_vm0, %v198_v0, 0.0  ;;  %v202_v3 = vsel (!%p163_p2), %vm200_vm0, %v199_v1, 0.0  ;;  %v798_v11 = vmov (!%p163_p2), 1966171168   ;;  %vm535_vm1 = vcmask (!%p163_p2), 519168  }
   0x7   : > { %v203_v4 = vadd.f32 (!%p163_p2), %v202_v3, %v201_v2  ;;  %v216_v12 = vunpack.c.l.s4 (!%p163_p2), %v798_v11  ;;  %v846_v15 = vshrl.u32 (!%p163_p2), %v218_v13, 7  ;;  %v211_v39 = vld [vmem:[%s1116_s2] sm:$0x1] (!%p163_p2) }
   0x8   : > { %v232_v62 = vld [vmem:[%s1117_s3] sm:$0x1] (!%p163_p2) }
   0x9   : > { %v838_v5 = vmul.f32 (!%p163_p2), 0.001953125, %v203_v4  ;;  %v217_v14 = vunpack.c.0.s8 (!%p163_p2), %v216_v12  ;;  %v302_v24 = vsub.s32 (!%p163_p2), 0, %v846_v15 }
   0xb   : > { %v205_v6 = vmul.f32 (!%p163_p2), %v838_v5, %v838_v5  ;;  %v220_v16 = vsub.s32 (!%p163_p2), %v217_v14, %v846_v15 }
   0xd   : > { %v207_v7 = vrot.slane %v205_v6, 7  ;;  %s1120_s16 = smov (!%p188_p3, %s623_s16), 1 }
   0xe   : > { %s666_s21 = sshll.u32 %s1120_s16, 7 }
   0xf   : > { %v209_v8 = vsub.f32 %v838_v5, %v207_v7  ;;  %s853_s24 = scalar_lea.vmem %s1114_s0, %s666_s21  ;;  %s967_s5 = scalar_lea.vmem %s1118_s4, %s666_s21 }
  0x10   : > { %v701_v17 = vld [vmem:[%s853_s24] sm:$0xff]   ;;  %v858_v18 = vld [vmem:[%s853_s24 + $0x8] sm:$0xff]   ;;  %v861_v19 = vld [vmem:[%s853_s24 + $0x10] sm:$0xff]  }
  0x11   : > { %v210_v9 = vmax.f32 %v209_v8, 0.0  ;;  %v864_v21 = vld [vmem:[%s853_s24 + $0x18] sm:$0xff]   ;;  %v702_v23 = vunpack.c.l.bf16 %v701_v17  ;;  %v868_v25 = vld [vmem:[%s853_s24 + $0x20] sm:$0xff]   ;;  %v871_v26 = vld [vmem:[%s853_s24 + $0x28] sm:$0xff]   ;;  %v703_v27 = vunpack.c.h.bf16 %v701_v17  ;;  %v706_v28 = vunpack.c.l.bf16 %v858_v18 }
  0x12   : > { %v707_v29 = vunpack.c.h.bf16 %v858_v18  ;;  %v710_v30 = vunpack.c.l.bf16 %v861_v19  ;;  %v769_v31 = vld [vmem:[%s853_s24 + $0x30] sm:$0xff]   ;;  %v878_v32 = vld [vmem:[%s853_s24 + $0x38] sm:$0xff]   ;;  %v711_v34 = vunpack.c.h.bf16 %v861_v19  ;;  %v714_v35 = vunpack.c.l.bf16 %v864_v21  ;;  %v884_v37 = vld [vmem:[%s853_s24 + $0x40] sm:$0xff]  }
  0x13   : > { %v212_v10 = vadd.f32 1e-05, %v210_v9  ;;  %v715_v36 = vunpack.c.h.bf16 %v864_v21  ;;  %v887_v38 = vld [vmem:[%s853_s24 + $0x48] sm:$0xff]   ;;  %v718_v40 = vunpack.c.l.bf16 %v868_v25  ;;  %v719_v41 = vunpack.c.h.bf16 %v868_v25  ;;  %v897_v44 = vld [vmem:[%s853_s24 + $0x50] sm:$0xff]   ;;  %v901_v49 = vld [vmem:[%s853_s24 + $0x58] sm:$0xff]  }
  0x14   : > { %v722_v42 = vunpack.c.l.bf16 %v871_v26  ;;  %v723_v43 = vunpack.c.h.bf16 %v871_v26  ;;  %v726_v46 = vunpack.c.l.bf16 %v769_v31  ;;  %v727_v47 = vunpack.c.h.bf16 %v769_v31  ;;  %v904_v50 = vld [vmem:[%s853_s24 + $0x60] sm:$0xff]   ;;  %v911_v55 = vld [vmem:[%s853_s24 + $0x68] sm:$0xff]   ;;  %v917_v60 = vld [vmem:[%s853_s24 + $0x70] sm:$0xff]  }
  0x15   : > { %788 = vrsqrt.f32 %v212_v10  ;;  %v730_v48 = vunpack.c.l.bf16 %v878_v32  ;;  %v731_v51 = vunpack.c.h.bf16 %v878_v32  ;;  %v734_v52 = vunpack.c.l.bf16 %v884_v37  ;;  %v920_v61 = vld [vmem:[%s853_s24 + $0x78] sm:$0xff]  }
  0x16   : > { %v735_v53 = vunpack.c.h.bf16 %v884_v37  ;;  %v738_v54 = vunpack.c.l.bf16 %v887_v38  ;;  %v739_v57 = vunpack.c.h.bf16 %v887_v38  ;;  %v742_v58 = vunpack.c.l.bf16 %v897_v44 }
  0x17   : > { %v743_v59 = vunpack.c.h.bf16 %v897_v44  ;;  %v746_v63 = vunpack.c.l.bf16 %v901_v49  ;;  %v747_v0 = vunpack.c.h.bf16 %v901_v49  ;;  %v750_v1 = vunpack.c.l.bf16 %v904_v50 }
  0x18   : > { %v751_v2 = vunpack.c.h.bf16 %v904_v50  ;;  %v754_v6 = vunpack.c.l.bf16 %v911_v55  ;;  %v755_v7 = vunpack.c.h.bf16 %v911_v55  ;;  %v758_v8 = vunpack.c.l.bf16 %v917_v60 }
  0x19   : > { %v759_v9 = vunpack.c.h.bf16 %v917_v60  ;;  %v762_v10 = vunpack.c.l.bf16 %v920_v61  ;;  %v763_v11 = vunpack.c.h.bf16 %v920_v61 }
  0x1f   : > { %v789_v20 = vpop.eup %788 }
  0x20   : > { %v221_v22 = vrot.slane %v789_v20, %v220_v16 }
  0x22   : > { %v222_v33 = vcombine.high %v221_v22, %v221_v22 }
  0x24   : > { %v229_v45 = vrot.slane %v222_v33, %v220_v16 }
  0x26   : > { %v231_v56 = vmul.f32 %v229_v45, %v211_v39 }
  0x28   : > { %v233_v3 = vmul.f32 %v231_v56, %v838_v5  ;;  %v930_v4 = vrot.slane %v231_v56, %v302_v24 }
  0x2a   : > { %v234_v12 = vsub.f32 %v232_v62, %v233_v3  ;;  %v305_v13 = vmul.f32 %v702_v23, %v930_v4  ;;  %v306_v5 = vmul.f32 %v703_v27, %v930_v4  ;;  %v307_v14 = vmul.f32 %v706_v28, %v930_v4 }
  0x2b   : > { %v308_v15 = vmul.f32 %v707_v29, %v930_v4  ;;  %v309_v16 = vmul.f32 %v710_v30, %v930_v4  ;;  %v310_v17 = vmul.f32 %v711_v34, %v930_v4  ;;  %v311_v18 = vmul.f32 %v714_v35, %v930_v4 }
  0x2c   : > { %v945_v19 = vrot.slane %v234_v12, %v302_v24  ;;  %v312_v20 = vmul.f32 %v715_v36, %v930_v4  ;;  %v313_v21 = vmul.f32 %v718_v40, %v930_v4  ;;  %v314_v22 = vmul.f32 %v719_v41, %v930_v4 }
  0x2d   : > { %v315_v23 = vmul.f32 %v722_v42, %v930_v4  ;;  %v316_v25 = vmul.f32 %v723_v43, %v930_v4  ;;  %v317_v26 = vmul.f32 %v726_v46, %v930_v4  ;;  %v318_v27 = vmul.f32 %v727_v47, %v930_v4 }
  0x2e   : > { %v343_v28 = vadd.f32 %v945_v19, %v305_v13  ;;  %v344_v24 = vadd.f32 %v945_v19, %v306_v5  ;;  %v345_v29 = vadd.f32 %v945_v19, %v307_v14  ;;  %v346_v30 = vadd.f32 %v945_v19, %v308_v15 }
  0x2f   : > { %v347_v31 = vadd.f32 %v945_v19, %v309_v16  ;;  %v348_v33 = vadd.f32 %v945_v19, %v310_v17  ;;  %v349_v34 = vadd.f32 %v945_v19, %v311_v18  ;;  %v350_v35 = vadd.f32 %v945_v19, %v312_v20 }
  0x30   : > { %v375_v36 = vmax.f32 %v343_v28, 0.0  ;;  %v376_v39 = vmax.f32 %v344_v24, 0.0  ;;  %v377_v40 = vmax.f32 %v345_v29, 0.0  ;;  %v378_v41 = vmax.f32 %v346_v30, 0.0 }
  0x31   : > { %v379_v42 = vmax.f32 %v347_v31, 0.0  ;;  %v380_v43 = vmax.f32 %v348_v33, 0.0  ;;  %v381_v45 = vmax.f32 %v349_v34, 0.0  ;;  %v382_v46 = vmax.f32 %v350_v35, 0.0 }
  0x32   : > { %v668_v47 = vpack.c.bf16 %v375_v36, %v375_v36  ;;  %v669_v56 = vpack.c.bf16 %v376_v39, %v376_v39  ;;  %v670_v62 = vpack.c.bf16 %v377_v40, %v377_v40  ;;  %v671_v3 = vpack.c.bf16 %v378_v41, %v378_v41 }
  0x33   : > { %v672_v12 = vpack.c.bf16 %v379_v42, %v379_v42  ;;  %v673_v13 = vpack.c.bf16 %v380_v43, %v380_v43  ;;  %v674_v5 = vpack.c.bf16 %v381_v45, %v381_v45  ;;  %v675_v14 = vpack.c.bf16 %v382_v46, %v382_v46 }
  0x34   : > { %536 = vst.msk [vmem:[%s967_s5] sm:$0xf] %vm535_vm1, %v668_v47  ;;  %537 = vst.msk [vmem:[%s967_s5 + $0x4] sm:$0xf] %vm535_vm1, %v669_v56  ;;  %v351_v15 = vadd.f32 %v945_v19, %v313_v21  ;;  %v352_v16 = vadd.f32 %v945_v19, %v314_v22  ;;  %v353_v17 = vadd.f32 %v945_v19, %v315_v23 }
  0x35   : > { %538 = vst.msk [vmem:[%s967_s5 + $0x8] sm:$0xf] %vm535_vm1, %v670_v62  ;;  %539 = vst.msk [vmem:[%s967_s5 + $0xc] sm:$0xf] %vm535_vm1, %v671_v3  ;;  %v354_v18 = vadd.f32 %v945_v19, %v316_v25  ;;  %v355_v20 = vadd.f32 %v945_v19, %v317_v26  ;;  %v356_v28 = vadd.f32 %v945_v19, %v318_v27 }
  0x36   : > { %540 = vst.msk [vmem:[%s967_s5 + $0x10] sm:$0xf] %vm535_vm1, %v672_v12  ;;  %541 = vst.msk [vmem:[%s967_s5 + $0x14] sm:$0xf] %vm535_vm1, %v673_v13  ;;  %v319_v21 = vmul.f32 %v730_v48, %v930_v4  ;;  %v320_v22 = vmul.f32 %v731_v51, %v930_v4  ;;  %v383_v23 = vmax.f32 %v351_v15, 0.0  ;;  %v384_v25 = vmax.f32 %v352_v16, 0.0 }
  0x37   : > { %542 = vst.msk [vmem:[%s967_s5 + $0x18] sm:$0xf] %vm535_vm1, %v674_v5  ;;  %543 = vst.msk [vmem:[%s967_s5 + $0x1c] sm:$0xf] %vm535_vm1, %v675_v14  ;;  %v385_v24 = vmax.f32 %v353_v17, 0.0  ;;  %v386_v29 = vmax.f32 %v354_v18, 0.0  ;;  %v321_v40 = vmul.f32 %v734_v52, %v930_v4  ;;  %v322_v41 = vmul.f32 %v735_v53, %v930_v4 }
  0x38   : > { %v387_v30 = vmax.f32 %v355_v20, 0.0  ;;  %v388_v26 = vmax.f32 %v356_v28, 0.0  ;;  %v357_v27 = vadd.f32 %v945_v19, %v319_v21  ;;  %v358_v31 = vadd.f32 %v945_v19, %v320_v22 }
  0x39   : > { %v676_v33 = vpack.c.bf16 %v383_v23, %v383_v23  ;;  %v677_v48 = vpack.c.bf16 %v384_v25, %v384_v25  ;;  %v678_v32 = vpack.c.bf16 %v385_v24, %v385_v24  ;;  %v679_v51 = vpack.c.bf16 %v386_v29, %v386_v29 }
  0x3a   : > { %v680_v34 = vpack.c.bf16 %v387_v30, %v387_v30  ;;  %v681_v35 = vpack.c.bf16 %v388_v26, %v388_v26  ;;  %v389_v36 = vmax.f32 %v357_v27, 0.0  ;;  %v390_v39 = vmax.f32 %v358_v31, 0.0 }
  0x3b   : > { %544 = vst.msk [vmem:[%s967_s5 + $0x20] sm:$0xf] %vm535_vm1, %v676_v33  ;;  %545 = vst.msk [vmem:[%s967_s5 + $0x24] sm:$0xf] %vm535_vm1, %v677_v48  ;;  %v323_v42 = vmul.f32 %v738_v54, %v930_v4  ;;  %v324_v43 = vmul.f32 %v739_v57, %v930_v4  ;;  %v325_v52 = vmul.f32 %v742_v58, %v930_v4 }
  0x3c   : > { %546 = vst.msk [vmem:[%s967_s5 + $0x28] sm:$0xf] %vm535_vm1, %v678_v32  ;;  %547 = vst.msk [vmem:[%s967_s5 + $0x2c] sm:$0xf] %vm535_vm1, %v679_v51  ;;  %v682_v45 = vpack.c.bf16 %v389_v36, %v389_v36  ;;  %v683_v46 = vpack.c.bf16 %v390_v39, %v390_v39  ;;  %v326_v37 = vmul.f32 %v743_v59, %v930_v4 }
  0x3d   : > { %548 = vst.msk [vmem:[%s967_s5 + $0x30] sm:$0xf] %vm535_vm1, %v680_v34  ;;  %549 = vst.msk [vmem:[%s967_s5 + $0x34] sm:$0xf] %vm535_vm1, %v681_v35  ;;  %v359_v53 = vadd.f32 %v945_v19, %v321_v40  ;;  %v360_v54 = vadd.f32 %v945_v19, %v322_v41  ;;  %v361_v38 = vadd.f32 %v945_v19, %v323_v42 }
  0x3e   : > { %v362_v57 = vadd.f32 %v945_v19, %v324_v43  ;;  %550 = vst.msk [vmem:[%s967_s5 + $0x38] sm:$0xf] %vm535_vm1, %v682_v45  ;;  %551 = vst.msk [vmem:[%s967_s5 + $0x3c] sm:$0xf] %vm535_vm1, %v683_v46  ;;  %v363_v47 = vadd.f32 %v945_v19, %v325_v52  ;;  %v364_v58 = vadd.f32 %v945_v19, %v326_v37 }
  0x3f   : > { %v327_v44 = vmul.f32 %v746_v63, %v930_v4  ;;  %v328_v59 = vmul.f32 %v747_v0, %v930_v4  ;;  %v391_v56 = vmax.f32 %v359_v53, 0.0  ;;  %v392_v62 = vmax.f32 %v360_v54, 0.0 }
  0x40   : > { %v393_v3 = vmax.f32 %v361_v38, 0.0  ;;  %v394_v12 = vmax.f32 %v362_v57, 0.0  ;;  %v395_v13 = vmax.f32 %v363_v47, 0.0  ;;  %v396_v5 = vmax.f32 %v364_v58, 0.0 }
  0x41   : > { %v365_v14 = vadd.f32 %v945_v19, %v327_v44  ;;  %v366_v15 = vadd.f32 %v945_v19, %v328_v59  ;;  %v684_v16 = vpack.c.bf16 %v391_v56, %v391_v56  ;;  %v685_v63 = vpack.c.bf16 %v392_v62, %v392_v62 }
  0x42   : > { %v686_v49 = vpack.c.bf16 %v393_v3, %v393_v3  ;;  %v687_v0 = vpack.c.bf16 %v394_v12, %v394_v12  ;;  %v688_v17 = vpack.c.bf16 %v395_v13, %v395_v13  ;;  %v689_v18 = vpack.c.bf16 %v396_v5, %v396_v5 }
  0x43   : > { %v397_v20 = vmax.f32 %v365_v14, 0.0  ;;  %v398_v28 = vmax.f32 %v366_v15, 0.0  ;;  %552 = vst.msk [vmem:[%s967_s5 + $0x40] sm:$0xf] %vm535_vm1, %v684_v16  ;;  %553 = vst.msk [vmem:[%s967_s5 + $0x44] sm:$0xf] %vm535_vm1, %v685_v63  ;;  %v329_v21 = vmul.f32 %v750_v1, %v930_v4  ;;  %v330_v22 = vmul.f32 %v751_v2, %v930_v4 }
  0x44   : > { %554 = vst.msk [vmem:[%s967_s5 + $0x48] sm:$0xf] %vm535_vm1, %v686_v49  ;;  %555 = vst.msk [vmem:[%s967_s5 + $0x4c] sm:$0xf] %vm535_vm1, %v687_v0  ;;  %v331_v23 = vmul.f32 %v754_v6, %v930_v4  ;;  %v332_v25 = vmul.f32 %v755_v7, %v930_v4  ;;  %v333_v1 = vmul.f32 %v758_v8, %v930_v4 }
  0x45   : > { %556 = vst.msk [vmem:[%s967_s5 + $0x50] sm:$0xf] %vm535_vm1, %v688_v17  ;;  %557 = vst.msk [vmem:[%s967_s5 + $0x54] sm:$0xf] %vm535_vm1, %v689_v18  ;;  %v690_v24 = vpack.c.bf16 %v397_v20, %v397_v20  ;;  %v691_v29 = vpack.c.bf16 %v398_v28, %v398_v28  ;;  %v334_v50 = vmul.f32 %v759_v9, %v930_v4 }
  0x46   : > { %v367_v2 = vadd.f32 %v945_v19, %v329_v21  ;;  %v368_v6 = vadd.f32 %v945_v19, %v330_v22  ;;  %v369_v55 = vadd.f32 %v945_v19, %v331_v23  ;;  %v370_v7 = vadd.f32 %v945_v19, %v332_v25 }
  0x47   : > { %558 = vst.msk [vmem:[%s967_s5 + $0x58] sm:$0xf] %vm535_vm1, %v690_v24  ;;  %559 = vst.msk [vmem:[%s967_s5 + $0x5c] sm:$0xf] %vm535_vm1, %v691_v29  ;;  %v371_v30 = vadd.f32 %v945_v19, %v333_v1  ;;  %v372_v8 = vadd.f32 %v945_v19, %v334_v50  ;;  %v335_v60 = vmul.f32 %v762_v10, %v930_v4 }
  0x48   : > { %v336_v9 = vmul.f32 %v763_v11, %v930_v4  ;;  %v399_v26 = vmax.f32 %v367_v2, 0.0  ;;  %v400_v27 = vmax.f32 %v368_v6, 0.0  ;;  %v401_v31 = vmax.f32 %v369_v55, 0.0 }
  0x49   : > { %v402_v33 = vmax.f32 %v370_v7, 0.0  ;;  %v403_v48 = vmax.f32 %v371_v30, 0.0  ;;  %v404_v32 = vmax.f32 %v372_v8, 0.0  ;;  %v373_v51 = vadd.f32 %v945_v19, %v335_v60 }
  0x4a   : > { %v374_v10 = vadd.f32 %v945_v19, %v336_v9  ;;  %v692_v34 = vpack.c.bf16 %v399_v26, %v399_v26  ;;  %v693_v61 = vpack.c.bf16 %v400_v27, %v400_v27  ;;  %v694_v4 = vpack.c.bf16 %v401_v31, %v401_v31 }
  0x4b   : > { %v695_v11 = vpack.c.bf16 %v402_v33, %v402_v33  ;;  %v696_v35 = vpack.c.bf16 %v403_v48, %v403_v48  ;;  %v697_v36 = vpack.c.bf16 %v404_v32, %v404_v32  ;;  %v405_v39 = vmax.f32 %v373_v51, 0.0 }
  0x4c   : > { %v406_v40 = vmax.f32 %v374_v10, 0.0  ;;  %560 = vst.msk [vmem:[%s967_s5 + $0x60] sm:$0xf] %vm535_vm1, %v692_v34  ;;  %561 = vst.msk [vmem:[%s967_s5 + $0x64] sm:$0xf] %vm535_vm1, %v693_v61 }
  0x4d   : > { %562 = vst.msk [vmem:[%s967_s5 + $0x68] sm:$0xf] %vm535_vm1, %v694_v4  ;;  %563 = vst.msk [vmem:[%s967_s5 + $0x6c] sm:$0xf] %vm535_vm1, %v695_v11  ;;  %v698_v19 = vpack.c.bf16 %v405_v39, %v405_v39 }
  0x4e   : > { %564 = vst.msk [vmem:[%s967_s5 + $0x70] sm:$0xf] %vm535_vm1, %v696_v35  ;;  %565 = vst.msk [vmem:[%s967_s5 + $0x74] sm:$0xf] %vm535_vm1, %v697_v36  ;;  %v699_v41 = vpack.c.bf16 %v406_v40, %v406_v40 }
  0x4f   : > { %566 = vst.msk [vmem:[%s967_s5 + $0x78] sm:$0xf] %vm535_vm1, %v698_v19 }
  0x50   : > { %567 = vst.msk [vmem:[%s967_s5 + $0x7c] sm:$0xf] %vm535_vm1, %v699_v41 }
  0x51 PF: > { %s14_s15 = sadd.s32 1, %s796_s15  }
  0x52   : > { %p11_p4 = scmp.ge.s32.totalorder %s14_s15, 4  }
  0x54   :  { %13 = sbr.rel (!%p11_p4) target bundleno = 1 (0x1), region = 66 }

// kernel: generator_forward.11
= control target key start
LH: loop header
LB: loop body
LE: loop exit
PB: predicated region body
PF: predicated region fallthrough
CT: control target
= control target key end

     0   :  { %s3840_s9 = smov 0   ;;  %s5071_s0 = inlined_call_operand.vmem [shape: bf16[2,18,18,64], index: 0, kind: input, shape index: {}]   ;;  %s5072_s1 = inlined_call_operand.vmem [shape: bf16[4,256,8], index: 1, kind: input, shape index: {}]   ;;  %s5073_s2 = inlined_call_operand.vmem [shape: f32[2,4,256,8], index: 2, kind: output, shape index: {}]  }
   0x1 LB: > { %s2670_s10 = sadd.s32 4294967295, %s3822_s9   ;;  %p2674_p0 = scmp.ge.s32.totalorder %s3822_s9, 1  ;;  %s3822_s9 = sphi %s3840_s9, %s12_s9  }
   0x2   : > { %p112_p1 = scmp.lt.s32.totalorder %s3822_s9, 3 }
   0x4   : > { %p113_p2 = pnand %p2674_p0, %p112_p1 }
   0x5   : > { %p134_p3 = scmp.lt.s32.totalorder (!%p113_p2), %s2670_s10, 1  ;;  %vm199_vm0 = vsmask.f32 (!%p113_p2), 3328  ;;  %vm200_vm1 = vsmask.f32 (!%p113_p2), 7440  ;;  %v3467_v0 = vld [vmem:[%s5072_s1 + $0x40] sm:$0xff] (!%p113_p2)  }
   0x6   : > { %116 = sbr.rel (%p113_p2) target bundleno = 631 (0x277), region = 28  ;;  %v3468_v1 = vld [vmem:[%s5072_s1] sm:$0xff] (!%p113_p2)   ;;  %3009 = vmatprep.subr.bf16.mxu0 (!%p113_p2), %v3467_v0  ;;  %vm1219_vm2 = vcmask (!%p113_p2), 1042432   ;;  %v3470_v3 = vld [vmem:[%s5072_s1 + $0x48] sm:$0xff] (!%p113_p2)   ;;  %vm1220_vm3 = vcmask (!%p113_p2), 1046532   ;;  %vm3895_vm5 = vmor (!%p113_p2), %vm199_vm0, %vm200_vm1  ;;  %s3824_s29 = smov (!%p113_p2), 64  }
   0x7   : > { %v3469_v2 = vld [vmem:[%s5072_s1 + $0xc0] sm:$0xff] (!%p113_p2)   ;;  %3010 = vmatpush3.bf16.msra.mxu0 (!%p113_p2), %v3468_v1  ;;  %vm3889_vm4 = vmor (!%p113_p2), %vm1219_vm2, %vm1220_vm3  ;;  %v3472_v49 = vld [vmem:[%s5072_s1 + $0x8] sm:$0xff] (!%p113_p2)   ;;  %vm780_vm6 = vcmask (!%p113_p2), 523264   ;;  %vm1170_vm7 = vcmask (!%p113_p2), 64512  }
   0x8   : > { %3121 = vmatprep.subr.bf16.mxu1 (!%p113_p2), %v3469_v2  ;;  %v3471_v4 = vld [vmem:[%s5072_s1 + $0x80] sm:$0xff] (!%p113_p2)   ;;  %3011 = vmatprep.subr.bf16.mxu0 (!%p113_p2), %v3470_v3  ;;  %v3473_v60 = vld [vmem:[%s5072_s1 + $0xc8] sm:$0xff] (!%p113_p2)  }
   0x9   : > { %3122 = vmatpush3.bf16.msra.mxu1 (!%p113_p2), %v3471_v4 }
   0xa   : > { %3123 = vmatprep.subr.bf16.mxu1 (!%p113_p2), %v3473_v60 }
   0xb   : > { %3012 = vmatpush3.bf16.msra.mxu0 (!%p113_p2), %v3472_v49 }
   0xd   : > { %s5086_s10 = smov (!%p134_p3, %s2670_s10), 1 }
   0xe   : > { %s3457_s15 = smul.u32 216, %s5086_s10  ;;  %s3008_s19 = sshll.u32 %s5086_s10, 10 }
   0xf   : > { %s4793_s23 = scalar_lea.vmem %s5073_s2, %s3008_s19 }
  0x10   : > { %s3866_s22 = scalar_lea.vmem %s5071_s0, %s3457_s15 }
  0x11   : > { %v3872_v5 = vld [vmem:[%s3866_s22 + $0xc] sm:$0xf]  ;;  %v3875_v6 = vld [vmem:[%s3866_s22 + $0x10] sm:$0xf]  ;;  %v150_v7 = vld [vmem:[%s3866_s22 + $0x14] sm:$0x1] }
  0x12   : > { %v227_v8 = vshrl.u32 %v3872_v5, 16  ;;  %v230_v9 = vshll.u32 %v3872_v5, 16  ;;  %v236_v10 = vshll.u32 %v3875_v6, 16  ;;  %v240_v11 = vshrl.u32 %v3875_v6, 16  ;;  %v145_v12 = vld [vmem:[%s3866_s22] sm:$0xf] }
  0x13   : > { %v246_v13 = vshll.u32 %v150_v7, 16  ;;  %v146_v14 = vld [vmem:[%s3866_s22 + $0x4] sm:$0xf]  ;;  %v147_v15 = vld [vmem:[%s3866_s22 + $0x8] sm:$0x1]  ;;  %v203_v16 = vshrl.u32 %v145_v12, 16  ;;  %v2679_v17 = vcombine.low %v3872_v5, %v3875_v6 }
  0x14   : > { %v229_v18 = vrot.slane %v227_v8, 4  ;;  %v232_v19 = vrot.slane %v230_v9, 5  ;;  %v238_v20 = vrot.slane %v236_v10, 5  ;;  %v242_v21 = vrot.slane %v240_v11, 4  ;;  %v151_v44 = vld [vmem:[%s3866_s22 + $0x18] sm:$0xf] }
  0x15   : > { %v248_v22 = vrot.slane %v246_v13, 5  ;;  %v205_v23 = vrot.slane %v203_v16, 4  ;;  %v206_v24 = vshll.u32 %v145_v12, 16  ;;  %v212_v25 = vshll.u32 %v146_v14, 16  ;;  %v152_v54 = vld [vmem:[%s3866_s22 + $0x1c] sm:$0xf] }
  0x16   : > { %v233_v26 = vor.u32 %v232_v19, %v229_v18  ;;  %v243_v27 = vor.u32 %v242_v21, %v238_v20  ;;  %v216_v28 = vshrl.u32 %v146_v14, 16  ;;  %v222_v29 = vshll.u32 %v147_v15, 16  ;;  %v153_v58 = vld [vmem:[%s3866_s22 + $0x20] sm:$0x1]  ;;  %v155_v13 = vld [vmem:[%s3866_s22 + $0x28] sm:$0xf] }
  0x17   : > { %v208_v32 = vrot.slane %v206_v24, 5  ;;  %v214_v33 = vrot.slane %v212_v25, 5  ;;  %v2729_v34 = vrot.slane %v3872_v5, 9  ;;  %v1231_v35 = vrot.slane %v3875_v6, 5  ;;  %v3475_v19 = vld [vmem:[%s5072_s1 + $0x88] sm:$0xff]   ;;  %v3476_v24 = vld [vmem:[%s5072_s1 + $0x10] sm:$0xff]  }
  0x18   : > { %v234_v36 = vrot.slane %v233_v26, 4  ;;  %v244_v37 = vrot.slane %v243_v27, 4  ;;  %v218_v38 = vrot.slane %v216_v28, 4  ;;  %v224_v39 = vrot.slane %v222_v29, 5  ;;  %v156_v26 = vld [vmem:[%s3866_s22 + $0x2c] sm:$0x1]  ;;  %3124 = vmatpush3.bf16.msra.mxu1 %v3475_v19 }
  0x19   : > { %v209_v40 = vor.u32 %v208_v32, %v205_v23  ;;  %v1232_v41 = vsel %vm3889_vm4, %v2729_v34, %v1231_v35  ;;  %v1233_v42 = vrot.slane %v1231_v35, 4  ;;  %v1234_v43 = vrot.slane %v150_v7, 5  ;;  %v3474_v7 = vld [vmem:[%s5072_s1 + $0x50] sm:$0xff]   ;;  %v159_v60 = vld [vmem:[%s3866_s22 + $0x38] sm:$0x1]  ;;  %v3507_v5 = vld [vmem:[%s5072_s1 + $0x148] sm:$0xff]  }
  0x1a   : > { %v239_v45 = vsel %vm3895_vm5, %v234_v36, %v238_v20  ;;  %v249_v46 = vsel %vm3895_vm5, %v244_v37, %v248_v22  ;;  %v219_v47 = vor.u32 %v218_v38, %v214_v33  ;;  %v2728_v48 = vrot.slane %v145_v12, 9  ;;  %v154_v12 = vld [vmem:[%s3866_s22 + $0x24] sm:$0xf]  ;;  %3013 = vmatprep.subr.bf16.mxu0 %v3474_v7  ;;  %v3477_v32 = vld [vmem:[%s5072_s1 + $0xd0] sm:$0xff]   ;;  %v3478_v37 = vld [vmem:[%s5072_s1 + $0x58] sm:$0xff]  }
  0x1b   : > { %v3911_v50 = vcombine.low %v239_v45, %v249_v46  ;;  %v210_v51 = vrot.slane %v209_v40, 4  ;;  %v1235_v52 = vsel %vm3889_vm4, %v1233_v42, %v1234_v43  ;;  %v1224_v53 = vrot.slane %v146_v14, 5  ;;  %3014 = vmatpush3.bf16.msra.mxu0 %v3476_v24  ;;  %3125 = vmatprep.subr.bf16.mxu1 %v3477_v32  ;;  %v157_v46 = vld [vmem:[%s3866_s22 + $0x30] sm:$0xf]  ;;  %v3482_v24 = vld [vmem:[%s5072_s1 + $0x60] sm:$0xff]  }
  0x1c   : > { %v220_v55 = vrot.slane %v219_v47, 4  ;;  %v2746_v56 = vcombine.low %v1232_v41, %v1235_v52  ;;  %v1227_v57 = vrot.slane %v147_v15, 5  ;;  %v251_v59 = vshrl.u32 %v151_v44, 16  ;;  %3015 = vmatprep.subr.bf16.mxu0 %v3478_v37  ;;  %v158_v52 = vld [vmem:[%s3866_s22 + $0x34] sm:$0xf] }
  0x1d   : > { %740 = vrot.lane.b32.xlu0 %v3911_v50, %s3824_s29  ;;  %v215_v61 = vsel %vm3895_vm5, %v210_v51, %v214_v33  ;;  %v1225_v62 = vsel %vm3889_vm4, %v2728_v48, %v1224_v53  ;;  %v1226_v63 = vrot.slane %v1224_v53, 4  ;;  %v254_v0 = vshll.u32 %v151_v44, 16  ;;  %v3479_v53 = vld [vmem:[%s5072_s1 + $0x90] sm:$0xff]   ;;  %v3808_v30 = vld [vmem:[%s3866_s22 + $0x24] sm:$0xf] }
  0x1e   : > { %v225_v1 = vsel %vm3895_vm5, %v220_v55, %v224_v39  ;;  %v253_v2 = vrot.slane %v251_v59, 4  ;;  %v260_v3 = vshll.u32 %v152_v54, 16  ;;  %v264_v4 = vshrl.u32 %v152_v54, 16  ;;  %3126 = vmatpush3.bf16.msra.mxu1 %v3479_v53  ;;  %v3486_v53 = vld [vmem:[%s5072_s1 + $0x68] sm:$0xff]  }
  0x1f   : > { %v3931_v8 = vcombine.low %v215_v61, %v225_v1  ;;  %v1228_v9 = vsel %vm3889_vm4, %v1226_v63, %v1227_v57  ;;  %v256_v10 = vrot.slane %v254_v0, 5  ;;  %v270_v11 = vshll.u32 %v153_v58, 16 }
  0x20   : > { %v2745_v14 = vcombine.low %v1225_v62, %v1228_v9  ;;  %v262_v15 = vrot.slane %v260_v3, 5  ;;  %v266_v16 = vrot.slane %v264_v4, 4  ;;  %v2730_v18 = vrot.slane %v151_v44, 9  ;;  %v3480_v3 = vld [vmem:[%s5072_s1 + $0x18] sm:$0xff]  }
  0x21   : > { %738 = vrot.lane.b32.xlu1 %v3931_v8, %s3824_s29  ;;  %1392 = vrot.lane.b32.xlu0 %v2746_v56, %s3824_s29  ;;  %v257_v20 = vor.u32 %v256_v10, %v253_v2  ;;  %v272_v21 = vrot.slane %v270_v11, 5  ;;  %v1238_v22 = vrot.slane %v152_v54, 5  ;;  %v1241_v23 = vrot.slane %v153_v58, 5  ;;  %v3981_v11 = vld [vmem:[%s3866_s22 + $0x3c] sm:$0xf] }
  0x22   : > { %v267_v25 = vor.u32 %v266_v16, %v262_v15  ;;  %v275_v27 = vshrl.u32 %v154_v12, 16  ;;  %v278_v28 = vshll.u32 %v154_v12, 16  ;;  %v284_v29 = vshll.u32 %v155_v13, 16  ;;  %3016 = vmatpush3.bf16.msra.mxu0 %v3480_v3 }
  0x23   : > { %v258_v33 = vrot.slane %v257_v20, 4  ;;  %v1239_v34 = vsel %vm3889_vm4, %v2730_v18, %v1238_v22  ;;  %v1240_v35 = vrot.slane %v1238_v22, 4  ;;  %v288_v36 = vshrl.u32 %v155_v13, 16  ;;  %v161_v18 = vld [vmem:[%s3866_s22 + $0x40] sm:$0xf]  ;;  %3017 = vmatprep.subr.bf16.mxu0 %v3482_v24 }
  0x24   : > { %v268_v38 = vrot.slane %v267_v25, 4  ;;  %v277_v39 = vrot.slane %v275_v27, 4  ;;  %v280_v40 = vrot.slane %v278_v28, 5  ;;  %v286_v41 = vrot.slane %v284_v29, 5 }
  0x25   : > { %1390 = vrot.lane.b32.xlu1 %v2745_v14, %s3824_s29  ;;  %v263_v42 = vsel %vm3895_vm5, %v258_v33, %v262_v15  ;;  %v1242_v43 = vsel %vm3889_vm4, %v1240_v35, %v1241_v23  ;;  %v290_v44 = vrot.slane %v288_v36, 4  ;;  %v294_v45 = vshll.u32 %v156_v26, 16  ;;  %v3994_v23 = vld [vmem:[%s3866_s22 + $0x44] sm:$0x1]  ;;  %v3483_v35 = vld [vmem:[%s5072_s1 + $0x98] sm:$0xff]  }
  0x26   : > { %v273_v47 = vsel %vm3895_vm5, %v268_v38, %v272_v21  ;;  %v2747_v48 = vcombine.low %v1239_v34, %v1242_v43  ;;  %v281_v49 = vor.u32 %v280_v40, %v277_v39  ;;  %v2731_v51 = vrot.slane %v154_v12, 9  ;;  %v3481_v12 = vld [vmem:[%s5072_s1 + $0xd8] sm:$0xff]   ;;  %v4010_v40 = vld [vmem:[%s3866_s22 + $0x48] sm:$0xf] }
  0x27   : > { %v3967_v54 = vcombine.low %v263_v42, %v273_v47  ;;  %v291_v55 = vor.u32 %v290_v44, %v286_v41  ;;  %v296_v56 = vrot.slane %v294_v45, 5  ;;  %v1245_v57 = vrot.slane %v155_v13, 5  ;;  %3127 = vmatprep.subr.bf16.mxu1 %v3481_v12  ;;  %v3485_v47 = vld [vmem:[%s5072_s1 + $0xe0] sm:$0xff]   ;;  %v4048_v12 = vld [vmem:[%s3866_s22 + $0x54] sm:$0xf] }
  0x28   : > { %v282_v58 = vrot.slane %v281_v49, 4  ;;  %v1248_v59 = vrot.slane %v156_v26, 5  ;;  %v299_v61 = vshrl.u32 %v157_v46, 16  ;;  %v302_v62 = vshll.u32 %v157_v46, 16  ;;  %3128 = vmatpush3.bf16.msra.mxu1 %v3483_v35 }
  0x29   : > { %742 = vrot.lane.b32.xlu0 %v3967_v54, %s3824_s29  ;;  %1394 = vrot.lane.b32.xlu1 %v2747_v48, %s3824_s29  ;;  %v292_v63 = vrot.slane %v291_v55, 4  ;;  %v1246_v0 = vsel %vm3889_vm4, %v2731_v51, %v1245_v57  ;;  %v1247_v1 = vrot.slane %v1245_v57, 4  ;;  %v308_v2 = vshll.u32 %v158_v52, 16 }
  0x2a   : > { %v287_v4 = vsel %vm3895_vm5, %v282_v58, %v286_v41  ;;  %v301_v7 = vrot.slane %v299_v61, 4  ;;  %v304_v9 = vrot.slane %v302_v62, 5  ;;  %v312_v10 = vshrl.u32 %v158_v52, 16  ;;  %v3484_v41 = vld [vmem:[%s5072_s1 + $0x20] sm:$0xff]   ;;  %3129 = vmatprep.subr.bf16.mxu1 %v3485_v47 }
  0x2b   : > { %v297_v13 = vsel %vm3895_vm5, %v292_v63, %v296_v56  ;;  %v1249_v14 = vsel %vm3889_vm4, %v1247_v1, %v1248_v59  ;;  %v310_v15 = vrot.slane %v308_v2, 5  ;;  %v318_v16 = vshll.u32 %v159_v60, 16  ;;  %3018 = vmatpush3.bf16.msra.mxu0 %v3484_v41  ;;  %v3487_v59 = vld [vmem:[%s5072_s1 + $0xa0] sm:$0xff]   ;;  %v165_v2 = vld [vmem:[%s3866_s22 + $0x50] sm:$0x1] }
  0x2c   : > { %v3991_v19 = vcombine.low %v287_v4, %v297_v13  ;;  %v2748_v20 = vcombine.low %v1246_v0, %v1249_v14  ;;  %v305_v21 = vor.u32 %v304_v9, %v301_v7  ;;  %v314_v22 = vrot.slane %v312_v10, 4  ;;  %3019 = vmatprep.subr.bf16.mxu0 %v3486_v53  ;;  %3130 = vmatpush3.bf16.msra.mxu1 %v3487_v59  ;;  %v3488_v13 = vld [vmem:[%s5072_s1 + $0x28] sm:$0xff]   ;;  %v4089_v47 = vld [vmem:[%s3866_s22 + $0x60] sm:$0xf] }
  0x2d   : > { %v320_v25 = vrot.slane %v318_v16, 5  ;;  %v2732_v26 = vrot.slane %v157_v46, 9  ;;  %v1252_v27 = vrot.slane %v158_v52, 5  ;;  %v1255_v28 = vrot.slane %v159_v60, 5  ;;  %v4018_v46 = vld [vmem:[%s3866_s22 + $0x4c] sm:$0xf] }
  0x2e   : > { %744 = vrot.lane.b32.xlu0 %v3991_v19, %s3824_s29  ;;  %1396 = vrot.lane.b32.xlu1 %v2748_v20, %s3824_s29  ;;  %v306_v29 = vrot.slane %v305_v21, 4  ;;  %v315_v32 = vor.u32 %v314_v22, %v310_v15  ;;  %v323_v33 = vshrl.u32 %v3981_v11, 16  ;;  %v326_v34 = vshll.u32 %v3981_v11, 16  ;;  %v4057_v20 = vld [vmem:[%s3866_s22 + $0x58] sm:$0xf]  ;;  %v3489_v21 = vld [vmem:[%s5072_s1 + $0xe8] sm:$0xff]  }
  0x2f   : > { %v1253_v36 = vsel %vm3889_vm4, %v2732_v26, %v1252_v27  ;;  %v1254_v37 = vrot.slane %v1252_v27, 4  ;;  %v332_v38 = vshll.u32 %v161_v18, 16  ;;  %v336_v39 = vshrl.u32 %v161_v18, 16  ;;  %3020 = vmatpush3.bf16.msra.mxu0 %v3488_v13  ;;  %3131 = vmatprep.subr.bf16.mxu1 %v3489_v21 }
  0x30   : > { %v311_v42 = vsel %vm3895_vm5, %v306_v29, %v310_v15  ;;  %v316_v43 = vrot.slane %v315_v32, 4  ;;  %v325_v44 = vrot.slane %v323_v33, 4  ;;  %v328_v45 = vrot.slane %v326_v34, 5  ;;  %v4069_v32 = vld [vmem:[%s3866_s22 + $0x5c] sm:$0x1]  ;;  %v3490_v33 = vld [vmem:[%s5072_s1 + $0x70] sm:$0xff]  }
  0x31   : > { %v1256_v48 = vsel %vm3889_vm4, %v1254_v37, %v1255_v28  ;;  %v334_v49 = vrot.slane %v332_v38, 5  ;;  %v338_v51 = vrot.slane %v336_v39, 4  ;;  %v342_v52 = vshll.u32 %v3994_v23, 16  ;;  %3021 = vmatprep.subr.bf16.mxu0 %v3490_v33 }
  0x32   : > { %v321_v55 = vsel %vm3895_vm5, %v316_v43, %v320_v25  ;;  %v2749_v56 = vcombine.low %v1253_v36, %v1256_v48  ;;  %v329_v57 = vor.u32 %v328_v45, %v325_v44  ;;  %v2733_v58 = vrot.slane %v3981_v11, 9  ;;  %v3491_v43 = vld [vmem:[%s5072_s1 + $0xa8] sm:$0xff]   ;;  %v3492_v48 = vld [vmem:[%s5072_s1 + $0x30] sm:$0xff]  }
  0x33   : > { %v4035_v60 = vcombine.low %v311_v42, %v321_v55  ;;  %v339_v61 = vor.u32 %v338_v51, %v334_v49  ;;  %v344_v62 = vrot.slane %v342_v52, 5  ;;  %v1259_v63 = vrot.slane %v161_v18, 5  ;;  %v4097_v55 = vld [vmem:[%s3866_s22 + $0x64] sm:$0xf]  ;;  %3132 = vmatpush3.bf16.msra.mxu1 %v3491_v43  ;;  %3022 = vmatpush3.bf16.msra.mxu0 %v3492_v48 }
  0x34   : > { %1398 = vrot.lane.b32.xlu1 %v2749_v56, %s3824_s29  ;;  %v330_v0 = vrot.slane %v329_v57, 4  ;;  %v1262_v1 = vrot.slane %v3994_v23, 5  ;;  %v347_v3 = vshrl.u32 %v4010_v40, 16  ;;  %v350_v4 = vshll.u32 %v4010_v40, 16  ;;  %v3493_v56 = vld [vmem:[%s5072_s1 + $0xf0] sm:$0xff]  }
  0x35   : > { %746 = vrot.lane.b32.xlu0 %v4035_v60, %s3824_s29  ;;  %v340_v7 = vrot.slane %v339_v61, 4  ;;  %v1260_v9 = vsel %vm3889_vm4, %v2733_v58, %v1259_v63  ;;  %v1261_v10 = vrot.slane %v1259_v63, 4  ;;  %v356_v11 = vshll.u32 %v4018_v46, 16  ;;  %3133 = vmatprep.subr.bf16.mxu1 %v3493_v56 }
  0x36   : > { %v335_v14 = vsel %vm3895_vm5, %v330_v0, %v334_v49  ;;  %v349_v15 = vrot.slane %v347_v3, 4  ;;  %v352_v16 = vrot.slane %v350_v4, 5  ;;  %v360_v18 = vshrl.u32 %v4018_v46, 16  ;;  %v4112_v3 = vld [vmem:[%s3866_s22 + $0x68] sm:$0x1]  ;;  %v3495_v4 = vld [vmem:[%s5072_s1 + $0xb0] sm:$0xff]  }
  0x37   : > { %v345_v22 = vsel %vm3895_vm5, %v340_v7, %v344_v62  ;;  %v1263_v23 = vsel %vm3889_vm4, %v1261_v10, %v1262_v1  ;;  %v358_v24 = vrot.slane %v356_v11, 5  ;;  %v366_v25 = vshll.u32 %v165_v2, 16  ;;  %v3494_v62 = vld [vmem:[%s5072_s1 + $0x78] sm:$0xff]   ;;  %3134 = vmatpush3.bf16.msra.mxu1 %v3495_v4 }
  0x38   : > { %v4066_v26 = vcombine.low %v335_v14, %v345_v22  ;;  %v2750_v27 = vcombine.low %v1260_v9, %v1263_v23  ;;  %v353_v28 = vor.u32 %v352_v16, %v349_v15  ;;  %v362_v29 = vrot.slane %v360_v18, 4  ;;  %3023 = vmatprep.subr.bf16.mxu0 %v3494_v62 }
  0x39   : > { %v368_v34 = vrot.slane %v366_v25, 5  ;;  %v2734_v35 = vrot.slane %v4010_v40, 9  ;;  %v1266_v36 = vrot.slane %v4018_v46, 5  ;;  %v1269_v37 = vrot.slane %v165_v2, 5 }
  0x3a   : > { %748 = vrot.lane.b32.xlu0 %v4066_v26, %s3824_s29  ;;  %1400 = vrot.lane.b32.xlu1 %v2750_v27, %s3824_s29  ;;  %v354_v38 = vrot.slane %v353_v28, 4  ;;  %v363_v39 = vor.u32 %v362_v29, %v358_v24  ;;  %v371_v41 = vshrl.u32 %v4048_v12, 16  ;;  %v374_v42 = vshll.u32 %v4048_v12, 16 }
  0x3b   : > { %v1267_v40 = vsel %vm3889_vm4, %v2734_v35, %v1266_v36  ;;  %v1268_v44 = vrot.slane %v1266_v36, 4  ;;  %v380_v45 = vshll.u32 %v4057_v20, 16  ;;  %v384_v46 = vshrl.u32 %v4057_v20, 16 }
  0x3c   : > { %v359_v49 = vsel %vm3895_vm5, %v354_v38, %v358_v24  ;;  %v364_v51 = vrot.slane %v363_v39, 4  ;;  %v373_v52 = vrot.slane %v371_v41, 4  ;;  %v376_v53 = vrot.slane %v374_v42, 5  ;;  %v3496_v24 = vld [vmem:[%s5072_s1 + $0x38] sm:$0xff]   ;;  %v4147_v38 = vld [vmem:[%s3866_s22 + $0x70] sm:$0xf] }
  0x3d   : > { %v1270_v57 = vsel %vm3889_vm4, %v1268_v44, %v1269_v37  ;;  %v382_v58 = vrot.slane %v380_v45, 5  ;;  %v386_v59 = vrot.slane %v384_v46, 4  ;;  %v390_v61 = vshll.u32 %v4069_v32, 16  ;;  %v4144_v37 = vld [vmem:[%s3866_s22 + $0x6c] sm:$0xf]  ;;  %3024 = vmatpush3.bf16.msra.mxu0 %v3496_v24  ;;  %v3500_v44 = vld [vmem:[%s5072_s1 + $0xb8] sm:$0xff]  }
  0x3e   : > { %v369_v63 = vsel %vm3895_vm5, %v364_v51, %v368_v34  ;;  %v2751_v0 = vcombine.low %v1267_v40, %v1270_v57  ;;  %v377_v1 = vor.u32 %v376_v53, %v373_v52  ;;  %v2735_v2 = vrot.slane %v4048_v12, 9  ;;  %v174_v40 = vld [vmem:[%s3866_s22 + $0x74] sm:$0x1]  ;;  %v3501_v57 = vld [vmem:[%s5072_s1 + $0x140] sm:$0xff]  }
  0x3f   : > { %v4117_v7 = vcombine.low %v359_v49, %v369_v63  ;;  %v387_v9 = vor.u32 %v386_v59, %v382_v58  ;;  %v392_v10 = vrot.slane %v390_v61, 5  ;;  %v1273_v11 = vrot.slane %v4057_v20, 5  ;;  %v4171_v63 = vld [vmem:[%s3866_s22 + $0x78] sm:$0xf]  ;;  %3233 = vmatprep.subr.bf16.mxu0 %v3501_v57 }
  0x40   : > { %1402 = vrot.lane.b32.xlu1 %v2751_v0, %s3824_s29  ;;  %v378_v13 = vrot.slane %v377_v1, 4  ;;  %v1276_v14 = vrot.slane %v4069_v32, 5  ;;  %v395_v15 = vshrl.u32 %v4089_v47, 16  ;;  %v398_v16 = vshll.u32 %v4089_v47, 16  ;;  %v3498_v32 = vld [vmem:[%s5072_s1 + $0xf8] sm:$0xff]   ;;  %v3502_v0 = vld [vmem:[%s5072_s1 + $0x1c0] sm:$0xff]  }
  0x41   : > { %750 = vrot.lane.b32.xlu0 %v4117_v7, %s3824_s29  ;;  %v388_v18 = vrot.slane %v387_v9, 4  ;;  %v1274_v21 = vsel %vm3889_vm4, %v2735_v2, %v1273_v11  ;;  %v1275_v22 = vrot.slane %v1273_v11, 4  ;;  %v404_v23 = vshll.u32 %v4097_v55, 16  ;;  %3135 = vmatprep.subr.bf16.mxu1 %v3498_v32  ;;  %v4179_v9 = vld [vmem:[%s3866_s22 + $0x7c] sm:$0xf] }
  0x42   : > { %v383_v25 = vsel %vm3895_vm5, %v378_v13, %v382_v58  ;;  %v397_v27 = vrot.slane %v395_v15, 4  ;;  %v400_v28 = vrot.slane %v398_v16, 5  ;;  %v408_v29 = vshrl.u32 %v4097_v55, 16  ;;  %3136 = vmatpush3.bf16.msra.mxu1 %v3500_v44 }
  0x43   : > { %v393_v33 = vsel %vm3895_vm5, %v388_v18, %v392_v10  ;;  %v1277_v34 = vsel %vm3889_vm4, %v1275_v22, %v1276_v14  ;;  %v406_v35 = vrot.slane %v404_v23, 5  ;;  %v414_v36 = vshll.u32 %v4112_v3, 16  ;;  %3345 = vmatprep.subr.bf16.mxu1 %v3502_v0  ;;  %v177_v22 = vld [vmem:[%s3866_s22 + $0x80] sm:$0x1] }
  0x44   : > { %v4149_v39 = vcombine.low %v383_v25, %v393_v33  ;;  %v2752_v41 = vcombine.low %v1274_v21, %v1277_v34  ;;  %v401_v42 = vor.u32 %v400_v28, %v397_v27  ;;  %v410_v43 = vrot.slane %v408_v29, 4 }
  0x45   : > { %v416_v45 = vrot.slane %v414_v36, 5  ;;  %v2736_v46 = vrot.slane %v4089_v47, 9  ;;  %v1280_v48 = vrot.slane %v4097_v55, 5  ;;  %v1283_v49 = vrot.slane %v4112_v3, 5 }
  0x46   : > { %752 = vrot.lane.b32.xlu0 %v4149_v39, %s3824_s29  ;;  %1404 = vrot.lane.b32.xlu1 %v2752_v41, %s3824_s29  ;;  %v402_v51 = vrot.slane %v401_v42, 4  ;;  %v411_v52 = vor.u32 %v410_v43, %v406_v35  ;;  %v419_v53 = vshrl.u32 %v4144_v37, 16  ;;  %v422_v56 = vshll.u32 %v4144_v37, 16  ;;  %v4199_v42 = vld [vmem:[%s3866_s22 + $0x84] sm:$0xf] }
  0x47   : > { %v1281_v58 = vsel %vm3889_vm4, %v2736_v46, %v1280_v48  ;;  %v1282_v59 = vrot.slane %v1280_v48, 4  ;;  %v428_v61 = vshll.u32 %v4147_v38, 16  ;;  %v432_v62 = vshrl.u32 %v4147_v38, 16 }
  0x48   : > { %v407_v1 = vsel %vm3895_vm5, %v402_v51, %v406_v35  ;;  %v412_v2 = vrot.slane %v411_v52, 4  ;;  %v421_v3 = vrot.slane %v419_v53, 4  ;;  %v424_v4 = vrot.slane %v422_v56, 5 }
  0x49   : > { %v1284_v10 = vsel %vm3889_vm4, %v1282_v59, %v1283_v49  ;;  %v430_v11 = vrot.slane %v428_v61, 5  ;;  %v434_v13 = vrot.slane %v432_v62, 4  ;;  %v438_v14 = vshll.u32 %v174_v40, 16 }
  0x4a   : > { %v417_v15 = vsel %vm3895_vm5, %v412_v2, %v416_v45  ;;  %v2753_v16 = vcombine.low %v1281_v58, %v1284_v10  ;;  %v425_v18 = vor.u32 %v424_v4, %v421_v3  ;;  %v2737_v21 = vrot.slane %v4144_v37, 9  ;;  %v4211_v58 = vld [vmem:[%s3866_s22 + $0x88] sm:$0xf] }
  0x4b   : > { %v4187_v23 = vcombine.low %v407_v1, %v417_v15  ;;  %v435_v24 = vor.u32 %v434_v13, %v430_v11  ;;  %v440_v25 = vrot.slane %v438_v14, 5  ;;  %v1287_v27 = vrot.slane %v4147_v38, 5  ;;  %v180_v1 = vld [vmem:[%s3866_s22 + $0x8c] sm:$0x1] }
  0x4c   : > { %1406 = vrot.lane.b32.xlu1 %v2753_v16, %s3824_s29  ;;  %v426_v28 = vrot.slane %v425_v18, 4  ;;  %v1290_v29 = vrot.slane %v174_v40, 5  ;;  %v443_v32 = vshrl.u32 %v4171_v63, 16  ;;  %v446_v33 = vshll.u32 %v4171_v63, 16  ;;  %v4226_v16 = vld [vmem:[%s3866_s22 + $0x90] sm:$0xf] }
  0x4d   : > { %754 = vrot.lane.b32.xlu0 %v4187_v23, %s3824_s29  ;;  %v436_v34 = vrot.slane %v435_v24, 4  ;;  %v1288_v35 = vsel %vm3889_vm4, %v2737_v21, %v1287_v27  ;;  %v1289_v36 = vrot.slane %v1287_v27, 4  ;;  %v452_v41 = vshll.u32 %v4179_v9, 16 }
  0x4e   : > { %v431_v43 = vsel %vm3895_vm5, %v426_v28, %v430_v11  ;;  %v445_v40 = vrot.slane %v443_v32, 4  ;;  %v448_v44 = vrot.slane %v446_v33, 5  ;;  %v456_v45 = vshrl.u32 %v4179_v9, 16 }
  0x4f   : > { %v441_v46 = vsel %vm3895_vm5, %v436_v34, %v440_v25  ;;  %v1291_v48 = vsel %vm3889_vm4, %v1289_v36, %v1290_v29  ;;  %v454_v49 = vrot.slane %v452_v41, 5  ;;  %v462_v51 = vshll.u32 %v177_v22, 16  ;;  %v4231_v25 = vld [vmem:[%s3866_s22 + $0x94] sm:$0xf]  ;;  %v183_v41 = vld [vmem:[%s3866_s22 + $0x98] sm:$0x1] }
  0x50   : > { %v4208_v52 = vcombine.low %v431_v43, %v441_v46  ;;  %v2754_v53 = vcombine.low %v1288_v35, %v1291_v48  ;;  %v449_v56 = vor.u32 %v448_v44, %v445_v40  ;;  %v458_v57 = vrot.slane %v456_v45, 4 }
  0x51   : > { %v464_v59 = vrot.slane %v462_v51, 5  ;;  %v2738_v61 = vrot.slane %v4171_v63, 9  ;;  %v1294_v62 = vrot.slane %v4179_v9, 5  ;;  %v1297_v0 = vrot.slane %v177_v22, 5 }
  0x52   : > { %756 = vrot.lane.b32.xlu0 %v4208_v52, %s3824_s29  ;;  %1408 = vrot.lane.b32.xlu1 %v2754_v53, %s3824_s29  ;;  %v450_v2 = vrot.slane %v449_v56, 4  ;;  %v459_v3 = vor.u32 %v458_v57, %v454_v49  ;;  %v467_v4 = vshrl.u32 %v4199_v42, 16  ;;  %v470_v10 = vshll.u32 %v4199_v42, 16 }
  0x53   : > { %v1295_v11 = vsel %vm3889_vm4, %v2738_v61, %v1294_v62  ;;  %v1296_v13 = vrot.slane %v1294_v62, 4  ;;  %v476_v14 = vshll.u32 %v4211_v58, 16  ;;  %v480_v15 = vshrl.u32 %v4211_v58, 16  ;;  %v4251_v61 = vld [vmem:[%s3866_s22 + $0x9c] sm:$0xf] }
  0x54   : > { %v455_v18 = vsel %vm3895_vm5, %v450_v2, %v454_v49  ;;  %v460_v21 = vrot.slane %v459_v3, 4  ;;  %v469_v22 = vrot.slane %v467_v4, 4  ;;  %v472_v24 = vrot.slane %v470_v10, 5 }
  0x55   : > { %v1298_v27 = vsel %vm3889_vm4, %v1296_v13, %v1297_v0  ;;  %v478_v28 = vrot.slane %v476_v14, 5  ;;  %v482_v29 = vrot.slane %v480_v15, 4  ;;  %v486_v32 = vshll.u32 %v180_v1, 16 }
  0x56   : > { %v465_v33 = vsel %vm3895_vm5, %v460_v21, %v464_v59  ;;  %v2755_v34 = vcombine.low %v1295_v11, %v1298_v27  ;;  %v473_v35 = vor.u32 %v472_v24, %v469_v22  ;;  %v2739_v36 = vrot.slane %v4199_v42, 9  ;;  %v4263_v21 = vld [vmem:[%s3866_s22 + $0xa0] sm:$0xf] }
  0x57   : > { %v4239_v43 = vcombine.low %v455_v18, %v465_v33  ;;  %v483_v40 = vor.u32 %v482_v29, %v478_v28  ;;  %v488_v44 = vrot.slane %v486_v32, 5  ;;  %v1301_v45 = vrot.slane %v4211_v58, 5  ;;  %v186_v33 = vld [vmem:[%s3866_s22 + $0xa4] sm:$0x1] }
  0x58   : > { %1410 = vrot.lane.b32.xlu1 %v2755_v34, %s3824_s29  ;;  %v474_v46 = vrot.slane %v473_v35, 4  ;;  %v1304_v48 = vrot.slane %v180_v1, 5  ;;  %v491_v49 = vshrl.u32 %v4226_v16, 16  ;;  %v494_v51 = vshll.u32 %v4226_v16, 16 }
  0x59   : > { %758 = vrot.lane.b32.xlu0 %v4239_v43, %s3824_s29  ;;  %v484_v53 = vrot.slane %v483_v40, 4  ;;  %v1302_v56 = vsel %vm3889_vm4, %v2739_v36, %v1301_v45  ;;  %v1303_v57 = vrot.slane %v1301_v45, 4  ;;  %v500_v59 = vshll.u32 %v4231_v25, 16  ;;  %v4278_v45 = vld [vmem:[%s3866_s22 + $0xa8] sm:$0xf] }
  0x5a   : > { %v479_v62 = vsel %vm3895_vm5, %v474_v46, %v478_v28  ;;  %v493_v0 = vrot.slane %v491_v49, 4  ;;  %v496_v1 = vrot.slane %v494_v51, 5  ;;  %v504_v2 = vshrl.u32 %v4231_v25, 16 }
  0x5b   : > { %v489_v3 = vsel %vm3895_vm5, %v484_v53, %v488_v44  ;;  %v1305_v4 = vsel %vm3889_vm4, %v1303_v57, %v1304_v48  ;;  %v502_v10 = vrot.slane %v500_v59, 5  ;;  %v510_v11 = vshll.u32 %v183_v41, 16  ;;  %v4283_v53 = vld [vmem:[%s3866_s22 + $0xac] sm:$0xf] }
  0x5c   : > { %v4260_v13 = vcombine.low %v479_v62, %v489_v3  ;;  %v2756_v14 = vcombine.low %v1302_v56, %v1305_v4  ;;  %v497_v15 = vor.u32 %v496_v1, %v493_v0  ;;  %v506_v18 = vrot.slane %v504_v2, 4  ;;  %v189_v4 = vld [vmem:[%s3866_s22 + $0xb0] sm:$0x1] }
  0x5d   : > { %v512_v22 = vrot.slane %v510_v11, 5  ;;  %v2740_v24 = vrot.slane %v4226_v16, 9  ;;  %v1308_v27 = vrot.slane %v4231_v25, 5  ;;  %v1311_v28 = vrot.slane %v183_v41, 5 }
  0x5e   : > { %760 = vrot.lane.b32.xlu0 %v4260_v13, %s3824_s29  ;;  %1412 = vrot.lane.b32.xlu1 %v2756_v14, %s3824_s29  ;;  %v498_v29 = vrot.slane %v497_v15, 4  ;;  %v507_v32 = vor.u32 %v506_v18, %v502_v10  ;;  %v515_v34 = vshrl.u32 %v4251_v61, 16  ;;  %v518_v35 = vshll.u32 %v4251_v61, 16 }
  0x5f   : > { %v1309_v36 = vsel %vm3889_vm4, %v2740_v24, %v1308_v27  ;;  %v1310_v40 = vrot.slane %v1308_v27, 4  ;;  %v524_v44 = vshll.u32 %v4263_v21, 16  ;;  %v528_v41 = vshrl.u32 %v4263_v21, 16 }
  0x60   : > { %v503_v46 = vsel %vm3895_vm5, %v498_v29, %v502_v10  ;;  %v508_v48 = vrot.slane %v507_v32, 4  ;;  %v517_v49 = vrot.slane %v515_v34, 4  ;;  %v520_v51 = vrot.slane %v518_v35, 5  ;;  %v4303_v35 = vld [vmem:[%s3866_s22 + $0xb4] sm:$0xf] }
  0x61   : > { %v1312_v56 = vsel %vm3889_vm4, %v1310_v40, %v1311_v28  ;;  %v526_v57 = vrot.slane %v524_v44, 5  ;;  %v530_v59 = vrot.slane %v528_v41, 4  ;;  %v534_v62 = vshll.u32 %v186_v33, 16  ;;  %v4309_v41 = vld [vmem:[%s3866_s22 + $0xb8] sm:$0xf] }
  0x62   : > { %v513_v0 = vsel %vm3895_vm5, %v508_v48, %v512_v22  ;;  %v2757_v1 = vcombine.low %v1309_v36, %v1312_v56  ;;  %v521_v2 = vor.u32 %v520_v51, %v517_v49  ;;  %v2741_v3 = vrot.slane %v4251_v61, 9 }
  0x63   : > { %v4291_v10 = vcombine.low %v503_v46, %v513_v0  ;;  %v531_v11 = vor.u32 %v530_v59, %v526_v57  ;;  %v536_v14 = vrot.slane %v534_v62, 5  ;;  %v1315_v15 = vrot.slane %v4263_v21, 5 }
  0x64   : > { %1414 = vrot.lane.b32.xlu1 %v2757_v1, %s3824_s29  ;;  %v522_v18 = vrot.slane %v521_v2, 4  ;;  %v1318_v24 = vrot.slane %v186_v33, 5  ;;  %v539_v27 = vshrl.u32 %v4278_v45, 16  ;;  %v542_v22 = vshll.u32 %v4278_v45, 16 }
  0x65   : > { %762 = vrot.lane.b32.xlu0 %v4291_v10, %s3824_s29  ;;  %v532_v28 = vrot.slane %v531_v11, 4  ;;  %v1316_v29 = vsel %vm3889_vm4, %v2741_v3, %v1315_v15  ;;  %v1317_v32 = vrot.slane %v1315_v15, 4  ;;  %v548_v34 = vshll.u32 %v4283_v53, 16 }
  0x66   : > { %v527_v33 = vsel %vm3895_vm5, %v522_v18, %v526_v57  ;;  %v541_v36 = vrot.slane %v539_v27, 4  ;;  %v544_v40 = vrot.slane %v542_v22, 5  ;;  %v552_v44 = vshrl.u32 %v4283_v53, 16  ;;  %v192_v57 = vld [vmem:[%s3866_s22 + $0xbc] sm:$0x1] }
  0x67   : > { %v537_v46 = vsel %vm3895_vm5, %v532_v28, %v536_v14  ;;  %v1319_v48 = vsel %vm3889_vm4, %v1317_v32, %v1318_v24  ;;  %v550_v49 = vrot.slane %v548_v34, 5  ;;  %v558_v51 = vshll.u32 %v189_v4, 16 }
  0x68   : > { %v4315_v56 = vcombine.low %v527_v33, %v537_v46  ;;  %v2758_v59 = vcombine.low %v1316_v29, %v1319_v48  ;;  %v545_v62 = vor.u32 %v544_v40, %v541_v36  ;;  %v554_v0 = vrot.slane %v552_v44, 4  ;;  %v4332_v36 = vld [vmem:[%s3866_s22 + $0xc0] sm:$0xf] }
  0x69   : > { %v560_v1 = vrot.slane %v558_v51, 5  ;;  %v2742_v2 = vrot.slane %v4278_v45, 9  ;;  %v1322_v3 = vrot.slane %v4283_v53, 5  ;;  %v1325_v11 = vrot.slane %v189_v4, 5 }
  0x6a   : > { %764 = vrot.lane.b32.xlu0 %v4315_v56, %s3824_s29  ;;  %1416 = vrot.lane.b32.xlu1 %v2758_v59, %s3824_s29  ;;  %v546_v14 = vrot.slane %v545_v62, 4  ;;  %v555_v15 = vor.u32 %v554_v0, %v550_v49  ;;  %v563_v18 = vshrl.u32 %v4303_v35, 16  ;;  %v566_v24 = vshll.u32 %v4303_v35, 16  ;;  %v4339_v0 = vld [vmem:[%s3866_s22 + $0xc4] sm:$0xf] }
  0x6b   : > { %v1323_v27 = vsel %vm3889_vm4, %v2742_v2, %v1322_v3  ;;  %v1324_v22 = vrot.slane %v1322_v3, 4  ;;  %v572_v28 = vshll.u32 %v4309_v41, 16  ;;  %v576_v4 = vshrl.u32 %v4309_v41, 16 }
  0x6c   : > { %v551_v29 = vsel %vm3895_vm5, %v546_v14, %v550_v49  ;;  %v556_v32 = vrot.slane %v555_v15, 4  ;;  %v565_v34 = vrot.slane %v563_v18, 4  ;;  %v568_v33 = vrot.slane %v566_v24, 5  ;;  %v195_v15 = vld [vmem:[%s3866_s22 + $0xc8] sm:$0x1] }
  0x6d   : > { %v1326_v40 = vsel %vm3889_vm4, %v1324_v22, %v1325_v11  ;;  %v574_v44 = vrot.slane %v572_v28, 5  ;;  %v578_v46 = vrot.slane %v576_v4, 4  ;;  %v582_v48 = vshll.u32 %v192_v57, 16 }
  0x6e   : > { %v561_v51 = vsel %vm3895_vm5, %v556_v32, %v560_v1  ;;  %v2759_v59 = vcombine.low %v1323_v27, %v1326_v40  ;;  %v569_v62 = vor.u32 %v568_v33, %v565_v34  ;;  %v2743_v14 = vrot.slane %v4303_v35, 9 }
  0x6f   : > { %v4341_v49 = vcombine.low %v551_v29, %v561_v51  ;;  %v579_v2 = vor.u32 %v578_v46, %v574_v44  ;;  %v584_v3 = vrot.slane %v582_v48, 5  ;;  %v1329_v18 = vrot.slane %v4309_v41, 5 }
  0x70   : > { %1418 = vrot.lane.b32.xlu1 %v2759_v59, %s3824_s29  ;;  %v570_v11 = vrot.slane %v569_v62, 4  ;;  %v1332_v24 = vrot.slane %v192_v57, 5  ;;  %v587_v27 = vshrl.u32 %v4332_v36, 16  ;;  %v590_v22 = vshll.u32 %v4332_v36, 16 }
  0x71   : > { %766 = vrot.lane.b32.xlu0 %v4341_v49, %s3824_s29  ;;  %v580_v1 = vrot.slane %v579_v2, 4  ;;  %v596_v28 = vshll.u32 %v4339_v0, 16  ;;  %v1330_v29 = vsel %vm3889_vm4, %v2743_v14, %v1329_v18  ;;  %v1331_v32 = vrot.slane %v1329_v18, 4 }
  0x72   : > { %v575_v4 = vsel %vm3895_vm5, %v570_v11, %v574_v44  ;;  %v600_v34 = vshrl.u32 %v4339_v0, 16  ;;  %v589_v33 = vrot.slane %v587_v27, 4  ;;  %v592_v40 = vrot.slane %v590_v22, 5 }
  0x73   : > { %v585_v57 = vsel %vm3895_vm5, %v580_v1, %v584_v3  ;;  %v598_v46 = vrot.slane %v596_v28, 5  ;;  %v1333_v51 = vsel %vm3889_vm4, %v1331_v32, %v1332_v24  ;;  %v606_v62 = vshll.u32 %v195_v15, 16 }
  0x74   : > { %v4359_v48 = vcombine.low %v575_v4, %v585_v57  ;;  %v602_v59 = vrot.slane %v600_v34, 4  ;;  %v2760_v44 = vcombine.low %v1330_v29, %v1333_v51  ;;  %v593_v2 = vor.u32 %v592_v40, %v589_v33 }
  0x75   : > { %v2744_v14 = vrot.slane %v4332_v36, 9  ;;  %v608_v18 = vrot.slane %v606_v62, 5  ;;  %v1337_v3 = vrot.slane %v4339_v0, 5  ;;  %v1340_v1 = vrot.slane %v195_v15, 5 }
  0x76   : > { %768 = vrot.lane.b32.xlu0 %v4359_v48, %s3824_s29  ;;  %v603_v11 = vor.u32 %v602_v59, %v598_v46  ;;  %1420 = vrot.lane.b32.xlu1 %v2760_v44, %s3824_s29  ;;  %v594_v27 = vrot.slane %v593_v2, 4  ;;  %v2685_v29 = vcombine.low %v4048_v12, %v4057_v20  ;;  %v2686_v32 = vcombine.low %v4089_v47, %v4097_v55  ;;  %v198_v44 = vld [vmem:[%s3866_s22 + $0xd4] sm:$0x1]  ;;  %v3503_v59 = vld [vmem:[%s5072_s1 + $0x100] sm:$0xff]  }
  0x77   : > { %v1338_v24 = vsel %vm3889_vm4, %v2744_v14, %v1337_v3  ;;  %v1339_v28 = vrot.slane %v1337_v3, 4  ;;  %v2687_v15 = vcombine.low %v4144_v37, %v4147_v38  ;;  %v1870_v33 = vshll.u32 %v198_v44, 16 }
  0x78   : > { %v604_v22 = vrot.slane %v603_v11, 4  ;;  %v599_v4 = vsel %vm3895_vm5, %v594_v27, %v598_v46  ;;  %v4402_v11 = vld [vmem:[%s3866_s22 + $0xcc] sm:$0xf]  ;;  %v5078_v37 = vcombine.low %v4171_v63, %v4179_v9  ;;  %v5079_v63 = vcombine.low %v4199_v42, %v4211_v58 }
  0x79   : > { %v1341_v57 = vsel %vm3889_vm4, %v1339_v28, %v1340_v1  ;;  %v1851_v3 = vshrl.u32 %v4402_v11, 16  ;;  %v1854_v1 = vshll.u32 %v4402_v11, 16  ;;  %v3804_v28 = vld [vmem:[%s3866_s22] sm:$0xf]  ;;  %v5080_v42 = vcombine.low %v4226_v16, %v4231_v25 }
  0x7a   : > { %v609_v34 = vsel %vm3895_vm5, %v604_v22, %v608_v18  ;;  %v2761_v51 = vcombine.low %v1338_v24, %v1341_v57  ;;  %v4405_v18 = vld [vmem:[%s3866_s22 + $0xd0] sm:$0xf]  ;;  %v5081_v16 = vcombine.low %v4251_v61, %v4263_v21  ;;  %v5082_v61 = vcombine.low %v4278_v45, %v4283_v53 }
  0x7b   : > { %v4386_v46 = vcombine.low %v599_v4, %v609_v34  ;;  %v1860_v27 = vshll.u32 %v4405_v18, 16  ;;  %v1864_v22 = vshrl.u32 %v4405_v18, 16  ;;  %v3805_v4 = vld [vmem:[%s3866_s22 + $0x4] sm:$0xf]  ;;  %v1856_v14 = vrot.slane %v1854_v1, 5 }
  0x7c   : > { %1425 = vrot.lane.b32.xlu1 %v2761_v51, %s3824_s29  ;;  %v2678_v34 = vcombine.low %v3804_v28, %v3805_v4  ;;  %v1853_v51 = vrot.slane %v1851_v3, 4  ;;  %v5083_v45 = vcombine.low %v4303_v35, %v4309_v41  ;;  %v5084_v35 = vcombine.low %v4332_v36, %v4339_v0 }
  0x7d   : > { %778 = vrot.lane.b32.xlu0 %v4386_v46, %s3824_s29  ;;  %v1862_v2 = vrot.slane %v1860_v27, 5  ;;  %v1866_v62 = vrot.slane %v1864_v22, 4  ;;  %v1872_v27 = vrot.slane %v1870_v33, 5  ;;  %v3504_v22 = vld [vmem:[%s5072_s1 + $0x180] sm:$0xff]   ;;  %v3806_v33 = vld [vmem:[%s3866_s22 + $0x18] sm:$0xf] }
  0x7e   : > { %v1857_v40 = vor.u32 %v1856_v14, %v1853_v51 }
  0x7f   : > { %v1867_v6 = vor.u32 %v1866_v62, %v1862_v2  ;;  %v3509_v62 = vld [vmem:[%s5072_s1 + $0x108] sm:$0xff]  }
  0x80   : > { %v1858_v1 = vrot.slane %v1857_v40, 4 }
  0x81   : > { %v1868_v14 = vrot.slane %v1867_v6, 4 }
  0x8f   : > { %v741_v24 = vpop.permute.xlu0 %740 }
  0x90   : > { %v4417_v57 = vsel %vm780_vm6, %v2679_v17, %v741_v24  ;;  %v1863_v24 = vsel %vm3895_vm5, %v1858_v1, %v1862_v2 }
  0x91   : > { %1009 = vmatprep.mubr.bf16.mxu0 %v4417_v57 }
  0x93   : > { %v739_v28 = vpop.permute.xlu1 %738  ;;  %v1393_v4 = vpop.permute.xlu0 %1392 }
  0x94   : > { %v783_v17 = vsel %vm780_vm6, %v2678_v34, %v739_v28  ;;  %v4430_v3 = vsel %vm780_vm6, %v3911_v50, %v1393_v4  ;;  %v2246_v50 = vrot.slane %v4405_v18, 5  ;;  %v3807_v34 = vld [vmem:[%s3866_s22 + $0x1c] sm:$0xf]  ;;  %v3513_v28 = vld [vmem:[%s5072_s1 + $0x150] sm:$0xff]   ;;  %v1873_v4 = vsel %vm3895_vm5, %v1868_v14, %v1872_v27 }
  0x95   : > { %1010 = vmatmul.mubr.bf16.vlgmr.msra.gmra.mrb[0].mxu0 %v783_v17  ;;  %1656 = vmatprep.mubr.bf16.mxu1 %v4430_v3  ;;  %v2680_v51 = vcombine.low %v3806_v33, %v3807_v34  ;;  %v4454_v6 = vcombine.low %v1863_v24, %v1873_v4  ;;  %v2924_v17 = vrot.slane %v4402_v11, 9  ;;  %v3510_v33 = vld [vmem:[%s5072_s1 + $0x188] sm:$0xff]   ;;  %v3514_v14 = vld [vmem:[%s5072_s1 + $0x1d0] sm:$0xff]  }
  0x96   : > { %3234 = vmatpush3.bf16.msra.mxu0 %v3503_v59  ;;  %v3508_v59 = vld [vmem:[%s5072_s1 + $0x1c8] sm:$0xff]   ;;  %v2248_v1 = vrot.slane %v2246_v50, 4 }
  0x97   : > { %v1391_v40 = vpop.permute.xlu1 %1390  ;;  %3235 = vmatprep.subr.bf16.mxu0 %v3507_v5  ;;  %v2249_v5 = vrot.slane %v198_v44, 5  ;;  %v2247_v31 = vsel %vm3889_vm4, %v2924_v17, %v2246_v50  ;;  %v3515_v44 = vld [vmem:[%s5072_s1 + $0x110] sm:$0xff]   ;;  %v3519_v50 = vld [vmem:[%s5072_s1 + $0x158] sm:$0xff]   ;;  %1882 = vrot.lane.b32.xlu0 %v4454_v6, %s3824_s29  ;;  %v3809_v34 = vld [vmem:[%s3866_s22 + $0x28] sm:$0xf] }
  0x98   : > { %v1429_v2 = vsel %vm780_vm6, %v3931_v8, %v1391_v40  ;;  %v3525_v17 = vld [vmem:[%s5072_s1 + $0x160] sm:$0xff]  }
  0x99   : > { %1657 = vmatmul.mubr.bf16.vlgmr.msra.gmra.mrb[0].mxu1 %v1429_v2  ;;  %v3520_v2 = vld [vmem:[%s5072_s1 + $0x1d8] sm:$0xff]  }
  0x9a   : > { %3346 = vmatpush3.bf16.msra.mxu1 %v3504_v22  ;;  %3236 = vmatpush3.bf16.msra.mxu0 %v3509_v62  ;;  %v2250_v22 = vsel %vm3889_vm4, %v2248_v1, %v2249_v5 }
  0x9b   : > { %v743_v27 = vpop.permute.xlu0 %742  ;;  %v1395_v8 = vpop.permute.xlu1 %1394  ;;  %3347 = vmatprep.subr.bf16.mxu1 %v3508_v59  ;;  %3237 = vmatprep.subr.bf16.mxu0 %v3513_v28  ;;  %v2925_v40 = vcombine.low %v2247_v31, %v2250_v22  ;;  %v3521_v59 = vld [vmem:[%s5072_s1 + $0x118] sm:$0xff]   ;;  %v3527_v31 = vld [vmem:[%s5072_s1 + $0x120] sm:$0xff]  }
  0x9c   : > { %v4471_v62 = vsel %vm780_vm6, %v2680_v51, %v743_v27  ;;  %v4475_v24 = vsel %vm780_vm6, %v3967_v54, %v1395_v8  ;;  %v2681_v51 = vcombine.low %v3808_v30, %v3809_v34  ;;  %v3516_v54 = vld [vmem:[%s5072_s1 + $0x190] sm:$0xff]   ;;  %v3528_v30 = vld [vmem:[%s5072_s1 + $0x1a0] sm:$0xff]   ;;  %v3533_v34 = vld [vmem:[%s5072_s1 + $0x128] sm:$0xff]  }
  0x9d   : > { %1017 = vmatprep.mubr.bf16.mxu0 %v4471_v62  ;;  %1664 = vmatprep.mubr.bf16.mxu1 %v4475_v24  ;;  %v3810_v27 = vld [vmem:[%s3866_s22 + $0x30] sm:$0xf]  ;;  %v3811_v8 = vld [vmem:[%s3866_s22 + $0x34] sm:$0xf] }
  0x9e   : > { %1018 = vmatmul.mubr.bf16.gmra.mrb[4].mxu0 %v4417_v57  ;;  %3348 = vmatpush3.bf16.msra.mxu1 %v3510_v33  ;;  %v3522_v33 = vld [vmem:[%s5072_s1 + $0x198] sm:$0xff]  }
  0x9f   : > { %3349 = vmatprep.subr.bf16.mxu1 %v3514_v14  ;;  %3238 = vmatpush3.bf16.msra.mxu0 %v3515_v44  ;;  %v2682_v14 = vcombine.low %v3810_v27, %v3811_v8  ;;  %v3531_v44 = vld [vmem:[%s5072_s1 + $0x168] sm:$0xff]   ;;  %v3539_v27 = vld [vmem:[%s5072_s1 + $0x130] sm:$0xff]  }
  0xa0   : > { %v745_v28 = vpop.permute.xlu0 %744  ;;  %v1397_v4 = vpop.permute.xlu1 %1396  ;;  %3239 = vmatprep.subr.bf16.mxu0 %v3519_v50  ;;  %2254 = vrot.lane.b32.xlu1 %v2925_v40, %s3824_s29 }
  0xa1   : > { %1665 = vmatmul.mubr.bf16.gmra.mrb[4].mxu1 %v4430_v3  ;;  %v4502_v1 = vsel %vm780_vm6, %v2681_v51, %v745_v28  ;;  %v4506_v5 = vsel %vm780_vm6, %v3991_v19, %v1397_v4  ;;  %v3526_v19 = vld [vmem:[%s5072_s1 + $0x1e0] sm:$0xff]  }
  0xa2   : > { %1025 = vmatprep.mubr.bf16.mxu0 %v4502_v1  ;;  %1672 = vmatprep.mubr.bf16.mxu1 %v4506_v5  ;;  %v3813_v28 = vld [vmem:[%s3866_s22 + $0x40] sm:$0xf] }
  0xa3   : > { %3350 = vmatpush3.bf16.msra.mxu1 %v3516_v54  ;;  %3240 = vmatpush3.bf16.msra.mxu0 %v3521_v59  ;;  %v3537_v54 = vld [vmem:[%s5072_s1 + $0x170] sm:$0xff]   ;;  %v3812_v59 = vld [vmem:[%s3866_s22 + $0x3c] sm:$0xf] }
  0xa4   : > { %3351 = vmatprep.subr.bf16.mxu1 %v3520_v2  ;;  %3241 = vmatprep.subr.bf16.mxu0 %v3525_v17  ;;  %v2683_v4 = vcombine.low %v3812_v59, %v3813_v28  ;;  %v3534_v2 = vld [vmem:[%s5072_s1 + $0x1a8] sm:$0xff]  }
  0xa6   : > { %1026 = vmatmul.mubr.bf16.gmra.mrb[8].mxu0 %v4471_v62  ;;  %v1399_v22 = vpop.permute.xlu1 %1398 }
  0xa7   : > { %v747_v50 = vpop.permute.xlu0 %746  ;;  %v4527_v40 = vsel %vm780_vm6, %v4035_v60, %v1399_v22  ;;  %3352 = vmatpush3.bf16.msra.mxu1 %v3522_v33  ;;  %3242 = vmatpush3.bf16.msra.mxu0 %v3527_v31  ;;  %v3532_v60 = vld [vmem:[%s5072_s1 + $0x1e8] sm:$0xff]   ;;  %v3538_v31 = vld [vmem:[%s5072_s1 + $0x1f0] sm:$0xff]  }
  0xa8   : > { %v4536_v51 = vsel %vm780_vm6, %v2682_v14, %v747_v50  ;;  %3353 = vmatprep.subr.bf16.mxu1 %v3526_v19  ;;  %3243 = vmatprep.subr.bf16.mxu0 %v3531_v44  ;;  %v3543_v14 = vld [vmem:[%s5072_s1 + $0x178] sm:$0xff]   ;;  %v3540_v44 = vld [vmem:[%s5072_s1 + $0x1b0] sm:$0xff]   ;;  %v3814_v22 = vld [vmem:[%s3866_s22 + $0x48] sm:$0xf] }
  0xa9   : > { %1673 = vmatmul.mubr.bf16.gmra.mrb[8].mxu1 %v4475_v24  ;;  %1033 = vmatprep.mubr.bf16.mxu0 %v4536_v51  ;;  %v3815_v50 = vld [vmem:[%s3866_s22 + $0x4c] sm:$0xf] }
  0xaa   : > { %1680 = vmatprep.mubr.bf16.mxu1 %v4527_v40 }
  0xab   : > { %3354 = vmatpush3.bf16.msra.mxu1 %v3528_v30  ;;  %3244 = vmatpush3.bf16.msra.mxu0 %v3533_v34  ;;  %v2684_v30 = vcombine.low %v3814_v22, %v3815_v50  ;;  %v3544_v34 = vld [vmem:[%s5072_s1 + $0x1f8] sm:$0xff]  }
  0xac   : > { %v749_v17 = vpop.permute.xlu0 %748  ;;  %v1401_v33 = vpop.permute.xlu1 %1400  ;;  %3355 = vmatprep.subr.bf16.mxu1 %v3532_v60  ;;  %3245 = vmatprep.subr.bf16.mxu0 %v3537_v54  ;;  %v3545_v60 = vld [vmem:[%s5072_s1 + $0x138] sm:$0xff]  }
  0xad   : > { %v4559_v8 = vsel %vm780_vm6, %v2683_v4, %v749_v17  ;;  %v4568_v19 = vsel %vm780_vm6, %v4066_v26, %v1401_v33  ;;  %v3546_v54 = vld [vmem:[%s5072_s1 + $0x1b8] sm:$0xff]  }
  0xae   : > { %1034 = vmatmul.mubr.bf16.gmra.mrb[12].mxu0 %v4502_v1 }
  0xaf   : > { %1041 = vmatprep.mubr.bf16.mxu0 %v4559_v8  ;;  %3356 = vmatpush3.bf16.msra.mxu1 %v3534_v2 }
  0xb0   : > { %3357 = vmatprep.subr.bf16.mxu1 %v3538_v31  ;;  %3246 = vmatpush3.bf16.msra.mxu0 %v3539_v27 }
  0xb1   : > { %1681 = vmatmul.mubr.bf16.gmra.mrb[12].mxu1 %v4506_v5  ;;  %3247 = vmatprep.subr.bf16.mxu0 %v3543_v14 }
  0xb2   : > { %1688 = vmatprep.mubr.bf16.mxu1 %v4568_v19  ;;  %v1403_v28 = vpop.permute.xlu1 %1402 }
  0xb3   : > { %v751_v26 = vpop.permute.xlu0 %750  ;;  %3358 = vmatpush3.bf16.msra.mxu1 %v3540_v44  ;;  %v4593_v4 = vsel %vm780_vm6, %v4117_v7, %v1403_v28 }
  0xb4   : > { %v4587_v59 = vsel %vm780_vm6, %v2684_v30, %v751_v26  ;;  %3359 = vmatprep.subr.bf16.mxu1 %v3544_v34  ;;  %3248 = vmatpush3.bf16.msra.mxu0 %v3545_v60 }
  0xb6   : > { %1042 = vmatmul.mubr.bf16.gmra.mrb[16].mxu0 %v4536_v51 }
  0xb7   : > { %1049 = vmatprep.mubr.bf16.mxu0 %v4587_v59  ;;  %3360 = vmatpush3.bf16.msra.mxu1 %v3546_v54 }
  0xb8   : > { %v753_v2 = vpop.permute.xlu0 %752  ;;  %v1405_v33 = vpop.permute.xlu1 %1404 }
  0xb9   : > { %1689 = vmatmul.mubr.bf16.gmra.mrb[16].mxu1 %v4527_v40  ;;  %v4601_v17 = vsel %vm780_vm6, %v2685_v29, %v753_v2  ;;  %v4607_v7 = vsel %vm780_vm6, %v4149_v39, %v1405_v33 }
  0xba   : > { %1696 = vmatprep.mubr.bf16.mxu1 %v4593_v4 }
  0xbe   : > { %1050 = vmatmul.mubr.bf16.gmra.mrb[20].mxu0 %v4559_v8  ;;  %v1407_v20 = vpop.permute.xlu1 %1406 }
  0xbf   : > { %1057 = vmatprep.mubr.bf16.mxu0 %v4601_v17  ;;  %v755_v31 = vpop.permute.xlu0 %754  ;;  %v4621_v39 = vsel %vm780_vm6, %v4187_v23, %v1407_v20 }
  0xc0   : > { %v4615_v12 = vsel %vm780_vm6, %v2686_v32, %v755_v31 }
  0xc1   : > { %1697 = vmatmul.mubr.bf16.gmra.mrb[20].mxu1 %v4568_v19 }
  0xc2   : > { %1704 = vmatprep.mubr.bf16.mxu1 %v4607_v7 }
  0xc4   : > { %v757_v29 = vpop.permute.xlu0 %756  ;;  %v1409_v55 = vpop.permute.xlu1 %1408 }
  0xc5   : > { %v4629_v47 = vsel %vm780_vm6, %v2687_v15, %v757_v29  ;;  %v4635_v23 = vsel %vm780_vm6, %v4208_v52, %v1409_v55 }
  0xc6   : > { %1058 = vmatmul.mubr.bf16.gmra.mrb[24].mxu0 %v4587_v59 }
  0xc7   : > { %1065 = vmatprep.mubr.bf16.mxu0 %v4615_v12 }
  0xc9   : > { %1705 = vmatmul.mubr.bf16.gmra.mrb[24].mxu1 %v4593_v4 }
  0xca   : > { %1712 = vmatprep.mubr.bf16.mxu1 %v4621_v39  ;;  %v1411_v15 = vpop.permute.xlu1 %1410 }
  0xcb   : > { %v759_v32 = vpop.permute.xlu0 %758  ;;  %v4649_v52 = vsel %vm780_vm6, %v4239_v43, %v1411_v15 }
  0xcc   : > { %v4643_v38 = vsel %vm780_vm6, %v5078_v37, %v759_v32 }
  0xce   : > { %1066 = vmatmul.mubr.bf16.gmra.mrb[28].mxu0 %v4601_v17 }
  0xcf   : > { %1073 = vmatprep.mubr.bf16.mxu0 %v4629_v47 }
  0xd0   : > { %v761_v27 = vpop.permute.xlu0 %760  ;;  %v1413_v14 = vpop.permute.xlu1 %1412 }
  0xd1   : > { %1713 = vmatmul.mubr.bf16.gmra.mrb[28].mxu1 %v4607_v7  ;;  %v4657_v9 = vsel %vm780_vm6, %v5079_v63, %v761_v27  ;;  %v4663_v43 = vsel %vm780_vm6, %v4260_v13, %v1413_v14 }
  0xd2   : > { %1720 = vmatprep.mubr.bf16.mxu1 %v4635_v23 }
  0xd6   : > { %1074 = vmatmul.mubr.bf16.gmra.mrb[32].mxu0 %v4615_v12  ;;  %v1415_v22 = vpop.permute.xlu1 %1414 }
  0xd7   : > { %1081 = vmatprep.mubr.bf16.mxu0 %v4643_v38  ;;  %v763_v44 = vpop.permute.xlu0 %762  ;;  %v4677_v13 = vsel %vm780_vm6, %v4291_v10, %v1415_v22 }
  0xd8   : > { %v4671_v58 = vsel %vm780_vm6, %v5080_v42, %v763_v44 }
  0xd9   : > { %1721 = vmatmul.mubr.bf16.gmra.mrb[32].mxu1 %v4621_v39 }
  0xda   : > { %1728 = vmatprep.mubr.bf16.mxu1 %v4649_v52 }
  0xdc   : > { %v765_v50 = vpop.permute.xlu0 %764  ;;  %v1417_v30 = vpop.permute.xlu1 %1416 }
  0xdd   : > { %v4685_v25 = vsel %vm780_vm6, %v5081_v16, %v765_v50  ;;  %v4691_v10 = vsel %vm780_vm6, %v4315_v56, %v1417_v30  ;;  %v2842_v50 = vcombine.low %v4402_v11, %v4405_v18 }
  0xde   : > { %1082 = vmatmul.mubr.bf16.gmra.mrb[36].mxu0 %v4629_v47 }
  0xdf   : > { %1089 = vmatprep.mubr.bf16.mxu0 %v4657_v9 }
  0xe1   : > { %1729 = vmatmul.mubr.bf16.gmra.mrb[36].mxu1 %v4635_v23 }
  0xe2   : > { %1736 = vmatprep.mubr.bf16.mxu1 %v4663_v43  ;;  %v1419_v60 = vpop.permute.xlu1 %1418 }
  0xe3   : > { %v767_v34 = vpop.permute.xlu0 %766  ;;  %v4705_v56 = vsel %vm780_vm6, %v4341_v49, %v1419_v60 }
  0xe4   : > { %v4699_v21 = vsel %vm780_vm6, %v5082_v61, %v767_v34 }
  0xe6   : > { %1090 = vmatmul.mubr.bf16.gmra.mrb[40].mxu0 %v4643_v38 }
  0xe7   : > { %1097 = vmatprep.mubr.bf16.mxu0 %v4671_v58 }
  0xe8   : > { %v769_v26 = vpop.permute.xlu0 %768  ;;  %v1421_v54 = vpop.permute.xlu1 %1420 }
  0xe9   : > { %1737 = vmatmul.mubr.bf16.gmra.mrb[40].mxu1 %v4649_v52  ;;  %v4713_v53 = vsel %vm780_vm6, %v5083_v45, %v769_v26  ;;  %v4719_v49 = vsel %vm780_vm6, %v4359_v48, %v1421_v54 }
  0xea   : > { %1744 = vmatprep.mubr.bf16.mxu1 %v4677_v13 }
  0xee   : > { %1098 = vmatmul.mubr.bf16.gmra.mrb[44].mxu0 %v4657_v9  ;;  %v1426_v2 = vpop.permute.xlu1 %1425 }
  0xef   : > { %1105 = vmatprep.mubr.bf16.mxu0 %v4685_v25  ;;  %v779_v28 = vpop.permute.xlu0 %778  ;;  %v4733_v48 = vsel %vm780_vm6, %v4386_v46, %v1426_v2 }
  0xf0   : > { %v4727_v41 = vsel %vm780_vm6, %v5084_v35, %v779_v28 }
  0xf1   : > { %1745 = vmatmul.mubr.bf16.gmra.mrb[44].mxu1 %v4663_v43 }
  0xf2   : > { %1752 = vmatprep.mubr.bf16.mxu1 %v4691_v10 }
  0xf6   : > { %1106 = vmatmul.mubr.bf16.gmra.mrb[48].mxu0 %v4671_v58 }
  0xf7   : > { %1113 = vmatprep.mubr.bf16.mxu0 %v4699_v21 }
  0xf9   : > { %1753 = vmatmul.mubr.bf16.gmra.mrb[48].mxu1 %v4677_v13 }
  0xfa   : > { %1760 = vmatprep.mubr.bf16.mxu1 %v4705_v56 }
  0xfe   : > { %1114 = vmatmul.mubr.bf16.gmra.mrb[52].mxu0 %v4685_v25 }
  0xff   : > { %1121 = vmatprep.mubr.bf16.mxu0 %v4713_v53 }
 0x101   : > { %1761 = vmatmul.mubr.bf16.gmra.mrb[52].mxu1 %v4691_v10 }
 0x102   : > { %1768 = vmatprep.mubr.bf16.mxu1 %v4719_v49 }
 0x106   : > { %1122 = vmatmul.mubr.bf16.gmra.mrb[56].mxu0 %v4699_v21 }
 0x107   : > { %1129 = vmatprep.mubr.bf16.mxu0 %v4727_v41 }
 0x109   : > { %1769 = vmatmul.mubr.bf16.gmra.mrb[56].mxu1 %v4705_v56  ;;  %v1883_v30 = vpop.permute.xlu0 %1882 }
 0x10a   : > { %1776 = vmatprep.mubr.bf16.mxu1 %v4733_v48  ;;  %v1886_v45 = vsel %vm780_vm6, %v2842_v50, %v1883_v30 }
 0x10e   : > { %1130 = vmatmul.mubr.bf16.gmra.mrb[60].mxu0 %v4713_v53 }
 0x10f   : > { %2049 = vmatprep.mubr.bf16.mxu0 %v4471_v62 }
 0x111   : > { %1777 = vmatmul.mubr.bf16.gmra.mrb[60].mxu1 %v4719_v49 }
 0x112   : > { %2421 = vmatprep.mubr.bf16.mxu1 %v4475_v24  ;;  %v2255_v60 = vpop.permute.xlu1 %2254 }
 0x116   : > { %2050 = vmatmul.mubr.bf16.vlgmr.msra.gmra.mrb[64].mxu0 %v4417_v57 }
 0x117   : > { %2057 = vmatprep.mubr.bf16.mxu0 %v4502_v1 }
 0x119   : > { %2422 = vmatmul.mubr.bf16.vlgmr.msra.gmra.mrb[64].mxu1 %v4430_v3 }
 0x11a   : > { %2429 = vmatprep.mubr.bf16.mxu1 %v4506_v5 }
 0x11e   : > { %2058 = vmatmul.mubr.bf16.gmra.mrb[68].mxu0 %v4471_v62 }
 0x11f   : > { %2065 = vmatprep.mubr.bf16.mxu0 %v4536_v51 }
 0x121   : > { %2430 = vmatmul.mubr.bf16.gmra.mrb[68].mxu1 %v4475_v24 }
 0x122   : > { %2437 = vmatprep.mubr.bf16.mxu1 %v4527_v40 }
 0x126   : > { %2066 = vmatmul.mubr.bf16.gmra.mrb[72].mxu0 %v4502_v1 }
 0x127   : > { %2073 = vmatprep.mubr.bf16.mxu0 %v4559_v8 }
 0x129   : > { %2438 = vmatmul.mubr.bf16.gmra.mrb[72].mxu1 %v4506_v5 }
 0x12a   : > { %2445 = vmatprep.mubr.bf16.mxu1 %v4568_v19 }
 0x12e   : > { %2074 = vmatmul.mubr.bf16.gmra.mrb[76].mxu0 %v4536_v51 }
 0x12f   : > { %2081 = vmatprep.mubr.bf16.mxu0 %v4587_v59 }
 0x131   : > { %2446 = vmatmul.mubr.bf16.gmra.mrb[76].mxu1 %v4527_v40 }
 0x132   : > { %2453 = vmatprep.mubr.bf16.mxu1 %v4593_v4 }
 0x136   : > { %2082 = vmatmul.mubr.bf16.gmra.mrb[80].mxu0 %v4559_v8 }
 0x137   : > { %2089 = vmatprep.mubr.bf16.mxu0 %v4601_v17 }
 0x139   : > { %2454 = vmatmul.mubr.bf16.gmra.mrb[80].mxu1 %v4568_v19 }
 0x13a   : > { %2461 = vmatprep.mubr.bf16.mxu1 %v4607_v7 }
 0x13e   : > { %2090 = vmatmul.mubr.bf16.gmra.mrb[84].mxu0 %v4587_v59 }
 0x13f   : > { %2097 = vmatprep.mubr.bf16.mxu0 %v4615_v12 }
 0x141   : > { %2462 = vmatmul.mubr.bf16.gmra.mrb[84].mxu1 %v4593_v4 }
 0x142   : > { %2469 = vmatprep.mubr.bf16.mxu1 %v4621_v39 }
 0x146   : > { %2098 = vmatmul.mubr.bf16.gmra.mrb[88].mxu0 %v4601_v17 }
 0x147   : > { %2105 = vmatprep.mubr.bf16.mxu0 %v4629_v47 }
 0x149   : > { %2470 = vmatmul.mubr.bf16.gmra.mrb[88].mxu1 %v4607_v7 }
 0x14a   : > { %2477 = vmatprep.mubr.bf16.mxu1 %v4635_v23 }
 0x14e   : > { %2106 = vmatmul.mubr.bf16.gmra.mrb[92].mxu0 %v4615_v12 }
 0x14f   : > { %2113 = vmatprep.mubr.bf16.mxu0 %v4643_v38 }
 0x151   : > { %2478 = vmatmul.mubr.bf16.gmra.mrb[92].mxu1 %v4621_v39 }
 0x152   : > { %2485 = vmatprep.mubr.bf16.mxu1 %v4649_v52 }
 0x156   : > { %2114 = vmatmul.mubr.bf16.gmra.mrb[96].mxu0 %v4629_v47 }
 0x157   : > { %2121 = vmatprep.mubr.bf16.mxu0 %v4657_v9 }
 0x159   : > { %2486 = vmatmul.mubr.bf16.gmra.mrb[96].mxu1 %v4635_v23 }
 0x15a   : > { %2493 = vmatprep.mubr.bf16.mxu1 %v4663_v43 }
 0x15e   : > { %2122 = vmatmul.mubr.bf16.gmra.mrb[100].mxu0 %v4643_v38 }
 0x15f   : > { %2129 = vmatprep.mubr.bf16.mxu0 %v4671_v58 }
 0x161   : > { %2494 = vmatmul.mubr.bf16.gmra.mrb[100].mxu1 %v4649_v52 }
 0x162   : > { %2501 = vmatprep.mubr.bf16.mxu1 %v4677_v13 }
 0x166   : > { %2130 = vmatmul.mubr.bf16.gmra.mrb[104].mxu0 %v4657_v9 }
 0x167   : > { %2137 = vmatprep.mubr.bf16.mxu0 %v4685_v25 }
 0x168   : > { %v3025_v36 = vpop.f32.mrb[0].mxu0 }
 0x169   : > { %v3026_v0 = vpop.f32.mrb[1].mxu0  ;;  %2502 = vmatmul.mubr.bf16.gmra.mrb[104].mxu1 %v4663_v43 }
 0x16a   : > { %v3027_v46 = vadd.f32 %v3026_v0, %v3025_v36  ;;  %v3028_v57 = vpop.f32.mrb[2].mxu0  ;;  %2509 = vmatprep.mubr.bf16.mxu1 %v4691_v10  ;;  %v2258_v0 = vsel %vm780_vm6, %v4454_v6, %v2255_v60 }
 0x16b   : > { %v3029_v3 = vpop.f32.mrb[3].mxu0 }
 0x16c   : > { %3548 = vtanh.f32 %v3027_v46  ;;  %v3030_v62 = vadd.f32 %v3029_v3, %v3028_v57  ;;  %v3137_v24 = vpop.f32.mrb[0].mxu1 }
 0x16d   : > { %v3138_v1 = vpop.f32.mrb[1].mxu1 }
 0x16e   : > { %3550 = vtanh.f32 %v3030_v62  ;;  %v3139_v5 = vadd.f32 %v3138_v1, %v3137_v24  ;;  %2138 = vmatmul.mubr.bf16.gmra.mrb[108].mxu0 %v4671_v58  ;;  %v3140_v40 = vpop.f32.mrb[2].mxu1 }
 0x16f   : > { %2145 = vmatprep.mubr.bf16.mxu0 %v4699_v21  ;;  %v3141_v51 = vpop.f32.mrb[3].mxu1 }
 0x170   : > { %3552 = vtanh.f32 %v3139_v5  ;;  %v3142_v8 = vadd.f32 %v3141_v51, %v3140_v40 }
 0x171   : > { %v3031_v19 = vpop.f32.mrb[4].mxu0  ;;  %2510 = vmatmul.mubr.bf16.gmra.mrb[108].mxu1 %v4677_v13 }
 0x172   : > { %3554 = vtanh.f32 %v3142_v8  ;;  %v3032_v59 = vpop.f32.mrb[5].mxu0  ;;  %2517 = vmatprep.mubr.bf16.mxu1 %v4705_v56 }
 0x173   : > { %v3033_v4 = vadd.f32 %v3032_v59, %v3031_v19  ;;  %v3034_v17 = vpop.f32.mrb[6].mxu0 }
 0x174   : > { %v3035_v33 = vpop.f32.mrb[7].mxu0  ;;  %v3143_v7 = vpop.f32.mrb[4].mxu1 }
 0x175   : > { %3556 = vtanh.f32 %v3033_v4  ;;  %v3036_v31 = vadd.f32 %v3035_v33, %v3034_v17  ;;  %v3144_v12 = vpop.f32.mrb[5].mxu1 }
 0x176   : > { %v3549_v20 = vpop.eup %3548  ;;  %v3145_v39 = vadd.f32 %v3144_v12, %v3143_v7  ;;  %2146 = vmatmul.mubr.bf16.gmra.mrb[112].mxu0 %v4685_v25  ;;  %v3146_v29 = vpop.f32.mrb[6].mxu1 }
 0x177   : > { %1171 = vst.msk [vmem:[%s4793_s23] sm:$0xff] %vm1170_vm7, %v3549_v20  ;;  %3558 = vtanh.f32 %v3036_v31  ;;  %2153 = vmatprep.mubr.bf16.mxu0 %v4713_v53  ;;  %v3147_v47 = vpop.f32.mrb[7].mxu1 }
 0x178   : > { %v3551_v55 = vpop.eup %3550  ;;  %3560 = vtanh.f32 %v3145_v39  ;;  %v3148_v23 = vadd.f32 %v3147_v47, %v3146_v29 }
 0x179   : > { %1172 = vst.msk [vmem:[%s4793_s23 + $0x8] sm:$0xff] %vm1170_vm7, %v3551_v55  ;;  %v3037_v32 = vpop.f32.mrb[8].mxu0  ;;  %2518 = vmatmul.mubr.bf16.gmra.mrb[112].mxu1 %v4691_v10 }
 0x17a   : > { %v3553_v37 = vpop.eup %3552  ;;  %3562 = vtanh.f32 %v3148_v23  ;;  %v3038_v38 = vpop.f32.mrb[9].mxu0  ;;  %2525 = vmatprep.mubr.bf16.mxu1 %v4719_v49 }
 0x17b   : > { %2810 = vst.msk [vmem:[%s4793_s23 + $0x100] sm:$0xff] %vm1170_vm7, %v3553_v37  ;;  %v3039_v15 = vadd.f32 %v3038_v38, %v3037_v32  ;;  %v3040_v52 = vpop.f32.mrb[10].mxu0 }
 0x17c   : > { %v3555_v27 = vpop.eup %3554  ;;  %v3041_v63 = vpop.f32.mrb[11].mxu0 }
 0x17d   : > { %v3149_v9 = vpop.f32.mrb[8].mxu1  ;;  %2811 = vst.msk [vmem:[%s4793_s23 + $0x108] sm:$0xff] %vm1170_vm7, %v3555_v27  ;;  %3564 = vtanh.f32 %v3039_v15  ;;  %v3042_v14 = vadd.f32 %v3041_v63, %v3040_v52 }
 0x17e   : > { %v3150_v43 = vpop.f32.mrb[9].mxu1  ;;  %2154 = vmatmul.mubr.bf16.gmra.mrb[116].mxu0 %v4699_v21 }
 0x17f   : > { %v3151_v44 = vadd.f32 %v3150_v43, %v3149_v9  ;;  %v3152_v42 = vpop.f32.mrb[10].mxu1  ;;  %v3557_v58 = vpop.eup %3556  ;;  %3566 = vtanh.f32 %v3042_v14  ;;  %2161 = vmatprep.mubr.bf16.mxu0 %v4727_v41 }
 0x180   : > { %v3153_v22 = vpop.f32.mrb[11].mxu1  ;;  %1173 = vst.msk [vmem:[%s4793_s23 + $0x10] sm:$0xff] %vm1170_vm7, %v3557_v58 }
 0x181   : > { %3568 = vtanh.f32 %v3151_v44  ;;  %v3154_v13 = vadd.f32 %v3153_v22, %v3152_v42  ;;  %v3559_v16 = vpop.eup %3558  ;;  %v3043_v25 = vpop.f32.mrb[12].mxu0  ;;  %2526 = vmatmul.mubr.bf16.gmra.mrb[116].mxu1 %v4705_v56 }
 0x182   : > { %v3561_v10 = vpop.eup %3560  ;;  %1174 = vst.msk [vmem:[%s4793_s23 + $0x18] sm:$0xff] %vm1170_vm7, %v3559_v16  ;;  %v3044_v34 = vpop.f32.mrb[13].mxu0  ;;  %2533 = vmatprep.mubr.bf16.mxu1 %v4733_v48 }
 0x183   : > { %3570 = vtanh.f32 %v3154_v13  ;;  %2812 = vst.msk [vmem:[%s4793_s23 + $0x110] sm:$0xff] %vm1170_vm7, %v3561_v10  ;;  %v3045_v61 = vadd.f32 %v3044_v34, %v3043_v25  ;;  %v3046_v21 = vpop.f32.mrb[14].mxu0 }
 0x184   : > { %v3563_v26 = vpop.eup %3562  ;;  %v3047_v11 = vpop.f32.mrb[15].mxu0 }
 0x185   : > { %v3155_v18 = vpop.f32.mrb[12].mxu1  ;;  %2813 = vst.msk [vmem:[%s4793_s23 + $0x118] sm:$0xff] %vm1170_vm7, %v3563_v26  ;;  %3572 = vtanh.f32 %v3045_v61  ;;  %v3048_v56 = vadd.f32 %v3047_v11, %v3046_v21 }
 0x186   : > { %v3156_v54 = vpop.f32.mrb[13].mxu1  ;;  %2162 = vmatmul.mubr.bf16.gmra.mrb[120].mxu0 %v4713_v53 }
 0x187   : > { %v3157_v28 = vadd.f32 %v3156_v54, %v3155_v18  ;;  %v3158_v35 = vpop.f32.mrb[14].mxu1  ;;  %v3565_v2 = vpop.eup %3564  ;;  %3574 = vtanh.f32 %v3048_v56  ;;  %2169 = vmatprep.mubr.bf16.mxu0 %v1886_v45 }
 0x188   : > { %v3159_v36 = vpop.f32.mrb[15].mxu1  ;;  %1175 = vst.msk [vmem:[%s4793_s23 + $0x20] sm:$0xff] %vm1170_vm7, %v3565_v2 }
 0x189   : > { %3576 = vtanh.f32 %v3157_v28  ;;  %v3160_v46 = vadd.f32 %v3159_v36, %v3158_v35  ;;  %v3567_v57 = vpop.eup %3566  ;;  %v3049_v3 = vpop.f32.mrb[16].mxu0  ;;  %2534 = vmatmul.mubr.bf16.gmra.mrb[120].mxu1 %v4719_v49 }
 0x18a   : > { %1176 = vst.msk [vmem:[%s4793_s23 + $0x28] sm:$0xff] %vm1170_vm7, %v3567_v57  ;;  %v3050_v53 = vpop.f32.mrb[17].mxu0  ;;  %2541 = vmatprep.mubr.bf16.mxu1 %v2258_v0 }
 0x18b   : > { %v3569_v62 = vpop.eup %3568  ;;  %3578 = vtanh.f32 %v3160_v46  ;;  %v3051_v24 = vadd.f32 %v3050_v53, %v3049_v3  ;;  %v3052_v6 = vpop.f32.mrb[18].mxu0 }
 0x18c   : > { %2814 = vst.msk [vmem:[%s4793_s23 + $0x120] sm:$0xff] %vm1170_vm7, %v3569_v62  ;;  %v3053_v5 = vpop.f32.mrb[19].mxu0  ;;  %v3161_v40 = vpop.f32.mrb[16].mxu1 }
 0x18d   : > { %v3571_v1 = vpop.eup %3570  ;;  %3580 = vtanh.f32 %v3051_v24  ;;  %v3054_v51 = vadd.f32 %v3053_v5, %v3052_v6  ;;  %v3162_v49 = vpop.f32.mrb[17].mxu1 }
 0x18e   : > { %2815 = vst.msk [vmem:[%s4793_s23 + $0x128] sm:$0xff] %vm1170_vm7, %v3571_v1  ;;  %v3163_v8 = vadd.f32 %v3162_v49, %v3161_v40  ;;  %2170 = vmatmul.mubr.bf16.gmra.mrb[124].mxu0 %v4727_v41  ;;  %v3164_v19 = vpop.f32.mrb[18].mxu1 }
 0x18f   : > { %v3573_v59 = vpop.eup %3572  ;;  %3582 = vtanh.f32 %v3054_v51  ;;  %v3165_v4 = vpop.f32.mrb[19].mxu1 }
 0x190   : > { %1177 = vst.msk [vmem:[%s4793_s23 + $0x30] sm:$0xff] %vm1170_vm7, %v3573_v59  ;;  %3584 = vtanh.f32 %v3163_v8  ;;  %v3166_v17 = vadd.f32 %v3165_v4, %v3164_v19 }
 0x191   : > { %v3575_v33 = vpop.eup %3574  ;;  %v3055_v7 = vpop.f32.mrb[20].mxu0  ;;  %2542 = vmatmul.mubr.bf16.gmra.mrb[124].mxu1 %v4733_v48 }
 0x192   : > { %1178 = vst.msk [vmem:[%s4793_s23 + $0x38] sm:$0xff] %vm1170_vm7, %v3575_v33  ;;  %3586 = vtanh.f32 %v3166_v17  ;;  %v3056_v12 = vpop.f32.mrb[21].mxu0 }
 0x193   : > { %v3577_v31 = vpop.eup %3576  ;;  %v3057_v41 = vadd.f32 %v3056_v12, %v3055_v7  ;;  %v3058_v20 = vpop.f32.mrb[22].mxu0 }
 0x194   : > { %2816 = vst.msk [vmem:[%s4793_s23 + $0x130] sm:$0xff] %vm1170_vm7, %v3577_v31  ;;  %v3059_v29 = vpop.f32.mrb[23].mxu0  ;;  %v3167_v47 = vpop.f32.mrb[20].mxu1 }
 0x195   : > { %v3579_v39 = vpop.eup %3578  ;;  %3588 = vtanh.f32 %v3057_v41  ;;  %v3060_v55 = vadd.f32 %v3059_v29, %v3058_v20  ;;  %v3168_v48 = vpop.f32.mrb[21].mxu1 }
 0x196   : > { %2817 = vst.msk [vmem:[%s4793_s23 + $0x138] sm:$0xff] %vm1170_vm7, %v3579_v39  ;;  %v3169_v23 = vadd.f32 %v3168_v48, %v3167_v47  ;;  %v3170_v32 = vpop.f32.mrb[22].mxu1 }
 0x197   : > { %v3581_v37 = vpop.eup %3580  ;;  %3590 = vtanh.f32 %v3060_v55  ;;  %v3171_v38 = vpop.f32.mrb[23].mxu1 }
 0x198   : > { %1179 = vst.msk [vmem:[%s4793_s23 + $0x40] sm:$0xff] %vm1170_vm7, %v3581_v37  ;;  %3592 = vtanh.f32 %v3169_v23  ;;  %v3172_v15 = vadd.f32 %v3171_v38, %v3170_v32 }
 0x199   : > { %v3583_v52 = vpop.eup %3582  ;;  %v3061_v27 = vpop.f32.mrb[24].mxu0 }
 0x19a   : > { %v3585_v63 = vpop.eup %3584  ;;  %1180 = vst.msk [vmem:[%s4793_s23 + $0x48] sm:$0xff] %vm1170_vm7, %v3583_v52  ;;  %3594 = vtanh.f32 %v3172_v15  ;;  %v3062_v9 = vpop.f32.mrb[25].mxu0 }
 0x19b   : > { %2818 = vst.msk [vmem:[%s4793_s23 + $0x140] sm:$0xff] %vm1170_vm7, %v3585_v63  ;;  %v3063_v14 = vadd.f32 %v3062_v9, %v3061_v27  ;;  %v3064_v43 = vpop.f32.mrb[26].mxu0 }
 0x19c   : > { %v3587_v44 = vpop.eup %3586  ;;  %v3065_v42 = vpop.f32.mrb[27].mxu0 }
 0x19d   : > { %v3173_v58 = vpop.f32.mrb[24].mxu1  ;;  %2819 = vst.msk [vmem:[%s4793_s23 + $0x148] sm:$0xff] %vm1170_vm7, %v3587_v44  ;;  %3596 = vtanh.f32 %v3063_v14  ;;  %v3066_v22 = vadd.f32 %v3065_v42, %v3064_v43 }
 0x19e   : > { %v3174_v13 = vpop.f32.mrb[25].mxu1 }
 0x19f   : > { %v3175_v50 = vadd.f32 %v3174_v13, %v3173_v58  ;;  %v3176_v16 = vpop.f32.mrb[26].mxu1  ;;  %v3589_v25 = vpop.eup %3588  ;;  %3598 = vtanh.f32 %v3066_v22 }
 0x1a0   : > { %v3177_v30 = vpop.f32.mrb[27].mxu1  ;;  %1181 = vst.msk [vmem:[%s4793_s23 + $0x50] sm:$0xff] %vm1170_vm7, %v3589_v25 }
 0x1a1   : > { %3600 = vtanh.f32 %v3175_v50  ;;  %v3178_v10 = vadd.f32 %v3177_v30, %v3176_v16  ;;  %v3591_v34 = vpop.eup %3590  ;;  %v3067_v61 = vpop.f32.mrb[28].mxu0 }
 0x1a2   : > { %v3593_v21 = vpop.eup %3592  ;;  %1182 = vst.msk [vmem:[%s4793_s23 + $0x58] sm:$0xff] %vm1170_vm7, %v3591_v34  ;;  %v3068_v60 = vpop.f32.mrb[29].mxu0 }
 0x1a3   : > { %3602 = vtanh.f32 %v3178_v10  ;;  %2820 = vst.msk [vmem:[%s4793_s23 + $0x150] sm:$0xff] %vm1170_vm7, %v3593_v21  ;;  %v3069_v26 = vadd.f32 %v3068_v60, %v3067_v61  ;;  %v3070_v11 = vpop.f32.mrb[30].mxu0 }
 0x1a4   : > { %v3595_v18 = vpop.eup %3594  ;;  %v3071_v45 = vpop.f32.mrb[31].mxu0 }
 0x1a5   : > { %v3179_v56 = vpop.f32.mrb[28].mxu1  ;;  %2821 = vst.msk [vmem:[%s4793_s23 + $0x158] sm:$0xff] %vm1170_vm7, %v3595_v18  ;;  %3604 = vtanh.f32 %v3069_v26  ;;  %v3072_v54 = vadd.f32 %v3071_v45, %v3070_v11 }
 0x1a6   : > { %v3180_v28 = vpop.f32.mrb[29].mxu1 }
 0x1a7   : > { %v3181_v35 = vadd.f32 %v3180_v28, %v3179_v56  ;;  %v3182_v2 = vpop.f32.mrb[30].mxu1  ;;  %v3597_v36 = vpop.eup %3596  ;;  %3606 = vtanh.f32 %v3072_v54 }
 0x1a8   : > { %v3183_v0 = vpop.f32.mrb[31].mxu1  ;;  %1183 = vst.msk [vmem:[%s4793_s23 + $0x60] sm:$0xff] %vm1170_vm7, %v3597_v36 }
 0x1a9   : > { %3608 = vtanh.f32 %v3181_v35  ;;  %v3184_v46 = vadd.f32 %v3183_v0, %v3182_v2  ;;  %v3599_v57 = vpop.eup %3598  ;;  %v3073_v3 = vpop.f32.mrb[32].mxu0 }
 0x1aa   : > { %1184 = vst.msk [vmem:[%s4793_s23 + $0x68] sm:$0xff] %vm1170_vm7, %v3599_v57  ;;  %v3074_v53 = vpop.f32.mrb[33].mxu0 }
 0x1ab   : > { %v3601_v62 = vpop.eup %3600  ;;  %3610 = vtanh.f32 %v3184_v46  ;;  %v3075_v24 = vadd.f32 %v3074_v53, %v3073_v3  ;;  %v3076_v6 = vpop.f32.mrb[34].mxu0 }
 0x1ac   : > { %2822 = vst.msk [vmem:[%s4793_s23 + $0x160] sm:$0xff] %vm1170_vm7, %v3601_v62  ;;  %v3077_v5 = vpop.f32.mrb[35].mxu0  ;;  %v3185_v40 = vpop.f32.mrb[32].mxu1 }
 0x1ad   : > { %v3603_v1 = vpop.eup %3602  ;;  %3612 = vtanh.f32 %v3075_v24  ;;  %v3078_v51 = vadd.f32 %v3077_v5, %v3076_v6  ;;  %v3186_v49 = vpop.f32.mrb[33].mxu1 }
 0x1ae   : > { %2823 = vst.msk [vmem:[%s4793_s23 + $0x168] sm:$0xff] %vm1170_vm7, %v3603_v1  ;;  %v3187_v8 = vadd.f32 %v3186_v49, %v3185_v40  ;;  %v3188_v19 = vpop.f32.mrb[34].mxu1 }
 0x1af   : > { %v3605_v59 = vpop.eup %3604  ;;  %3614 = vtanh.f32 %v3078_v51  ;;  %v3189_v4 = vpop.f32.mrb[35].mxu1 }
 0x1b0   : > { %1185 = vst.msk [vmem:[%s4793_s23 + $0x70] sm:$0xff] %vm1170_vm7, %v3605_v59  ;;  %3616 = vtanh.f32 %v3187_v8  ;;  %v3190_v17 = vadd.f32 %v3189_v4, %v3188_v19 }
 0x1b1   : > { %v3607_v33 = vpop.eup %3606  ;;  %v3079_v7 = vpop.f32.mrb[36].mxu0 }
 0x1b2   : > { %1186 = vst.msk [vmem:[%s4793_s23 + $0x78] sm:$0xff] %vm1170_vm7, %v3607_v33  ;;  %3618 = vtanh.f32 %v3190_v17  ;;  %v3080_v12 = vpop.f32.mrb[37].mxu0 }
 0x1b3   : > { %v3609_v31 = vpop.eup %3608  ;;  %v3081_v41 = vadd.f32 %v3080_v12, %v3079_v7  ;;  %v3082_v20 = vpop.f32.mrb[38].mxu0 }
 0x1b4   : > { %2824 = vst.msk [vmem:[%s4793_s23 + $0x170] sm:$0xff] %vm1170_vm7, %v3609_v31  ;;  %v3083_v29 = vpop.f32.mrb[39].mxu0  ;;  %v3191_v47 = vpop.f32.mrb[36].mxu1 }
 0x1b5   : > { %v3611_v39 = vpop.eup %3610  ;;  %3620 = vtanh.f32 %v3081_v41  ;;  %v3084_v55 = vadd.f32 %v3083_v29, %v3082_v20  ;;  %v3192_v48 = vpop.f32.mrb[37].mxu1 }
 0x1b6   : > { %2825 = vst.msk [vmem:[%s4793_s23 + $0x178] sm:$0xff] %vm1170_vm7, %v3611_v39  ;;  %v3193_v23 = vadd.f32 %v3192_v48, %v3191_v47  ;;  %v3194_v32 = vpop.f32.mrb[38].mxu1 }
 0x1b7   : > { %v3613_v37 = vpop.eup %3612  ;;  %3622 = vtanh.f32 %v3084_v55  ;;  %v3195_v38 = vpop.f32.mrb[39].mxu1 }
 0x1b8   : > { %1187 = vst.msk [vmem:[%s4793_s23 + $0x80] sm:$0xff] %vm1170_vm7, %v3613_v37  ;;  %3624 = vtanh.f32 %v3193_v23  ;;  %v3196_v15 = vadd.f32 %v3195_v38, %v3194_v32 }
 0x1b9   : > { %v3615_v52 = vpop.eup %3614  ;;  %v3085_v27 = vpop.f32.mrb[40].mxu0 }
 0x1ba   : > { %v3617_v63 = vpop.eup %3616  ;;  %1188 = vst.msk [vmem:[%s4793_s23 + $0x88] sm:$0xff] %vm1170_vm7, %v3615_v52  ;;  %3626 = vtanh.f32 %v3196_v15  ;;  %v3086_v9 = vpop.f32.mrb[41].mxu0 }
 0x1bb   : > { %2826 = vst.msk [vmem:[%s4793_s23 + $0x180] sm:$0xff] %vm1170_vm7, %v3617_v63  ;;  %v3087_v14 = vadd.f32 %v3086_v9, %v3085_v27  ;;  %v3088_v43 = vpop.f32.mrb[42].mxu0 }
 0x1bc   : > { %v3619_v44 = vpop.eup %3618  ;;  %v3089_v42 = vpop.f32.mrb[43].mxu0 }
 0x1bd   : > { %v3197_v58 = vpop.f32.mrb[40].mxu1  ;;  %2827 = vst.msk [vmem:[%s4793_s23 + $0x188] sm:$0xff] %vm1170_vm7, %v3619_v44  ;;  %3628 = vtanh.f32 %v3087_v14  ;;  %v3090_v22 = vadd.f32 %v3089_v42, %v3088_v43 }
 0x1be   : > { %v3198_v13 = vpop.f32.mrb[41].mxu1 }
 0x1bf   : > { %v3199_v50 = vadd.f32 %v3198_v13, %v3197_v58  ;;  %v3200_v16 = vpop.f32.mrb[42].mxu1  ;;  %v3621_v25 = vpop.eup %3620  ;;  %3630 = vtanh.f32 %v3090_v22 }
 0x1c0   : > { %v3201_v30 = vpop.f32.mrb[43].mxu1  ;;  %1189 = vst.msk [vmem:[%s4793_s23 + $0x90] sm:$0xff] %vm1170_vm7, %v3621_v25 }
 0x1c1   : > { %3632 = vtanh.f32 %v3199_v50  ;;  %v3202_v10 = vadd.f32 %v3201_v30, %v3200_v16  ;;  %v3623_v34 = vpop.eup %3622  ;;  %v3091_v61 = vpop.f32.mrb[44].mxu0 }
 0x1c2   : > { %v3625_v21 = vpop.eup %3624  ;;  %1190 = vst.msk [vmem:[%s4793_s23 + $0x98] sm:$0xff] %vm1170_vm7, %v3623_v34  ;;  %v3092_v60 = vpop.f32.mrb[45].mxu0 }
 0x1c3   : > { %3634 = vtanh.f32 %v3202_v10  ;;  %2828 = vst.msk [vmem:[%s4793_s23 + $0x190] sm:$0xff] %vm1170_vm7, %v3625_v21  ;;  %v3093_v26 = vadd.f32 %v3092_v60, %v3091_v61  ;;  %v3094_v11 = vpop.f32.mrb[46].mxu0 }
 0x1c4   : > { %v3627_v18 = vpop.eup %3626  ;;  %v3095_v45 = vpop.f32.mrb[47].mxu0 }
 0x1c5   : > { %v3203_v56 = vpop.f32.mrb[44].mxu1  ;;  %2829 = vst.msk [vmem:[%s4793_s23 + $0x198] sm:$0xff] %vm1170_vm7, %v3627_v18  ;;  %3636 = vtanh.f32 %v3093_v26  ;;  %v3096_v54 = vadd.f32 %v3095_v45, %v3094_v11 }
 0x1c6   : > { %v3204_v28 = vpop.f32.mrb[45].mxu1 }
 0x1c7   : > { %v3205_v35 = vadd.f32 %v3204_v28, %v3203_v56  ;;  %v3206_v2 = vpop.f32.mrb[46].mxu1  ;;  %v3629_v36 = vpop.eup %3628  ;;  %3638 = vtanh.f32 %v3096_v54 }
 0x1c8   : > { %v3207_v0 = vpop.f32.mrb[47].mxu1  ;;  %1191 = vst.msk [vmem:[%s4793_s23 + $0xa0] sm:$0xff] %vm1170_vm7, %v3629_v36 }
 0x1c9   : > { %3640 = vtanh.f32 %v3205_v35  ;;  %v3208_v46 = vadd.f32 %v3207_v0, %v3206_v2  ;;  %v3631_v57 = vpop.eup %3630  ;;  %v3097_v3 = vpop.f32.mrb[48].mxu0 }
 0x1ca   : > { %1192 = vst.msk [vmem:[%s4793_s23 + $0xa8] sm:$0xff] %vm1170_vm7, %v3631_v57  ;;  %v3098_v53 = vpop.f32.mrb[49].mxu0 }
 0x1cb   : > { %v3633_v62 = vpop.eup %3632  ;;  %3642 = vtanh.f32 %v3208_v46  ;;  %v3099_v24 = vadd.f32 %v3098_v53, %v3097_v3  ;;  %v3100_v6 = vpop.f32.mrb[50].mxu0 }
 0x1cc   : > { %2830 = vst.msk [vmem:[%s4793_s23 + $0x1a0] sm:$0xff] %vm1170_vm7, %v3633_v62  ;;  %v3101_v5 = vpop.f32.mrb[51].mxu0  ;;  %v3209_v40 = vpop.f32.mrb[48].mxu1 }
 0x1cd   : > { %v3635_v1 = vpop.eup %3634  ;;  %3644 = vtanh.f32 %v3099_v24  ;;  %v3102_v51 = vadd.f32 %v3101_v5, %v3100_v6  ;;  %v3210_v49 = vpop.f32.mrb[49].mxu1 }
 0x1ce   : > { %2831 = vst.msk [vmem:[%s4793_s23 + $0x1a8] sm:$0xff] %vm1170_vm7, %v3635_v1  ;;  %v3211_v8 = vadd.f32 %v3210_v49, %v3209_v40  ;;  %v3212_v19 = vpop.f32.mrb[50].mxu1 }
 0x1cf   : > { %v3637_v59 = vpop.eup %3636  ;;  %3646 = vtanh.f32 %v3102_v51  ;;  %v3213_v4 = vpop.f32.mrb[51].mxu1 }
 0x1d0   : > { %1193 = vst.msk [vmem:[%s4793_s23 + $0xb0] sm:$0xff] %vm1170_vm7, %v3637_v59  ;;  %3648 = vtanh.f32 %v3211_v8  ;;  %v3214_v17 = vadd.f32 %v3213_v4, %v3212_v19 }
 0x1d1   : > { %v3639_v33 = vpop.eup %3638  ;;  %v3103_v7 = vpop.f32.mrb[52].mxu0 }
 0x1d2   : > { %1194 = vst.msk [vmem:[%s4793_s23 + $0xb8] sm:$0xff] %vm1170_vm7, %v3639_v33  ;;  %3650 = vtanh.f32 %v3214_v17  ;;  %v3104_v12 = vpop.f32.mrb[53].mxu0 }
 0x1d3   : > { %v3641_v31 = vpop.eup %3640  ;;  %v3105_v41 = vadd.f32 %v3104_v12, %v3103_v7  ;;  %v3106_v20 = vpop.f32.mrb[54].mxu0 }
 0x1d4   : > { %2832 = vst.msk [vmem:[%s4793_s23 + $0x1b0] sm:$0xff] %vm1170_vm7, %v3641_v31  ;;  %v3107_v29 = vpop.f32.mrb[55].mxu0  ;;  %v3215_v47 = vpop.f32.mrb[52].mxu1 }
 0x1d5   : > { %v3643_v39 = vpop.eup %3642  ;;  %3652 = vtanh.f32 %v3105_v41  ;;  %v3108_v55 = vadd.f32 %v3107_v29, %v3106_v20  ;;  %v3216_v48 = vpop.f32.mrb[53].mxu1 }
 0x1d6   : > { %2833 = vst.msk [vmem:[%s4793_s23 + $0x1b8] sm:$0xff] %vm1170_vm7, %v3643_v39  ;;  %v3217_v23 = vadd.f32 %v3216_v48, %v3215_v47  ;;  %v3218_v32 = vpop.f32.mrb[54].mxu1 }
 0x1d7   : > { %v3645_v37 = vpop.eup %3644  ;;  %3654 = vtanh.f32 %v3108_v55  ;;  %v3219_v38 = vpop.f32.mrb[55].mxu1 }
 0x1d8   : > { %1195 = vst.msk [vmem:[%s4793_s23 + $0xc0] sm:$0xff] %vm1170_vm7, %v3645_v37  ;;  %3656 = vtanh.f32 %v3217_v23  ;;  %v3220_v15 = vadd.f32 %v3219_v38, %v3218_v32 }
 0x1d9   : > { %v3647_v52 = vpop.eup %3646  ;;  %v3109_v27 = vpop.f32.mrb[56].mxu0 }
 0x1da   : > { %v3649_v63 = vpop.eup %3648  ;;  %1196 = vst.msk [vmem:[%s4793_s23 + $0xc8] sm:$0xff] %vm1170_vm7, %v3647_v52  ;;  %3658 = vtanh.f32 %v3220_v15  ;;  %v3110_v9 = vpop.f32.mrb[57].mxu0 }
 0x1db   : > { %2834 = vst.msk [vmem:[%s4793_s23 + $0x1c0] sm:$0xff] %vm1170_vm7, %v3649_v63  ;;  %v3111_v14 = vadd.f32 %v3110_v9, %v3109_v27  ;;  %v3112_v43 = vpop.f32.mrb[58].mxu0 }
 0x1dc   : > { %v3651_v44 = vpop.eup %3650  ;;  %v3113_v42 = vpop.f32.mrb[59].mxu0 }
 0x1dd   : > { %v3221_v58 = vpop.f32.mrb[56].mxu1  ;;  %2835 = vst.msk [vmem:[%s4793_s23 + $0x1c8] sm:$0xff] %vm1170_vm7, %v3651_v44  ;;  %3660 = vtanh.f32 %v3111_v14  ;;  %v3114_v22 = vadd.f32 %v3113_v42, %v3112_v43 }
 0x1de   : > { %v3222_v13 = vpop.f32.mrb[57].mxu1 }
 0x1df   : > { %v3223_v50 = vadd.f32 %v3222_v13, %v3221_v58  ;;  %v3224_v16 = vpop.f32.mrb[58].mxu1  ;;  %v3653_v25 = vpop.eup %3652  ;;  %3662 = vtanh.f32 %v3114_v22 }
 0x1e0   : > { %v3225_v30 = vpop.f32.mrb[59].mxu1  ;;  %1197 = vst.msk [vmem:[%s4793_s23 + $0xd0] sm:$0xff] %vm1170_vm7, %v3653_v25 }
 0x1e1   : > { %3664 = vtanh.f32 %v3223_v50  ;;  %v3226_v10 = vadd.f32 %v3225_v30, %v3224_v16  ;;  %v3655_v34 = vpop.eup %3654  ;;  %v3115_v61 = vpop.f32.mrb[60].mxu0 }
 0x1e2   : > { %v3657_v21 = vpop.eup %3656  ;;  %1198 = vst.msk [vmem:[%s4793_s23 + $0xd8] sm:$0xff] %vm1170_vm7, %v3655_v34  ;;  %v3116_v60 = vpop.f32.mrb[61].mxu0 }
 0x1e3   : > { %3666 = vtanh.f32 %v3226_v10  ;;  %2836 = vst.msk [vmem:[%s4793_s23 + $0x1d0] sm:$0xff] %vm1170_vm7, %v3657_v21  ;;  %v3117_v26 = vadd.f32 %v3116_v60, %v3115_v61  ;;  %v3118_v11 = vpop.f32.mrb[62].mxu0 }
 0x1e4   : > { %v3659_v18 = vpop.eup %3658  ;;  %v3119_v45 = vpop.f32.mrb[63].mxu0 }
 0x1e5   : > { %v3227_v56 = vpop.f32.mrb[60].mxu1  ;;  %2837 = vst.msk [vmem:[%s4793_s23 + $0x1d8] sm:$0xff] %vm1170_vm7, %v3659_v18  ;;  %3668 = vtanh.f32 %v3117_v26  ;;  %v3120_v54 = vadd.f32 %v3119_v45, %v3118_v11 }
 0x1e6   : > { %v3228_v28 = vpop.f32.mrb[61].mxu1 }
 0x1e7   : > { %v3229_v35 = vadd.f32 %v3228_v28, %v3227_v56  ;;  %v3230_v2 = vpop.f32.mrb[62].mxu1  ;;  %v3661_v36 = vpop.eup %3660  ;;  %3670 = vtanh.f32 %v3120_v54 }
 0x1e8   : > { %v3231_v0 = vpop.f32.mrb[63].mxu1  ;;  %1199 = vst.msk [vmem:[%s4793_s23 + $0xe0] sm:$0xff] %vm1170_vm7, %v3661_v36 }
 0x1e9   : > { %3672 = vtanh.f32 %v3229_v35  ;;  %v3232_v46 = vadd.f32 %v3231_v0, %v3230_v2  ;;  %v3663_v57 = vpop.eup %3662  ;;  %v3249_v3 = vpop.f32.mrb[64].mxu0 }
 0x1ea   : > { %1200 = vst.msk [vmem:[%s4793_s23 + $0xe8] sm:$0xff] %vm1170_vm7, %v3663_v57  ;;  %v3250_v53 = vpop.f32.mrb[65].mxu0 }
 0x1eb   : > { %v3665_v62 = vpop.eup %3664  ;;  %3674 = vtanh.f32 %v3232_v46  ;;  %v3251_v24 = vadd.f32 %v3250_v53, %v3249_v3  ;;  %v3252_v6 = vpop.f32.mrb[66].mxu0 }
 0x1ec   : > { %2838 = vst.msk [vmem:[%s4793_s23 + $0x1e0] sm:$0xff] %vm1170_vm7, %v3665_v62  ;;  %v3253_v5 = vpop.f32.mrb[67].mxu0  ;;  %v3361_v40 = vpop.f32.mrb[64].mxu1 }
 0x1ed   : > { %v3667_v1 = vpop.eup %3666  ;;  %3676 = vtanh.f32 %v3251_v24  ;;  %v3254_v51 = vadd.f32 %v3253_v5, %v3252_v6  ;;  %v3362_v49 = vpop.f32.mrb[65].mxu1 }
 0x1ee   : > { %2839 = vst.msk [vmem:[%s4793_s23 + $0x1e8] sm:$0xff] %vm1170_vm7, %v3667_v1  ;;  %v3363_v8 = vadd.f32 %v3362_v49, %v3361_v40  ;;  %v3364_v19 = vpop.f32.mrb[66].mxu1 }
 0x1ef   : > { %v3669_v59 = vpop.eup %3668  ;;  %3678 = vtanh.f32 %v3254_v51  ;;  %v3365_v4 = vpop.f32.mrb[67].mxu1 }
 0x1f0   : > { %1201 = vst.msk [vmem:[%s4793_s23 + $0xf0] sm:$0xff] %vm1170_vm7, %v3669_v59  ;;  %3680 = vtanh.f32 %v3363_v8  ;;  %v3366_v17 = vadd.f32 %v3365_v4, %v3364_v19 }
 0x1f1   : > { %v3671_v33 = vpop.eup %3670  ;;  %v3255_v7 = vpop.f32.mrb[68].mxu0 }
 0x1f2   : > { %1202 = vst.msk [vmem:[%s4793_s23 + $0xf8] sm:$0xff] %vm1170_vm7, %v3671_v33  ;;  %3682 = vtanh.f32 %v3366_v17  ;;  %v3256_v12 = vpop.f32.mrb[69].mxu0 }
 0x1f3   : > { %v3673_v31 = vpop.eup %3672  ;;  %v3257_v41 = vadd.f32 %v3256_v12, %v3255_v7  ;;  %v3258_v20 = vpop.f32.mrb[70].mxu0 }
 0x1f4   : > { %2840 = vst.msk [vmem:[%s4793_s23 + $0x1f0] sm:$0xff] %vm1170_vm7, %v3673_v31  ;;  %v3259_v29 = vpop.f32.mrb[71].mxu0  ;;  %v3367_v47 = vpop.f32.mrb[68].mxu1 }
 0x1f5   : > { %v3675_v39 = vpop.eup %3674  ;;  %3684 = vtanh.f32 %v3257_v41  ;;  %v3260_v55 = vadd.f32 %v3259_v29, %v3258_v20  ;;  %v3368_v48 = vpop.f32.mrb[69].mxu1 }
 0x1f6   : > { %2841 = vst.msk [vmem:[%s4793_s23 + $0x1f8] sm:$0xff] %vm1170_vm7, %v3675_v39  ;;  %v3369_v23 = vadd.f32 %v3368_v48, %v3367_v47  ;;  %v3370_v32 = vpop.f32.mrb[70].mxu1 }
 0x1f7   : > { %v3677_v37 = vpop.eup %3676  ;;  %3686 = vtanh.f32 %v3260_v55  ;;  %v3371_v38 = vpop.f32.mrb[71].mxu1 }
 0x1f8   : > { %2892 = vst.msk [vmem:[%s4793_s23 + $0x200] sm:$0xff] %vm1170_vm7, %v3677_v37  ;;  %3688 = vtanh.f32 %v3369_v23  ;;  %v3372_v15 = vadd.f32 %v3371_v38, %v3370_v32 }
 0x1f9   : > { %v3679_v52 = vpop.eup %3678  ;;  %v3261_v27 = vpop.f32.mrb[72].mxu0 }
 0x1fa   : > { %v3681_v63 = vpop.eup %3680  ;;  %2893 = vst.msk [vmem:[%s4793_s23 + $0x208] sm:$0xff] %vm1170_vm7, %v3679_v52  ;;  %3690 = vtanh.f32 %v3372_v15  ;;  %v3262_v9 = vpop.f32.mrb[73].mxu0 }
 0x1fb   : > { %2974 = vst.msk [vmem:[%s4793_s23 + $0x300] sm:$0xff] %vm1170_vm7, %v3681_v63  ;;  %v3263_v14 = vadd.f32 %v3262_v9, %v3261_v27  ;;  %v3264_v43 = vpop.f32.mrb[74].mxu0 }
 0x1fc   : > { %v3683_v44 = vpop.eup %3682  ;;  %v3265_v42 = vpop.f32.mrb[75].mxu0 }
 0x1fd   : > { %v3373_v58 = vpop.f32.mrb[72].mxu1  ;;  %2975 = vst.msk [vmem:[%s4793_s23 + $0x308] sm:$0xff] %vm1170_vm7, %v3683_v44  ;;  %3692 = vtanh.f32 %v3263_v14  ;;  %v3266_v22 = vadd.f32 %v3265_v42, %v3264_v43 }
 0x1fe   : > { %v3374_v13 = vpop.f32.mrb[73].mxu1 }
 0x1ff   : > { %v3375_v50 = vadd.f32 %v3374_v13, %v3373_v58  ;;  %v3376_v16 = vpop.f32.mrb[74].mxu1  ;;  %v3685_v25 = vpop.eup %3684  ;;  %3694 = vtanh.f32 %v3266_v22 }
 0x200   : > { %v3377_v30 = vpop.f32.mrb[75].mxu1  ;;  %2894 = vst.msk [vmem:[%s4793_s23 + $0x210] sm:$0xff] %vm1170_vm7, %v3685_v25 }
 0x201   : > { %3696 = vtanh.f32 %v3375_v50  ;;  %v3378_v10 = vadd.f32 %v3377_v30, %v3376_v16  ;;  %v3687_v34 = vpop.eup %3686  ;;  %v3267_v61 = vpop.f32.mrb[76].mxu0 }
 0x202   : > { %v3689_v21 = vpop.eup %3688  ;;  %2895 = vst.msk [vmem:[%s4793_s23 + $0x218] sm:$0xff] %vm1170_vm7, %v3687_v34  ;;  %v3268_v60 = vpop.f32.mrb[77].mxu0 }
 0x203   : > { %3698 = vtanh.f32 %v3378_v10  ;;  %2976 = vst.msk [vmem:[%s4793_s23 + $0x310] sm:$0xff] %vm1170_vm7, %v3689_v21  ;;  %v3269_v26 = vadd.f32 %v3268_v60, %v3267_v61  ;;  %v3270_v11 = vpop.f32.mrb[78].mxu0 }
 0x204   : > { %v3691_v18 = vpop.eup %3690  ;;  %v3271_v45 = vpop.f32.mrb[79].mxu0 }
 0x205   : > { %v3379_v56 = vpop.f32.mrb[76].mxu1  ;;  %2977 = vst.msk [vmem:[%s4793_s23 + $0x318] sm:$0xff] %vm1170_vm7, %v3691_v18  ;;  %3700 = vtanh.f32 %v3269_v26  ;;  %v3272_v54 = vadd.f32 %v3271_v45, %v3270_v11 }
 0x206   : > { %v3380_v28 = vpop.f32.mrb[77].mxu1 }
 0x207   : > { %v3381_v35 = vadd.f32 %v3380_v28, %v3379_v56  ;;  %v3382_v2 = vpop.f32.mrb[78].mxu1  ;;  %v3693_v36 = vpop.eup %3692  ;;  %3702 = vtanh.f32 %v3272_v54 }
 0x208   : > { %v3383_v0 = vpop.f32.mrb[79].mxu1  ;;  %2896 = vst.msk [vmem:[%s4793_s23 + $0x220] sm:$0xff] %vm1170_vm7, %v3693_v36 }
 0x209   : > { %3704 = vtanh.f32 %v3381_v35  ;;  %v3384_v46 = vadd.f32 %v3383_v0, %v3382_v2  ;;  %v3695_v57 = vpop.eup %3694  ;;  %v3273_v3 = vpop.f32.mrb[80].mxu0 }
 0x20a   : > { %2897 = vst.msk [vmem:[%s4793_s23 + $0x228] sm:$0xff] %vm1170_vm7, %v3695_v57  ;;  %v3274_v53 = vpop.f32.mrb[81].mxu0 }
 0x20b   : > { %v3697_v62 = vpop.eup %3696  ;;  %3706 = vtanh.f32 %v3384_v46  ;;  %v3275_v24 = vadd.f32 %v3274_v53, %v3273_v3  ;;  %v3276_v6 = vpop.f32.mrb[82].mxu0 }
 0x20c   : > { %2978 = vst.msk [vmem:[%s4793_s23 + $0x320] sm:$0xff] %vm1170_vm7, %v3697_v62  ;;  %v3277_v5 = vpop.f32.mrb[83].mxu0  ;;  %v3385_v40 = vpop.f32.mrb[80].mxu1 }
 0x20d   : > { %v3699_v1 = vpop.eup %3698  ;;  %3708 = vtanh.f32 %v3275_v24  ;;  %v3278_v51 = vadd.f32 %v3277_v5, %v3276_v6  ;;  %v3386_v49 = vpop.f32.mrb[81].mxu1 }
 0x20e   : > { %2979 = vst.msk [vmem:[%s4793_s23 + $0x328] sm:$0xff] %vm1170_vm7, %v3699_v1  ;;  %v3387_v8 = vadd.f32 %v3386_v49, %v3385_v40  ;;  %v3388_v19 = vpop.f32.mrb[82].mxu1 }
 0x20f   : > { %v3701_v59 = vpop.eup %3700  ;;  %3710 = vtanh.f32 %v3278_v51  ;;  %v3389_v4 = vpop.f32.mrb[83].mxu1 }
 0x210   : > { %2898 = vst.msk [vmem:[%s4793_s23 + $0x230] sm:$0xff] %vm1170_vm7, %v3701_v59  ;;  %3712 = vtanh.f32 %v3387_v8  ;;  %v3390_v17 = vadd.f32 %v3389_v4, %v3388_v19 }
 0x211   : > { %v3703_v33 = vpop.eup %3702  ;;  %v3279_v7 = vpop.f32.mrb[84].mxu0 }
 0x212   : > { %2899 = vst.msk [vmem:[%s4793_s23 + $0x238] sm:$0xff] %vm1170_vm7, %v3703_v33  ;;  %3714 = vtanh.f32 %v3390_v17  ;;  %v3280_v12 = vpop.f32.mrb[85].mxu0 }
 0x213   : > { %v3705_v31 = vpop.eup %3704  ;;  %v3281_v41 = vadd.f32 %v3280_v12, %v3279_v7  ;;  %v3282_v20 = vpop.f32.mrb[86].mxu0 }
 0x214   : > { %2980 = vst.msk [vmem:[%s4793_s23 + $0x330] sm:$0xff] %vm1170_vm7, %v3705_v31  ;;  %v3283_v29 = vpop.f32.mrb[87].mxu0  ;;  %v3391_v47 = vpop.f32.mrb[84].mxu1 }
 0x215   : > { %v3707_v39 = vpop.eup %3706  ;;  %3716 = vtanh.f32 %v3281_v41  ;;  %v3284_v55 = vadd.f32 %v3283_v29, %v3282_v20  ;;  %v3392_v48 = vpop.f32.mrb[85].mxu1 }
 0x216   : > { %2981 = vst.msk [vmem:[%s4793_s23 + $0x338] sm:$0xff] %vm1170_vm7, %v3707_v39  ;;  %v3393_v23 = vadd.f32 %v3392_v48, %v3391_v47  ;;  %v3394_v32 = vpop.f32.mrb[86].mxu1 }
 0x217   : > { %v3709_v37 = vpop.eup %3708  ;;  %3718 = vtanh.f32 %v3284_v55  ;;  %v3395_v38 = vpop.f32.mrb[87].mxu1 }
 0x218   : > { %2900 = vst.msk [vmem:[%s4793_s23 + $0x240] sm:$0xff] %vm1170_vm7, %v3709_v37  ;;  %3720 = vtanh.f32 %v3393_v23  ;;  %v3396_v15 = vadd.f32 %v3395_v38, %v3394_v32 }
 0x219   : > { %v3711_v52 = vpop.eup %3710  ;;  %v3285_v27 = vpop.f32.mrb[88].mxu0 }
 0x21a   : > { %v3713_v63 = vpop.eup %3712  ;;  %2901 = vst.msk [vmem:[%s4793_s23 + $0x248] sm:$0xff] %vm1170_vm7, %v3711_v52  ;;  %3722 = vtanh.f32 %v3396_v15  ;;  %v3286_v9 = vpop.f32.mrb[89].mxu0 }
 0x21b   : > { %2982 = vst.msk [vmem:[%s4793_s23 + $0x340] sm:$0xff] %vm1170_vm7, %v3713_v63  ;;  %v3287_v14 = vadd.f32 %v3286_v9, %v3285_v27  ;;  %v3288_v43 = vpop.f32.mrb[90].mxu0 }
 0x21c   : > { %v3715_v44 = vpop.eup %3714  ;;  %v3289_v42 = vpop.f32.mrb[91].mxu0 }
 0x21d   : > { %v3397_v58 = vpop.f32.mrb[88].mxu1  ;;  %2983 = vst.msk [vmem:[%s4793_s23 + $0x348] sm:$0xff] %vm1170_vm7, %v3715_v44  ;;  %3724 = vtanh.f32 %v3287_v14  ;;  %v3290_v22 = vadd.f32 %v3289_v42, %v3288_v43 }
 0x21e   : > { %v3398_v13 = vpop.f32.mrb[89].mxu1 }
 0x21f   : > { %v3399_v50 = vadd.f32 %v3398_v13, %v3397_v58  ;;  %v3400_v16 = vpop.f32.mrb[90].mxu1  ;;  %v3717_v25 = vpop.eup %3716  ;;  %3726 = vtanh.f32 %v3290_v22 }
 0x220   : > { %v3401_v30 = vpop.f32.mrb[91].mxu1  ;;  %2902 = vst.msk [vmem:[%s4793_s23 + $0x250] sm:$0xff] %vm1170_vm7, %v3717_v25 }
 0x221   : > { %3728 = vtanh.f32 %v3399_v50  ;;  %v3402_v10 = vadd.f32 %v3401_v30, %v3400_v16  ;;  %v3719_v34 = vpop.eup %3718  ;;  %v3291_v61 = vpop.f32.mrb[92].mxu0 }
 0x222   : > { %v3721_v21 = vpop.eup %3720  ;;  %2903 = vst.msk [vmem:[%s4793_s23 + $0x258] sm:$0xff] %vm1170_vm7, %v3719_v34  ;;  %v3292_v60 = vpop.f32.mrb[93].mxu0 }
 0x223   : > { %3730 = vtanh.f32 %v3402_v10  ;;  %2984 = vst.msk [vmem:[%s4793_s23 + $0x350] sm:$0xff] %vm1170_vm7, %v3721_v21  ;;  %v3293_v26 = vadd.f32 %v3292_v60, %v3291_v61  ;;  %v3294_v11 = vpop.f32.mrb[94].mxu0 }
 0x224   : > { %v3723_v18 = vpop.eup %3722  ;;  %v3295_v45 = vpop.f32.mrb[95].mxu0 }
 0x225   : > { %v3403_v56 = vpop.f32.mrb[92].mxu1  ;;  %2985 = vst.msk [vmem:[%s4793_s23 + $0x358] sm:$0xff] %vm1170_vm7, %v3723_v18  ;;  %3732 = vtanh.f32 %v3293_v26  ;;  %v3296_v54 = vadd.f32 %v3295_v45, %v3294_v11 }
 0x226   : > { %v3404_v28 = vpop.f32.mrb[93].mxu1 }
 0x227   : > { %v3405_v35 = vadd.f32 %v3404_v28, %v3403_v56  ;;  %v3406_v2 = vpop.f32.mrb[94].mxu1  ;;  %v3725_v36 = vpop.eup %3724  ;;  %3734 = vtanh.f32 %v3296_v54 }
 0x228   : > { %v3407_v0 = vpop.f32.mrb[95].mxu1  ;;  %2904 = vst.msk [vmem:[%s4793_s23 + $0x260] sm:$0xff] %vm1170_vm7, %v3725_v36 }
 0x229   : > { %3736 = vtanh.f32 %v3405_v35  ;;  %v3408_v46 = vadd.f32 %v3407_v0, %v3406_v2  ;;  %v3727_v57 = vpop.eup %3726  ;;  %v3297_v3 = vpop.f32.mrb[96].mxu0 }
 0x22a   : > { %2905 = vst.msk [vmem:[%s4793_s23 + $0x268] sm:$0xff] %vm1170_vm7, %v3727_v57  ;;  %v3298_v53 = vpop.f32.mrb[97].mxu0 }
 0x22b   : > { %v3729_v62 = vpop.eup %3728  ;;  %3738 = vtanh.f32 %v3408_v46  ;;  %v3299_v24 = vadd.f32 %v3298_v53, %v3297_v3  ;;  %v3300_v6 = vpop.f32.mrb[98].mxu0 }
 0x22c   : > { %2986 = vst.msk [vmem:[%s4793_s23 + $0x360] sm:$0xff] %vm1170_vm7, %v3729_v62  ;;  %v3301_v5 = vpop.f32.mrb[99].mxu0  ;;  %v3409_v40 = vpop.f32.mrb[96].mxu1 }
 0x22d   : > { %v3731_v1 = vpop.eup %3730  ;;  %3740 = vtanh.f32 %v3299_v24  ;;  %v3302_v51 = vadd.f32 %v3301_v5, %v3300_v6  ;;  %v3410_v49 = vpop.f32.mrb[97].mxu1 }
 0x22e   : > { %2987 = vst.msk [vmem:[%s4793_s23 + $0x368] sm:$0xff] %vm1170_vm7, %v3731_v1  ;;  %v3411_v8 = vadd.f32 %v3410_v49, %v3409_v40  ;;  %v3412_v19 = vpop.f32.mrb[98].mxu1 }
 0x22f   : > { %v3733_v59 = vpop.eup %3732  ;;  %3742 = vtanh.f32 %v3302_v51  ;;  %v3413_v4 = vpop.f32.mrb[99].mxu1 }
 0x230   : > { %2906 = vst.msk [vmem:[%s4793_s23 + $0x270] sm:$0xff] %vm1170_vm7, %v3733_v59  ;;  %3744 = vtanh.f32 %v3411_v8  ;;  %v3414_v17 = vadd.f32 %v3413_v4, %v3412_v19 }
 0x231   : > { %v3735_v33 = vpop.eup %3734  ;;  %v3303_v7 = vpop.f32.mrb[100].mxu0 }
 0x232   : > { %2907 = vst.msk [vmem:[%s4793_s23 + $0x278] sm:$0xff] %vm1170_vm7, %v3735_v33  ;;  %3746 = vtanh.f32 %v3414_v17  ;;  %v3304_v12 = vpop.f32.mrb[101].mxu0 }
 0x233   : > { %v3737_v31 = vpop.eup %3736  ;;  %v3305_v41 = vadd.f32 %v3304_v12, %v3303_v7  ;;  %v3306_v20 = vpop.f32.mrb[102].mxu0 }
 0x234   : > { %2988 = vst.msk [vmem:[%s4793_s23 + $0x370] sm:$0xff] %vm1170_vm7, %v3737_v31  ;;  %v3307_v29 = vpop.f32.mrb[103].mxu0  ;;  %v3415_v47 = vpop.f32.mrb[100].mxu1 }
 0x235   : > { %v3739_v39 = vpop.eup %3738  ;;  %3748 = vtanh.f32 %v3305_v41  ;;  %v3308_v55 = vadd.f32 %v3307_v29, %v3306_v20  ;;  %v3416_v48 = vpop.f32.mrb[101].mxu1 }
 0x236   : > { %2989 = vst.msk [vmem:[%s4793_s23 + $0x378] sm:$0xff] %vm1170_vm7, %v3739_v39  ;;  %v3417_v23 = vadd.f32 %v3416_v48, %v3415_v47  ;;  %v3418_v32 = vpop.f32.mrb[102].mxu1 }
 0x237   : > { %v3741_v37 = vpop.eup %3740  ;;  %3750 = vtanh.f32 %v3308_v55  ;;  %v3419_v38 = vpop.f32.mrb[103].mxu1 }
 0x238   : > { %2908 = vst.msk [vmem:[%s4793_s23 + $0x280] sm:$0xff] %vm1170_vm7, %v3741_v37  ;;  %3752 = vtanh.f32 %v3417_v23  ;;  %v3420_v15 = vadd.f32 %v3419_v38, %v3418_v32 }
 0x239   : > { %v3743_v52 = vpop.eup %3742  ;;  %v3309_v27 = vpop.f32.mrb[104].mxu0 }
 0x23a   : > { %v3745_v63 = vpop.eup %3744  ;;  %2909 = vst.msk [vmem:[%s4793_s23 + $0x288] sm:$0xff] %vm1170_vm7, %v3743_v52  ;;  %3754 = vtanh.f32 %v3420_v15  ;;  %v3310_v9 = vpop.f32.mrb[105].mxu0 }
 0x23b   : > { %2990 = vst.msk [vmem:[%s4793_s23 + $0x380] sm:$0xff] %vm1170_vm7, %v3745_v63  ;;  %v3311_v14 = vadd.f32 %v3310_v9, %v3309_v27  ;;  %v3312_v43 = vpop.f32.mrb[106].mxu0 }
 0x23c   : > { %v3747_v44 = vpop.eup %3746  ;;  %v3313_v42 = vpop.f32.mrb[107].mxu0 }
 0x23d   : > { %v3421_v58 = vpop.f32.mrb[104].mxu1  ;;  %2991 = vst.msk [vmem:[%s4793_s23 + $0x388] sm:$0xff] %vm1170_vm7, %v3747_v44  ;;  %3756 = vtanh.f32 %v3311_v14  ;;  %v3314_v22 = vadd.f32 %v3313_v42, %v3312_v43 }
 0x23e   : > { %v3422_v13 = vpop.f32.mrb[105].mxu1 }
 0x23f   : > { %v3423_v50 = vadd.f32 %v3422_v13, %v3421_v58  ;;  %v3424_v16 = vpop.f32.mrb[106].mxu1  ;;  %v3749_v25 = vpop.eup %3748  ;;  %3758 = vtanh.f32 %v3314_v22 }
 0x240   : > { %v3425_v30 = vpop.f32.mrb[107].mxu1  ;;  %2910 = vst.msk [vmem:[%s4793_s23 + $0x290] sm:$0xff] %vm1170_vm7, %v3749_v25 }
 0x241   : > { %3760 = vtanh.f32 %v3423_v50  ;;  %v3426_v10 = vadd.f32 %v3425_v30, %v3424_v16  ;;  %v3751_v34 = vpop.eup %3750  ;;  %v3315_v61 = vpop.f32.mrb[108].mxu0 }
 0x242   : > { %v3753_v21 = vpop.eup %3752  ;;  %2911 = vst.msk [vmem:[%s4793_s23 + $0x298] sm:$0xff] %vm1170_vm7, %v3751_v34  ;;  %v3316_v60 = vpop.f32.mrb[109].mxu0 }
 0x243   : > { %3762 = vtanh.f32 %v3426_v10  ;;  %2992 = vst.msk [vmem:[%s4793_s23 + $0x390] sm:$0xff] %vm1170_vm7, %v3753_v21  ;;  %v3317_v26 = vadd.f32 %v3316_v60, %v3315_v61  ;;  %v3318_v11 = vpop.f32.mrb[110].mxu0 }
 0x244   : > { %v3755_v18 = vpop.eup %3754  ;;  %v3319_v45 = vpop.f32.mrb[111].mxu0 }
 0x245   : > { %v3427_v56 = vpop.f32.mrb[108].mxu1  ;;  %2993 = vst.msk [vmem:[%s4793_s23 + $0x398] sm:$0xff] %vm1170_vm7, %v3755_v18  ;;  %3764 = vtanh.f32 %v3317_v26  ;;  %v3320_v54 = vadd.f32 %v3319_v45, %v3318_v11 }
 0x246   : > { %v3428_v28 = vpop.f32.mrb[109].mxu1 }
 0x247   : > { %v3429_v35 = vadd.f32 %v3428_v28, %v3427_v56  ;;  %v3430_v2 = vpop.f32.mrb[110].mxu1  ;;  %v3757_v36 = vpop.eup %3756  ;;  %3766 = vtanh.f32 %v3320_v54 }
 0x248   : > { %v3431_v0 = vpop.f32.mrb[111].mxu1  ;;  %2912 = vst.msk [vmem:[%s4793_s23 + $0x2a0] sm:$0xff] %vm1170_vm7, %v3757_v36 }
 0x249   : > { %3768 = vtanh.f32 %v3429_v35  ;;  %v3432_v46 = vadd.f32 %v3431_v0, %v3430_v2  ;;  %v3759_v57 = vpop.eup %3758  ;;  %v3321_v3 = vpop.f32.mrb[112].mxu0 }
 0x24a   : > { %2913 = vst.msk [vmem:[%s4793_s23 + $0x2a8] sm:$0xff] %vm1170_vm7, %v3759_v57  ;;  %v3322_v53 = vpop.f32.mrb[113].mxu0 }
 0x24b   : > { %v3761_v62 = vpop.eup %3760  ;;  %3770 = vtanh.f32 %v3432_v46  ;;  %v3323_v24 = vadd.f32 %v3322_v53, %v3321_v3  ;;  %v3324_v6 = vpop.f32.mrb[114].mxu0 }
 0x24c   : > { %2994 = vst.msk [vmem:[%s4793_s23 + $0x3a0] sm:$0xff] %vm1170_vm7, %v3761_v62  ;;  %v3325_v5 = vpop.f32.mrb[115].mxu0  ;;  %v3433_v40 = vpop.f32.mrb[112].mxu1 }
 0x24d   : > { %v3763_v1 = vpop.eup %3762  ;;  %3772 = vtanh.f32 %v3323_v24  ;;  %v3326_v51 = vadd.f32 %v3325_v5, %v3324_v6  ;;  %v3434_v49 = vpop.f32.mrb[113].mxu1 }
 0x24e   : > { %2995 = vst.msk [vmem:[%s4793_s23 + $0x3a8] sm:$0xff] %vm1170_vm7, %v3763_v1  ;;  %v3435_v8 = vadd.f32 %v3434_v49, %v3433_v40  ;;  %v3436_v19 = vpop.f32.mrb[114].mxu1 }
 0x24f   : > { %v3765_v59 = vpop.eup %3764  ;;  %3774 = vtanh.f32 %v3326_v51  ;;  %v3437_v4 = vpop.f32.mrb[115].mxu1 }
 0x250   : > { %2914 = vst.msk [vmem:[%s4793_s23 + $0x2b0] sm:$0xff] %vm1170_vm7, %v3765_v59  ;;  %3776 = vtanh.f32 %v3435_v8  ;;  %v3438_v17 = vadd.f32 %v3437_v4, %v3436_v19 }
 0x251   : > { %v3767_v33 = vpop.eup %3766  ;;  %v3327_v7 = vpop.f32.mrb[116].mxu0 }
 0x252   : > { %2915 = vst.msk [vmem:[%s4793_s23 + $0x2b8] sm:$0xff] %vm1170_vm7, %v3767_v33  ;;  %3778 = vtanh.f32 %v3438_v17  ;;  %v3328_v12 = vpop.f32.mrb[117].mxu0 }
 0x253   : > { %v3769_v31 = vpop.eup %3768  ;;  %v3329_v41 = vadd.f32 %v3328_v12, %v3327_v7  ;;  %v3330_v20 = vpop.f32.mrb[118].mxu0 }
 0x254   : > { %2996 = vst.msk [vmem:[%s4793_s23 + $0x3b0] sm:$0xff] %vm1170_vm7, %v3769_v31  ;;  %v3331_v29 = vpop.f32.mrb[119].mxu0  ;;  %v3439_v47 = vpop.f32.mrb[116].mxu1 }
 0x255   : > { %v3771_v39 = vpop.eup %3770  ;;  %3780 = vtanh.f32 %v3329_v41  ;;  %v3332_v55 = vadd.f32 %v3331_v29, %v3330_v20  ;;  %v3440_v48 = vpop.f32.mrb[117].mxu1 }
 0x256   : > { %2997 = vst.msk [vmem:[%s4793_s23 + $0x3b8] sm:$0xff] %vm1170_vm7, %v3771_v39  ;;  %v3441_v23 = vadd.f32 %v3440_v48, %v3439_v47  ;;  %v3442_v32 = vpop.f32.mrb[118].mxu1 }
 0x257   : > { %v3773_v37 = vpop.eup %3772  ;;  %3782 = vtanh.f32 %v3332_v55  ;;  %v3443_v38 = vpop.f32.mrb[119].mxu1 }
 0x258   : > { %2916 = vst.msk [vmem:[%s4793_s23 + $0x2c0] sm:$0xff] %vm1170_vm7, %v3773_v37  ;;  %3784 = vtanh.f32 %v3441_v23  ;;  %v3444_v15 = vadd.f32 %v3443_v38, %v3442_v32 }
 0x259   : > { %v3775_v52 = vpop.eup %3774  ;;  %v3333_v27 = vpop.f32.mrb[120].mxu0 }
 0x25a   : > { %v3777_v63 = vpop.eup %3776  ;;  %2917 = vst.msk [vmem:[%s4793_s23 + $0x2c8] sm:$0xff] %vm1170_vm7, %v3775_v52  ;;  %3786 = vtanh.f32 %v3444_v15  ;;  %v3334_v9 = vpop.f32.mrb[121].mxu0 }
 0x25b   : > { %2998 = vst.msk [vmem:[%s4793_s23 + $0x3c0] sm:$0xff] %vm1170_vm7, %v3777_v63  ;;  %v3335_v14 = vadd.f32 %v3334_v9, %v3333_v27  ;;  %v3336_v43 = vpop.f32.mrb[122].mxu0 }
 0x25c   : > { %v3779_v44 = vpop.eup %3778  ;;  %v3337_v42 = vpop.f32.mrb[123].mxu0 }
 0x25d   : > { %v3445_v58 = vpop.f32.mrb[120].mxu1  ;;  %2999 = vst.msk [vmem:[%s4793_s23 + $0x3c8] sm:$0xff] %vm1170_vm7, %v3779_v44  ;;  %3788 = vtanh.f32 %v3335_v14  ;;  %v3338_v22 = vadd.f32 %v3337_v42, %v3336_v43 }
 0x25e   : > { %v3446_v13 = vpop.f32.mrb[121].mxu1 }
 0x25f   : > { %v3447_v50 = vadd.f32 %v3446_v13, %v3445_v58  ;;  %v3448_v16 = vpop.f32.mrb[122].mxu1  ;;  %v3781_v25 = vpop.eup %3780  ;;  %3790 = vtanh.f32 %v3338_v22 }
 0x260   : > { %v3449_v30 = vpop.f32.mrb[123].mxu1  ;;  %2918 = vst.msk [vmem:[%s4793_s23 + $0x2d0] sm:$0xff] %vm1170_vm7, %v3781_v25 }
 0x261   : > { %3792 = vtanh.f32 %v3447_v50  ;;  %v3450_v10 = vadd.f32 %v3449_v30, %v3448_v16  ;;  %v3783_v34 = vpop.eup %3782  ;;  %v3339_v61 = vpop.f32.mrb[124].mxu0 }
 0x262   : > { %v3785_v21 = vpop.eup %3784  ;;  %2919 = vst.msk [vmem:[%s4793_s23 + $0x2d8] sm:$0xff] %vm1170_vm7, %v3783_v34  ;;  %v3340_v60 = vpop.f32.mrb[125].mxu0 }
 0x263   : > { %3794 = vtanh.f32 %v3450_v10  ;;  %3000 = vst.msk [vmem:[%s4793_s23 + $0x3d0] sm:$0xff] %vm1170_vm7, %v3785_v21  ;;  %v3341_v26 = vadd.f32 %v3340_v60, %v3339_v61  ;;  %v3342_v11 = vpop.f32.mrb[126].mxu0 }
 0x264   : > { %v3787_v18 = vpop.eup %3786  ;;  %v3343_v45 = vpop.f32.mrb[127].mxu0 }
 0x265   : > { %v3451_v56 = vpop.f32.mrb[124].mxu1  ;;  %3001 = vst.msk [vmem:[%s4793_s23 + $0x3d8] sm:$0xff] %vm1170_vm7, %v3787_v18  ;;  %3796 = vtanh.f32 %v3341_v26  ;;  %v3344_v54 = vadd.f32 %v3343_v45, %v3342_v11 }
 0x266   : > { %v3452_v28 = vpop.f32.mrb[125].mxu1 }
 0x267   : > { %v3453_v35 = vadd.f32 %v3452_v28, %v3451_v56  ;;  %v3454_v2 = vpop.f32.mrb[126].mxu1  ;;  %v3789_v36 = vpop.eup %3788  ;;  %3798 = vtanh.f32 %v3344_v54 }
 0x268   : > { %v3455_v0 = vpop.f32.mrb[127].mxu1  ;;  %2920 = vst.msk [vmem:[%s4793_s23 + $0x2e0] sm:$0xff] %vm1170_vm7, %v3789_v36 }
 0x269   : > { %3800 = vtanh.f32 %v3453_v35  ;;  %v3456_v46 = vadd.f32 %v3455_v0, %v3454_v2  ;;  %v3791_v57 = vpop.eup %3790 }
 0x26a   : > { %2921 = vst.msk [vmem:[%s4793_s23 + $0x2e8] sm:$0xff] %vm1170_vm7, %v3791_v57 }
 0x26b   : > { %v3793_v3 = vpop.eup %3792  ;;  %3802 = vtanh.f32 %v3456_v46 }
 0x26c   : > { %3002 = vst.msk [vmem:[%s4793_s23 + $0x3e0] sm:$0xff] %vm1170_vm7, %v3793_v3 }
 0x26d   : > { %v3795_v62 = vpop.eup %3794 }
 0x26e   : > { %3003 = vst.msk [vmem:[%s4793_s23 + $0x3e8] sm:$0xff] %vm1170_vm7, %v3795_v62 }
 0x26f   : > { %v3797_v53 = vpop.eup %3796 }
 0x270   : > { %2922 = vst.msk [vmem:[%s4793_s23 + $0x2f0] sm:$0xff] %vm1170_vm7, %v3797_v53 }
 0x271   : > { %v3799_v24 = vpop.eup %3798 }
 0x272   : > { %2923 = vst.msk [vmem:[%s4793_s23 + $0x2f8] sm:$0xff] %vm1170_vm7, %v3799_v24 }
 0x273   : > { %v3801_v6 = vpop.eup %3800 }
 0x274   : > { %3004 = vst.msk [vmem:[%s4793_s23 + $0x3f0] sm:$0xff] %vm1170_vm7, %v3801_v6 }
 0x275   : > { %v3803_v1 = vpop.eup %3802 }
 0x276   : > { %3005 = vst.msk [vmem:[%s4793_s23 + $0x3f8] sm:$0xff] %vm1170_vm7, %v3803_v1 }
 0x277 PF: > { %s12_s9 = sadd.s32 1, %s3822_s9  }
 0x278   : > { %p9_p4 = scmp.ge.s32.totalorder %s12_s9, 4  }
 0x27a   :  { %11 = sbr.rel (!%p9_p4) target bundleno = 1 (0x1), region = 64 }

</bundles_post_ra>
